<compile_context>
chip_gen: v5e
topology: v5e:2x2
jax: 0.10.0
libtpu: 0.0.40
codegen_flags: <defaults>
</compile_context>

<pallas_src>
import functools
import math

import jax
import jax.numpy as jnp
from jax.experimental import pallas as pl
from jax.experimental.pallas import tpu as pltpu

_NEG_INF = -1e30  # large finite negative: NaN-safe masking / init value


# ---------------------------------------------------------------------------
# (a) / (c): tiled GEMM  (C = A @ B), K axis innermost + f32 accumulator
# ---------------------------------------------------------------------------
def _matmul_kernel(a_ref, b_ref, o_ref, acc_ref):
    @pl.when(pl.program_id(2) == 0)
    def _init():
        acc_ref[...] = jnp.zeros_like(acc_ref)

    acc_ref[...] += jnp.dot(a_ref[...], b_ref[...],
                            preferred_element_type=jnp.float32)

    @pl.when(pl.program_id(2) == pl.num_programs(2) - 1)
    def _store():
        o_ref[...] = acc_ref[...].astype(o_ref.dtype)


def _pick_tile(dim, want):
    """Largest tile <= want that divides dim; multiples of 128, else full dim."""
    if dim <= want:
        return dim
    t = (want // 128) * 128
    while t >= 128:
        if dim % t == 0:
            return t
        t -= 128
    return dim  # fall back to full extent (always legal for a BlockSpec)


def _tiled_matmul(a, b, *, tm=512, tn=512, tk=512):
    M, K = a.shape
    K2, N = b.shape
    assert K == K2
    tm, tn, tk = _pick_tile(M, tm), _pick_tile(N, tn), _pick_tile(K, tk)
    # Double-buffered 512-class bf16 tiles + f32 accumulator are only a few
    # MiB -> comfortably inside the default scoped VMEM on v5e/v6e/v7x.
    return pl.pallas_call(
        _matmul_kernel,
        out_shape=jax.ShapeDtypeStruct((M, N), a.dtype),
        grid_spec=pltpu.PrefetchScalarGridSpec(
            num_scalar_prefetch=0,
            grid=(M // tm, N // tn, K // tk),
            in_specs=[
                pl.BlockSpec((tm, tk), lambda i, j, k: (i, k)),
                pl.BlockSpec((tk, tn), lambda i, j, k: (k, j)),
            ],
            out_specs=pl.BlockSpec((tm, tn), lambda i, j, k: (i, j)),
            scratch_shapes=[pltpu.VMEM((tm, tn), jnp.float32)],
        ),
        compiler_params=pltpu.CompilerParams(
            dimension_semantics=("parallel", "parallel", "arbitrary")),
    )(a, b)


# ---------------------------------------------------------------------------
# (b): flash attention, in-kernel causal kv loop (trip count qi + 1)
# ---------------------------------------------------------------------------
def _flash_kernel(q_ref, k_ref, v_ref, o_ref, m_sc, l_sc, acc_sc, *, blk, hd):
    # q_ref : (blk, hd)  query block (head-addressed column slice of qkv2d)
    # k_ref : (T, hd)    full keys for this (batch, head), resident in VMEM
    # v_ref : (T, hd)    full values for this (batch, head)
    qi = pl.program_id(2)

    # Fresh softmax state per grid step (no reduction grid axis here).
    m_sc[...] = jnp.full_like(m_sc, _NEG_INF)
    l_sc[...] = jnp.zeros_like(l_sc)
    acc_sc[...] = jnp.zeros_like(acc_sc)

    # Lower-triangular mask for the single diagonal kv block; built once per
    # grid step (VPU) and reused across the whole kv loop.
    row = jax.lax.broadcasted_iota(jnp.int32, (blk, blk), 0)
    col = jax.lax.broadcasted_iota(jnp.int32, (blk, blk), 1)
    diag_mask = col <= row

    lanes = m_sc.shape[-1]

    def kv_step(j, carry):
        start = pl.multiple_of(j * blk, blk)
        q = q_ref[...]                                   # (blk, hd)
        k_blk = k_ref[pl.ds(start, blk), :]              # (blk, hd)
        v_blk = v_ref[pl.ds(start, blk), :]              # (blk, hd)

        # q @ k^T via dot_general contracting last dims (no in-kernel .T);
        # f32 accumulation regardless of input dtype.
        s = jax.lax.dot_general(
            q, k_blk, dimension_numbers=(((1,), (1,)), ((), ())),
            preferred_element_type=jnp.float32)          # (blk, blk)

        # Single-path causal mask: blocks strictly below the diagonal
        # (j < qi) keep everything, the diagonal block is lower-triangular.
        # Blocks above the diagonal are never visited (loop bound qi + 1).
        s = jnp.where((j < qi) | diag_mask, s, _NEG_INF)

        m_prev = m_sc[...]                               # (blk, 128) lane-rep
        m_new = jnp.maximum(m_prev, jnp.max(s, axis=-1, keepdims=True))
        alpha = jnp.exp(m_prev - m_new)                  # (blk, 128) lane-rep
        p = jnp.exp(s - m_new[:, 0:1])                   # (blk, blk)

        l_sc[...] = alpha * l_sc[...] + jnp.sum(p, axis=-1, keepdims=True)
        alpha_o = alpha if hd == lanes else alpha[:, 0:1]
        acc_sc[...] = alpha_o * acc_sc[...] + jnp.dot(
            p.astype(v_blk.dtype), v_blk, preferred_element_type=jnp.float32)
        m_sc[...] = m_new
        return carry

    jax.lax.fori_loop(0, qi + 1, kv_step, 0)

    inv_l = pl.reciprocal(l_sc[...], approx=True)        # EUP, ~free slot
    inv_o = inv_l if hd == lanes else inv_l[:, 0:1]
    o_ref[...] = (acc_sc[...] * inv_o).astype(o_ref.dtype)


def _flash_attention(qkv2d, *, batch, seq, n_heads, head_dim, block_q=512):
    """qkv2d: (B*T, 3C) output of the qkv GEMM.  Returns (B*T, C)."""
    BT, three_c = qkv2d.shape
    H, hd, T = n_heads, head_dim, seq
    C = three_c // 3
    assert BT == batch * T and C == H * hd
    assert hd % 128 == 0, "head_dim must be lane-dense (multiple of 128)"
    blk = min(block_q, T)
    assert T % blk == 0 and blk % 8 == 0
    nq = T // blk

    kernel = functools.partial(_flash_kernel, blk=blk, hd=hd)

    # K/V residency: (T, hd) per operand, reused across all q blocks of a
    # (batch, head).  At T ~ 8K bf16 this is ~2 MiB per operand -- fine on all
    # generations.  For very long T on v7x (64 MiB VMEM), window the kv axis
    # (e.g. pltpu.emit_pipeline over kv slabs) instead of full residency.
    return pl.pallas_call(
        kernel,
        out_shape=jax.ShapeDtypeStruct((BT, C), qkv2d.dtype),
        grid_spec=pltpu.PrefetchScalarGridSpec(
            num_scalar_prefetch=0,
            grid=(batch, H, nq),
            in_specs=[
                # q: head h -> column block h of the (B*T, 3C) buffer
                pl.BlockSpec((blk, hd), lambda b, h, qi: (b * nq + qi, h)),
                # k: head h -> column block H + h (constant over qi -> no re-DMA)
                pl.BlockSpec((T, hd), lambda b, h, qi: (b, H + h)),
                # v: head h -> column block 2H + h
                pl.BlockSpec((T, hd), lambda b, h, qi: (b, 2 * H + h)),
            ],
            # write directly as (B*T, C): column block h == output head slot
            out_specs=pl.BlockSpec((blk, hd), lambda b, h, qi: (b * nq + qi, h)),
            scratch_shapes=[
                pltpu.VMEM((blk, 128), jnp.float32),  # running max (lane-rep)
                pltpu.VMEM((blk, 128), jnp.float32),  # running denom (lane-rep)
                pltpu.VMEM((blk, hd), jnp.float32),   # output accumulator
            ],
        ),
        compiler_params=pltpu.CompilerParams(
            dimension_semantics=("parallel", "parallel", "arbitrary")),
    )(qkv2d, qkv2d, qkv2d)


# ---------------------------------------------------------------------------
# Weight preparation (hoisted out of the forward path -- call once at init)
# ---------------------------------------------------------------------------
def prepare_weights(w_qkv, w_o, n_heads, dtype=jnp.bfloat16):
    """torch Linear weights (out, in) -> pre-transposed, scale-folded, cast."""
    three_c, C = w_qkv.shape
    assert three_c == 3 * C and w_o.shape == (C, C) and C % n_heads == 0
    hd = C // n_heads
    scale = 1.0 / math.sqrt(hd)
    w_qkv_t = jnp.transpose(w_qkv).astype(jnp.float32)       # (C, 3C)
    w_qkv_t = w_qkv_t.at[:, :C].multiply(scale)              # fold 1/sqrt(hd) into q
    w_o_t = jnp.transpose(w_o)                               # (C, C)
    return w_qkv_t.astype(dtype), w_o_t.astype(dtype)


# ---------------------------------------------------------------------------
# Full module forward (matches torch CausalSelfAttn.forward)
# ---------------------------------------------------------------------------
def causal_self_attn(x, w_qkv_t, w_o_t, n_heads, *, block_q=512):
    B, T, C = x.shape
    assert w_qkv_t.shape == (C, 3 * C) and w_o_t.shape == (C, C)
    assert C % n_heads == 0
    hd = C // n_heads

    x2d = x.reshape(B * T, C).astype(w_qkv_t.dtype)           # free reshape
    qkv2d = _tiled_matmul(x2d, w_qkv_t)                       # (B*T, 3C)
    y2d = _flash_attention(qkv2d, batch=B, seq=T, n_heads=n_heads,
                           head_dim=hd, block_q=block_q)      # (B*T, C)
    out = _tiled_matmul(y2d, w_o_t)                           # (B*T, C)
    return out.reshape(B, T, C)                               # free reshape


# ---------------------------------------------------------------------------
# Pure-JAX reference (high precision) for correctness checking
# ---------------------------------------------------------------------------
def _reference(x, w_qkv, w_o, n_heads):
    B, T, C = x.shape
    hd = C // n_heads
    hp = jax.lax.Precision.HIGHEST
    qkv = jnp.einsum('btc,oc->bto', x, w_qkv, precision=hp)          # (B,T,3C)
    q = qkv[..., 0 * C:1 * C].reshape(B, T, n_heads, hd)
    k = qkv[..., 1 * C:2 * C].reshape(B, T, n_heads, hd)
    v = qkv[..., 2 * C:3 * C].reshape(B, T, n_heads, hd)
    scores = jnp.einsum('bqhd,bkhd->bhqk', q, k, precision=hp) / math.sqrt(hd)
    mask = jnp.tril(jnp.ones((T, T), dtype=bool))
    scores = jnp.where(mask[None, None], scores, -jnp.inf)
    p = jax.nn.softmax(scores, axis=-1)
    y = jnp.einsum('bhqk,bkhd->bqhd', p, v, precision=hp).reshape(B, T, C)
    return jnp.einsum('btc,oc->bto', y, w_o, precision=hp)


if __name__ == "__main__":
    # Small but blocking-meaningful shapes: head_dim = 128 (lane-dense),
    # block_q = 128 with T = 256 -> nq = 2, exercising a diagonal-only q block
    # and a q block with both an unmasked off-diagonal kv step and the masked
    # diagonal kv step inside the in-kernel loop.
    B, T, C, n_heads = 2, 256, 256, 2

    key = jax.random.PRNGKey(0)
    kx, kqkv, ko = jax.random.split(key, 3)

    x = jax.random.normal(kx, (B, T, C), dtype=jnp.float32)
    # torch Linear layout: (out_features, in_features)
    w_qkv = jax.random.normal(kqkv, (3 * C, C), dtype=jnp.float32) / math.sqrt(C)
    w_o = jax.random.normal(ko, (C, C), dtype=jnp.float32) / math.sqrt(C)

    # Weight prep hoisted out of the forward path; bf16 compute end-to-end.
    w_qkv_t, w_o_t = prepare_weights(w_qkv, w_o, n_heads, dtype=jnp.bfloat16)

    fwd = jax.jit(lambda xx, wq, wo: causal_self_attn(xx, wq, wo, n_heads,
                                                      block_q=128))
    out = jax.block_until_ready(fwd(x, w_qkv_t, w_o_t))
    assert out.shape == (B, T, C)

    # Reference on the SAME bf16-quantized inputs (isolates kernel error from
    # the intentional bf16 quantization), math in f32.
    xq = x.astype(jnp.bfloat16).astype(jnp.float32)
    wqkv_q = w_qkv.astype(jnp.bfloat16).astype(jnp.float32)
    wo_q = w_o.astype(jnp.bfloat16).astype(jnp.float32)
    ref = _reference(xq, wqkv_q, wo_q, n_heads)

    out_f32 = out.astype(jnp.float32)
    max_err = float(jnp.max(jnp.abs(out_f32 - ref)))
    # Tolerance covers bf16 storage of intermediates, MXU bf16 matmuls (f32
    # accumulation), the scale-fold rounding and the approximate EUP
    # reciprocal; semantic bugs give O(1) errors.
    assert jnp.allclose(out_f32, ref, atol=5e-2, rtol=5e-2), (
        f"mismatch vs reference (max abs err {max_err})")

    print("KERNEL_OK")
</pallas_src>

<mosaic_0001>
module attributes {stable_mosaic.version = 11 : i64} {
  func.func @_flash_kernel(%arg0: i32, %arg1: i32, %arg2: i32, %arg3: memref<128x128xbf16, #tpu.memory_space<vmem>>, %arg4: memref<256x128xbf16, #tpu.memory_space<vmem>>, %arg5: memref<256x128xbf16, #tpu.memory_space<vmem>>, %arg6: memref<128x128xbf16, #tpu.memory_space<vmem>>, %arg7: memref<128x128xf32, #tpu.memory_space<vmem>>, %arg8: memref<128x128xf32, #tpu.memory_space<vmem>>, %arg9: memref<128x128xf32, #tpu.memory_space<vmem>>) attributes {dimension_semantics = [#tpu.dimension_semantics<parallel>, #tpu.dimension_semantics<parallel>, #tpu.dimension_semantics<arbitrary>], iteration_bounds = array<i64: 2, 2, 2>, scalar_prefetch = 0 : i64, scratch_operands = 3 : i64, tpu.core_type = #tpu.core_type<tc>, window_params = [{transform_indices = @transform_0, window_bounds = array<i64: 128, 128>}, {transform_indices = @transform_1, window_bounds = array<i64: 256, 128>}, {transform_indices = @transform_2, window_bounds = array<i64: 256, 128>}, {transform_indices = @transform_3, window_bounds = array<i64: 128, 128>}]} {
    %cst = arith.constant -1.000000e+30 : f32
    %0 = vector.broadcast %cst : f32 to vector<128x128xf32>
    %c0 = arith.constant 0 : index
    %c0_0 = arith.constant 0 : index
    %1 = vector.load %arg7[%c0, %c0_0] : memref<128x128xf32, #tpu.memory_space<vmem>>, vector<128x128xf32>
    tpu.vector_store %arg7[%c0, %c0_0], %0 {strides = array<i32>} : memref<128x128xf32, #tpu.memory_space<vmem>>, vector<128x128xf32>,
    %cst_1 = arith.constant 0.000000e+00 : f32
    %2 = vector.broadcast %cst_1 : f32 to vector<128x128xf32>
    %c0_2 = arith.constant 0 : index
    %c0_3 = arith.constant 0 : index
    %3 = vector.load %arg8[%c0_2, %c0_3] : memref<128x128xf32, #tpu.memory_space<vmem>>, vector<128x128xf32>
    tpu.vector_store %arg8[%c0_2, %c0_3], %2 {strides = array<i32>} : memref<128x128xf32, #tpu.memory_space<vmem>>, vector<128x128xf32>,
    %cst_4 = arith.constant 0.000000e+00 : f32
    %4 = vector.broadcast %cst_4 : f32 to vector<128x128xf32>
    %c0_5 = arith.constant 0 : index
    %c0_6 = arith.constant 0 : index
    %5 = vector.load %arg9[%c0_5, %c0_6] : memref<128x128xf32, #tpu.memory_space<vmem>>, vector<128x128xf32>
    tpu.vector_store %arg9[%c0_5, %c0_6], %4 {strides = array<i32>} : memref<128x128xf32, #tpu.memory_space<vmem>>, vector<128x128xf32>,
    %6 = tpu.iota {dimensions = array<i32: 0>} : vector<128x128xi32>
    %7 = tpu.iota {dimensions = array<i32: 1>} : vector<128x128xi32>
    %8 = arith.cmpi sle, %7, %6 : vector<128x128xi32>
    %c1_i32 = arith.constant 1 : i32
    %9 = arith.addi %arg2, %c1_i32 : i32
    %c0_i32 = arith.constant 0 : i32
    %c0_i32_7 = arith.constant 0 : i32
    %10 = arith.subi %9, %c0_i32_7 : i32
    %11 = arith.addi %c0_i32_7, %10 : i32
    %c1_i32_8 = arith.constant 1 : i32
    scf.for %arg10 = %c0_i32_7 to %11 step %c1_i32_8  : i32 {
      %c128_i32 = arith.constant 128 : i32
      %18 = arith.muli %arg10, %c128_i32 : i32
      %19 = tpu.assume_multiple %18, 128 : i32
      %c0_15 = arith.constant 0 : index
      %c0_16 = arith.constant 0 : index
      %20 = vector.load %arg3[%c0_15, %c0_16] : memref<128x128xbf16, #tpu.memory_space<vmem>>, vector<128x128xbf16>
      %21 = arith.index_cast %19 : i32 to index
      %c0_17 = arith.constant 0 : index
      %22 = vector.load %arg4[%21, %c0_17] : memref<256x128xbf16, #tpu.memory_space<vmem>>, vector<128x128xbf16>
      %23 = arith.index_cast %19 : i32 to index
      %c0_18 = arith.constant 0 : index
      %24 = vector.load %arg5[%23, %c0_18] : memref<256x128xbf16, #tpu.memory_space<vmem>>, vector<128x128xbf16>
      %cst_19 = arith.constant dense<0.000000e+00> : vector<128x128xf32>
      %25 = tpu.matmul %20, %22, %cst_19 {dimension_numbers = #tpu.dot_dimension_numbers<[1], [1], [0], [0], [0, 0, 1, 0], [], []>} : vector<128x128xbf16>, vector<128x128xbf16>, vector<128x128xf32> -> vector<128x128xf32>
      %26 = arith.cmpi slt, %arg10, %arg2 : i32
      %27 = vector.broadcast %26 : i1 to vector<128x128xi1>
      %28 = arith.ori %27, %8 : vector<128x128xi1>
      %cst_20 = arith.constant -1.000000e+30 : f32
      %29 = vector.broadcast %cst_20 : f32 to vector<128x128xf32>
      %30 = arith.select %28, %25, %29 : vector<128x128xi1>, vector<128x128xf32>
      %c0_21 = arith.constant 0 : index
      %c0_22 = arith.constant 0 : index
      %31 = vector.load %arg7[%c0_21, %c0_22] : memref<128x128xf32, #tpu.memory_space<vmem>>, vector<128x128xf32>
      %cst_23 = arith.constant dense<0xFF800000> : vector<128xf32>
      %32 = vector.multi_reduction <maximumf>, %30, %cst_23 [1] : vector<128x128xf32> to vector<128xf32>
      %33 = vector.shape_cast %32 : vector<128xf32> to vector<128x1xf32>
      %34 = vector.broadcast %33 : vector<128x1xf32> to vector<128x128xf32>
      %35 = arith.maximumf %31, %34 : vector<128x128xf32>
      %36 = arith.subf %31, %35 : vector<128x128xf32>
      %37 = math.exp %36 : vector<128x128xf32>
      %38 = vector.extract_strided_slice %35 {offsets = [0, 0], sizes = [128, 1], strides = [1, 1]} : vector<128x128xf32> to vector<128x1xf32>
      %39 = vector.broadcast %38 : vector<128x1xf32> to vector<128x128xf32>
      %40 = arith.subf %30, %39 : vector<128x128xf32>
      %41 = math.exp %40 : vector<128x128xf32>
      %c0_24 = arith.constant 0 : index
      %c0_25 = arith.constant 0 : index
      %42 = vector.load %arg8[%c0_24, %c0_25] : memref<128x128xf32, #tpu.memory_space<vmem>>, vector<128x128xf32>
      %43 = arith.mulf %37, %42 : vector<128x128xf32>
      %cst_26 = arith.constant dense<0.000000e+00> : vector<128xf32>
      %44 = vector.multi_reduction <add>, %41, %cst_26 [1] : vector<128x128xf32> to vector<128xf32>
      %45 = vector.shape_cast %44 : vector<128xf32> to vector<128x1xf32>
      %46 = vector.broadcast %45 : vector<128x1xf32> to vector<128x128xf32>
      %47 = arith.addf %43, %46 : vector<128x128xf32>
      %c0_27 = arith.constant 0 : index
      %c0_28 = arith.constant 0 : index
      %48 = vector.load %arg8[%c0_27, %c0_28] : memref<128x128xf32, #tpu.memory_space<vmem>>, vector<128x128xf32>
      tpu.vector_store %arg8[%c0_27, %c0_28], %47 {strides = array<i32>} : memref<128x128xf32, #tpu.memory_space<vmem>>, vector<128x128xf32>,
      %c0_29 = arith.constant 0 : index
      %c0_30 = arith.constant 0 : index
      %49 = vector.load %arg9[%c0_29, %c0_30] : memref<128x128xf32, #tpu.memory_space<vmem>>, vector<128x128xf32>
      %50 = arith.mulf %37, %49 : vector<128x128xf32>
      %51 = arith.truncf %41 : vector<128x128xf32> to vector<128x128xbf16>
      %cst_31 = arith.constant dense<0.000000e+00> : vector<128x128xf32>
      %52 = tpu.matmul %51, %24, %cst_31 {dimension_numbers = #tpu.dot_dimension_numbers<[1], [0], [0], [1], [0, 0, 1, 1], [], []>} : vector<128x128xbf16>, vector<128x128xbf16>, vector<128x128xf32> -> vector<128x128xf32>
      %53 = arith.addf %50, %52 : vector<128x128xf32>
      %c0_32 = arith.constant 0 : index
      %c0_33 = arith.constant 0 : index
      %54 = vector.load %arg9[%c0_32, %c0_33] : memref<128x128xf32, #tpu.memory_space<vmem>>, vector<128x128xf32>
      tpu.vector_store %arg9[%c0_32, %c0_33], %53 {strides = array<i32>} : memref<128x128xf32, #tpu.memory_space<vmem>>, vector<128x128xf32>,
      %c0_34 = arith.constant 0 : index
      %c0_35 = arith.constant 0 : index
      %55 = vector.load %arg7[%c0_34, %c0_35] : memref<128x128xf32, #tpu.memory_space<vmem>>, vector<128x128xf32>
      tpu.vector_store %arg7[%c0_34, %c0_35], %35 {strides = array<i32>} : memref<128x128xf32, #tpu.memory_space<vmem>>, vector<128x128xf32>,
    }
    %c0_9 = arith.constant 0 : index
    %c0_10 = arith.constant 0 : index
    %12 = vector.load %arg8[%c0_9, %c0_10] : memref<128x128xf32, #tpu.memory_space<vmem>>, vector<128x128xf32>
    %13 = tpu.reciprocal %12 {approx = true} : vector<128x128xf32> -> vector<128x128xf32>
    %c0_11 = arith.constant 0 : index
    %c0_12 = arith.constant 0 : index
    %14 = vector.load %arg9[%c0_11, %c0_12] : memref<128x128xf32, #tpu.memory_space<vmem>>, vector<128x128xf32>
    %15 = arith.mulf %14, %13 : vector<128x128xf32>
    %16 = arith.truncf %15 : vector<128x128xf32> to vector<128x128xbf16>
    %c0_13 = arith.constant 0 : index
    %c0_14 = arith.constant 0 : index
    %17 = vector.load %arg6[%c0_13, %c0_14] : memref<128x128xbf16, #tpu.memory_space<vmem>>, vector<128x128xbf16>
    tpu.vector_store %arg6[%c0_13, %c0_14], %16 {strides = array<i32>} : memref<128x128xbf16, #tpu.memory_space<vmem>>, vector<128x128xbf16>,
    return
  }
  func.func @transform_0(%arg0: i32, %arg1: i32, %arg2: i32) -> (i32, i32) {
    %c2_i32 = arith.constant 2 : i32
    %0 = arith.muli %arg0, %c2_i32 : i32
    %1 = arith.addi %0, %arg2 : i32
    %c0_i32 = arith.constant 0 : i32
    return %1, %arg1 : i32, i32
  }
  func.func @transform_1(%arg0: i32, %arg1: i32, %arg2: i32) -> (i32, i32) {
    %c2_i32 = arith.constant 2 : i32
    %0 = arith.addi %c2_i32, %arg1 : i32
    %c0_i32 = arith.constant 0 : i32
    return %arg0, %0 : i32, i32
  }
  func.func @transform_2(%arg0: i32, %arg1: i32, %arg2: i32) -> (i32, i32) {
    %c4_i32 = arith.constant 4 : i32
    %0 = arith.addi %c4_i32, %arg1 : i32
    %c0_i32 = arith.constant 0 : i32
    return %arg0, %0 : i32, i32
  }
  func.func @transform_3(%arg0: i32, %arg1: i32, %arg2: i32) -> (i32, i32) {
    %c2_i32 = arith.constant 2 : i32
    %0 = arith.muli %arg0, %c2_i32 : i32
    %1 = arith.addi %0, %arg2 : i32
    %c0_i32 = arith.constant 0 : i32
    return %1, %arg1 : i32, i32
  }
}

module attributes {stable_mosaic.version = 11 : i64} {
  func.func @_matmul_kernel(%arg0: i32, %arg1: i32, %arg2: i32, %arg3: memref<512x256xbf16, #tpu.memory_space<vmem>>, %arg4: memref<256x384xbf16, #tpu.memory_space<vmem>>, %arg5: memref<512x384xbf16, #tpu.memory_space<vmem>>, %arg6: memref<512x384xf32, #tpu.memory_space<vmem>>) attributes {dimension_semantics = [#tpu.dimension_semantics<parallel>, #tpu.dimension_semantics<parallel>, #tpu.dimension_semantics<arbitrary>], iteration_bounds = array<i64: 1, 2, 1>, scalar_prefetch = 0 : i64, scratch_operands = 1 : i64, tpu.core_type = #tpu.core_type<tc>, window_params = [{transform_indices = @transform_0, window_bounds = array<i64: 512, 256>}, {transform_indices = @transform_1, window_bounds = array<i64: 256, 384>}, {transform_indices = @transform_2, window_bounds = array<i64: 512, 384>}]} {
    %c0_i32 = arith.constant 0 : i32
    %0 = arith.cmpi eq, %arg2, %c0_i32 : i32
    %1 = arith.extui %0 : i1 to i32
    %c0_i32_0 = arith.constant 0 : i32
    %2 = arith.cmpi ne, %1, %c0_i32_0 : i32
    scf.if %2 {
      %cst_10 = arith.constant 0.000000e+00 : f32
      %12 = vector.broadcast %cst_10 : f32 to vector<512x384xf32>
      %c0_11 = arith.constant 0 : index
      %c0_12 = arith.constant 0 : index
      %13 = vector.load %arg6[%c0_11, %c0_12] : memref<512x384xf32, #tpu.memory_space<vmem>>, vector<512x384xf32>
      tpu.vector_store %arg6[%c0_11, %c0_12], %12 {strides = array<i32>} : memref<512x384xf32, #tpu.memory_space<vmem>>, vector<512x384xf32>,
    } else {
    }
    %c0 = arith.constant 0 : index
    %c0_1 = arith.constant 0 : index
    %3 = vector.load %arg6[%c0, %c0_1] : memref<512x384xf32, #tpu.memory_space<vmem>>, vector<512x384xf32>
    %c0_2 = arith.constant 0 : index
    %c0_3 = arith.constant 0 : index
    %4 = vector.load %arg3[%c0_2, %c0_3] : memref<512x256xbf16, #tpu.memory_space<vmem>>, vector<512x256xbf16>
    %c0_4 = arith.constant 0 : index
    %c0_5 = arith.constant 0 : index
    %5 = vector.load %arg4[%c0_4, %c0_5] : memref<256x384xbf16, #tpu.memory_space<vmem>>, vector<256x384xbf16>
    %cst = arith.constant dense<0.000000e+00> : vector<512x384xf32>
    %6 = tpu.matmul %4, %5, %cst {dimension_numbers = #tpu.dot_dimension_numbers<[1], [0], [0], [1], [0, 0, 1, 1], [], []>} : vector<512x256xbf16>, vector<256x384xbf16>, vector<512x384xf32> -> vector<512x384xf32>
    %7 = arith.addf %3, %6 : vector<512x384xf32>
    %c0_6 = arith.constant 0 : index
    %c0_7 = arith.constant 0 : index
    %8 = vector.load %arg6[%c0_6, %c0_7] : memref<512x384xf32, #tpu.memory_space<vmem>>, vector<512x384xf32>
    tpu.vector_store %arg6[%c0_6, %c0_7], %7 {strides = array<i32>} : memref<512x384xf32, #tpu.memory_space<vmem>>, vector<512x384xf32>,
    %c0_i32_8 = arith.constant 0 : i32
    %9 = arith.cmpi eq, %arg2, %c0_i32_8 : i32
    %10 = arith.extui %9 : i1 to i32
    %c0_i32_9 = arith.constant 0 : i32
    %11 = arith.cmpi ne, %10, %c0_i32_9 : i32
    scf.if %11 {
      %c0_10 = arith.constant 0 : index
      %c0_11 = arith.constant 0 : index
      %12 = vector.load %arg6[%c0_10, %c0_11] : memref<512x384xf32, #tpu.memory_space<vmem>>, vector<512x384xf32>
      %13 = arith.truncf %12 : vector<512x384xf32> to vector<512x384xbf16>
      %c0_12 = arith.constant 0 : index
      %c0_13 = arith.constant 0 : index
      %14 = vector.load %arg5[%c0_12, %c0_13] : memref<512x384xbf16, #tpu.memory_space<vmem>>, vector<512x384xbf16>
      tpu.vector_store %arg5[%c0_12, %c0_13], %13 {strides = array<i32>} : memref<512x384xbf16, #tpu.memory_space<vmem>>, vector<512x384xbf16>,
    } else {
    }
    return
  }
  func.func @transform_0(%arg0: i32, %arg1: i32, %arg2: i32) -> (i32, i32) {
    %c0_i32 = arith.constant 0 : i32
    return %arg0, %arg2 : i32, i32
  }
  func.func @transform_1(%arg0: i32, %arg1: i32, %arg2: i32) -> (i32, i32) {
    %c0_i32 = arith.constant 0 : i32
    return %arg2, %arg1 : i32, i32
  }
  func.func @transform_2(%arg0: i32, %arg1: i32, %arg2: i32) -> (i32, i32) {
    %c0_i32 = arith.constant 0 : i32
    return %arg0, %arg1 : i32, i32
  }
}

module attributes {stable_mosaic.version = 11 : i64} {
  func.func @_matmul_kernel(%arg0: i32, %arg1: i32, %arg2: i32, %arg3: memref<512x256xbf16, #tpu.memory_space<vmem>>, %arg4: memref<256x256xbf16, #tpu.memory_space<vmem>>, %arg5: memref<512x256xbf16, #tpu.memory_space<vmem>>, %arg6: memref<512x256xf32, #tpu.memory_space<vmem>>) attributes {dimension_semantics = [#tpu.dimension_semantics<parallel>, #tpu.dimension_semantics<parallel>, #tpu.dimension_semantics<arbitrary>], iteration_bounds = array<i64: 1, 1, 1>, scalar_prefetch = 0 : i64, scratch_operands = 1 : i64, tpu.core_type = #tpu.core_type<tc>, window_params = [{transform_indices = @transform_0, window_bounds = array<i64: 512, 256>}, {transform_indices = @transform_1, window_bounds = array<i64: 256, 256>}, {transform_indices = @transform_2, window_bounds = array<i64: 512, 256>}]} {
    %c0_i32 = arith.constant 0 : i32
    %0 = arith.cmpi eq, %arg2, %c0_i32 : i32
    %1 = arith.extui %0 : i1 to i32
    %c0_i32_0 = arith.constant 0 : i32
    %2 = arith.cmpi ne, %1, %c0_i32_0 : i32
    scf.if %2 {
      %cst_10 = arith.constant 0.000000e+00 : f32
      %12 = vector.broadcast %cst_10 : f32 to vector<512x256xf32>
      %c0_11 = arith.constant 0 : index
      %c0_12 = arith.constant 0 : index
      %13 = vector.load %arg6[%c0_11, %c0_12] : memref<512x256xf32, #tpu.memory_space<vmem>>, vector<512x256xf32>
      tpu.vector_store %arg6[%c0_11, %c0_12], %12 {strides = array<i32>} : memref<512x256xf32, #tpu.memory_space<vmem>>, vector<512x256xf32>,
    } else {
    }
    %c0 = arith.constant 0 : index
    %c0_1 = arith.constant 0 : index
    %3 = vector.load %arg6[%c0, %c0_1] : memref<512x256xf32, #tpu.memory_space<vmem>>, vector<512x256xf32>
    %c0_2 = arith.constant 0 : index
    %c0_3 = arith.constant 0 : index
    %4 = vector.load %arg3[%c0_2, %c0_3] : memref<512x256xbf16, #tpu.memory_space<vmem>>, vector<512x256xbf16>
    %c0_4 = arith.constant 0 : index
    %c0_5 = arith.constant 0 : index
    %5 = vector.load %arg4[%c0_4, %c0_5] : memref<256x256xbf16, #tpu.memory_space<vmem>>, vector<256x256xbf16>
    %cst = arith.constant dense<0.000000e+00> : vector<512x256xf32>
    %6 = tpu.matmul %4, %5, %cst {dimension_numbers = #tpu.dot_dimension_numbers<[1], [0], [0], [1], [0, 0, 1, 1], [], []>} : vector<512x256xbf16>, vector<256x256xbf16>, vector<512x256xf32> -> vector<512x256xf32>
    %7 = arith.addf %3, %6 : vector<512x256xf32>
    %c0_6 = arith.constant 0 : index
    %c0_7 = arith.constant 0 : index
    %8 = vector.load %arg6[%c0_6, %c0_7] : memref<512x256xf32, #tpu.memory_space<vmem>>, vector<512x256xf32>
    tpu.vector_store %arg6[%c0_6, %c0_7], %7 {strides = array<i32>} : memref<512x256xf32, #tpu.memory_space<vmem>>, vector<512x256xf32>,
    %c0_i32_8 = arith.constant 0 : i32
    %9 = arith.cmpi eq, %arg2, %c0_i32_8 : i32
    %10 = arith.extui %9 : i1 to i32
    %c0_i32_9 = arith.constant 0 : i32
    %11 = arith.cmpi ne, %10, %c0_i32_9 : i32
    scf.if %11 {
      %c0_10 = arith.constant 0 : index
      %c0_11 = arith.constant 0 : index
      %12 = vector.load %arg6[%c0_10, %c0_11] : memref<512x256xf32, #tpu.memory_space<vmem>>, vector<512x256xf32>
      %13 = arith.truncf %12 : vector<512x256xf32> to vector<512x256xbf16>
      %c0_12 = arith.constant 0 : index
      %c0_13 = arith.constant 0 : index
      %14 = vector.load %arg5[%c0_12, %c0_13] : memref<512x256xbf16, #tpu.memory_space<vmem>>, vector<512x256xbf16>
      tpu.vector_store %arg5[%c0_12, %c0_13], %13 {strides = array<i32>} : memref<512x256xbf16, #tpu.memory_space<vmem>>, vector<512x256xbf16>,
    } else {
    }
    return
  }
  func.func @transform_0(%arg0: i32, %arg1: i32, %arg2: i32) -> (i32, i32) {
    %c0_i32 = arith.constant 0 : i32
    return %arg0, %arg2 : i32, i32
  }
  func.func @transform_1(%arg0: i32, %arg1: i32, %arg2: i32) -> (i32, i32) {
    %c0_i32 = arith.constant 0 : i32
    return %arg2, %arg1 : i32, i32
  }
  func.func @transform_2(%arg0: i32, %arg1: i32, %arg2: i32) -> (i32, i32) {
    %c0_i32 = arith.constant 0 : i32
    return %arg0, %arg1 : i32, i32
  }
}

</mosaic_0001>

<bundles_post_ra>
// kernel: _lambda_.4
= control target key start
LH: loop header
LB: loop body
LE: loop exit
PB: predicated region body
PF: predicated region fallthrough
CT: control target
= control target key end

     0   :  { %s3468_s0 = inlined_call_operand.vmem [shape: bf16[512,768], index: 0, kind: input, shape index: {}, may-alias: {0,1,2}]   ;;  %s3469_s1 = inlined_call_operand.vmem [shape: bf16[512,768], index: 1, kind: input, shape index: {}, may-alias: {0,1,2}]   ;;  %s3470_s2 = inlined_call_operand.vmem [shape: bf16[512,768], index: 2, kind: input, shape index: {}, may-alias: {0,1,2}]   ;;  %s3471_s3 = inlined_call_operand.vmem [shape: bf16[512,256], index: 3, kind: output, shape index: {}]  }
   0x1   :  { %3493 = sst [smem:[#allocation30_spill]] %s3471_s3 }
   0x2   :  { %s2526_s12 = smov 0   ;;  %s2528_s13 = smov 0  }
   0x3   :  { %s2530_s14 = smov 0   ;;  %s2532_s15 = smov 0  }
   0x4   :  { %s2534_s16 = smov 0   ;;  %s2536_s17 = smov 0  }
   0x5   :  { %s2538_s18 = smov 0   ;;  %s2540_s19 = smov 0  }
   0x6   :  { %s2542_s20 = smov 0   ;;  %s2544_s21 = smov 0  }
   0x7   :  { %s2546_s22 = smov 0   ;;  %s2548_s23 = smov 0  }
   0x8   :  { %s2550_s24 = smov 0  }
   0x9 LB: > { %3494 = sst [smem:[#allocation9_spill]] %s2473_s18  ;;  %s25_s26 = sadd.s32 1, %s2485_s21  ;;  %s2497_s24 = sphi %s2550_s24, %s13_s24   ;;  %s2493_s23 = sphi %s2548_s23, %s3577_s23   ;;  %s2489_s22 = sphi %s2546_s22, %s3576_s22   ;;  %s2485_s21 = sphi %s2544_s21, %s3564_s21   ;;  %s2481_s20 = sphi %s2542_s20, %s3575_s20   ;;  %s2477_s19 = sphi %s2540_s19, %s3574_s19   ;;  %s2473_s18 = sphi %s2538_s18, %s3573_s18   ;;  %s2469_s17 = sphi %s2536_s17, %s3572_s17   ;;  %s2465_s16 = sphi %s2534_s16, %s3571_s16   ;;  %s2461_s15 = sphi %s2532_s15, %s3570_s15   ;;  %s2457_s14 = sphi %s2530_s14, %s3569_s14   ;;  %s2453_s13 = sphi %s2528_s13, %s3568_s13   ;;  %s2449_s12 = sphi %s2526_s12, %s3567_s12  }
   0xa   : > { %3495 = sst [smem:[#allocation10_spill]] %s2477_s19  ;;  %p26_p0 = scmp.ge.s32.totalorder %s25_s26, 2 }
   0xb   : > { %3496 = sst [smem:[#allocation11_spill]] %s2481_s20  ;;  %s28_s27 = sadd.s32 1, %s2489_s22 }
   0xc   : > { %3497 = sst [smem:[#allocation12_spill]] %s2485_s21  ;;  %s32_s28 = sadd.s32 1, %s2493_s23 }
   0xd   : > { %s1897_s29 = sshll.u32 %s2493_s23, 1  ;;  %s3579_s26 = smov (%p26_p0, %s25_s26), 0 }
   0xe   : > { %3498 = sst [smem:[#allocation13_spill]] %s3579_s26  ;;  %s3581_s27 = smov (!%p26_p0, %s28_s27), %s2489_s22 }
   0xf   : > { %s2600_s30 = sadd.s32 %s2485_s21, %s1897_s29  ;;  %s45_s4 = sadd.s32 1, %s2469_s17 }
  0x10   : > { %p30_p1 = scmp.ge.s32.totalorder %s3581_s27, 2  ;;  %p52_p2 = scmp.ne.s32.totalorder %s2469_s17, %s2465_s16 }
  0x11   : > { %p53_p3 = scmp.eq.s32.totalorder %s2497_s24, 0  ;;  %s68_s5 = sadd.s32 2, %s2489_s22 }
  0x12   : > { %s3583_s27 = smov (%p30_p1, %s3581_s27), 0  ;;  %s3585_s28 = smov (!%p30_p1, %s32_s28), %s2493_s23 }
  0x13   : > { %s41_s6 = ssub.s32 %s2489_s22, %s3583_s27  ;;  %p2617_p4 = por %p53_p3, %p52_p2 }
  0x14   : > { %p34_p5 = scmp.ge.s32.totalorder %s3585_s28, 2  ;;  %s69_s8 = sadd.s32 2, %s3583_s27 }
  0x15   : > { %s71_s9 = ssub.s32 %s68_s5, %s69_s8  ;;  %s75_s10 = sadd.s32 1, %s2461_s15 }
  0x16   : > { %s3587_s28 = smov (%p34_p5, %s3585_s28), 0  ;;  %p82_p6 = scmp.ne.s32.totalorder %s2461_s15, %s2457_s14 }
  0x17   : > { %3500 = sst [smem:[#allocation14_spill]] %s3587_s28  ;;  %s98_s11 = sadd.s32 4, %s2489_s22 }
  0x18   : > { %s1898_s29 = sshll.u32 %s3587_s28, 1  ;;  %s70_s25 = ssub.s32 %s2493_s23, %s3587_s28 }
  0x19   : > { %s39_s21 = sadd.s32 %s1898_s29, %s3579_s26  ;;  %s72_s3 = sor.u32 %s71_s9, %s70_s25 }
  0x1a   : > { %s40_s19 = ssub.s32 %s2600_s30, %s39_s21  ;;  %p73_p7 = scmp.eq.s32.totalorder %s72_s3, 0 }
  0x1b   : > { %s42_s5 = sor.u32 %s41_s6, %s40_s19  ;;  %p2635_p8 = por %p82_p6, %p53_p3 }
  0x1c   : > { %p43_p9 = scmp.eq.s32.totalorder %s42_s5, 0  ;;  %s99_s20 = sadd.s32 4, %s3583_s27 }
  0x1d   : > { %s2641_s18 = scalar_select %p73_p7, %s2461_s15, %s75_s10  }
  0x1e   : > { %s2644_s28 = scalar_select %p43_p9, %s2469_s17, %s45_s4  }
  0x1f   : > { %s101_s29 = ssub.s32 %s98_s11, %s99_s20  ;;  %s105_s26 = sadd.s32 1, %s2453_s13 }
  0x20   : > { %s102_s9 = sor.u32 %s101_s29, %s70_s25  ;;  %p112_p10 = scmp.ne.s32.totalorder %s2453_s13, %s2449_s12 }
  0x21   : > { %p103_p11 = scmp.eq.s32.totalorder %s102_s9, 0  ;;  %s3502_s21 = sadd.s32 4294967295, %s2497_s24  }
  0x22   : > { %p148_p12 = scmp.eq.s32.totalorder %s3502_s21, 7  ;;  %p2653_p13 = por %p112_p10, %p53_p3 }
  0x23   : > { %s2658_s19 = scalar_select %p103_p11, %s2453_s13, %s105_s26  }
  0x24   : > { %p2663_p0 = por %p148_p12, %p52_p2  ;;  %p1902_p1 = scmp.ge.s32.totalorder %s2497_s24, 8 }
  0x26   : > { %170 = sbr.rel (%p1902_p1) target bundleno = 144 (0x90), region = 16 }
  0x2b   : > { %173 = sbr.rel (!%p2617_p4) target bundleno = 66 (0x42), region = 20  ;;  %s175_s20 = sand.u32 (%p2617_p4), 1, %s2469_s17  }
  0x2c   : > { %s2176_s25 = smul.u32 (%p2617_p4), 96, %s2600_s30  ;;  %s1903_s4 = sshll.u32 (%p2617_p4), %s175_s20, 6 }
  0x2d   : > { %s177_s30 = scalar_lea.vmem (%p2617_p4), [#allocation5], %s1903_s4 }
  0x2e   : > { %s182_s10 = sadd.s32 (%p2617_p4), %s2489_s22, %s2176_s25 }
  0x2f   : > { %s1907_s26 = sshll.u32 (%p2617_p4), %s182_s10, 2 }
  0x30   : > { %s2676_s29 = scalar_lea.vmem %s3468_s0, %s1907_s26 }
  0x31   : > { %v201_v0 = vld [vmem:[%s2676_s29] sm:$0xf]  ;;  %v203_v1 = vld [vmem:[%s2676_s29 + $0x18] sm:$0xf]  ;;  %v205_v2 = vld [vmem:[%s2676_s29 + $0x30] sm:$0xf] }
  0x32   : > { %202 = vst [vmem:[%s177_s30] sm:$0xf] %v201_v0  ;;  %v207_v3 = vld [vmem:[%s2676_s29 + $0x48] sm:$0xf]  ;;  %v209_v4 = vld [vmem:[%s2676_s29 + $0x60] sm:$0xf] }
  0x33   : > { %204 = vst [vmem:[%s177_s30 + $0x4] sm:$0xf] %v203_v1  ;;  %v211_v5 = vld [vmem:[%s2676_s29 + $0x78] sm:$0xf]  ;;  %v213_v6 = vld [vmem:[%s2676_s29 + $0x90] sm:$0xf] }
  0x34   : > { %206 = vst [vmem:[%s177_s30 + $0x8] sm:$0xf] %v205_v2  ;;  %v215_v7 = vld [vmem:[%s2676_s29 + $0xa8] sm:$0xf]  ;;  %v217_v8 = vld [vmem:[%s2676_s29 + $0xc0] sm:$0xf] }
  0x35   : > { %208 = vst [vmem:[%s177_s30 + $0xc] sm:$0xf] %v207_v3  ;;  %v219_v9 = vld [vmem:[%s2676_s29 + $0xd8] sm:$0xf]  ;;  %v221_v10 = vld [vmem:[%s2676_s29 + $0xf0] sm:$0xf] }
  0x36   : > { %210 = vst [vmem:[%s177_s30 + $0x10] sm:$0xf] %v209_v4  ;;  %v223_v11 = vld [vmem:[%s2676_s29 + $0x108] sm:$0xf]  ;;  %v225_v12 = vld [vmem:[%s2676_s29 + $0x120] sm:$0xf] }
  0x37   : > { %212 = vst [vmem:[%s177_s30 + $0x14] sm:$0xf] %v211_v5  ;;  %v227_v13 = vld [vmem:[%s2676_s29 + $0x138] sm:$0xf]  ;;  %v229_v14 = vld [vmem:[%s2676_s29 + $0x150] sm:$0xf] }
  0x38   : > { %214 = vst [vmem:[%s177_s30 + $0x18] sm:$0xf] %v213_v6  ;;  %v231_v15 = vld [vmem:[%s2676_s29 + $0x168] sm:$0xf] }
  0x39   : > { %216 = vst [vmem:[%s177_s30 + $0x1c] sm:$0xf] %v215_v7 }
  0x3a   : > { %218 = vst [vmem:[%s177_s30 + $0x20] sm:$0xf] %v217_v8 }
  0x3b   : > { %220 = vst [vmem:[%s177_s30 + $0x24] sm:$0xf] %v219_v9 }
  0x3c   : > { %222 = vst [vmem:[%s177_s30 + $0x28] sm:$0xf] %v221_v10 }
  0x3d   : > { %224 = vst [vmem:[%s177_s30 + $0x2c] sm:$0xf] %v223_v11 }
  0x3e   : > { %226 = vst [vmem:[%s177_s30 + $0x30] sm:$0xf] %v225_v12 }
  0x3f   : > { %228 = vst [vmem:[%s177_s30 + $0x34] sm:$0xf] %v227_v13 }
  0x40   : > { %230 = vst [vmem:[%s177_s30 + $0x38] sm:$0xf] %v229_v14 }
  0x41   : > { %232 = vst [vmem:[%s177_s30 + $0x3c] sm:$0xf] %v231_v15 }
  0x42 PF: > { %288 = sbr.rel (!%p2635_p8) target bundleno = 105 (0x69), region = 61  ;;  %s290_s7 = sand.u32 (%p2635_p8), 1, %s2461_s15  }
  0x43   : > { %s1784_s9 = smul.u32 (%p2635_p8), 192, %s2493_s23  ;;  %s1908_s21 = sshll.u32 (%p2635_p8), %s290_s7, 7 }
  0x44   : > { %s2707_s8 = scalar_lea.vmem (%p2635_p8), [#allocation6], %s1908_s21 }
  0x45   : > { %s1785_s20 = sadd.s32 (%p2635_p8), %s2489_s22, %s1784_s9 }
  0x46   : > { %s1909_s25 = sshll.u32 (%p2635_p8), %s1785_s20, 2 }
  0x47   : > { %s2702_s26 = scalar_lea.vmem %s3469_s1, %s1909_s25 }
  0x48   : > { %v1910_v16 = vld [vmem:[%s2702_s26 + $0x8] sm:$0xf]  ;;  %v1911_v17 = vld [vmem:[%s2702_s26 + $0x20] sm:$0xf]  ;;  %v1912_v18 = vld [vmem:[%s2702_s26 + $0x38] sm:$0xf] }
  0x49   : > { %316 = vst [vmem:[%s2707_s8] sm:$0xf] %v1910_v16  ;;  %v1913_v19 = vld [vmem:[%s2702_s26 + $0x50] sm:$0xf]  ;;  %v1914_v20 = vld [vmem:[%s2702_s26 + $0x68] sm:$0xf] }
  0x4a   : > { %318 = vst [vmem:[%s2707_s8 + $0x4] sm:$0xf] %v1911_v17  ;;  %v1915_v21 = vld [vmem:[%s2702_s26 + $0x80] sm:$0xf]  ;;  %v1916_v22 = vld [vmem:[%s2702_s26 + $0x98] sm:$0xf] }
  0x4b   : > { %320 = vst [vmem:[%s2707_s8 + $0x8] sm:$0xf] %v1912_v18  ;;  %v1917_v23 = vld [vmem:[%s2702_s26 + $0xb0] sm:$0xf]  ;;  %v1918_v24 = vld [vmem:[%s2702_s26 + $0xc8] sm:$0xf] }
  0x4c   : > { %322 = vst [vmem:[%s2707_s8 + $0xc] sm:$0xf] %v1913_v19  ;;  %v1919_v25 = vld [vmem:[%s2702_s26 + $0xe0] sm:$0xf]  ;;  %v1920_v26 = vld [vmem:[%s2702_s26 + $0xf8] sm:$0xf] }
  0x4d   : > { %324 = vst [vmem:[%s2707_s8 + $0x10] sm:$0xf] %v1914_v20  ;;  %v1921_v27 = vld [vmem:[%s2702_s26 + $0x110] sm:$0xf]  ;;  %v1922_v28 = vld [vmem:[%s2702_s26 + $0x128] sm:$0xf] }
  0x4e   : > { %326 = vst [vmem:[%s2707_s8 + $0x14] sm:$0xf] %v1915_v21  ;;  %v1923_v29 = vld [vmem:[%s2702_s26 + $0x140] sm:$0xf]  ;;  %v1924_v30 = vld [vmem:[%s2702_s26 + $0x158] sm:$0xf] }
  0x4f   : > { %328 = vst [vmem:[%s2707_s8 + $0x18] sm:$0xf] %v1916_v22  ;;  %v1925_v31 = vld [vmem:[%s2702_s26 + $0x170] sm:$0xf]  ;;  %v1926_v32 = vld [vmem:[%s2702_s26 + $0x188] sm:$0xf] }
  0x50   : > { %330 = vst [vmem:[%s2707_s8 + $0x1c] sm:$0xf] %v1917_v23  ;;  %v1927_v33 = vld [vmem:[%s2702_s26 + $0x1a0] sm:$0xf]  ;;  %v1928_v34 = vld [vmem:[%s2702_s26 + $0x1b8] sm:$0xf] }
  0x51   : > { %332 = vst [vmem:[%s2707_s8 + $0x20] sm:$0xf] %v1918_v24  ;;  %v1929_v35 = vld [vmem:[%s2702_s26 + $0x1d0] sm:$0xf]  ;;  %v1930_v36 = vld [vmem:[%s2702_s26 + $0x1e8] sm:$0xf] }
  0x52   : > { %334 = vst [vmem:[%s2707_s8 + $0x24] sm:$0xf] %v1919_v25  ;;  %v1931_v37 = vld [vmem:[%s2702_s26 + $0x200] sm:$0xf]  ;;  %v1932_v38 = vld [vmem:[%s2702_s26 + $0x218] sm:$0xf] }
  0x53   : > { %336 = vst [vmem:[%s2707_s8 + $0x28] sm:$0xf] %v1920_v26  ;;  %v1933_v39 = vld [vmem:[%s2702_s26 + $0x230] sm:$0xf]  ;;  %v1934_v40 = vld [vmem:[%s2702_s26 + $0x248] sm:$0xf] }
  0x54   : > { %338 = vst [vmem:[%s2707_s8 + $0x2c] sm:$0xf] %v1921_v27  ;;  %v1935_v41 = vld [vmem:[%s2702_s26 + $0x260] sm:$0xf]  ;;  %v1936_v42 = vld [vmem:[%s2702_s26 + $0x278] sm:$0xf] }
  0x55   : > { %340 = vst [vmem:[%s2707_s8 + $0x30] sm:$0xf] %v1922_v28  ;;  %v1937_v43 = vld [vmem:[%s2702_s26 + $0x290] sm:$0xf]  ;;  %v1938_v44 = vld [vmem:[%s2702_s26 + $0x2a8] sm:$0xf] }
  0x56   : > { %342 = vst [vmem:[%s2707_s8 + $0x34] sm:$0xf] %v1923_v29  ;;  %v1939_v45 = vld [vmem:[%s2702_s26 + $0x2c0] sm:$0xf]  ;;  %v1940_v46 = vld [vmem:[%s2702_s26 + $0x2d8] sm:$0xf] }
  0x57   : > { %344 = vst [vmem:[%s2707_s8 + $0x38] sm:$0xf] %v1924_v30  ;;  %v1941_v47 = vld [vmem:[%s2702_s26 + $0x2f0] sm:$0xf] }
  0x58   : > { %346 = vst [vmem:[%s2707_s8 + $0x3c] sm:$0xf] %v1925_v31 }
  0x59   : > { %348 = vst [vmem:[%s2707_s8 + $0x40] sm:$0xf] %v1926_v32 }
  0x5a   : > { %350 = vst [vmem:[%s2707_s8 + $0x44] sm:$0xf] %v1927_v33 }
  0x5b   : > { %352 = vst [vmem:[%s2707_s8 + $0x48] sm:$0xf] %v1928_v34 }
  0x5c   : > { %354 = vst [vmem:[%s2707_s8 + $0x4c] sm:$0xf] %v1929_v35 }
  0x5d   : > { %356 = vst [vmem:[%s2707_s8 + $0x50] sm:$0xf] %v1930_v36 }
  0x5e   : > { %358 = vst [vmem:[%s2707_s8 + $0x54] sm:$0xf] %v1931_v37 }
  0x5f   : > { %360 = vst [vmem:[%s2707_s8 + $0x58] sm:$0xf] %v1932_v38 }
  0x60   : > { %362 = vst [vmem:[%s2707_s8 + $0x5c] sm:$0xf] %v1933_v39 }
  0x61   : > { %364 = vst [vmem:[%s2707_s8 + $0x60] sm:$0xf] %v1934_v40 }
  0x62   : > { %366 = vst [vmem:[%s2707_s8 + $0x64] sm:$0xf] %v1935_v41 }
  0x63   : > { %368 = vst [vmem:[%s2707_s8 + $0x68] sm:$0xf] %v1936_v42 }
  0x64   : > { %370 = vst [vmem:[%s2707_s8 + $0x6c] sm:$0xf] %v1937_v43 }
  0x65   : > { %372 = vst [vmem:[%s2707_s8 + $0x70] sm:$0xf] %v1938_v44 }
  0x66   : > { %374 = vst [vmem:[%s2707_s8 + $0x74] sm:$0xf] %v1939_v45 }
  0x67   : > { %376 = vst [vmem:[%s2707_s8 + $0x78] sm:$0xf] %v1940_v46 }
  0x68   : > { %378 = vst [vmem:[%s2707_s8 + $0x7c] sm:$0xf] %v1941_v47 }
  0x69 PF: > { %466 = sbr.rel (!%p2653_p13) target bundleno = 144 (0x90), region = 102  ;;  %s468_s11 = sand.u32 (%p2653_p13), 1, %s2453_s13  }
  0x6a   : > { %s1791_s5 = smul.u32 (%p2653_p13), 192, %s2493_s23  ;;  %s1942_s29 = sshll.u32 (%p2653_p13), %s468_s11, 7 }
  0x6b   : > { %s2783_s3 = scalar_lea.vmem (%p2653_p13), [#allocation7], %s1942_s29 }
  0x6c   : > { %s1792_s30 = sadd.s32 (%p2653_p13), %s2489_s22, %s1791_s5 }
  0x6d   : > { %s1943_s7 = sshll.u32 (%p2653_p13), %s1792_s30, 2 }
  0x6e   : > { %s2778_s20 = scalar_lea.vmem %s3470_s2, %s1943_s7 }
  0x6f   : > { %v1944_v48 = vld [vmem:[%s2778_s20 + $0x10] sm:$0xf]  ;;  %v1945_v49 = vld [vmem:[%s2778_s20 + $0x28] sm:$0xf]  ;;  %v1946_v50 = vld [vmem:[%s2778_s20 + $0x40] sm:$0xf] }
  0x70   : > { %494 = vst [vmem:[%s2783_s3] sm:$0xf] %v1944_v48  ;;  %v1947_v51 = vld [vmem:[%s2778_s20 + $0x58] sm:$0xf]  ;;  %v1948_v52 = vld [vmem:[%s2778_s20 + $0x70] sm:$0xf] }
  0x71   : > { %496 = vst [vmem:[%s2783_s3 + $0x4] sm:$0xf] %v1945_v49  ;;  %v1949_v53 = vld [vmem:[%s2778_s20 + $0x88] sm:$0xf]  ;;  %v1950_v54 = vld [vmem:[%s2778_s20 + $0xa0] sm:$0xf] }
  0x72   : > { %498 = vst [vmem:[%s2783_s3 + $0x8] sm:$0xf] %v1946_v50  ;;  %v1951_v55 = vld [vmem:[%s2778_s20 + $0xb8] sm:$0xf]  ;;  %v1952_v56 = vld [vmem:[%s2778_s20 + $0xd0] sm:$0xf] }
  0x73   : > { %500 = vst [vmem:[%s2783_s3 + $0xc] sm:$0xf] %v1947_v51  ;;  %v1953_v57 = vld [vmem:[%s2778_s20 + $0xe8] sm:$0xf]  ;;  %v1954_v58 = vld [vmem:[%s2778_s20 + $0x100] sm:$0xf] }
  0x74   : > { %502 = vst [vmem:[%s2783_s3 + $0x10] sm:$0xf] %v1948_v52  ;;  %v1955_v59 = vld [vmem:[%s2778_s20 + $0x118] sm:$0xf]  ;;  %v1956_v60 = vld [vmem:[%s2778_s20 + $0x130] sm:$0xf] }
  0x75   : > { %504 = vst [vmem:[%s2783_s3 + $0x14] sm:$0xf] %v1949_v53  ;;  %v1957_v61 = vld [vmem:[%s2778_s20 + $0x148] sm:$0xf]  ;;  %v1958_v62 = vld [vmem:[%s2778_s20 + $0x160] sm:$0xf] }
  0x76   : > { %506 = vst [vmem:[%s2783_s3 + $0x18] sm:$0xf] %v1950_v54  ;;  %v1959_v63 = vld [vmem:[%s2778_s20 + $0x178] sm:$0xf]  ;;  %v1960_v0 = vld [vmem:[%s2778_s20 + $0x190] sm:$0xf] }
  0x77   : > { %508 = vst [vmem:[%s2783_s3 + $0x1c] sm:$0xf] %v1951_v55  ;;  %v1961_v1 = vld [vmem:[%s2778_s20 + $0x1a8] sm:$0xf]  ;;  %v1962_v2 = vld [vmem:[%s2778_s20 + $0x1c0] sm:$0xf] }
  0x78   : > { %510 = vst [vmem:[%s2783_s3 + $0x20] sm:$0xf] %v1952_v56  ;;  %v1963_v3 = vld [vmem:[%s2778_s20 + $0x1d8] sm:$0xf]  ;;  %v1964_v4 = vld [vmem:[%s2778_s20 + $0x1f0] sm:$0xf] }
  0x79   : > { %512 = vst [vmem:[%s2783_s3 + $0x24] sm:$0xf] %v1953_v57  ;;  %v1965_v5 = vld [vmem:[%s2778_s20 + $0x208] sm:$0xf]  ;;  %v1966_v6 = vld [vmem:[%s2778_s20 + $0x220] sm:$0xf] }
  0x7a   : > { %514 = vst [vmem:[%s2783_s3 + $0x28] sm:$0xf] %v1954_v58  ;;  %v1967_v7 = vld [vmem:[%s2778_s20 + $0x238] sm:$0xf]  ;;  %v1968_v8 = vld [vmem:[%s2778_s20 + $0x250] sm:$0xf] }
  0x7b   : > { %516 = vst [vmem:[%s2783_s3 + $0x2c] sm:$0xf] %v1955_v59  ;;  %v1969_v9 = vld [vmem:[%s2778_s20 + $0x268] sm:$0xf]  ;;  %v1970_v10 = vld [vmem:[%s2778_s20 + $0x280] sm:$0xf] }
  0x7c   : > { %518 = vst [vmem:[%s2783_s3 + $0x30] sm:$0xf] %v1956_v60  ;;  %v1971_v11 = vld [vmem:[%s2778_s20 + $0x298] sm:$0xf]  ;;  %v1972_v12 = vld [vmem:[%s2778_s20 + $0x2b0] sm:$0xf] }
  0x7d   : > { %520 = vst [vmem:[%s2783_s3 + $0x34] sm:$0xf] %v1957_v61  ;;  %v1973_v13 = vld [vmem:[%s2778_s20 + $0x2c8] sm:$0xf]  ;;  %v1974_v14 = vld [vmem:[%s2778_s20 + $0x2e0] sm:$0xf] }
  0x7e   : > { %522 = vst [vmem:[%s2783_s3 + $0x38] sm:$0xf] %v1958_v62  ;;  %v1975_v15 = vld [vmem:[%s2778_s20 + $0x2f8] sm:$0xf] }
  0x7f   : > { %524 = vst [vmem:[%s2783_s3 + $0x3c] sm:$0xf] %v1959_v63 }
  0x80   : > { %526 = vst [vmem:[%s2783_s3 + $0x40] sm:$0xf] %v1960_v0 }
  0x81   : > { %528 = vst [vmem:[%s2783_s3 + $0x44] sm:$0xf] %v1961_v1 }
  0x82   : > { %530 = vst [vmem:[%s2783_s3 + $0x48] sm:$0xf] %v1962_v2 }
  0x83   : > { %532 = vst [vmem:[%s2783_s3 + $0x4c] sm:$0xf] %v1963_v3 }
  0x84   : > { %534 = vst [vmem:[%s2783_s3 + $0x50] sm:$0xf] %v1964_v4 }
  0x85   : > { %536 = vst [vmem:[%s2783_s3 + $0x54] sm:$0xf] %v1965_v5 }
  0x86   : > { %538 = vst [vmem:[%s2783_s3 + $0x58] sm:$0xf] %v1966_v6 }
  0x87   : > { %540 = vst [vmem:[%s2783_s3 + $0x5c] sm:$0xf] %v1967_v7 }
  0x88   : > { %542 = vst [vmem:[%s2783_s3 + $0x60] sm:$0xf] %v1968_v8 }
  0x89   : > { %544 = vst [vmem:[%s2783_s3 + $0x64] sm:$0xf] %v1969_v9 }
  0x8a   : > { %546 = vst [vmem:[%s2783_s3 + $0x68] sm:$0xf] %v1970_v10 }
  0x8b   : > { %548 = vst [vmem:[%s2783_s3 + $0x6c] sm:$0xf] %v1971_v11 }
  0x8c   : > { %550 = vst [vmem:[%s2783_s3 + $0x70] sm:$0xf] %v1972_v12 }
  0x8d   : > { %552 = vst [vmem:[%s2783_s3 + $0x74] sm:$0xf] %v1973_v13 }
  0x8e   : > { %554 = vst [vmem:[%s2783_s3 + $0x78] sm:$0xf] %v1974_v14 }
  0x8f   : > { %556 = vst [vmem:[%s2783_s3 + $0x7c] sm:$0xf] %v1975_v15 }
  0x90 PF: > { %p1976_p2 = scmp.ge.s32.totalorder %s2497_s24, 1  ;;  %p643_p3 = scmp.lt.s32.totalorder %s2497_s24, 9 }
  0x92   : > { %p644_p4 = pnand %p1976_p2, %p643_p3 }
  0x94   : > { %647 = sbr.rel (%p644_p4) target bundleno = 1016 (0x3f8), region = 143 }
  0x99   : > { %s650_s25 = sand.u32 1, %s2465_s16   ;;  %s657_s4 = sand.u32 1, %s2457_s14   ;;  %v752_v16 = vlaneseq  ;;  %v2503_v17 = vmov -1e+30   ;;  %v2504_v35 = vmov 0.0  }
  0x9a   : > { %s2850_s10 = sshll.u32 %s650_s25, 6  ;;  %s2852_s26 = sshll.u32 %s657_s4, 7  ;;  %704 = vst [vmem:[#allocation2 + $0x30] sm:$0xff] %v2503_v17 }
  0x9b   : > { %705 = vst [vmem:[#allocation2] sm:$0xff] %v2503_v17  ;;  %v2854_v18 = vshrl.u32 %v752_v16, 7  ;;  %s664_s8 = sand.u32 1, %s2449_s12   ;;  %v2857_v19 = vand.u32 127, %v752_v16  ;;  %s3507_s5 = sld [smem:[#allocation9_spill]] }
  0x9c   : > { %706 = vst [vmem:[#allocation2 + $0x58] sm:$0xff] %v2503_v17  ;;  %s2859_s11 = sshll.u32 %s664_s8, 7  ;;  %s2940_s14 = scalar_lea.vmem [#allocation5], %s2850_s10 }
  0x9d   : > { %3505 = vst [vmem:[#allocation15_spill] sm:$0xff] %v2854_v18  ;;  %v2862_v20 = vadd.s32 8, %v2854_v18  ;;  %v2865_v21 = vadd.s32 16, %v2854_v18  ;;  %v2868_v22 = vadd.s32 24, %v2854_v18  ;;  %v2871_v23 = vadd.s32 32, %v2854_v18  ;;  %s659_s16 = scalar_lea.vmem [#allocation6], %s2852_s26 }
  0x9e   : > { %3506 = vst [vmem:[#allocation16_spill] sm:$0xff] %v2857_v19  ;;  %v2874_v24 = vadd.s32 40, %v2854_v18  ;;  %v2877_v25 = vadd.s32 48, %v2854_v18  ;;  %v2880_v26 = vadd.s32 56, %v2854_v18  ;;  %v2883_v27 = vadd.s32 64, %v2854_v18  ;;  %s666_s29 = scalar_lea.vmem [#allocation7], %s2859_s11 }
  0x9f   : > { %707 = vst [vmem:[#allocation2 + $0x18] sm:$0xff] %v2503_v17  ;;  %v2886_v28 = vadd.s32 72, %v2854_v18  ;;  %v2889_v29 = vadd.s32 80, %v2854_v18  ;;  %v2892_v30 = vadd.s32 88, %v2854_v18  ;;  %v2895_v31 = vadd.s32 96, %v2854_v18  ;;  %s2945_s30 = scalar_lea.vmem [#allocation8], %s2850_s10 }
  0xa0   : > { %3508 = vst [vmem:[#allocation17_spill] sm:$0xff] %v2862_v20  ;;  %v2899_v32 = vadd.s32 104, %v2854_v18  ;;  %v2902_v33 = vadd.s32 112, %v2854_v18  ;;  %v2905_v34 = vadd.s32 120, %v2854_v18  ;;  %vm773_vm2 = vcmp.le.s32.totalorder %v2857_v19, %v2865_v21 }
  0xa1   : > { %3509 = vst [vmem:[#allocation18_spill] sm:$0xff] %v2865_v21  ;;  %s787_s12 = sadd.s32 1, %s3507_s5  ;;  %vm774_vm3 = vcmp.le.s32.totalorder %v2857_v19, %v2868_v22  ;;  %vm775_vm4 = vcmp.le.s32.totalorder %v2857_v19, %v2871_v23  ;;  %vm776_vm5 = vcmp.le.s32.totalorder %v2857_v19, %v2874_v24  ;;  %vm777_vm6 = vcmp.le.s32.totalorder %v2857_v19, %v2877_v25 }
  0xa2   : > { %3510 = vst [vmem:[#allocation19_spill] sm:$0xff] %v2868_v22  ;;  %vm778_vm7 = vcmp.le.s32.totalorder %v2857_v19, %v2880_v26  ;;  %vm781_vm10 = vcmp.le.s32.totalorder %v2857_v19, %v2889_v29  ;;  %vm782_vm11 = vcmp.le.s32.totalorder %v2857_v19, %v2892_v30  ;;  %vm783_vm12 = vcmp.le.s32.totalorder %v2857_v19, %v2895_v31  ;;  %p1981_p5 = scmp.le.s32.totalorder %s787_s12, 0 }
  0xa3   : > { %3511 = vst [vmem:[#allocation20_spill] sm:$0xff] %v2871_v23  ;;  %vm784_vm13 = vcmp.le.s32.totalorder %v2857_v19, %v2899_v32  ;;  %vm785_vm14 = vcmp.le.s32.totalorder %v2857_v19, %v2902_v33  ;;  %s2949_s7 = smov (!%p1981_p5), 0  }
  0xa4   : > { %708 = vst [vmem:[#allocation2 + $0x50] sm:$0xff] %v2503_v17 }
  0xa5   : > { %3512 = vst [vmem:[#allocation21_spill] sm:$0xff] %v2874_v24 }
  0xa6   : > { %3513 = vst [vmem:[#allocation22_spill] sm:$0xff] %v2877_v25 }
  0xa7   : > { %3514 = vst [vmem:[#allocation23_spill] sm:$0xff] %v2880_v26 }
  0xa8   : > { %3515 = vst [vmem:[#allocation24_spill] sm:$0xff] %v2883_v27 }
  0xa9   : > { %709 = vst [vmem:[#allocation2 + $0x68] sm:$0xff] %v2503_v17 }
  0xaa   : > { %3516 = vst [vmem:[#allocation25_spill] sm:$0xff] %v2886_v28 }
  0xab   : > { %3517 = vst [vmem:[#allocation26_spill] sm:$0xff] %v2889_v29 }
  0xac   : > { %3518 = vst [vmem:[#allocation27_spill] sm:$0xff] %v2892_v30 }
  0xad   : > { %3519 = vst [vmem:[#allocation28_spill] sm:$0xff] %v2895_v31 }
  0xae   : > { %710 = vst [vmem:[#allocation2 + $0x8] sm:$0xff] %v2503_v17 }
  0xaf   : > { %3520 = vst [vmem:[#allocation29_spill] sm:$0xff] %v2899_v32 }
  0xb0   : > { %711 = vst [vmem:[#allocation2 + $0x48] sm:$0xff] %v2503_v17 }
  0xb1   : > { %712 = vst [vmem:[#allocation2 + $0x40] sm:$0xff] %v2503_v17 }
  0xb2   : > { %713 = vst [vmem:[#allocation2 + $0x20] sm:$0xff] %v2503_v17 }
  0xb3   : > { %714 = vst [vmem:[#allocation2 + $0x10] sm:$0xff] %v2503_v17 }
  0xb4   : > { %715 = vst [vmem:[#allocation2 + $0x38] sm:$0xff] %v2503_v17 }
  0xb5   : > { %716 = vst [vmem:[#allocation2 + $0x60] sm:$0xff] %v2503_v17 }
  0xb6   : > { %717 = vst [vmem:[#allocation2 + $0x70] sm:$0xff] %v2503_v17 }
  0xb7   : > { %718 = vst [vmem:[#allocation2 + $0x78] sm:$0xff] %v2503_v17 }
  0xb8   : > { %719 = vst [vmem:[#allocation2 + $0x28] sm:$0xff] %v2503_v17 }
  0xb9   : > { %720 = vst [vmem:[#allocation3 + $0x28] sm:$0xff] %v2504_v35 }
  0xba   : > { %721 = vst [vmem:[#allocation3 + $0x68] sm:$0xff] %v2504_v35 }
  0xbb   : > { %722 = vst [vmem:[#allocation3 + $0x10] sm:$0xff] %v2504_v35 }
  0xbc   : > { %723 = vst [vmem:[#allocation3 + $0x40] sm:$0xff] %v2504_v35 }
  0xbd   : > { %724 = vst [vmem:[#allocation3 + $0x48] sm:$0xff] %v2504_v35 }
  0xbe   : > { %725 = vst [vmem:[#allocation3 + $0x30] sm:$0xff] %v2504_v35 }
  0xbf   : > { %726 = vst [vmem:[#allocation3 + $0x70] sm:$0xff] %v2504_v35 }
  0xc0   : > { %727 = vst [vmem:[#allocation3 + $0x38] sm:$0xff] %v2504_v35 }
  0xc1   : > { %728 = vst [vmem:[#allocation3 + $0x20] sm:$0xff] %v2504_v35 }
  0xc2   : > { %729 = vst [vmem:[#allocation3 + $0x78] sm:$0xff] %v2504_v35 }
  0xc3   : > { %730 = vst [vmem:[#allocation3 + $0x18] sm:$0xff] %v2504_v35 }
  0xc4   : > { %731 = vst [vmem:[#allocation3 + $0x58] sm:$0xff] %v2504_v35 }
  0xc5   : > { %732 = vst [vmem:[#allocation3] sm:$0xff] %v2504_v35 }
  0xc6   : > { %733 = vst [vmem:[#allocation3 + $0x8] sm:$0xff] %v2504_v35 }
  0xc7   : > { %734 = vst [vmem:[#allocation3 + $0x60] sm:$0xff] %v2504_v35 }
  0xc8   : > { %735 = vst [vmem:[#allocation3 + $0x50] sm:$0xff] %v2504_v35 }
  0xc9   : > { %736 = vst [vmem:[#allocation4 + $0x8] sm:$0xff] %v2504_v35 }
  0xca   : > { %737 = vst [vmem:[#allocation4] sm:$0xff] %v2504_v35 }
  0xcb   : > { %738 = vst [vmem:[#allocation4 + $0x48] sm:$0xff] %v2504_v35 }
  0xcc   : > { %739 = vst [vmem:[#allocation4 + $0x60] sm:$0xff] %v2504_v35 }
  0xcd   : > { %740 = vst [vmem:[#allocation4 + $0x68] sm:$0xff] %v2504_v35 }
  0xce   : > { %741 = vst [vmem:[#allocation4 + $0x18] sm:$0xff] %v2504_v35 }
  0xcf   : > { %742 = vst [vmem:[#allocation4 + $0x10] sm:$0xff] %v2504_v35 }
  0xd0   : > { %743 = vst [vmem:[#allocation4 + $0x38] sm:$0xff] %v2504_v35 }
  0xd1   : > { %744 = vst [vmem:[#allocation4 + $0x40] sm:$0xff] %v2504_v35 }
  0xd2   : > { %745 = vst [vmem:[#allocation4 + $0x28] sm:$0xff] %v2504_v35 }
  0xd3   : > { %746 = vst [vmem:[#allocation4 + $0x70] sm:$0xff] %v2504_v35 }
  0xd4   : > { %747 = vst [vmem:[#allocation4 + $0x20] sm:$0xff] %v2504_v35  ;;  %1842 = sbr.rel (%p1981_p5) target bundleno = 975 (0x3cf), region = 250 }
  0xd5   : > { %748 = vst [vmem:[#allocation4 + $0x58] sm:$0xff] %v2504_v35 }
  0xd6   : > { %749 = vst [vmem:[#allocation4 + $0x30] sm:$0xff] %v2504_v35 }
  0xd7   : > { %750 = vst [vmem:[#allocation4 + $0x50] sm:$0xff] %v2504_v35 }
  0xd8   : > { %751 = vst [vmem:[#allocation4 + $0x78] sm:$0xff] %v2504_v35 }
  0xd9 LB: >> { %v3521_v19 = vld [vmem:[#allocation16_spill] sm:$0xff]  ;;  %s1982_s9 = sshll.u32 %s2501_s7, 7  ;;  %v2088_v44 = vld [vmem:[%s2940_s14] sm:$0xff]  ;;  %s3522_s25 = sld [smem:[#allocation9_spill]]  ;;  %v2091_v45 = vld [vmem:[%s2940_s14 + $0x18] sm:$0xff]  ;;  %s2501_s7 = sphi %s2949_s7, %s791_s7  }
  0xda   : >> { %s2955_s21 = sshra.s32 %s1982_s9, 3  ;;  %v2089_v46 = vld [vmem:[%s2940_s14 + $0x8] sm:$0xff]  ;;  %v2092_v47 = vld [vmem:[%s2940_s14 + $0x20] sm:$0xff]  ;;  %v2090_v49 = vld [vmem:[%s2940_s14 + $0x10] sm:$0xff] }
  0xdb   : >> { %s1983_s20 = sshll.u32 %s2955_s21, 2  ;;  %v2093_v48 = vld [vmem:[%s2940_s14 + $0x28] sm:$0xff]  ;;  %v2094_v50 = vld [vmem:[%s2940_s14 + $0x30] sm:$0xff]  ;;  %v2095_v51 = vld [vmem:[%s2940_s14 + $0x38] sm:$0xff] }
  0xdc   : >> { %s814_s3 = scalar_lea.vmem %s659_s16, %s1983_s20 [#allocation6]  ;;  %v3525_v18 = vld [vmem:[#allocation15_spill] sm:$0xff]  ;;  %v3528_v20 = vld [vmem:[#allocation17_spill] sm:$0xff]  ;;  %v3542_v27 = vld [vmem:[#allocation24_spill] sm:$0xff]  ;;  %s3200_s10 = scalar_lea.vmem %s666_s29, %s1983_s20 [#allocation7] }
  0xdd   : >> { %v2103_v36 = vld [vmem:[%s814_s3 + $0x38] sm:$0xff]  ;;  %v2102_v37 = vld [vmem:[%s814_s3 + $0x30] sm:$0xff]  ;;  %v2101_v38 = vld [vmem:[%s814_s3 + $0x28] sm:$0xff]  ;;  %vm3526_vm0 = vcmp.le.s32.totalorder %v3521_v19, %v3525_v18  ;;  %vm3529_vm1 = vcmp.le.s32.totalorder %v3521_v19, %v3528_v20 }
  0xde   : >> { %945 = vmatpush.bf16.xpose.msra.mxu0 %v2103_v36  ;;  %2160 = vmatpush.bf16.xpose.msra.mxu2 %v2103_v36  ;;  %v2100_v39 = vld [vmem:[%s814_s3 + $0x20] sm:$0xff]  ;;  %v2099_v40 = vld [vmem:[%s814_s3 + $0x18] sm:$0xff]  ;;  %v2098_v41 = vld [vmem:[%s814_s3 + $0x10] sm:$0xff] }
  0xdf   : >> { %v2097_v42 = vld [vmem:[%s814_s3 + $0x8] sm:$0xff]  ;;  %v2096_v43 = vld [vmem:[%s814_s3] sm:$0xff]  ;;  %p994_p6 = scmp.lt.s32.totalorder %s2501_s7, %s3522_s25  ;;  %v3540_v28 = vld [vmem:[#allocation25_spill] sm:$0xff]  ;;  %s791_s7 = sadd.s32 1, %s2501_s7  }
  0xe0   : >> { %v2104_v20 = vld [vmem:[%s3200_s10] sm:$0xff]  ;;  %p790_p7 = scmp.ge.s32.totalorder %s791_s7, %s787_s12 }
  0xe1   : >> { %s995_s4 = scalar_select %p994_p6, 1, 0 }
  0xe3   : >> { %v996_v52 = vstv %s995_s4 }
  0xe4   : >> { %vm2972_vm8 = vcmp.eq.s32.totalorder %v996_v52, 1  ;;  %v2110_v52 = vld [vmem:[%s3200_s10 + $0x30] sm:$0xff] }
  0xe5   : >> { %vm998_vm9 = vmor %vm2972_vm8, %vm3526_vm0 }
  0xe6   : >> { %946 = vmatpush.bf16.xpose.msra.mxu0 %v2102_v37  ;;  %2161 = vmatpush.bf16.xpose.msra.mxu2 %v2102_v37  ;;  %vm1004_vm15 = vmor %vm2972_vm8, %vm777_vm6  ;;  %v2505_v37 = vmov 0  }
  0xe7   : >> { %vm1000_vm0 = vmor %vm2972_vm8, %vm773_vm2  ;;  %2292 = vset.pattern.permute.xlu1 %v2505_v37  ;;  %2293 = vset.pattern.permute.xlu2 %v2505_v37 }
  0xe8   : >> { %2294 = vset.pattern.permute.xlu0 %v2505_v37 }
  0xee   : >> { %947 = vmatpush.bf16.xpose.msra.mxu0 %v2101_v38  ;;  %2162 = vmatpush.bf16.xpose.msra.mxu2 %v2101_v38  ;;  %v3092_v38 = vld [vmem:[#allocation2 + $0x30] sm:$0xff] }
  0xf6   : >> { %948 = vmatpush.bf16.xpose.msra.mxu0 %v2100_v39  ;;  %2163 = vmatpush.bf16.xpose.msra.mxu2 %v2100_v39 }
  0xfe   : >> { %949 = vmatpush.bf16.xpose.msra.mxu0 %v2099_v40  ;;  %2164 = vmatpush.bf16.xpose.msra.mxu2 %v2099_v40 }
 0x106   : >> { %950 = vmatpush.bf16.xpose.msra.mxu0 %v2098_v41  ;;  %2165 = vmatpush.bf16.xpose.msra.mxu2 %v2098_v41  ;;  %v2109_v41 = vld [vmem:[%s3200_s10 + $0x28] sm:$0xff] }
 0x10e   : >> { %951 = vmatpush.bf16.xpose.msra.mxu0 %v2097_v42  ;;  %2166 = vmatpush.bf16.xpose.msra.mxu2 %v2097_v42  ;;  %v3101_v42 = vld [vmem:[#allocation2 + $0x8] sm:$0xff] }
 0x116   : >> { %952 = vmatpush.bf16.xpose.msra.mxu0 %v2096_v43  ;;  %2167 = vmatpush.bf16.xpose.msra.mxu2 %v2096_v43 }
 0x11d   : >> { %953 = vmatmul.bf16.vlgmr.msra.gmra.mxu0 %v2088_v44  ;;  %968 = vmatmul.bf16.vlgmr.msra.gmra.mxu2 %v2091_v45  ;;  %v3107_v45 = vld [vmem:[#allocation2] sm:$0xff] }
 0x12d   : >> { %958 = vmatmul.bf16.gmra.mxu0 %v2089_v46  ;;  %973 = vmatmul.bf16.gmra.mxu2 %v2092_v47  ;;  %v3109_v46 = vld [vmem:[#allocation2 + $0x58] sm:$0xff] }
 0x13d   : >> { %978 = vmatmul.bf16.gmra.mxu2 %v2093_v48  ;;  %963 = vmatmul.bf16.gmra.mxu0 %v2090_v49 }
 0x14d   : >> { %983 = vmatmul.bf16.gmra.mxu2 %v2094_v50 }
 0x15d   : >> { %988 = vmatmul.bf16.gmra.mxu2 %v2095_v51 }
 0x19a   : >> { %v954_v54 = vpop.f32.mrf.mxu0 }
 0x19b   : >> { %v2981_v55 = vsel %vm998_vm9, %v954_v54, -1e+30  ;;  %vm999_vm9 = vmor %vm2972_vm8, %vm3529_vm1  ;;  %v3125_v54 = vld [vmem:[#allocation2 + $0x48] sm:$0xff] }
 0x19c   : >> { %1046 = vmax.xlane.f32.xlu0 %v2981_v55 }
 0x1a0   : >> { %v969_v56 = vpop.f32.mrf.mxu2 }
 0x1a1   : >> { %v2989_v57 = vsel %vm1004_vm15, %v969_v56, -1e+30  ;;  %vm1005_vm15 = vmor %vm2972_vm8, %vm778_vm7  ;;  %v3127_v56 = vld [vmem:[#allocation2 + $0x18] sm:$0xff] }
 0x1a2   : >> { %v956_v58 = vpop.f32.mrf.mxu0 }
 0x1a3   : >> { %v3002_v61 = vsel %vm999_vm9, %v956_v58, -1e+30  ;;  %vm1001_vm9 = vmor %vm2972_vm8, %vm774_vm3 }
 0x1a4   : >> { %1058 = vmax.xlane.f32.xlu0 %v2989_v57 }
 0x1a8   : >> { %v971_v59 = vpop.f32.mrf.mxu2 }
 0x1a9   : >> { %v3020_v1 = vsel %vm1005_vm15, %v971_v59, -1e+30  ;;  %vm1008_vm15 = vmor %vm2972_vm8, %vm781_vm10 }
 0x1aa   : >> { %v959_v60 = vpop.f32.mrf.mxu0 }
 0x1ab   : >> { %v3004_v62 = vsel %vm1000_vm0, %v959_v60, -1e+30  ;;  %vm1002_vm0 = vmor %vm2972_vm8, %vm775_vm4 }
 0x1ac   : >> { %1048 = vmax.xlane.f32.xlu0 %v3002_v61  ;;  %1050 = vmax.xlane.f32.xlu1 %v3004_v62 }
 0x1b0   : >> { %v3013_v63 = vpop.f32.mrf.mxu2 }
 0x1b2   : >> { %v961_v0 = vpop.f32.mrf.mxu0 }
 0x1b3   : >> { %v3022_v2 = vsel %vm1001_vm9, %v961_v0, -1e+30  ;;  %vm1003_vm9 = vmor %vm2972_vm8, %vm776_vm5 }
 0x1b4   : >> { %1060 = vmax.xlane.f32.xlu0 %v3020_v1  ;;  %1052 = vmax.xlane.f32.xlu1 %v3022_v2 }
 0x1b8   : >> { %v3026_v3 = vpop.f32.mrf.mxu2 }
 0x1ba   : >> { %v964_v4 = vpop.f32.mrf.mxu0 }
 0x1bb   : >> { %v3033_v5 = vsel %vm1002_vm0, %v964_v4, -1e+30  ;;  %vm1009_vm0 = vmor %vm2972_vm8, %vm782_vm11  ;;  %v3228_v4 = vld [vmem:[#allocation2 + $0x28] sm:$0xff] }
 0x1bc   : >> { %1054 = vmax.xlane.f32.xlu0 %v3033_v5 }
 0x1c0   : >> { %v979_v6 = vpop.f32.mrf.mxu2 }
 0x1c1   : >> { %v3046_v7 = vsel %vm1008_vm15, %v979_v6, -1e+30  ;;  %vm1010_vm15 = vmor %vm2972_vm8, %vm783_vm12  ;;  %v3140_v6 = vld [vmem:[#allocation2 + $0x50] sm:$0xff] }
 0x1c2   : >> { %1066 = vmax.xlane.f32.xlu2 %v3046_v7  ;;  %v966_v8 = vpop.f32.mrf.mxu0 }
 0x1c3   : >> { %v3049_v9 = vsel %vm1003_vm9, %v966_v8, -1e+30  ;;  %vm1011_vm9 = vmor %vm2972_vm8, %vm784_vm13 }
 0x1c4   : >> { %1056 = vmax.xlane.f32.xlu1 %v3049_v9 }
 0x1c8   : >> { %v981_v10 = vpop.f32.mrf.mxu2 }
 0x1c9   : >> { %v3057_v11 = vsel %vm1009_vm0, %v981_v10, -1e+30  ;;  %vm1012_vm0 = vmor %vm2972_vm8, %vm785_vm14 }
 0x1ca   : >> { %1068 = vmax.xlane.f32.xlu2 %v3057_v11 }
 0x1d0   : >> { %v984_v12 = vpop.f32.mrf.mxu2 }
 0x1d1   : >> { %v3065_v13 = vsel %vm1010_vm15, %v984_v12, -1e+30  ;;  %vm3539_vm15 = vcmp.le.s32.totalorder %v3521_v19, %v2905_v34 }
 0x1d2   : >> { %1070 = vmax.xlane.f32.xlu2 %v3065_v13 }
 0x1d8   : >> { %v986_v14 = vpop.f32.mrf.mxu2 }
 0x1d9   : >> { %v3073_v15 = vsel %vm1011_vm9, %v986_v14, -1e+30  ;;  %vm1013_vm9 = vmor %vm2972_vm8, %vm3539_vm15  ;;  %v3148_v14 = vld [vmem:[#allocation2 + $0x10] sm:$0xff] }
 0x1da   : >> { %1072 = vmax.xlane.f32.xlu0 %v3073_v15 }
 0x1e0   : >> { %v989_v16 = vpop.f32.mrf.mxu2 }
 0x1e1   : >> { %v3081_v17 = vsel %vm1012_vm0, %v989_v16, -1e+30  ;;  %vm3541_vm0 = vcmp.le.s32.totalorder %v3521_v19, %v3540_v28 }
 0x1e2   : >> { %1074 = vmax.xlane.f32.xlu0 %v3081_v17  ;;  %vm1007_vm15 = vmor %vm2972_vm8, %vm3541_vm0 }
 0x1e8   : >> { %v991_v35 = vpop.f32.mrf.mxu2 }
 0x1e9   : >> { %v3089_v36 = vsel %vm1013_vm9, %v991_v35, -1e+30  ;;  %v3150_v35 = vld [vmem:[#allocation2 + $0x68] sm:$0xff]  ;;  %vm3543_vm9 = vcmp.le.s32.totalorder %v3521_v19, %v3542_v27 }
 0x1ea   : >> { %1076 = vmax.xlane.f32.xlu2 %v3089_v36  ;;  %vm1006_vm1 = vmor %vm2972_vm8, %vm3543_vm9 }
 0x20f   : >> { %v1047_v39 = vpop.xlane.xlu0 %1046 }
 0x210   : >> { %v3095_v40 = vmax.f32 %v3092_v38, %v1047_v39 }
 0x212   : >> { %1535 = vst [vmem:[#allocation2 + $0x30] sm:$0xff] %v3095_v40  ;;  %1144 = vperm.xlu1 %2292, %v3095_v40  }
 0x217   : >> { %v1059_v43 = vpop.xlane.xlu0 %1058 }
 0x218   : >> { %v3104_v44 = vmax.f32 %v3101_v42, %v1059_v43  ;;  %v2111_v43 = vld [vmem:[%s3200_s10 + $0x38] sm:$0xff] }
 0x219   : >> { %1454 = vmatpush.bf16.msra.mxu1 %v2111_v43  ;;  %2168 = vmatpush.bf16.msra.mxu3 %v2111_v43  ;;  %v2107_v43 = vld [vmem:[%s3200_s10 + $0x18] sm:$0xff] }
 0x21a   : >> { %1541 = vst [vmem:[#allocation2 + $0x8] sm:$0xff] %v3104_v44 }
 0x21d   : >> { %1455 = vmatpush.bf16.msra.mxu1 %v2110_v52  ;;  %2169 = vmatpush.bf16.msra.mxu3 %v2110_v52  ;;  %v2108_v52 = vld [vmem:[%s3200_s10 + $0x20] sm:$0xff] }
 0x21f   : >> { %v1049_v47 = vpop.xlane.xlu0 %1048  ;;  %v1051_v48 = vpop.xlane.xlu1 %1050 }
 0x220   : >> { %v3112_v49 = vmax.f32 %v3107_v45, %v1049_v47  ;;  %v3115_v50 = vmax.f32 %v3109_v46, %v1051_v48 }
 0x221   : >> { %1456 = vmatpush.bf16.msra.mxu1 %v2109_v41  ;;  %2170 = vmatpush.bf16.msra.mxu3 %v2109_v41  ;;  %v2106_v41 = vld [vmem:[%s3200_s10 + $0x10] sm:$0xff] }
 0x222   : >> { %1536 = vst [vmem:[#allocation2] sm:$0xff] %v3112_v49  ;;  %1149 = vperm.xlu2 %2293, %v3112_v49   ;;  %1154 = vperm.xlu1 %2292, %v3115_v50  }
 0x223   : >> { %1537 = vst [vmem:[#allocation2 + $0x58] sm:$0xff] %v3115_v50 }
 0x225   : >> { %1457 = vmatpush.bf16.msra.mxu1 %v2108_v52  ;;  %2171 = vmatpush.bf16.msra.mxu3 %v2108_v52 }
 0x227   : >> { %v1061_v58 = vpop.xlane.xlu0 %1060  ;;  %v1053_v59 = vpop.xlane.xlu1 %1052 }
 0x228   : >> { %v3130_v60 = vmax.f32 %v3125_v54, %v1061_v58  ;;  %v3133_v0 = vmax.f32 %v3127_v56, %v1053_v59  ;;  %v3165_v58 = vld [vmem:[#allocation2 + $0x38] sm:$0xff] }
 0x229   : >> { %1458 = vmatpush.bf16.msra.mxu1 %v2107_v43  ;;  %2172 = vmatpush.bf16.msra.mxu3 %v2107_v43 }
 0x22a   : >> { %1542 = vst [vmem:[#allocation2 + $0x48] sm:$0xff] %v3130_v60  ;;  %1159 = vperm.xlu0 %2294, %v3133_v0  }
 0x22b   : >> { %1538 = vst [vmem:[#allocation2 + $0x18] sm:$0xff] %v3133_v0 }
 0x22d   : >> { %1459 = vmatpush.bf16.msra.mxu1 %v2106_v41  ;;  %2173 = vmatpush.bf16.msra.mxu3 %v2106_v41 }
 0x22f   : >> { %v1055_v8 = vpop.xlane.xlu0 %1054 }
 0x230   : >> { %v3143_v10 = vmax.f32 %v3140_v6, %v1055_v8 }
 0x232   : >> { %1539 = vst [vmem:[#allocation2 + $0x50] sm:$0xff] %v3143_v10 }
 0x235   : >> { %v1067_v16 = vpop.xlane.xlu2 %1066 }
 0x236   : >> { %v3153_v37 = vmax.f32 %v3148_v14, %v1067_v16  ;;  %v3206_v16 = vld [vmem:[#allocation2 + $0x70] sm:$0xff] }
 0x237   : >> { %v1057_v39 = vpop.xlane.xlu1 %1056 }
 0x238   : >> { %1545 = vst [vmem:[#allocation2 + $0x10] sm:$0xff] %v3153_v37  ;;  %1194 = vperm.xlu0 %2294, %v3153_v37   ;;  %v3160_v47 = vmax.f32 %v3150_v35, %v1057_v39  ;;  %v3174_v39 = vld [vmem:[#allocation2 + $0x60] sm:$0xff] }
 0x23a   : >> { %1540 = vst [vmem:[#allocation2 + $0x68] sm:$0xff] %v3160_v47 }
 0x23d   : >> { %v1069_v59 = vpop.xlane.xlu2 %1068 }
 0x23e   : >> { %v3168_v8 = vmax.f32 %v3165_v58, %v1069_v59  ;;  %v3204_v59 = vsel %vm1006_vm1, %v3013_v63, -1e+30  ;;  %v3217_v63 = vld [vmem:[#allocation2 + $0x78] sm:$0xff] }
 0x240   : >> { %1546 = vst [vmem:[#allocation2 + $0x38] sm:$0xff] %v3168_v8  ;;  %1169 = vperm.xlu0 %2294, %v3160_v47  }
 0x245   : >> { %v1071_v48 = vpop.xlane.xlu2 %1070 }
 0x246   : >> { %v3177_v12 = vmax.f32 %v3174_v39, %v1071_v48  ;;  %v3194_v48 = vsel %vm1007_vm15, %v3026_v3, -1e+30 }
 0x248   : >> { %1547 = vst [vmem:[#allocation2 + $0x60] sm:$0xff] %v3177_v12  ;;  %1204 = vperm.xlu0 %2294, %v3177_v12  }
 0x24b   : >> { %1064 = vmax.xlane.f32.xlu2 %v3194_v48 }
 0x24c   : >> { %1062 = vmax.xlane.f32.xlu1 %v3204_v59 }
 0x24d   : >> { %v1073_v53 = vpop.xlane.xlu0 %1072 }
 0x24e   : >> { %v3211_v3 = vmax.f32 %v3206_v16, %v1073_v53 }
 0x250   : >> { %1548 = vst [vmem:[#allocation2 + $0x70] sm:$0xff] %v3211_v3  ;;  %1209 = vperm.xlu0 %2294, %v3211_v3  }
 0x255   : >> { %v1075_v51 = vpop.xlane.xlu0 %1074 }
 0x256   : >> { %v3222_v53 = vmax.f32 %v3217_v63, %v1075_v51 }
 0x258   : >> { %1549 = vst [vmem:[#allocation2 + $0x78] sm:$0xff] %v3222_v53  ;;  %1214 = vperm.xlu0 %2294, %v3222_v53  }
 0x25d   : >> { %v1077_v18 = vpop.xlane.xlu2 %1076 }
 0x25e   : >> { %v3231_v19 = vmax.f32 %v3228_v4, %v1077_v18  ;;  %v2105_v18 = vld [vmem:[%s3200_s10 + $0x8] sm:$0xff] }
 0x25f   : >> { %1460 = vmatpush.bf16.msra.mxu1 %v2105_v18  ;;  %2174 = vmatpush.bf16.msra.mxu3 %v2105_v18 }
 0x260   : >> { %1550 = vst [vmem:[#allocation2 + $0x28] sm:$0xff] %v3231_v19 }
 0x263   : >> { %1199 = vperm.xlu2 %2293, %v3168_v8   ;;  %1461 = vmatpush.bf16.msra.mxu1 %v2104_v20 }
 0x264   : >> { %2175 = vmatpush.bf16.msra.mxu3 %v2104_v20 }
 0x265   : >> { %1164 = vperm.xlu1 %2292, %v3143_v10  }
 0x26b   : >> { %1174 = vperm.xlu2 %2293, %v3104_v44  }
 0x26d   : >> { %1179 = vperm.xlu1 %2292, %v3130_v60  }
 0x273   : >> { %1219 = vperm.xlu2 %2293, %v3231_v19  }
 0x27c   : >> { %v1150_v52 = vpop.permute.xlu2 %1149 }
 0x27d   : >> { %v1223_v43 = vsub.f32 %v3002_v61, %v1150_v52 }
 0x27f   : >> { %v1240_v51 = vmul.f32 1.442695, %v1223_v43 }
 0x281   : >> { %2295 = vpow2.f32 %v1240_v51 }
 0x284   : >> { %v1145_v21 = vpop.permute.xlu1 %1144 }
 0x285   : >> { %v1222_v22 = vsub.f32 %v2981_v55, %v1145_v21 }
 0x287   : >> { %v1238_v41 = vmul.f32 1.442695, %v1222_v22  ;;  %v3248_v23 = vpop.eup %2295 }
 0x289   : >> { %2297 = vpow2.f32 %v1238_v41  ;;  %v3256_v41 = vld [vmem:[#allocation2 + $0x20] sm:$0xff] }
 0x28f   : >> { %v2298_v24 = vpop.eup %2297 }
 0x290   : >> { %v1398_v18 = vpack.c.bf16 %v3248_v23, %v2298_v24 }
 0x292   : >> { %1462 = vmatmul.bf16.vlgmr.msra.gmra.mxu1 %v1398_v18  ;;  %v3258_v18 = vld [vmem:[#allocation2 + $0x40] sm:$0xff] }
 0x294   : >> { %v1155_v25 = vpop.permute.xlu1 %1154 }
 0x295   : >> { %v1224_v20 = vsub.f32 %v3004_v62, %v1155_v25 }
 0x297   : >> { %v1242_v26 = vmul.f32 1.442695, %v1224_v20 }
 0x299   : >> { %2299 = vpow2.f32 %v1242_v26 }
 0x29c   : >> { %v1160_v27 = vpop.permute.xlu0 %1159  ;;  %1302 = vadd.xlane.f32.xlu2 %v2298_v24 }
 0x29d   : >> { %v1225_v61 = vsub.f32 %v3022_v2, %v1160_v27 }
 0x29f   : >> { %v1244_v52 = vmul.f32 1.442695, %v1225_v61  ;;  %v3253_v21 = vpop.eup %2299 }
 0x2a1   : >> { %2301 = vpow2.f32 %v1244_v52 }
 0x2a7   : >> { %v2302_v22 = vpop.eup %2301 }
 0x2a8   : >> { %v1399_v55 = vpack.c.bf16 %v2302_v22, %v3253_v21 }
 0x2aa   : >> { %1467 = vmatmul.bf16.gmra.mxu1 %v1399_v55  ;;  %v1195_v51 = vpop.permute.xlu0 %1194 }
 0x2ab   : >> { %v1232_v2 = vsub.f32 %v3046_v7, %v1195_v51 }
 0x2ad   : >> { %v1258_v52 = vmul.f32 1.442695, %v1232_v2 }
 0x2af   : >> { %2303 = vpow2.f32 %v1258_v52 }
 0x2b2   : >> { %v1170_v43 = vpop.permute.xlu0 %1169 }
 0x2b3   : >> { %v1227_v31 = vsub.f32 %v3049_v9, %v1170_v43 }
 0x2b5   : >> { %v2304_v7 = vpop.eup %2303  ;;  %v1248_v52 = vmul.f32 1.442695, %v1227_v31 }
 0x2ba   : >> { %v1205_v61 = vpop.permute.xlu0 %1204 }
 0x2bb   : >> { %v1234_v32 = vsub.f32 %v3065_v13, %v1205_v61 }
 0x2be   : >> { %v1065_v25 = vpop.xlane.xlu2 %1064 }
 0x2bf   : >> { %v3261_v24 = vmax.f32 %v3256_v41, %v1065_v25  ;;  %v1063_v27 = vpop.xlane.xlu1 %1062 }
 0x2c0   : >> { %v3264_v26 = vmax.f32 %v3258_v18, %v1063_v27 }
 0x2c1   : >> { %1544 = vst [vmem:[#allocation2 + $0x20] sm:$0xff] %v3261_v24  ;;  %1189 = vperm.xlu0 %2294, %v3261_v24  }
 0x2c2   : >> { %1543 = vst [vmem:[#allocation2 + $0x40] sm:$0xff] %v3264_v26  ;;  %1184 = vperm.xlu1 %2292, %v3264_v26   ;;  %v1210_v62 = vpop.permute.xlu0 %1209 }
 0x2c3   : >> { %v1235_v20 = vsub.f32 %v3073_v15, %v1210_v62 }
 0x2c6   : >> { %v1200_v55 = vpop.permute.xlu2 %1199 }
 0x2c7   : >> { %v1233_v25 = vsub.f32 %v3057_v11, %v1200_v55  ;;  %v1264_v11 = vmul.f32 1.442695, %v1235_v20  ;;  %v1262_v55 = vmul.f32 1.442695, %v1234_v32 }
 0x2c9   : >> { %v1260_v27 = vmul.f32 1.442695, %v1233_v25 }
 0x2cb   : >> { %2305 = vpow2.f32 %v1260_v27 }
 0x2ce   : >> { %v1175_v28 = vpop.permute.xlu2 %1174 }
 0x2cf   : >> { %v1228_v29 = vsub.f32 %v2989_v57, %v1175_v28 }
 0x2d1   : >> { %v3277_v51 = vpop.eup %2305  ;;  %v1250_v30 = vmul.f32 1.442695, %v1228_v29 }
 0x2d2   : >> { %v1403_v2 = vpack.c.bf16 %v3277_v51, %v2304_v7 }
 0x2d3   : >> { %2307 = vpow2.f32 %v1250_v30  ;;  %v1215_v30 = vpop.permute.xlu0 %1214 }
 0x2d4   : >> { %1487 = vmatmul.bf16.vlgmr.msra.gmra.mxu3 %v1403_v2  ;;  %2309 = vpow2.f32 %v1264_v11  ;;  %v1236_v20 = vsub.f32 %v3081_v17, %v1215_v30 }
 0x2d5   : >> { %2311 = vpow2.f32 %v1248_v52 }
 0x2d6   : >> { %2313 = vpow2.f32 %v1262_v55  ;;  %v1220_v29 = vpop.permute.xlu2 %1219  ;;  %v1266_v52 = vmul.f32 1.442695, %v1236_v20  ;;  %v3546_v20 = vsub.f32 %v3109_v46, %v3115_v50 }
 0x2d7   : >> { %v1165_v25 = vpop.permute.xlu1 %1164  ;;  %v1237_v31 = vsub.f32 %v3089_v36, %v1220_v29  ;;  %v1270_v29 = vld [vmem:[#allocation3 + $0x28] sm:$0xff] }
 0x2d8   : >> { %v1226_v28 = vsub.f32 %v3033_v5, %v1165_v25  ;;  %v3544_v25 = vsub.f32 %v3092_v38, %v3095_v40  ;;  %v1367_v40 = vld [vmem:[#allocation4] sm:$0xff] }
 0x2d9   : >> { %v2308_v57 = vpop.eup %2307  ;;  %v1268_v2 = vmul.f32 1.442695, %v1237_v31 }
 0x2da   : >> { %v1246_v27 = vmul.f32 1.442695, %v1226_v28  ;;  %1314 = vadd.xlane.f32.xlu2 %v2308_v57  ;;  %v2310_v9 = vpop.eup %2309  ;;  %v1110_v28 = vmul.f32 1.442695, %v3544_v25 }
 0x2db   : >> { %v3284_v43 = vpop.eup %2311 }
 0x2dc   : >> { %2315 = vpow2.f32 %v1246_v27  ;;  %v3286_v13 = vpop.eup %2313 }
 0x2dd   : >> { %v1404_v62 = vpack.c.bf16 %v2310_v9, %v3286_v13  ;;  %2317 = vpow2.f32 %v1268_v2 }
 0x2df   : >> { %v1180_v15 = vpop.permute.xlu1 %1179 }
 0x2e0   : >> { %v1229_v5 = vsub.f32 %v3020_v1, %v1180_v15  ;;  %v1366_v15 = vld [vmem:[#allocation4 + $0x8] sm:$0xff] }
 0x2e2   : >> { %v2316_v32 = vpop.eup %2315  ;;  %1308 = vadd.xlane.f32.xlu2 %v2302_v22  ;;  %v1252_v11 = vmul.f32 1.442695, %v1229_v5 }
 0x2e3   : >> { %v1400_v61 = vpack.c.bf16 %v3284_v43, %v2316_v32  ;;  %v3295_v1 = vpop.eup %2317 }
 0x2e4   : >> { %1492 = vmatmul.bf16.gmra.mxu3 %v1404_v62  ;;  %2319 = vpow2.f32 %v1252_v11 }
 0x2e5   : >> { %1472 = vmatmul.bf16.gmra.mxu1 %v1400_v61  ;;  %2321 = vpow2.f32 %v1266_v52  ;;  %v3547_v61 = vsub.f32 %v3127_v56, %v3133_v0  ;;  %v1368_v52 = vld [vmem:[#allocation4 + $0x48] sm:$0xff] }
 0x2e6   : >> { %2323 = vpow2.f32 %v1110_v28  ;;  %v1369_v28 = vld [vmem:[#allocation4 + $0x60] sm:$0xff] }
 0x2e7   : >> { %v1116_v2 = vmul.f32 1.442695, %v3547_v61 }
 0x2ea   : >> { %v2320_v36 = vpop.eup %2319 }
 0x2eb   : >> { %1306 = vadd.xlane.f32.xlu0 %v3253_v21  ;;  %v3297_v22 = vpop.eup %2321  ;;  %v1401_v55 = vpack.c.bf16 %v2320_v36, %v2308_v57 }
 0x2ec   : >> { %1304 = vadd.xlane.f32.xlu1 %v3248_v23  ;;  %v1405_v17 = vpack.c.bf16 %v3295_v1, %v3297_v22  ;;  %v3545_v23 = vsub.f32 %v3107_v45, %v3112_v49  ;;  %v2324_v27 = vpop.eup %2323 }
 0x2ed   : >> { %v1286_v57 = vmul.f32 %v2324_v27, %v1270_v29  ;;  %v1382_v30 = vmul.f32 %v2324_v27, %v1366_v15 }
 0x2ee   : >> { %v1112_v21 = vmul.f32 1.442695, %v3545_v23 }
 0x2f0   : >> { %2325 = vpow2.f32 %v1112_v21 }
 0x2f4   : >> { %1497 = vmatmul.bf16.gmra.mxu3 %v1405_v17  ;;  %1316 = vadd.xlane.f32.xlu1 %v2320_v36 }
 0x2f5   : >> { %1477 = vmatmul.bf16.gmra.mxu1 %v1401_v55 }
 0x2f6   : >> { %v3307_v38 = vpop.eup %2325 }
 0x2fc   : >> { %1310 = vadd.xlane.f32.xlu1 %v2316_v32 }
 0x304   : >> { %1322 = vadd.xlane.f32.xlu1 %v2304_v7  ;;  %v1383_v7 = vmul.f32 %v3307_v38, %v1367_v40  ;;  %v1276_v40 = vld [vmem:[#allocation3 + $0x70] sm:$0xff] }
 0x30c   : >> { %1328 = vadd.xlane.f32.xlu1 %v2310_v9  ;;  %v1114_v9 = vmul.f32 1.442695, %v3546_v20  ;;  %v3550_v20 = vsub.f32 %v3140_v6, %v3143_v10  ;;  %v1272_v6 = vld [vmem:[#allocation3 + $0x10] sm:$0xff] }
 0x30e   : >> { %2327 = vpow2.f32 %v1114_v9  ;;  %v1118_v9 = vmul.f32 1.442695, %v3550_v20  ;;  %v1274_v20 = vld [vmem:[#allocation3 + $0x48] sm:$0xff] }
 0x30f   : >> { %v1303_v31 = vpop.xlane.xlu2 %1302  ;;  %v1463_v5 = vpop.f32.mrf.mxu1  ;;  %2329 = vpow2.f32 %v1116_v2 }
 0x310   : >> { %v1334_v32 = vadd.f32 %v1303_v31, %v1286_v57  ;;  %v1503_v62 = vadd.f32 %v1463_v5, %v1382_v30  ;;  %v1100_v57 = vsub.f32 %v3101_v42, %v3104_v44 }
 0x312   : >> { %1350 = vst [vmem:[#allocation3 + $0x28] sm:$0xff] %v1334_v32  ;;  %v1122_v5 = vmul.f32 1.442695, %v1100_v57 }
 0x313   : >> { %1519 = vst [vmem:[#allocation4 + $0x8] sm:$0xff] %v1503_v62 }
 0x314   : >> { %v3316_v11 = vpop.eup %2327 }
 0x315   : >> { %v1384_v36 = vmul.f32 %v3316_v11, %v1368_v52  ;;  %v2330_v25 = vpop.eup %2329 }
 0x316   : >> { %v1385_v23 = vmul.f32 %v2330_v25, %v1369_v28  ;;  %v1288_v28 = vmul.f32 %v3316_v11, %v1272_v6 }
 0x317   : >> { %v1465_v45 = vpop.f32.mrf.mxu1 }
 0x318   : >> { %v1504_v49 = vadd.f32 %v1465_v45, %v1383_v7  ;;  %v1273_v45 = vld [vmem:[#allocation3 + $0x40] sm:$0xff] }
 0x319   : >> { %v1289_v61 = vmul.f32 %v2330_v25, %v1273_v45 }
 0x31a   : >> { %1520 = vst [vmem:[#allocation4] sm:$0xff] %v1504_v49 }
 0x327   : >> { %v1468_v17 = vpop.f32.mrf.mxu1 }
 0x328   : >> { %v1505_v55 = vadd.f32 %v1468_v17, %v1384_v36  ;;  %v1377_v36 = vld [vmem:[#allocation4 + $0x20] sm:$0xff]  ;;  %v1271_v17 = vld [vmem:[#allocation3 + $0x68] sm:$0xff] }
 0x32a   : >> { %1521 = vst [vmem:[#allocation4 + $0x48] sm:$0xff] %v1505_v55  ;;  %v3552_v55 = vsub.f32 %v3150_v35, %v3160_v47  ;;  %v3553_v35 = vsub.f32 %v3206_v16, %v3211_v3  ;;  %v1371_v16 = vld [vmem:[#allocation4 + $0x18] sm:$0xff] }
 0x32c   : >> { %v1120_v25 = vmul.f32 1.442695, %v3552_v55  ;;  %v1136_v47 = vmul.f32 1.442695, %v3553_v35 }
 0x32f   : >> { %v1470_v46 = vpop.f32.mrf.mxu1 }
 0x330   : >> { %v1506_v50 = vadd.f32 %v1470_v46, %v1385_v23 }
 0x332   : >> { %1522 = vst [vmem:[#allocation4 + $0x60] sm:$0xff] %v1506_v50 }
 0x333   : >> { %v1190_v21 = vpop.permute.xlu0 %1189 }
 0x334   : >> { %v1231_v27 = vsub.f32 %v3194_v48, %v1190_v21  ;;  %v1185_v56 = vpop.permute.xlu1 %1184  ;;  %v3548_v48 = vsub.f32 %v3148_v14, %v3153_v37  ;;  %v1376_v14 = vld [vmem:[#allocation4 + $0x70] sm:$0xff]  ;;  %v1101_v37 = vsub.f32 %v3125_v54, %v3130_v60  ;;  %v3551_v54 = vsub.f32 %v3174_v39, %v3177_v12  ;;  %v1370_v39 = vld [vmem:[#allocation4 + $0x68] sm:$0xff] }
 0x335   : >> { %v1230_v0 = vsub.f32 %v3204_v59, %v1185_v56  ;;  %v1287_v12 = vmul.f32 %v3307_v38, %v1271_v17  ;;  %v1280_v17 = vld [vmem:[#allocation3 + $0x18] sm:$0xff] }
 0x336   : >> { %v1256_v29 = vmul.f32 1.442695, %v1231_v27  ;;  %v1130_v62 = vmul.f32 1.442695, %v3548_v48  ;;  %v1134_v60 = vmul.f32 1.442695, %v3551_v54 }
 0x337   : >> { %v1254_v15 = vmul.f32 1.442695, %v1230_v0 }
 0x338   : >> { %2331 = vpow2.f32 %v1256_v29 }
 0x339   : >> { %2333 = vpow2.f32 %v1254_v15 }
 0x33a   : >> { %2335 = vpow2.f32 %v1122_v5 }
 0x33b   : >> { %2337 = vpow2.f32 %v1130_v62 }
 0x33e   : >> { %v2332_v30 = vpop.eup %2331 }
 0x33f   : >> { %v2334_v31 = vpop.eup %2333  ;;  %1320 = vadd.xlane.f32.xlu2 %v2332_v30 }
 0x340   : >> { %1318 = vadd.xlane.f32.xlu0 %v2334_v31  ;;  %v1402_v32 = vpack.c.bf16 %v2332_v30, %v2334_v31  ;;  %v3325_v59 = vpop.eup %2335  ;;  %v1378_v30 = vld [vmem:[#allocation4 + $0x58] sm:$0xff] }
 0x341   : >> { %v1292_v42 = vmul.f32 %v3325_v59, %v1276_v40  ;;  %v3336_v49 = vpop.eup %2337  ;;  %v1277_v31 = vld [vmem:[#allocation3 + $0x38] sm:$0xff] }
 0x342   : >> { %1482 = vmatmul.bf16.gmra.mxu1 %v1402_v32 }
 0x347   : >> { %1326 = vadd.xlane.f32.xlu2 %v3286_v13 }
 0x348   : >> { %1312 = vadd.xlane.f32.xlu0 %v3284_v43  ;;  %v3549_v43 = vsub.f32 %v3165_v58, %v3168_v8  ;;  %v1124_v58 = vmul.f32 1.442695, %v1101_v37  ;;  %v1379_v37 = vld [vmem:[#allocation4 + $0x30] sm:$0xff] }
 0x34a   : >> { %v1132_v13 = vmul.f32 1.442695, %v3549_v43 }
 0x34c   : >> { %2339 = vpow2.f32 %v1132_v13 }
 0x34d   : >> { %v1315_v44 = vpop.xlane.xlu2 %1314  ;;  %2341 = vpow2.f32 %v1118_v9 }
 0x34e   : >> { %v1340_v7 = vadd.f32 %v1315_v44, %v1292_v42  ;;  %2343 = vpow2.f32 %v1124_v58  ;;  %v3554_v44 = vsub.f32 %v3217_v63, %v3222_v53  ;;  %v3555_v63 = vsub.f32 %v3228_v4, %v3231_v19 }
 0x34f   : >> { %1332 = vadd.xlane.f32.xlu2 %v3295_v1  ;;  %2345 = vpow2.f32 %v1134_v60 }
 0x350   : >> { %1356 = vst [vmem:[#allocation3 + $0x70] sm:$0xff] %v1340_v7  ;;  %1324 = vadd.xlane.f32.xlu0 %v3277_v51  ;;  %v1392_v51 = vmul.f32 %v3336_v49, %v1376_v14  ;;  %2347 = vpow2.f32 %v1120_v25  ;;  %v1138_v7 = vmul.f32 1.442695, %v3554_v44  ;;  %v1140_v53 = vmul.f32 1.442695, %v3555_v63  ;;  %v1375_v63 = vld [vmem:[#allocation4 + $0x28] sm:$0xff] }
 0x351   : >> { %2349 = vpow2.f32 %v1136_v47  ;;  %v1296_v25 = vmul.f32 %v3336_v49, %v1280_v17 }
 0x352   : >> { %v3348_v10 = vpop.eup %2339  ;;  %2351 = vpow2.f32 %v1138_v7 }
 0x353   : >> { %v2342_v23 = vpop.eup %2341  ;;  %v1393_v46 = vmul.f32 %v3348_v10, %v1377_v36  ;;  %v1380_v36 = vld [vmem:[#allocation4 + $0x50] sm:$0xff]  ;;  %2353 = vpow2.f32 %v1140_v53 }
 0x354   : >> { %v1386_v29 = vmul.f32 %v2342_v23, %v1370_v39  ;;  %v2344_v11 = vpop.eup %2343 }
 0x355   : >> { %v1309_v1 = vpop.xlane.xlu2 %1308  ;;  %v3359_v57 = vpop.eup %2345  ;;  %v1293_v48 = vmul.f32 %v2344_v11, %v1277_v31  ;;  %v1279_v31 = vld [vmem:[#allocation3 + $0x78] sm:$0xff] }
 0x356   : >> { %v1337_v2 = vadd.f32 %v1309_v1, %v1289_v61  ;;  %v3361_v5 = vpop.eup %2347  ;;  %v1394_v32 = vmul.f32 %v3359_v57, %v1378_v30  ;;  %v1290_v61 = vmul.f32 %v2342_v23, %v1274_v20  ;;  %v1372_v1 = vld [vmem:[#allocation4 + $0x10] sm:$0xff] }
 0x357   : >> { %v1488_v52 = vpop.f32.mrf.mxu3  ;;  %v1387_v43 = vmul.f32 %v3361_v5, %v1371_v16  ;;  %v2350_v45 = vpop.eup %2349  ;;  %v1285_v20 = vld [vmem:[#allocation3 + $0x50] sm:$0xff] }
 0x358   : >> { %1353 = vst [vmem:[#allocation3 + $0x40] sm:$0xff] %v1337_v2  ;;  %v1513_v8 = vadd.f32 %v1488_v52, %v1392_v51  ;;  %1330 = vadd.xlane.f32.xlu0 %v3297_v22  ;;  %v1395_v9 = vmul.f32 %v2350_v45, %v1379_v37  ;;  %v3372_v60 = vpop.eup %2351 }
 0x359   : >> { %v1396_v55 = vmul.f32 %v3372_v60, %v1380_v36 }
 0x35a   : >> { %1529 = vst [vmem:[#allocation4 + $0x70] sm:$0xff] %v1513_v8  ;;  %v1388_v8 = vmul.f32 %v3325_v59, %v1372_v1 }
 0x35e   : >> { %v1307_v22 = vpop.xlane.xlu0 %1306 }
 0x35f   : >> { %v1336_v50 = vadd.f32 %v1307_v22, %v1288_v28  ;;  %v1490_v21 = vpop.f32.mrf.mxu3  ;;  %v1305_v27 = vpop.xlane.xlu1 %1304  ;;  %v1373_v28 = vld [vmem:[#allocation4 + $0x38] sm:$0xff] }
 0x360   : >> { %v1514_v56 = vadd.f32 %v1490_v21, %v1393_v46  ;;  %v1335_v0 = vadd.f32 %v1305_v27, %v1287_v12  ;;  %v1389_v59 = vmul.f32 %v2344_v11, %v1373_v28  ;;  %v2354_v12 = vpop.eup %2353  ;;  %v1283_v21 = vld [vmem:[#allocation3 + $0x8] sm:$0xff] }
 0x361   : >> { %1352 = vst [vmem:[#allocation3 + $0x10] sm:$0xff] %v1336_v50  ;;  %v1381_v50 = vld [vmem:[#allocation4 + $0x78] sm:$0xff] }
 0x362   : >> { %1530 = vst [vmem:[#allocation4 + $0x20] sm:$0xff] %v1514_v56  ;;  %v1473_v15 = vpop.f32.mrf.mxu1  ;;  %v1397_v27 = vmul.f32 %v2354_v12, %v1381_v50  ;;  %v1299_v56 = vmul.f32 %v2350_v45, %v1283_v21  ;;  %v1374_v45 = vld [vmem:[#allocation4 + $0x40] sm:$0xff] }
 0x363   : >> { %1351 = vst [vmem:[#allocation3 + $0x68] sm:$0xff] %v1335_v0  ;;  %v1507_v38 = vadd.f32 %v1473_v15, %v1386_v29  ;;  %v3556_v29 = vsub.f32 %v3256_v41, %v3261_v24  ;;  %v3557_v15 = vsub.f32 %v3258_v18, %v3264_v26  ;;  %v1282_v41 = vld [vmem:[#allocation3] sm:$0xff]  ;;  %v1275_v24 = vld [vmem:[#allocation3 + $0x30] sm:$0xff] }
 0x364   : >> { %v1298_v7 = vmul.f32 %v3359_v57, %v1282_v41  ;;  %v1291_v26 = vmul.f32 %v3361_v5, %v1275_v24 }
 0x365   : >> { %1523 = vst [vmem:[#allocation4 + $0x68] sm:$0xff] %v1507_v38  ;;  %v1128_v11 = vmul.f32 1.442695, %v3556_v29  ;;  %v1126_v38 = vmul.f32 1.442695, %v3557_v15 }
 0x367   : >> { %v1493_v3 = vpop.f32.mrf.mxu3  ;;  %v1317_v62 = vpop.xlane.xlu1 %1316  ;;  %2355 = vpow2.f32 %v1128_v11 }
 0x368   : >> { %v1515_v40 = vadd.f32 %v1493_v3, %v1394_v32  ;;  %v1341_v42 = vadd.f32 %v1317_v62, %v1293_v48  ;;  %2357 = vpow2.f32 %v1126_v38  ;;  %v1278_v48 = vld [vmem:[#allocation3 + $0x20] sm:$0xff] }
 0x36a   : >> { %1531 = vst [vmem:[#allocation4 + $0x58] sm:$0xff] %v1515_v40  ;;  %v1475_v13 = vpop.f32.mrf.mxu1 }
 0x36b   : >> { %1357 = vst [vmem:[#allocation3 + $0x38] sm:$0xff] %v1341_v42  ;;  %v1508_v14 = vadd.f32 %v1475_v13, %v1387_v43 }
 0x36d   : >> { %1524 = vst [vmem:[#allocation4 + $0x18] sm:$0xff] %v1508_v14  ;;  %v2356_v30 = vpop.eup %2355 }
 0x36e   : >> { %v2358_v32 = vpop.eup %2357  ;;  %v1295_v16 = vmul.f32 %v2356_v30, %v1279_v31  ;;  %v1391_v53 = vmul.f32 %v2356_v30, %v1375_v63 }
 0x36f   : >> { %v1495_v2 = vpop.f32.mrf.mxu3  ;;  %v1311_v51 = vpop.xlane.xlu1 %1310  ;;  %v1294_v62 = vmul.f32 %v2358_v32, %v1278_v48  ;;  %v1390_v37 = vmul.f32 %v2358_v32, %v1374_v45 }
 0x370   : >> { %v1516_v52 = vadd.f32 %v1495_v2, %v1395_v9  ;;  %v1338_v58 = vadd.f32 %v1311_v51, %v1290_v61  ;;  %v1281_v61 = vld [vmem:[#allocation3 + $0x58] sm:$0xff]  ;;  %v1301_v2 = vmul.f32 %v2354_v12, %v1285_v20 }
 0x372   : >> { %1532 = vst [vmem:[#allocation4 + $0x30] sm:$0xff] %v1516_v52  ;;  %v1478_v54 = vpop.f32.mrf.mxu1  ;;  %v1297_v52 = vmul.f32 %v3348_v10, %v1281_v61 }
 0x373   : >> { %1354 = vst [vmem:[#allocation3 + $0x48] sm:$0xff] %v1338_v58  ;;  %v1509_v6 = vadd.f32 %v1478_v54, %v1388_v8  ;;  %v1284_v54 = vld [vmem:[#allocation3 + $0x60] sm:$0xff] }
 0x374   : >> { %v1300_v36 = vmul.f32 %v3372_v60, %v1284_v54 }
 0x375   : >> { %1525 = vst [vmem:[#allocation4 + $0x10] sm:$0xff] %v1509_v6 }
 0x377   : >> { %v1498_v23 = vpop.f32.mrf.mxu3  ;;  %v1323_v19 = vpop.xlane.xlu1 %1322 }
 0x378   : >> { %v1517_v4 = vadd.f32 %v1498_v23, %v1396_v55  ;;  %v1344_v22 = vadd.f32 %v1323_v19, %v1296_v25 }
 0x37a   : >> { %1533 = vst [vmem:[#allocation4 + $0x50] sm:$0xff] %v1517_v4  ;;  %v1480_v46 = vpop.f32.mrf.mxu1 }
 0x37b   : >> { %1360 = vst [vmem:[#allocation3 + $0x18] sm:$0xff] %v1344_v22  ;;  %v1510_v39 = vadd.f32 %v1480_v46, %v1389_v59 }
 0x37d   : >> { %1526 = vst [vmem:[#allocation4 + $0x38] sm:$0xff] %v1510_v39 }
 0x37f   : >> { %v1500_v0 = vpop.f32.mrf.mxu3  ;;  %v1329_v35 = vpop.xlane.xlu1 %1328 }
 0x380   : >> { %v1518_v47 = vadd.f32 %v1500_v0, %v1397_v27  ;;  %v1347_v49 = vadd.f32 %v1329_v35, %v1299_v56 }
 0x382   : >> { %1534 = vst [vmem:[#allocation4 + $0x78] sm:$0xff] %v1518_v47 }
 0x383   : >> { %1363 = vst [vmem:[#allocation3 + $0x8] sm:$0xff] %v1347_v49 }
 0x3b2   : >> { %v1321_v3 = vpop.xlane.xlu2 %1320 }
 0x3b3   : >> { %v1343_v40 = vadd.f32 %v1321_v3, %v1295_v16  ;;  %v1319_v42 = vpop.xlane.xlu0 %1318 }
 0x3b4   : >> { %v1342_v44 = vadd.f32 %v1319_v42, %v1294_v62 }
 0x3b5   : >> { %1359 = vst [vmem:[#allocation3 + $0x78] sm:$0xff] %v1343_v40 }
 0x3b6   : >> { %1358 = vst [vmem:[#allocation3 + $0x20] sm:$0xff] %v1342_v44 }
 0x3ba   : >> { %v1327_v18 = vpop.xlane.xlu2 %1326 }
 0x3bb   : >> { %v1346_v43 = vadd.f32 %v1327_v18, %v1298_v7  ;;  %v1313_v13 = vpop.xlane.xlu0 %1312 }
 0x3bc   : >> { %v1339_v14 = vadd.f32 %v1313_v13, %v1291_v26 }
 0x3bd   : >> { %1362 = vst [vmem:[#allocation3] sm:$0xff] %v1346_v43 }
 0x3be   : >> { %1355 = vst [vmem:[#allocation3 + $0x30] sm:$0xff] %v1339_v14 }
 0x3bf   : >> { %v1483_v9 = vpop.f32.mrf.mxu1 }
 0x3c0   : >> { %v1511_v1 = vadd.f32 %v1483_v9, %v1390_v37 }
 0x3c2   : >> { %1527 = vst [vmem:[#allocation4 + $0x40] sm:$0xff] %v1511_v1  ;;  %v1333_v51 = vpop.xlane.xlu2 %1332 }
 0x3c3   : >> { %v1349_v57 = vadd.f32 %v1333_v51, %v1301_v2  ;;  %v1325_v58 = vpop.xlane.xlu0 %1324 }
 0x3c4   : >> { %v1345_v5 = vadd.f32 %v1325_v58, %v1297_v52 }
 0x3c5   : >> { %1365 = vst [vmem:[#allocation3 + $0x50] sm:$0xff] %v1349_v57 }
 0x3c6   : >> { %1361 = vst [vmem:[#allocation3 + $0x58] sm:$0xff] %v1345_v5 }
 0x3c7   : >> { %v1485_v8 = vpop.f32.mrf.mxu1 }
 0x3c8   : >> { %v1512_v6 = vadd.f32 %v1485_v8, %v1391_v53 }
 0x3ca   : >> { %1528 = vst [vmem:[#allocation4 + $0x28] sm:$0xff] %v1512_v6  ;;  %793 = sbr.rel (!%p790_p7) target bundleno = 217 (0xd9), region = 256 }
 0x3cb   : >> { %v1331_v17 = vpop.xlane.xlu0 %1330 }
 0x3cc   : >> { %v1348_v55 = vadd.f32 %v1331_v17, %v1300_v36 }
 0x3ce   : >> { %1364 = vst [vmem:[#allocation3 + $0x60] sm:$0xff] %v1348_v55 }
 0x3cf PF: > { %v1551_v10 = vld [vmem:[#allocation3 + $0x28] sm:$0xff]  ;;  %v1553_v28 = vld [vmem:[#allocation3 + $0x10] sm:$0xff]  ;;  %v1554_v23 = vld [vmem:[#allocation3 + $0x40] sm:$0xff]  ;;  %s3558_s26 = sld [smem:[#allocation11_spill]] (%p2663_p0) }
 0x3d0   : > { %v1552_v25 = vld [vmem:[#allocation3 + $0x68] sm:$0xff]  ;;  %2359 = vrcp.f32 %v1551_v10  ;;  %v1556_v60 = vld [vmem:[#allocation3 + $0x30] sm:$0xff]  ;;  %v1558_v59 = vld [vmem:[#allocation3 + $0x38] sm:$0xff]  ;;  %s3559_s8 = sld [smem:[#allocation9_spill]] (%p2663_p0) }
 0x3d1   : > { %2361 = vrcp.f32 %v1552_v25  ;;  %v1555_v19 = vld [vmem:[#allocation3 + $0x48] sm:$0xff]  ;;  %v1557_v4 = vld [vmem:[#allocation3 + $0x70] sm:$0xff]  ;;  %v1584_v46 = vld [vmem:[#allocation4] sm:$0xff]  ;;  %s3560_s11 = sld [smem:[#allocation10_spill]] (%p2663_p0) }
 0x3d2   : > { %2363 = vrcp.f32 %v1553_v28  ;;  %v1583_v22 = vld [vmem:[#allocation4 + $0x8] sm:$0xff]  ;;  %v1559_v12 = vld [vmem:[#allocation3 + $0x20] sm:$0xff]  ;;  %v1560_v33 = vld [vmem:[#allocation3 + $0x78] sm:$0xff]  ;;  %s3561_s9 = sld [smem:[#allocation30_spill]] (%p2663_p0) }
 0x3d3   : > { %2365 = vrcp.f32 %v1554_v23  ;;  %v1585_v50 = vld [vmem:[#allocation4 + $0x48] sm:$0xff]  ;;  %v1586_v27 = vld [vmem:[#allocation4 + $0x60] sm:$0xff]  ;;  %v1561_v56 = vld [vmem:[#allocation3 + $0x18] sm:$0xff] }
 0x3d4   : > { %2367 = vrcp.f32 %v1555_v19  ;;  %v1587_v47 = vld [vmem:[#allocation4 + $0x68] sm:$0xff]  ;;  %v1562_v49 = vld [vmem:[#allocation3 + $0x58] sm:$0xff]  ;;  %v1563_v38 = vld [vmem:[#allocation3] sm:$0xff] }
 0x3d5   : > { %2369 = vrcp.f32 %v1556_v60  ;;  %v1588_v15 = vld [vmem:[#allocation4 + $0x18] sm:$0xff]  ;;  %v1589_v48 = vld [vmem:[#allocation4 + $0x10] sm:$0xff]  ;;  %v1564_v16 = vld [vmem:[#allocation3 + $0x8] sm:$0xff]  ;;  %s2082_s5 = sshll.u32 (%p2663_p0), %s3558_s26, 1 }
 0x3d6   : > { %v2360_v39 = vpop.eup %2359  ;;  %2371 = vrcp.f32 %v1557_v4  ;;  %v1590_v40 = vld [vmem:[#allocation4 + $0x38] sm:$0xff]  ;;  %v1565_v42 = vld [vmem:[#allocation3 + $0x60] sm:$0xff]  ;;  %v1566_v18 = vld [vmem:[#allocation3 + $0x50] sm:$0xff]  ;;  %s1655_s12 = sadd.s32 (%p2663_p0), %s3559_s8, %s2082_s5 }
 0x3d7   : > { %v2362_v34 = vpop.eup %2361  ;;  %v1599_v21 = vmul.f32 %v2360_v39, %v1583_v22  ;;  %2373 = vrcp.f32 %v1558_v59  ;;  %v1591_v7 = vld [vmem:[#allocation4 + $0x40] sm:$0xff]  ;;  %v1592_v13 = vld [vmem:[#allocation4 + $0x28] sm:$0xff]  ;;  %v1593_v20 = vld [vmem:[#allocation4 + $0x70] sm:$0xff]  ;;  %s2112_s14 = sshll.u32 (%p2663_p0), %s1655_s12, 5 }
 0x3d8   : > { %v2364_v0 = vpop.eup %2363  ;;  %v1600_v35 = vmul.f32 %v2362_v34, %v1584_v46  ;;  %2375 = vrcp.f32 %v1559_v12  ;;  %v1594_v1 = vld [vmem:[#allocation4 + $0x20] sm:$0xff]  ;;  %v1595_v57 = vld [vmem:[#allocation4 + $0x58] sm:$0xff]  ;;  %v1596_v5 = vld [vmem:[#allocation4 + $0x30] sm:$0xff]  ;;  %s1658_s16 = sadd.s32 (%p2663_p0), %s3560_s11, %s2112_s14 }
 0x3d9   : > { %v2366_v29 = vpop.eup %2365  ;;  %v1601_v11 = vmul.f32 %v2364_v0, %v1585_v50  ;;  %2377 = vrcp.f32 %v1560_v33  ;;  %v1597_v6 = vld [vmem:[#allocation4 + $0x50] sm:$0xff]  ;;  %v1598_v55 = vld [vmem:[#allocation4 + $0x78] sm:$0xff]  ;;  %s2085_s29 = sshll.u32 (%p2663_p0), %s1658_s16, 2 }
 0x3da   : > { %v2368_v30 = vpop.eup %2367  ;;  %v2116_v31 = vpack.c.bf16 %v1600_v35, %v1599_v21  ;;  %v1602_v32 = vmul.f32 %v2366_v29, %v1586_v27  ;;  %2379 = vrcp.f32 %v1561_v56  ;;  %s1660_s21 = scalar_lea.vmem (%p2663_p0), %s3561_s9, %s2085_s29 }
 0x3db   : > { %v2370_v3 = vpop.eup %2369  ;;  %v1603_v62 = vmul.f32 %v2368_v30, %v1587_v47  ;;  %2381 = vrcp.f32 %v1562_v49 }
 0x3dc   : > { %v2372_v44 = vpop.eup %2371  ;;  %2117 = vst [vmem:[%s2945_s30] sm:$0xff] %v2116_v31   ;;  %v2121_v41 = vpack.c.bf16 %v1602_v32, %v1601_v11  ;;  %v1604_v24 = vmul.f32 %v2370_v3, %v1588_v15  ;;  %2383 = vrcp.f32 %v1563_v38 }
 0x3dd   : > { %v2374_v26 = vpop.eup %2373  ;;  %v1605_v43 = vmul.f32 %v2372_v44, %v1589_v48  ;;  %2385 = vrcp.f32 %v1564_v16 }
 0x3de   : > { %v2376_v45 = vpop.eup %2375  ;;  %2153 = vst [vmem:[%s2945_s30 + $0x8] sm:$0xff] %v2121_v41   ;;  %v2126_v14 = vpack.c.bf16 %v1604_v24, %v1603_v62  ;;  %v1606_v37 = vmul.f32 %v2374_v26, %v1590_v40  ;;  %2387 = vrcp.f32 %v1565_v42 }
 0x3df   : > { %v2378_v9 = vpop.eup %2377  ;;  %v1607_v61 = vmul.f32 %v2376_v45, %v1591_v7  ;;  %2389 = vrcp.f32 %v1566_v18 }
 0x3e0   : > { %v2380_v2 = vpop.eup %2379  ;;  %2154 = vst [vmem:[%s2945_s30 + $0x10] sm:$0xff] %v2126_v14   ;;  %v2131_v51 = vpack.c.bf16 %v1606_v37, %v1605_v43  ;;  %v1608_v52 = vmul.f32 %v2378_v9, %v1592_v13 }
 0x3e1   : > { %v2382_v58 = vpop.eup %2381  ;;  %v1609_v63 = vmul.f32 %v2380_v2, %v1593_v20 }
 0x3e2   : > { %v2384_v53 = vpop.eup %2383  ;;  %2155 = vst [vmem:[%s2945_s30 + $0x18] sm:$0xff] %v2131_v51   ;;  %v2136_v8 = vpack.c.bf16 %v1608_v52, %v1607_v61  ;;  %v1610_v54 = vmul.f32 %v2382_v58, %v1594_v1 }
 0x3e3   : > { %v2386_v36 = vpop.eup %2385  ;;  %v1611_v17 = vmul.f32 %v2384_v53, %v1595_v57  ;;  %v1677_v59 = vld [vmem:[%s2945_s30] sm:$0xf] (%p2663_p0)  ;;  %v1679_v46 = vld [vmem:[%s2945_s30 + $0x4] sm:$0xf] (%p2663_p0) }
 0x3e4   : > { %v2388_v10 = vpop.eup %2387  ;;  %2156 = vst [vmem:[%s2945_s30 + $0x20] sm:$0xff] %v2136_v8   ;;  %v2141_v25 = vpack.c.bf16 %v1610_v54, %v1609_v63  ;;  %v1612_v28 = vmul.f32 %v2386_v36, %v1596_v5 }
 0x3e5   : > { %v2390_v23 = vpop.eup %2389  ;;  %v1613_v19 = vmul.f32 %v2388_v10, %v1597_v6  ;;  %v1681_v12 = vld [vmem:[%s2945_s30 + $0x8] sm:$0xf] (%p2663_p0)  ;;  %1678 = vst [vmem:[%s1660_s21] sm:$0xf] (%p2663_p0), %v1677_v59  ;;  %v1683_v39 = vld [vmem:[%s2945_s30 + $0xc] sm:$0xf] (%p2663_p0) }
 0x3e6   : > { %2157 = vst [vmem:[%s2945_s30 + $0x28] sm:$0xff] %v2141_v25   ;;  %v2146_v60 = vpack.c.bf16 %v1612_v28, %v1611_v17  ;;  %v1614_v4 = vmul.f32 %v2390_v23, %v1598_v55  ;;  %1653 = sbr.rel (!%p2663_p0) target bundleno = 1016 (0x3f8), region = 166 }
 0x3e7   : > { %1680 = vst [vmem:[%s1660_s21 + $0x8] sm:$0xf] (%p2663_p0), %v1679_v46  ;;  %v1685_v50 = vld [vmem:[%s2945_s30 + $0x10] sm:$0xf] (%p2663_p0)  ;;  %v1687_v33 = vld [vmem:[%s2945_s30 + $0x14] sm:$0xf] (%p2663_p0) }
 0x3e8   : > { %2158 = vst [vmem:[%s2945_s30 + $0x30] sm:$0xff] %v2146_v60   ;;  %v2151_v22 = vpack.c.bf16 %v1614_v4, %v1613_v19 }
 0x3e9   : > { %1682 = vst [vmem:[%s1660_s21 + $0x10] sm:$0xf] (%p2663_p0), %v1681_v12  ;;  %v1689_v34 = vld [vmem:[%s2945_s30 + $0x18] sm:$0xf] (%p2663_p0)  ;;  %v1691_v21 = vld [vmem:[%s2945_s30 + $0x1c] sm:$0xf] (%p2663_p0) }
 0x3ea   : > { %2159 = vst [vmem:[%s2945_s30 + $0x38] sm:$0xff] %v2151_v22  }
 0x3eb   : > { %1684 = vst [vmem:[%s1660_s21 + $0x18] sm:$0xf] %v1683_v39  ;;  %v1693_v27 = vld [vmem:[%s2945_s30 + $0x20] sm:$0xf]  ;;  %v1695_v56 = vld [vmem:[%s2945_s30 + $0x24] sm:$0xf] }
 0x3ec   : > { %1686 = vst [vmem:[%s1660_s21 + $0x20] sm:$0xf] %v1685_v50 }
 0x3ed   : > { %1688 = vst [vmem:[%s1660_s21 + $0x28] sm:$0xf] %v1687_v33  ;;  %v1697_v0 = vld [vmem:[%s2945_s30 + $0x28] sm:$0xf]  ;;  %v1699_v35 = vld [vmem:[%s2945_s30 + $0x2c] sm:$0xf] }
 0x3ee   : > { %1690 = vst [vmem:[%s1660_s21 + $0x30] sm:$0xf] %v1689_v34 }
 0x3ef   : > { %1692 = vst [vmem:[%s1660_s21 + $0x38] sm:$0xf] %v1691_v21  ;;  %v1701_v47 = vld [vmem:[%s2945_s30 + $0x30] sm:$0xf]  ;;  %v1703_v49 = vld [vmem:[%s2945_s30 + $0x34] sm:$0xf] }
 0x3f0   : > { %1694 = vst [vmem:[%s1660_s21 + $0x40] sm:$0xf] %v1693_v27 }
 0x3f1   : > { %1696 = vst [vmem:[%s1660_s21 + $0x48] sm:$0xf] %v1695_v56  ;;  %v1705_v29 = vld [vmem:[%s2945_s30 + $0x38] sm:$0xf]  ;;  %v1707_v11 = vld [vmem:[%s2945_s30 + $0x3c] sm:$0xf] }
 0x3f2   : > { %1698 = vst [vmem:[%s1660_s21 + $0x50] sm:$0xf] %v1697_v0 }
 0x3f3   : > { %1700 = vst [vmem:[%s1660_s21 + $0x58] sm:$0xf] %v1699_v35 }
 0x3f4   : > { %1702 = vst [vmem:[%s1660_s21 + $0x60] sm:$0xf] %v1701_v47 }
 0x3f5   : > { %1704 = vst [vmem:[%s1660_s21 + $0x68] sm:$0xf] %v1703_v49 }
 0x3f6   : > { %1706 = vst [vmem:[%s1660_s21 + $0x70] sm:$0xf] %v1705_v29 }
 0x3f7   : > { %1708 = vst [vmem:[%s1660_s21 + $0x78] sm:$0xf] %v1707_v11 }
 0x3f8 PF: > { %s13_s24 = sadd.s32 1, %s2497_s24   ;;  %s3563_s3 = sld [smem:[#allocation12_spill]] }
 0x3f9   : > { %p3424_p8 = scmp.ge.s32.totalorder %s13_s24, 10   ;;  %s3564_s21 = sld [smem:[#allocation13_spill]] }
 0x3fa   : > { %s3565_s30 = sld [smem:[#allocation14_spill]]  ;;  %s3567_s12 = smov %s2453_s13 }
 0x3fb   : > { %s3568_s13 = smov %s2658_s19  ;;  %s3569_s14 = smov %s2461_s15 }
 0x3fc   : > { %s3570_s15 = smov %s2641_s18  ;;  %s3571_s16 = smov %s2469_s17 }
 0x3fd   : > { %s3572_s17 = smov %s2644_s28  ;;  %s3574_s19 = smov %s2489_s22 }
 0x3fe   : > { %s3573_s18 = smov %s3563_s3  ;;  %s3575_s20 = smov %s2493_s23 }
 0x3ff   : > { %s3576_s22 = smov %s3583_s27  ;;  %12 = sbr.rel (!%p3424_p8) target bundleno = 9 (0x9), region = 267 }
 0x400   : > { %s3577_s23 = smov %s3565_s30 }

// kernel: _lambda_.5
= control target key start
LH: loop header
LB: loop body
LE: loop exit
PB: predicated region body
PF: predicated region fallthrough
CT: control target
= control target key end

     0   :  { %s3163_s0 = inlined_call_operand.vmem [shape: bf16[512,256], index: 0, kind: input, shape index: {}]   ;;  %s3164_s1 = inlined_call_operand.vmem [shape: bf16[256,256], index: 1, kind: input, shape index: {}]   ;;  %s3165_s2 = inlined_call_operand.hbm [shape: bf16[512,256], index: 2, kind: output, shape index: {}]  }
   0x1   :  { %v2371_v0 = vld [vmem:[%s3164_s1 + $0x70] sm:$0xf]  ;;  %v2520_v1 = vld [vmem:[%s3164_s1 + $0x74] sm:$0xf0]  ;;  %v2519_v5 = vld [vmem:[%s3164_s1 + $0x74] sm:$0xf] }
   0x2   :  { %v2435_v2 = vld [vmem:[%s3164_s1 + $0xf0] sm:$0xf]  ;;  %v2372_v3 = vor.u32 %v2520_v1, %v2371_v0  ;;  %v2536_v4 = vld [vmem:[%s3164_s1 + $0xf4] sm:$0xf0]  ;;  %v2373_v6 = vld [vmem:[%s3164_s1 + $0x78] sm:$0xf0] }
   0x3   :  { %v2436_v7 = vor.u32 %v2536_v4, %v2435_v2  ;;  %v2376_v8 = vor.u32 %v2519_v5, %v2373_v6  ;;  %v2535_v9 = vld [vmem:[%s3164_s1 + $0xf4] sm:$0xf]  ;;  %v2437_v10 = vld [vmem:[%s3164_s1 + $0xf8] sm:$0xf0]  ;;  %v2363_v11 = vld [vmem:[%s3164_s1 + $0x60] sm:$0xf] }
   0x4   :  { %848 = vmatpush.bf16.msra.mxu0 %v2372_v3  ;;  %v2440_v12 = vor.u32 %v2535_v9, %v2437_v10  ;;  %v2518_v13 = vld [vmem:[%s3164_s1 + $0x64] sm:$0xf0]  ;;  %v2427_v14 = vld [vmem:[%s3164_s1 + $0xe0] sm:$0xf]  ;;  %v2517_v18 = vld [vmem:[%s3164_s1 + $0x64] sm:$0xf] }
   0x5   :  { %v2534_v15 = vld [vmem:[%s3164_s1 + $0xe4] sm:$0xf0]  ;;  %1017 = vmatpush.bf16.msra.mxu1 %v2436_v7  ;;  %1186 = vmatpush.bf16.msra.mxu2 %v2376_v8  ;;  %v2364_v16 = vor.u32 %v2518_v13, %v2363_v11  ;;  %v2365_v19 = vld [vmem:[%s3164_s1 + $0x68] sm:$0xf0]  ;;  %v2533_v20 = vld [vmem:[%s3164_s1 + $0xe4] sm:$0xf] }
   0x6   :  { %v2428_v17 = vor.u32 %v2534_v15, %v2427_v14  ;;  %1355 = vmatpush.bf16.msra.mxu3 %v2440_v12  ;;  %v2368_v21 = vor.u32 %v2517_v18, %v2365_v19  ;;  %v2429_v22 = vld [vmem:[%s3164_s1 + $0xe8] sm:$0xf0]  ;;  %v2355_v23 = vld [vmem:[%s3164_s1 + $0x50] sm:$0xf]  ;;  %v2516_v24 = vld [vmem:[%s3164_s1 + $0x54] sm:$0xf0] }
   0x7   :  { %v2432_v25 = vor.u32 %v2533_v20, %v2429_v22  ;;  %v2419_v26 = vld [vmem:[%s3164_s1 + $0xd0] sm:$0xf]  ;;  %v2532_v27 = vld [vmem:[%s3164_s1 + $0xd4] sm:$0xf0]  ;;  %v2515_v28 = vld [vmem:[%s3164_s1 + $0x54] sm:$0xf]  ;;  %v2356_v29 = vor.u32 %v2516_v24, %v2355_v23 }
   0x8   :  { %849 = vmatpush.bf16.msra.mxu0 %v2364_v16  ;;  %v2357_v30 = vld [vmem:[%s3164_s1 + $0x58] sm:$0xf0]  ;;  %v2531_v31 = vld [vmem:[%s3164_s1 + $0xd4] sm:$0xf]  ;;  %v2420_v33 = vor.u32 %v2532_v27, %v2419_v26  ;;  %v2347_v35 = vld [vmem:[%s3164_s1 + $0x40] sm:$0xf] }
   0x9   :  { %v2421_v32 = vld [vmem:[%s3164_s1 + $0xd8] sm:$0xf0]  ;;  %1018 = vmatpush.bf16.msra.mxu1 %v2428_v17  ;;  %1187 = vmatpush.bf16.msra.mxu2 %v2368_v21  ;;  %v2360_v34 = vor.u32 %v2515_v28, %v2357_v30  ;;  %v2514_v36 = vld [vmem:[%s3164_s1 + $0x44] sm:$0xf0]  ;;  %v2411_v37 = vld [vmem:[%s3164_s1 + $0xc0] sm:$0xf] }
   0xa   :  { %1356 = vmatpush.bf16.msra.mxu3 %v2432_v25  ;;  %v2424_v38 = vor.u32 %v2531_v31, %v2421_v32  ;;  %v2530_v39 = vld [vmem:[%s3164_s1 + $0xc4] sm:$0xf0]  ;;  %v2513_v40 = vld [vmem:[%s3164_s1 + $0x44] sm:$0xf]  ;;  %v2349_v41 = vld [vmem:[%s3164_s1 + $0x48] sm:$0xf0]  ;;  %v2348_v44 = vor.u32 %v2514_v36, %v2347_v35 }
   0xb   :  { %v2529_v42 = vld [vmem:[%s3164_s1 + $0xc4] sm:$0xf]  ;;  %v2413_v43 = vld [vmem:[%s3164_s1 + $0xc8] sm:$0xf0]  ;;  %v2412_v45 = vor.u32 %v2530_v39, %v2411_v37  ;;  %v2352_v46 = vor.u32 %v2513_v40, %v2349_v41  ;;  %v2339_v47 = vld [vmem:[%s3164_s1 + $0x30] sm:$0xf] }
   0xc   :  { %850 = vmatpush.bf16.msra.mxu0 %v2356_v29  ;;  %v2512_v48 = vld [vmem:[%s3164_s1 + $0x34] sm:$0xf0]  ;;  %v2403_v49 = vld [vmem:[%s3164_s1 + $0xb0] sm:$0xf]  ;;  %v2416_v50 = vor.u32 %v2529_v42, %v2413_v43  ;;  %v2511_v52 = vld [vmem:[%s3164_s1 + $0x34] sm:$0xf] }
   0xd   :  { %1019 = vmatpush.bf16.msra.mxu1 %v2420_v33  ;;  %1188 = vmatpush.bf16.msra.mxu2 %v2360_v34  ;;  %v2528_v51 = vld [vmem:[%s3164_s1 + $0xb4] sm:$0xf0]  ;;  %v2341_v53 = vld [vmem:[%s3164_s1 + $0x38] sm:$0xf0]  ;;  %v2527_v54 = vld [vmem:[%s3164_s1 + $0xb4] sm:$0xf]  ;;  %v2340_v56 = vor.u32 %v2512_v48, %v2339_v47 }
   0xe   :  { %1357 = vmatpush.bf16.msra.mxu3 %v2424_v38  ;;  %v2405_v55 = vld [vmem:[%s3164_s1 + $0xb8] sm:$0xf0]  ;;  %v2404_v57 = vor.u32 %v2528_v51, %v2403_v49  ;;  %v2344_v58 = vor.u32 %v2511_v52, %v2341_v53  ;;  %v2331_v59 = vld [vmem:[%s3164_s1 + $0x20] sm:$0xf]  ;;  %v2510_v60 = vld [vmem:[%s3164_s1 + $0x24] sm:$0xf0] }
   0xf   :  { %v2395_v61 = vld [vmem:[%s3164_s1 + $0xa0] sm:$0xf]  ;;  %v2408_v62 = vor.u32 %v2527_v54, %v2405_v55  ;;  %v2526_v63 = vld [vmem:[%s3164_s1 + $0xa4] sm:$0xf0]  ;;  %v2509_v0 = vld [vmem:[%s3164_s1 + $0x24] sm:$0xf]  ;;  %v2332_v4 = vor.u32 %v2510_v60, %v2331_v59 }
  0x10   :  { %851 = vmatpush.bf16.msra.mxu0 %v2348_v44  ;;  %v2333_v1 = vld [vmem:[%s3164_s1 + $0x28] sm:$0xf0]  ;;  %v2525_v2 = vld [vmem:[%s3164_s1 + $0xa4] sm:$0xf]  ;;  %v2396_v5 = vor.u32 %v2526_v63, %v2395_v61  ;;  %v2323_v7 = vld [vmem:[%s3164_s1 + $0x10] sm:$0xf] }
  0x11   :  { %1020 = vmatpush.bf16.msra.mxu1 %v2412_v45  ;;  %1189 = vmatpush.bf16.msra.mxu2 %v2352_v46  ;;  %v2397_v3 = vld [vmem:[%s3164_s1 + $0xa8] sm:$0xf0]  ;;  %v2336_v6 = vor.u32 %v2509_v0, %v2333_v1  ;;  %v2508_v8 = vld [vmem:[%s3164_s1 + $0x14] sm:$0xf0]  ;;  %v2387_v9 = vld [vmem:[%s3164_s1 + $0x90] sm:$0xf] }
  0x12   :  { %1358 = vmatpush.bf16.msra.mxu3 %v2416_v50  ;;  %v2400_v10 = vor.u32 %v2525_v2, %v2397_v3  ;;  %v2524_v11 = vld [vmem:[%s3164_s1 + $0x94] sm:$0xf0]  ;;  %v2507_v12 = vld [vmem:[%s3164_s1 + $0x14] sm:$0xf]  ;;  %v2325_v13 = vld [vmem:[%s3164_s1 + $0x18] sm:$0xf0]  ;;  %v2324_v16 = vor.u32 %v2508_v8, %v2323_v7 }
  0x13   :  { %v2523_v14 = vld [vmem:[%s3164_s1 + $0x94] sm:$0xf]  ;;  %v2389_v15 = vld [vmem:[%s3164_s1 + $0x98] sm:$0xf0]  ;;  %v2315_v17 = vld [vmem:[%s3164_s1] sm:$0xf]  ;;  %v2388_v18 = vor.u32 %v2524_v11, %v2387_v9  ;;  %v2328_v19 = vor.u32 %v2507_v12, %v2325_v13 }
  0x14   :  { %852 = vmatpush.bf16.msra.mxu0 %v2340_v56  ;;  %v2506_v20 = vld [vmem:[%s3164_s1 + $0x4] sm:$0xf0]  ;;  %v2379_v21 = vld [vmem:[%s3164_s1 + $0x80] sm:$0xf] }
  0x15   :  { %1021 = vmatpush.bf16.msra.mxu1 %v2404_v57  ;;  %1190 = vmatpush.bf16.msra.mxu2 %v2344_v58 }
  0x16   :  { %1359 = vmatpush.bf16.msra.mxu3 %v2408_v62 }
  0x18   :  { %853 = vmatpush.bf16.msra.mxu0 %v2332_v4 }
  0x19   :  { %1022 = vmatpush.bf16.msra.mxu1 %v2396_v5  ;;  %1191 = vmatpush.bf16.msra.mxu2 %v2336_v6 }
  0x1a   :  { %7 = vsyncpa [#allocation4], 0  ;;  %1360 = vmatpush.bf16.msra.mxu3 %v2400_v10  ;;  %v2392_v22 = vor.u32 %v2523_v14, %v2389_v15  ;;  %v2522_v23 = vld [vmem:[%s3164_s1 + $0x84] sm:$0xf0]  ;;  %v2505_v24 = vld [vmem:[%s3164_s1 + $0x4] sm:$0xf]  ;;  %v2316_v28 = vor.u32 %v2506_v20, %v2315_v17 }
  0x1b   :  { %v2317_v25 = vld [vmem:[%s3164_s1 + $0x8] sm:$0xf0]  ;;  %v2521_v26 = vld [vmem:[%s3164_s1 + $0x84] sm:$0xf]  ;;  %v2059_v29 = vld [vmem:[%s3163_s0] sm:$0xf]  ;;  %v2380_v31 = vor.u32 %v2522_v23, %v2379_v21 }
  0x1c   :  { %v2381_v27 = vld [vmem:[%s3164_s1 + $0x88] sm:$0xf0]  ;;  %854 = vmatpush.bf16.msra.mxu0 %v2324_v16  ;;  %v2442_v30 = vld [vmem:[%s3163_s0 + $0x4] sm:$0xf0]  ;;  %v2320_v32 = vor.u32 %v2505_v24, %v2317_v25  ;;  %v2441_v33 = vld [vmem:[%s3163_s0 + $0x4] sm:$0xf] }
  0x1d   :  { %1023 = vmatpush.bf16.msra.mxu1 %v2388_v18  ;;  %1192 = vmatpush.bf16.msra.mxu2 %v2328_v19  ;;  %v2061_v34 = vld [vmem:[%s3163_s0 + $0x8] sm:$0xf0]  ;;  %v2384_v35 = vor.u32 %v2521_v26, %v2381_v27  ;;  %v2060_v36 = vor.u32 %v2442_v30, %v2059_v29  ;;  %v2067_v38 = vld [vmem:[%s3163_s0 + $0x10] sm:$0xf]  ;;  %v2444_v39 = vld [vmem:[%s3163_s0 + $0x14] sm:$0xf0] }
  0x1e   :  { %1361 = vmatpush.bf16.msra.mxu3 %v2392_v22  ;;  %v2064_v37 = vor.u32 %v2441_v33, %v2061_v34  ;;  %v2443_v40 = vld [vmem:[%s3163_s0 + $0x14] sm:$0xf]  ;;  %v2069_v41 = vld [vmem:[%s3163_s0 + $0x18] sm:$0xf0]  ;;  %v2068_v42 = vor.u32 %v2444_v39, %v2067_v38  ;;  %v2075_v44 = vld [vmem:[%s3163_s0 + $0x20] sm:$0xf] }
  0x1f   :  { %v2072_v43 = vor.u32 %v2443_v40, %v2069_v41  ;;  %v2446_v45 = vld [vmem:[%s3163_s0 + $0x24] sm:$0xf0]  ;;  %v2445_v46 = vld [vmem:[%s3163_s0 + $0x24] sm:$0xf]  ;;  %v2077_v47 = vld [vmem:[%s3163_s0 + $0x28] sm:$0xf0] }
  0x20   :  { %855 = vmatpush.bf16.msra.mxu0 %v2316_v28  ;;  %v2076_v48 = vor.u32 %v2446_v45, %v2075_v44  ;;  %v2080_v49 = vor.u32 %v2445_v46, %v2077_v47  ;;  %v2083_v50 = vld [vmem:[%s3163_s0 + $0x30] sm:$0xf]  ;;  %v2448_v51 = vld [vmem:[%s3163_s0 + $0x34] sm:$0xf0]  ;;  %v2447_v52 = vld [vmem:[%s3163_s0 + $0x34] sm:$0xf] }
  0x21   :  { %1024 = vmatpush.bf16.msra.mxu1 %v2380_v31  ;;  %1193 = vmatpush.bf16.msra.mxu2 %v2320_v32  ;;  %v2085_v53 = vld [vmem:[%s3163_s0 + $0x38] sm:$0xf0]  ;;  %v2084_v54 = vor.u32 %v2448_v51, %v2083_v50  ;;  %v2091_v56 = vld [vmem:[%s3163_s0 + $0x40] sm:$0xf]  ;;  %v2450_v57 = vld [vmem:[%s3163_s0 + $0x44] sm:$0xf0] }
  0x22   :  { %1362 = vmatpush.bf16.msra.mxu3 %v2384_v35  ;;  %v2088_v55 = vor.u32 %v2447_v52, %v2085_v53  ;;  %v2449_v58 = vld [vmem:[%s3163_s0 + $0x44] sm:$0xf]  ;;  %v2093_v59 = vld [vmem:[%s3163_s0 + $0x48] sm:$0xf0]  ;;  %v2092_v60 = vor.u32 %v2450_v57, %v2091_v56  ;;  %v2099_v62 = vld [vmem:[%s3163_s0 + $0x50] sm:$0xf] }
  0x23   :  { %856 = vmatmul.bf16.vlgmr.msra.gmra.mxu0 %v2060_v36  ;;  %v2096_v61 = vor.u32 %v2449_v58, %v2093_v59  ;;  %v2452_v63 = vld [vmem:[%s3163_s0 + $0x54] sm:$0xf0]  ;;  %v2451_v0 = vld [vmem:[%s3163_s0 + $0x54] sm:$0xf]  ;;  %v2101_v1 = vld [vmem:[%s3163_s0 + $0x58] sm:$0xf0] }
  0x24   :  { %1025 = vmatmul.bf16.vlgmr.msra.gmra.mxu1 %v2064_v37  ;;  %1194 = vmatmul.bf16.vlgmr.msra.gmra.mxu2 %v2060_v36  ;;  %v2100_v2 = vor.u32 %v2452_v63, %v2099_v62  ;;  %v2104_v3 = vor.u32 %v2451_v0, %v2101_v1  ;;  %v2107_v4 = vld [vmem:[%s3163_s0 + $0x60] sm:$0xf]  ;;  %v2454_v5 = vld [vmem:[%s3163_s0 + $0x64] sm:$0xf0]  ;;  %v2453_v6 = vld [vmem:[%s3163_s0 + $0x64] sm:$0xf] }
  0x25   :  { %1363 = vmatmul.bf16.vlgmr.msra.gmra.mxu3 %v2064_v37  ;;  %v2109_v7 = vld [vmem:[%s3163_s0 + $0x68] sm:$0xf0]  ;;  %v2108_v8 = vor.u32 %v2454_v5, %v2107_v4  ;;  %v2115_v10 = vld [vmem:[%s3163_s0 + $0x70] sm:$0xf]  ;;  %v2456_v11 = vld [vmem:[%s3163_s0 + $0x74] sm:$0xf0] }
  0x26   :  { %v2112_v9 = vor.u32 %v2453_v6, %v2109_v7  ;;  %v2455_v12 = vld [vmem:[%s3163_s0 + $0x74] sm:$0xf]  ;;  %v2117_v13 = vld [vmem:[%s3163_s0 + $0x78] sm:$0xf0]  ;;  %v2116_v14 = vor.u32 %v2456_v11, %v2115_v10  ;;  %v2123_v16 = vld [vmem:[%s3163_s0 + $0x80] sm:$0xf] }
  0x27   :  { %v2120_v15 = vor.u32 %v2455_v12, %v2117_v13  ;;  %v2458_v17 = vld [vmem:[%s3163_s0 + $0x84] sm:$0xf0]  ;;  %v2457_v18 = vld [vmem:[%s3163_s0 + $0x84] sm:$0xf]  ;;  %v2125_v19 = vld [vmem:[%s3163_s0 + $0x88] sm:$0xf0] }
  0x28   :  { %v2124_v20 = vor.u32 %v2458_v17, %v2123_v16  ;;  %v2128_v22 = vor.u32 %v2457_v18, %v2125_v19  ;;  %v2131_v31 = vld [vmem:[%s3163_s0 + $0x90] sm:$0xf]  ;;  %v2460_v32 = vld [vmem:[%s3163_s0 + $0x94] sm:$0xf0]  ;;  %v2459_v33 = vld [vmem:[%s3163_s0 + $0x94] sm:$0xf] }
  0x29   :  { %v2133_v34 = vld [vmem:[%s3163_s0 + $0x98] sm:$0xf0]  ;;  %v2132_v36 = vor.u32 %v2460_v32, %v2131_v31  ;;  %v2139_v51 = vld [vmem:[%s3163_s0 + $0xa0] sm:$0xf]  ;;  %v2462_v52 = vld [vmem:[%s3163_s0 + $0xa4] sm:$0xf0] }
  0x2a   :  { %v2136_v39 = vor.u32 %v2459_v33, %v2133_v34  ;;  %v2461_v53 = vld [vmem:[%s3163_s0 + $0xa4] sm:$0xf]  ;;  %v2140_v56 = vor.u32 %v2462_v52, %v2139_v51  ;;  %v2147_v7 = vld [vmem:[%s3163_s0 + $0xb0] sm:$0xf]  ;;  %v2149_v10 = vld [vmem:[%s3163_s0 + $0xb8] sm:$0xf0] }
  0x2b   :  { %s2045_s23 = sshll.u32 %s3165_s2, 4  ;;  %s2567_s24 = smov 128   ;;  %s2046_s23 = int_to_ptr.hbm [resolvable:$true] %s2045_s23 }
  0x2c   :  { %s2568_s25 = smov 8  }
  0x33   :  { %861 = vmatmul.bf16.gmra.mxu0 %v2068_v42 }
  0x34   :  { %1030 = vmatmul.bf16.gmra.mxu1 %v2072_v43  ;;  %1199 = vmatmul.bf16.gmra.mxu2 %v2068_v42 }
  0x35   :  { %1368 = vmatmul.bf16.gmra.mxu3 %v2072_v43 }
  0x43   :  { %866 = vmatmul.bf16.gmra.mxu0 %v2076_v48 }
  0x44   :  { %1035 = vmatmul.bf16.gmra.mxu1 %v2080_v49  ;;  %1204 = vmatmul.bf16.gmra.mxu2 %v2076_v48 }
  0x45   :  { %1373 = vmatmul.bf16.gmra.mxu3 %v2080_v49 }
  0x53   :  { %871 = vmatmul.bf16.gmra.mxu0 %v2084_v54 }
  0x54   :  { %1040 = vmatmul.bf16.gmra.mxu1 %v2088_v55  ;;  %1209 = vmatmul.bf16.gmra.mxu2 %v2084_v54  ;;  %v2141_v54 = vld [vmem:[%s3163_s0 + $0xa8] sm:$0xf0] }
  0x55   :  { %1378 = vmatmul.bf16.gmra.mxu3 %v2088_v55  ;;  %v2144_v59 = vor.u32 %v2461_v53, %v2141_v54 }
  0x63   :  { %876 = vmatmul.bf16.gmra.mxu0 %v2092_v60 }
  0x64   :  { %1045 = vmatmul.bf16.gmra.mxu1 %v2096_v61  ;;  %1214 = vmatmul.bf16.gmra.mxu2 %v2092_v60 }
  0x65   :  { %1383 = vmatmul.bf16.gmra.mxu3 %v2096_v61 }
  0x73   :  { %881 = vmatmul.bf16.gmra.mxu0 %v2100_v2 }
  0x74   :  { %1050 = vmatmul.bf16.gmra.mxu1 %v2104_v3  ;;  %1219 = vmatmul.bf16.gmra.mxu2 %v2100_v2 }
  0x75   :  { %1388 = vmatmul.bf16.gmra.mxu3 %v2104_v3 }
  0x83   :  { %886 = vmatmul.bf16.gmra.mxu0 %v2108_v8 }
  0x84   :  { %1055 = vmatmul.bf16.gmra.mxu1 %v2112_v9  ;;  %1224 = vmatmul.bf16.gmra.mxu2 %v2108_v8  ;;  %v2464_v8 = vld [vmem:[%s3163_s0 + $0xb4] sm:$0xf0] }
  0x85   :  { %1393 = vmatmul.bf16.gmra.mxu3 %v2112_v9  ;;  %v2463_v9 = vld [vmem:[%s3163_s0 + $0xb4] sm:$0xf]  ;;  %v2148_v12 = vor.u32 %v2464_v8, %v2147_v7 }
  0x93   :  { %891 = vmatmul.bf16.gmra.mxu0 %v2116_v14 }
  0x94   :  { %1060 = vmatmul.bf16.gmra.mxu1 %v2120_v15  ;;  %1229 = vmatmul.bf16.gmra.mxu2 %v2116_v14 }
  0x95   :  { %1398 = vmatmul.bf16.gmra.mxu3 %v2120_v15  ;;  %v2152_v15 = vor.u32 %v2463_v9, %v2149_v10 }
  0xa0   :  { %v857_v21 = vpop.f32.mrf.mxu0 }
  0xa1   :  { %v1026_v23 = vpop.f32.mrf.mxu1 }
  0xa2   :  { %v1027_v24 = vadd.f32 %v1026_v23, %v857_v21 }
  0xa3   :  { %896 = vmatmul.bf16.gmra.mxu0 %v2124_v20 }
  0xa4   :  { %1065 = vmatmul.bf16.gmra.mxu1 %v2128_v22  ;;  %1234 = vmatmul.bf16.gmra.mxu2 %v2124_v20 }
  0xa5   :  { %1403 = vmatmul.bf16.gmra.mxu3 %v2128_v22 }
  0xa7   :  { %v1195_v25 = vpop.f32.mrf.mxu2 }
  0xa8   :  { %v1364_v26 = vpop.f32.mrf.mxu3  ;;  %v859_v27 = vpop.f32.mrf.mxu0 }
  0xa9   :  { %v1365_v28 = vadd.f32 %v1364_v26, %v1195_v25  ;;  %v1028_v29 = vpop.f32.mrf.mxu1 }
  0xaa   :  { %v1029_v40 = vadd.f32 %v1028_v29, %v859_v27  ;;  %v2155_v27 = vld [vmem:[%s3163_s0 + $0xc0] sm:$0xf]  ;;  %v2465_v29 = vld [vmem:[%s3163_s0 + $0xc4] sm:$0xf] }
  0xab   :  { %v1911_v30 = vpack.c.bf16 %v1365_v28, %v1027_v24  ;;  %v2466_v28 = vld [vmem:[%s3163_s0 + $0xc4] sm:$0xf0] }
  0xac   :  { %v2156_v32 = vor.u32 %v2466_v28, %v2155_v27 }
  0xad   :  { %1975 = vst [vmem:[#allocation3] sm:$0xff] %v1911_v30  ;;  %v2157_v30 = vld [vmem:[%s3163_s0 + $0xc8] sm:$0xf0] }
  0xaf   :  { %v1197_v35 = vpop.f32.mrf.mxu2 }
  0xb0   :  { %v1366_v37 = vpop.f32.mrf.mxu3  ;;  %v862_v38 = vpop.f32.mrf.mxu0 }
  0xb1   :  { %v1367_v41 = vadd.f32 %v1366_v37, %v1197_v35  ;;  %v1031_v42 = vpop.f32.mrf.mxu1  ;;  %v2160_v35 = vor.u32 %v2465_v29, %v2157_v30 }
  0xb2   :  { %v1032_v44 = vadd.f32 %v1031_v42, %v862_v38 }
  0xb3   :  { %v1912_v43 = vpack.c.bf16 %v1367_v41, %v1029_v40  ;;  %901 = vmatmul.bf16.gmra.mxu0 %v2132_v36 }
  0xb4   :  { %1070 = vmatmul.bf16.gmra.mxu1 %v2136_v39  ;;  %1239 = vmatmul.bf16.gmra.mxu2 %v2132_v36 }
  0xb5   :  { %1976 = vst [vmem:[#allocation3 + $0x8] sm:$0xff] %v1912_v43  ;;  %1408 = vmatmul.bf16.gmra.mxu3 %v2136_v39 }
  0xb7   :  { %v1200_v45 = vpop.f32.mrf.mxu2 }
  0xb8   :  { %v1369_v46 = vpop.f32.mrf.mxu3  ;;  %v864_v47 = vpop.f32.mrf.mxu0 }
  0xb9   :  { %v1370_v48 = vadd.f32 %v1369_v46, %v1200_v45  ;;  %v1033_v49 = vpop.f32.mrf.mxu1 }
  0xba   :  { %v1034_v60 = vadd.f32 %v1033_v49, %v864_v47  ;;  %v2163_v47 = vld [vmem:[%s3163_s0 + $0xd0] sm:$0xf]  ;;  %v2467_v49 = vld [vmem:[%s3163_s0 + $0xd4] sm:$0xf] }
  0xbb   :  { %v1913_v50 = vpack.c.bf16 %v1370_v48, %v1032_v44  ;;  %v2468_v48 = vld [vmem:[%s3163_s0 + $0xd4] sm:$0xf0] }
  0xbc   :  { %v2164_v52 = vor.u32 %v2468_v48, %v2163_v47 }
  0xbd   :  { %1977 = vst [vmem:[#allocation3 + $0x10] sm:$0xff] %v1913_v50  ;;  %v2165_v50 = vld [vmem:[%s3163_s0 + $0xd8] sm:$0xf0] }
  0xbf   :  { %v1202_v55 = vpop.f32.mrf.mxu2 }
  0xc0   :  { %v1371_v57 = vpop.f32.mrf.mxu3  ;;  %v867_v58 = vpop.f32.mrf.mxu0 }
  0xc1   :  { %v1372_v61 = vadd.f32 %v1371_v57, %v1202_v55  ;;  %v1036_v62 = vpop.f32.mrf.mxu1  ;;  %v2168_v55 = vor.u32 %v2467_v49, %v2165_v50 }
  0xc2   :  { %v1037_v0 = vadd.f32 %v1036_v62, %v867_v58 }
  0xc3   :  { %v1914_v63 = vpack.c.bf16 %v1372_v61, %v1034_v60  ;;  %906 = vmatmul.bf16.gmra.mxu0 %v2140_v56 }
  0xc4   :  { %1075 = vmatmul.bf16.gmra.mxu1 %v2144_v59  ;;  %1244 = vmatmul.bf16.gmra.mxu2 %v2140_v56 }
  0xc5   :  { %1978 = vst [vmem:[#allocation3 + $0x18] sm:$0xff] %v1914_v63  ;;  %1413 = vmatmul.bf16.gmra.mxu3 %v2144_v59 }
  0xc7   :  { %v1205_v1 = vpop.f32.mrf.mxu2 }
  0xc8   :  { %v1374_v2 = vpop.f32.mrf.mxu3  ;;  %v869_v3 = vpop.f32.mrf.mxu0 }
  0xc9   :  { %v1375_v4 = vadd.f32 %v1374_v2, %v1205_v1  ;;  %v1038_v5 = vpop.f32.mrf.mxu1 }
  0xca   :  { %v1039_v16 = vadd.f32 %v1038_v5, %v869_v3  ;;  %v2171_v3 = vld [vmem:[%s3163_s0 + $0xe0] sm:$0xf]  ;;  %v2469_v5 = vld [vmem:[%s3163_s0 + $0xe4] sm:$0xf] }
  0xcb   :  { %v1915_v6 = vpack.c.bf16 %v1375_v4, %v1037_v0  ;;  %v2470_v4 = vld [vmem:[%s3163_s0 + $0xe4] sm:$0xf0] }
  0xcc   :  { %v2172_v8 = vor.u32 %v2470_v4, %v2171_v3 }
  0xcd   :  { %1979 = vst [vmem:[#allocation3 + $0x20] sm:$0xff] %v1915_v6  ;;  %v2173_v6 = vld [vmem:[%s3163_s0 + $0xe8] sm:$0xf0] }
  0xcf   :  { %v1207_v11 = vpop.f32.mrf.mxu2 }
  0xd0   :  { %v1376_v13 = vpop.f32.mrf.mxu3  ;;  %v872_v14 = vpop.f32.mrf.mxu0 }
  0xd1   :  { %v1377_v17 = vadd.f32 %v1376_v13, %v1207_v11  ;;  %v1041_v18 = vpop.f32.mrf.mxu1  ;;  %v2176_v11 = vor.u32 %v2469_v5, %v2173_v6 }
  0xd2   :  { %v1042_v20 = vadd.f32 %v1041_v18, %v872_v14 }
  0xd3   :  { %v1916_v19 = vpack.c.bf16 %v1377_v17, %v1039_v16  ;;  %911 = vmatmul.bf16.gmra.mxu0 %v2148_v12 }
  0xd4   :  { %1080 = vmatmul.bf16.gmra.mxu1 %v2152_v15  ;;  %1249 = vmatmul.bf16.gmra.mxu2 %v2148_v12 }
  0xd5   :  { %1980 = vst [vmem:[#allocation3 + $0x28] sm:$0xff] %v1916_v19  ;;  %1418 = vmatmul.bf16.gmra.mxu3 %v2152_v15 }
  0xd7   :  { %v1210_v21 = vpop.f32.mrf.mxu2 }
  0xd8   :  { %v1379_v22 = vpop.f32.mrf.mxu3  ;;  %v874_v23 = vpop.f32.mrf.mxu0 }
  0xd9   :  { %v1380_v24 = vadd.f32 %v1379_v22, %v1210_v21  ;;  %v1043_v25 = vpop.f32.mrf.mxu1 }
  0xda   :  { %v1044_v36 = vadd.f32 %v1043_v25, %v874_v23  ;;  %v2179_v23 = vld [vmem:[%s3163_s0 + $0xf0] sm:$0xf]  ;;  %v2471_v25 = vld [vmem:[%s3163_s0 + $0xf4] sm:$0xf] }
  0xdb   :  { %v1917_v26 = vpack.c.bf16 %v1380_v24, %v1042_v20  ;;  %v2472_v24 = vld [vmem:[%s3163_s0 + $0xf4] sm:$0xf0] }
  0xdc   :  { %v2180_v28 = vor.u32 %v2472_v24, %v2179_v23 }
  0xdd   :  { %1981 = vst [vmem:[#allocation3 + $0x30] sm:$0xff] %v1917_v26  ;;  %v2181_v26 = vld [vmem:[%s3163_s0 + $0xf8] sm:$0xf0] }
  0xdf   :  { %v1212_v31 = vpop.f32.mrf.mxu2 }
  0xe0   :  { %v1381_v33 = vpop.f32.mrf.mxu3  ;;  %v877_v34 = vpop.f32.mrf.mxu0 }
  0xe1   :  { %v1382_v37 = vadd.f32 %v1381_v33, %v1212_v31  ;;  %v1046_v38 = vpop.f32.mrf.mxu1  ;;  %v2184_v31 = vor.u32 %v2471_v25, %v2181_v26 }
  0xe2   :  { %v1047_v40 = vadd.f32 %v1046_v38, %v877_v34 }
  0xe3   :  { %v1918_v39 = vpack.c.bf16 %v1382_v37, %v1044_v36  ;;  %916 = vmatmul.bf16.gmra.mxu0 %v2156_v32 }
  0xe4   :  { %1085 = vmatmul.bf16.gmra.mxu1 %v2160_v35  ;;  %1254 = vmatmul.bf16.gmra.mxu2 %v2156_v32 }
  0xe5   :  { %1982 = vst [vmem:[#allocation3 + $0x38] sm:$0xff] %v1918_v39  ;;  %1423 = vmatmul.bf16.gmra.mxu3 %v2160_v35 }
  0xe7   :  { %v1215_v41 = vpop.f32.mrf.mxu2 }
  0xe8   :  { %v1384_v42 = vpop.f32.mrf.mxu3  ;;  %v879_v43 = vpop.f32.mrf.mxu0 }
  0xe9   :  { %v1385_v44 = vadd.f32 %v1384_v42, %v1215_v41  ;;  %v1048_v45 = vpop.f32.mrf.mxu1 }
  0xea   :  { %v1049_v56 = vadd.f32 %v1048_v45, %v879_v43  ;;  %v2187_v43 = vld [vmem:[%s3163_s0 + $0x100] sm:$0xf]  ;;  %v2473_v45 = vld [vmem:[%s3163_s0 + $0x104] sm:$0xf] }
  0xeb   :  { %v1919_v46 = vpack.c.bf16 %v1385_v44, %v1047_v40  ;;  %v2474_v44 = vld [vmem:[%s3163_s0 + $0x104] sm:$0xf0] }
  0xec   :  { %v2188_v48 = vor.u32 %v2474_v44, %v2187_v43 }
  0xed   :  { %1983 = vst [vmem:[#allocation3 + $0x40] sm:$0xff] %v1919_v46  ;;  %v2189_v46 = vld [vmem:[%s3163_s0 + $0x108] sm:$0xf0] }
  0xef   :  { %v1217_v51 = vpop.f32.mrf.mxu2 }
  0xf0   :  { %v1386_v53 = vpop.f32.mrf.mxu3  ;;  %v882_v54 = vpop.f32.mrf.mxu0 }
  0xf1   :  { %v1387_v57 = vadd.f32 %v1386_v53, %v1217_v51  ;;  %v1051_v58 = vpop.f32.mrf.mxu1  ;;  %v2192_v51 = vor.u32 %v2473_v45, %v2189_v46 }
  0xf2   :  { %v1052_v60 = vadd.f32 %v1051_v58, %v882_v54 }
  0xf3   :  { %v1920_v59 = vpack.c.bf16 %v1387_v57, %v1049_v56  ;;  %921 = vmatmul.bf16.gmra.mxu0 %v2164_v52 }
  0xf4   :  { %1090 = vmatmul.bf16.gmra.mxu1 %v2168_v55  ;;  %1259 = vmatmul.bf16.gmra.mxu2 %v2164_v52 }
  0xf5   :  { %1984 = vst [vmem:[#allocation3 + $0x48] sm:$0xff] %v1920_v59  ;;  %1428 = vmatmul.bf16.gmra.mxu3 %v2168_v55 }
  0xf7   :  { %v1220_v61 = vpop.f32.mrf.mxu2 }
  0xf8   :  { %v1389_v62 = vpop.f32.mrf.mxu3  ;;  %v884_v63 = vpop.f32.mrf.mxu0 }
  0xf9   :  { %v1390_v0 = vadd.f32 %v1389_v62, %v1220_v61  ;;  %v1053_v1 = vpop.f32.mrf.mxu1 }
  0xfa   :  { %v1054_v12 = vadd.f32 %v1053_v1, %v884_v63  ;;  %v2195_v63 = vld [vmem:[%s3163_s0 + $0x110] sm:$0xf]  ;;  %v2475_v1 = vld [vmem:[%s3163_s0 + $0x114] sm:$0xf] }
  0xfb   :  { %v1921_v2 = vpack.c.bf16 %v1390_v0, %v1052_v60  ;;  %v2476_v0 = vld [vmem:[%s3163_s0 + $0x114] sm:$0xf0] }
  0xfc   :  { %v2196_v4 = vor.u32 %v2476_v0, %v2195_v63 }
  0xfd   :  { %1985 = vst [vmem:[#allocation3 + $0x50] sm:$0xff] %v1921_v2  ;;  %v2197_v2 = vld [vmem:[%s3163_s0 + $0x118] sm:$0xf0] }
  0xff   :  { %v1222_v7 = vpop.f32.mrf.mxu2 }
 0x100   :  { %v1391_v9 = vpop.f32.mrf.mxu3  ;;  %v887_v10 = vpop.f32.mrf.mxu0 }
 0x101   :  { %v1392_v13 = vadd.f32 %v1391_v9, %v1222_v7  ;;  %v1056_v14 = vpop.f32.mrf.mxu1  ;;  %v2200_v7 = vor.u32 %v2475_v1, %v2197_v2 }
 0x102   :  { %v1057_v16 = vadd.f32 %v1056_v14, %v887_v10 }
 0x103   :  { %v1922_v15 = vpack.c.bf16 %v1392_v13, %v1054_v12  ;;  %926 = vmatmul.bf16.gmra.mxu0 %v2172_v8 }
 0x104   :  { %1095 = vmatmul.bf16.gmra.mxu1 %v2176_v11  ;;  %1264 = vmatmul.bf16.gmra.mxu2 %v2172_v8 }
 0x105   :  { %1986 = vst [vmem:[#allocation3 + $0x58] sm:$0xff] %v1922_v15  ;;  %1433 = vmatmul.bf16.gmra.mxu3 %v2176_v11 }
 0x107   :  { %v1225_v17 = vpop.f32.mrf.mxu2 }
 0x108   :  { %v1394_v18 = vpop.f32.mrf.mxu3  ;;  %v889_v19 = vpop.f32.mrf.mxu0 }
 0x109   :  { %v1395_v20 = vadd.f32 %v1394_v18, %v1225_v17  ;;  %v1058_v21 = vpop.f32.mrf.mxu1 }
 0x10a   :  { %v1059_v32 = vadd.f32 %v1058_v21, %v889_v19  ;;  %v2203_v19 = vld [vmem:[%s3163_s0 + $0x120] sm:$0xf]  ;;  %v2477_v21 = vld [vmem:[%s3163_s0 + $0x124] sm:$0xf] }
 0x10b   :  { %v1923_v22 = vpack.c.bf16 %v1395_v20, %v1057_v16  ;;  %v2478_v20 = vld [vmem:[%s3163_s0 + $0x124] sm:$0xf0] }
 0x10c   :  { %v2204_v24 = vor.u32 %v2478_v20, %v2203_v19 }
 0x10d   :  { %1987 = vst [vmem:[#allocation3 + $0x60] sm:$0xff] %v1923_v22  ;;  %v2205_v22 = vld [vmem:[%s3163_s0 + $0x128] sm:$0xf0] }
 0x10f   :  { %v1227_v27 = vpop.f32.mrf.mxu2 }
 0x110   :  { %v1396_v29 = vpop.f32.mrf.mxu3  ;;  %v892_v30 = vpop.f32.mrf.mxu0 }
 0x111   :  { %v1397_v33 = vadd.f32 %v1396_v29, %v1227_v27  ;;  %v1061_v34 = vpop.f32.mrf.mxu1  ;;  %v2208_v27 = vor.u32 %v2477_v21, %v2205_v22 }
 0x112   :  { %v1062_v36 = vadd.f32 %v1061_v34, %v892_v30 }
 0x113   :  { %v1924_v35 = vpack.c.bf16 %v1397_v33, %v1059_v32  ;;  %931 = vmatmul.bf16.gmra.mxu0 %v2180_v28 }
 0x114   :  { %1100 = vmatmul.bf16.gmra.mxu1 %v2184_v31  ;;  %1269 = vmatmul.bf16.gmra.mxu2 %v2180_v28 }
 0x115   :  { %1988 = vst [vmem:[#allocation3 + $0x68] sm:$0xff] %v1924_v35  ;;  %1438 = vmatmul.bf16.gmra.mxu3 %v2184_v31 }
 0x117   :  { %v1230_v37 = vpop.f32.mrf.mxu2 }
 0x118   :  { %v1399_v38 = vpop.f32.mrf.mxu3  ;;  %v894_v39 = vpop.f32.mrf.mxu0 }
 0x119   :  { %v1400_v40 = vadd.f32 %v1399_v38, %v1230_v37  ;;  %v1063_v41 = vpop.f32.mrf.mxu1 }
 0x11a   :  { %v1064_v52 = vadd.f32 %v1063_v41, %v894_v39  ;;  %v2211_v39 = vld [vmem:[%s3163_s0 + $0x130] sm:$0xf]  ;;  %v2479_v41 = vld [vmem:[%s3163_s0 + $0x134] sm:$0xf] }
 0x11b   :  { %v1925_v42 = vpack.c.bf16 %v1400_v40, %v1062_v36  ;;  %v2480_v40 = vld [vmem:[%s3163_s0 + $0x134] sm:$0xf0] }
 0x11c   :  { %v2212_v44 = vor.u32 %v2480_v40, %v2211_v39 }
 0x11d   :  { %1989 = vst [vmem:[#allocation3 + $0x70] sm:$0xff] %v1925_v42  ;;  %v2213_v42 = vld [vmem:[%s3163_s0 + $0x138] sm:$0xf0] }
 0x11f   :  { %v1232_v47 = vpop.f32.mrf.mxu2 }
 0x120   :  { %v1401_v49 = vpop.f32.mrf.mxu3  ;;  %v897_v50 = vpop.f32.mrf.mxu0 }
 0x121   :  { %v1402_v53 = vadd.f32 %v1401_v49, %v1232_v47  ;;  %v1066_v54 = vpop.f32.mrf.mxu1  ;;  %v2216_v47 = vor.u32 %v2479_v41, %v2213_v42 }
 0x122   :  { %v1067_v56 = vadd.f32 %v1066_v54, %v897_v50 }
 0x123   :  { %v1926_v55 = vpack.c.bf16 %v1402_v53, %v1064_v52  ;;  %936 = vmatmul.bf16.gmra.mxu0 %v2188_v48 }
 0x124   :  { %1105 = vmatmul.bf16.gmra.mxu1 %v2192_v51  ;;  %1274 = vmatmul.bf16.gmra.mxu2 %v2188_v48 }
 0x125   :  { %1990 = vst [vmem:[#allocation3 + $0x78] sm:$0xff] %v1926_v55  ;;  %1443 = vmatmul.bf16.gmra.mxu3 %v2192_v51 }
 0x127   :  { %v1235_v57 = vpop.f32.mrf.mxu2 }
 0x128   :  { %v1404_v58 = vpop.f32.mrf.mxu3  ;;  %v899_v59 = vpop.f32.mrf.mxu0 }
 0x129   :  { %v1405_v60 = vadd.f32 %v1404_v58, %v1235_v57  ;;  %v1068_v61 = vpop.f32.mrf.mxu1 }
 0x12a   :  { %v1069_v8 = vadd.f32 %v1068_v61, %v899_v59  ;;  %v2219_v59 = vld [vmem:[%s3163_s0 + $0x140] sm:$0xf]  ;;  %v2481_v61 = vld [vmem:[%s3163_s0 + $0x144] sm:$0xf] }
 0x12b   :  { %v1927_v62 = vpack.c.bf16 %v1405_v60, %v1067_v56  ;;  %v2482_v60 = vld [vmem:[%s3163_s0 + $0x144] sm:$0xf0] }
 0x12c   :  { %v2220_v0 = vor.u32 %v2482_v60, %v2219_v59 }
 0x12d   :  { %1991 = vst [vmem:[#allocation3 + $0x80] sm:$0xff] %v1927_v62  ;;  %v2221_v62 = vld [vmem:[%s3163_s0 + $0x148] sm:$0xf0] }
 0x12f   :  { %v1237_v3 = vpop.f32.mrf.mxu2 }
 0x130   :  { %v1406_v5 = vpop.f32.mrf.mxu3  ;;  %v902_v6 = vpop.f32.mrf.mxu0 }
 0x131   :  { %v1407_v9 = vadd.f32 %v1406_v5, %v1237_v3  ;;  %v1071_v10 = vpop.f32.mrf.mxu1  ;;  %v2224_v3 = vor.u32 %v2481_v61, %v2221_v62 }
 0x132   :  { %v1072_v12 = vadd.f32 %v1071_v10, %v902_v6 }
 0x133   :  { %v1928_v11 = vpack.c.bf16 %v1407_v9, %v1069_v8  ;;  %941 = vmatmul.bf16.gmra.mxu0 %v2196_v4 }
 0x134   :  { %1110 = vmatmul.bf16.gmra.mxu1 %v2200_v7  ;;  %1279 = vmatmul.bf16.gmra.mxu2 %v2196_v4 }
 0x135   :  { %1992 = vst [vmem:[#allocation3 + $0x88] sm:$0xff] %v1928_v11  ;;  %1448 = vmatmul.bf16.gmra.mxu3 %v2200_v7 }
 0x137   :  { %v1240_v13 = vpop.f32.mrf.mxu2 }
 0x138   :  { %v1409_v14 = vpop.f32.mrf.mxu3  ;;  %v904_v15 = vpop.f32.mrf.mxu0 }
 0x139   :  { %v1410_v16 = vadd.f32 %v1409_v14, %v1240_v13  ;;  %v1073_v17 = vpop.f32.mrf.mxu1 }
 0x13a   :  { %v1074_v28 = vadd.f32 %v1073_v17, %v904_v15  ;;  %v2227_v15 = vld [vmem:[%s3163_s0 + $0x150] sm:$0xf]  ;;  %v2483_v17 = vld [vmem:[%s3163_s0 + $0x154] sm:$0xf] }
 0x13b   :  { %v1929_v18 = vpack.c.bf16 %v1410_v16, %v1072_v12  ;;  %v2484_v16 = vld [vmem:[%s3163_s0 + $0x154] sm:$0xf0] }
 0x13c   :  { %v2228_v20 = vor.u32 %v2484_v16, %v2227_v15 }
 0x13d   :  { %1993 = vst [vmem:[#allocation3 + $0x90] sm:$0xff] %v1929_v18  ;;  %v2229_v18 = vld [vmem:[%s3163_s0 + $0x158] sm:$0xf0] }
 0x13f   :  { %v1242_v23 = vpop.f32.mrf.mxu2 }
 0x140   :  { %v1411_v25 = vpop.f32.mrf.mxu3  ;;  %v907_v26 = vpop.f32.mrf.mxu0 }
 0x141   :  { %v1412_v29 = vadd.f32 %v1411_v25, %v1242_v23  ;;  %v1076_v30 = vpop.f32.mrf.mxu1  ;;  %v2232_v23 = vor.u32 %v2483_v17, %v2229_v18 }
 0x142   :  { %v1077_v32 = vadd.f32 %v1076_v30, %v907_v26 }
 0x143   :  { %v1930_v31 = vpack.c.bf16 %v1412_v29, %v1074_v28  ;;  %946 = vmatmul.bf16.gmra.mxu0 %v2204_v24 }
 0x144   :  { %1115 = vmatmul.bf16.gmra.mxu1 %v2208_v27  ;;  %1284 = vmatmul.bf16.gmra.mxu2 %v2204_v24 }
 0x145   :  { %1994 = vst [vmem:[#allocation3 + $0x98] sm:$0xff] %v1930_v31  ;;  %1453 = vmatmul.bf16.gmra.mxu3 %v2208_v27 }
 0x147   :  { %v1245_v33 = vpop.f32.mrf.mxu2 }
 0x148   :  { %v1414_v34 = vpop.f32.mrf.mxu3  ;;  %v909_v35 = vpop.f32.mrf.mxu0 }
 0x149   :  { %v1415_v36 = vadd.f32 %v1414_v34, %v1245_v33  ;;  %v1078_v37 = vpop.f32.mrf.mxu1 }
 0x14a   :  { %v1079_v48 = vadd.f32 %v1078_v37, %v909_v35  ;;  %v2235_v35 = vld [vmem:[%s3163_s0 + $0x160] sm:$0xf]  ;;  %v2485_v37 = vld [vmem:[%s3163_s0 + $0x164] sm:$0xf] }
 0x14b   :  { %v1931_v38 = vpack.c.bf16 %v1415_v36, %v1077_v32  ;;  %v2486_v36 = vld [vmem:[%s3163_s0 + $0x164] sm:$0xf0] }
 0x14c   :  { %v2236_v40 = vor.u32 %v2486_v36, %v2235_v35 }
 0x14d   :  { %1995 = vst [vmem:[#allocation3 + $0xa0] sm:$0xff] %v1931_v38  ;;  %v2237_v38 = vld [vmem:[%s3163_s0 + $0x168] sm:$0xf0] }
 0x14f   :  { %v1247_v43 = vpop.f32.mrf.mxu2 }
 0x150   :  { %v1416_v45 = vpop.f32.mrf.mxu3  ;;  %v912_v46 = vpop.f32.mrf.mxu0 }
 0x151   :  { %v1417_v49 = vadd.f32 %v1416_v45, %v1247_v43  ;;  %v1081_v50 = vpop.f32.mrf.mxu1  ;;  %v2240_v43 = vor.u32 %v2485_v37, %v2237_v38 }
 0x152   :  { %v1082_v52 = vadd.f32 %v1081_v50, %v912_v46 }
 0x153   :  { %v1932_v51 = vpack.c.bf16 %v1417_v49, %v1079_v48  ;;  %951 = vmatmul.bf16.gmra.mxu0 %v2212_v44 }
 0x154   :  { %1120 = vmatmul.bf16.gmra.mxu1 %v2216_v47  ;;  %1289 = vmatmul.bf16.gmra.mxu2 %v2212_v44 }
 0x155   :  { %1996 = vst [vmem:[#allocation3 + $0xa8] sm:$0xff] %v1932_v51  ;;  %1458 = vmatmul.bf16.gmra.mxu3 %v2216_v47 }
 0x157   :  { %v1250_v53 = vpop.f32.mrf.mxu2 }
 0x158   :  { %v1419_v54 = vpop.f32.mrf.mxu3  ;;  %v914_v55 = vpop.f32.mrf.mxu0 }
 0x159   :  { %v1420_v56 = vadd.f32 %v1419_v54, %v1250_v53  ;;  %v1083_v57 = vpop.f32.mrf.mxu1 }
 0x15a   :  { %v1084_v4 = vadd.f32 %v1083_v57, %v914_v55  ;;  %v2243_v55 = vld [vmem:[%s3163_s0 + $0x170] sm:$0xf]  ;;  %v2487_v57 = vld [vmem:[%s3163_s0 + $0x174] sm:$0xf] }
 0x15b   :  { %v1933_v58 = vpack.c.bf16 %v1420_v56, %v1082_v52  ;;  %v2488_v56 = vld [vmem:[%s3163_s0 + $0x174] sm:$0xf0] }
 0x15c   :  { %v2244_v60 = vor.u32 %v2488_v56, %v2243_v55 }
 0x15d   :  { %1997 = vst [vmem:[#allocation3 + $0xb0] sm:$0xff] %v1933_v58  ;;  %v2245_v58 = vld [vmem:[%s3163_s0 + $0x178] sm:$0xf0] }
 0x15f   :  { %v1252_v63 = vpop.f32.mrf.mxu2 }
 0x160   :  { %v1421_v1 = vpop.f32.mrf.mxu3  ;;  %v917_v2 = vpop.f32.mrf.mxu0 }
 0x161   :  { %v1422_v5 = vadd.f32 %v1421_v1, %v1252_v63  ;;  %v1086_v6 = vpop.f32.mrf.mxu1  ;;  %v2248_v63 = vor.u32 %v2487_v57, %v2245_v58 }
 0x162   :  { %v1087_v8 = vadd.f32 %v1086_v6, %v917_v2 }
 0x163   :  { %v1934_v7 = vpack.c.bf16 %v1422_v5, %v1084_v4  ;;  %956 = vmatmul.bf16.gmra.mxu0 %v2220_v0 }
 0x164   :  { %1125 = vmatmul.bf16.gmra.mxu1 %v2224_v3  ;;  %1294 = vmatmul.bf16.gmra.mxu2 %v2220_v0 }
 0x165   :  { %1998 = vst [vmem:[#allocation3 + $0xb8] sm:$0xff] %v1934_v7  ;;  %1463 = vmatmul.bf16.gmra.mxu3 %v2224_v3 }
 0x167   :  { %v1255_v9 = vpop.f32.mrf.mxu2 }
 0x168   :  { %v1424_v10 = vpop.f32.mrf.mxu3  ;;  %v919_v11 = vpop.f32.mrf.mxu0 }
 0x169   :  { %v1425_v12 = vadd.f32 %v1424_v10, %v1255_v9  ;;  %v1088_v13 = vpop.f32.mrf.mxu1 }
 0x16a   :  { %v1089_v24 = vadd.f32 %v1088_v13, %v919_v11  ;;  %v2251_v11 = vld [vmem:[%s3163_s0 + $0x180] sm:$0xf]  ;;  %v2489_v13 = vld [vmem:[%s3163_s0 + $0x184] sm:$0xf] }
 0x16b   :  { %v1935_v14 = vpack.c.bf16 %v1425_v12, %v1087_v8  ;;  %v2490_v12 = vld [vmem:[%s3163_s0 + $0x184] sm:$0xf0] }
 0x16c   :  { %v2252_v16 = vor.u32 %v2490_v12, %v2251_v11 }
 0x16d   :  { %1999 = vst [vmem:[#allocation3 + $0xc0] sm:$0xff] %v1935_v14  ;;  %v2253_v14 = vld [vmem:[%s3163_s0 + $0x188] sm:$0xf0] }
 0x16f   :  { %v1257_v19 = vpop.f32.mrf.mxu2 }
 0x170   :  { %v1426_v21 = vpop.f32.mrf.mxu3  ;;  %v922_v22 = vpop.f32.mrf.mxu0 }
 0x171   :  { %v1427_v25 = vadd.f32 %v1426_v21, %v1257_v19  ;;  %v1091_v26 = vpop.f32.mrf.mxu1  ;;  %v2256_v19 = vor.u32 %v2489_v13, %v2253_v14 }
 0x172   :  { %v1092_v28 = vadd.f32 %v1091_v26, %v922_v22 }
 0x173   :  { %v1936_v27 = vpack.c.bf16 %v1427_v25, %v1089_v24  ;;  %961 = vmatmul.bf16.gmra.mxu0 %v2228_v20 }
 0x174   :  { %1130 = vmatmul.bf16.gmra.mxu1 %v2232_v23  ;;  %1299 = vmatmul.bf16.gmra.mxu2 %v2228_v20 }
 0x175   :  { %2000 = vst [vmem:[#allocation3 + $0xc8] sm:$0xff] %v1936_v27  ;;  %1468 = vmatmul.bf16.gmra.mxu3 %v2232_v23 }
 0x177   :  { %v1260_v29 = vpop.f32.mrf.mxu2 }
 0x178   :  { %v1429_v30 = vpop.f32.mrf.mxu3  ;;  %v924_v31 = vpop.f32.mrf.mxu0 }
 0x179   :  { %v1430_v32 = vadd.f32 %v1429_v30, %v1260_v29  ;;  %v1093_v33 = vpop.f32.mrf.mxu1 }
 0x17a   :  { %v1094_v44 = vadd.f32 %v1093_v33, %v924_v31  ;;  %v2259_v31 = vld [vmem:[%s3163_s0 + $0x190] sm:$0xf]  ;;  %v2491_v33 = vld [vmem:[%s3163_s0 + $0x194] sm:$0xf] }
 0x17b   :  { %v1937_v34 = vpack.c.bf16 %v1430_v32, %v1092_v28  ;;  %v2492_v32 = vld [vmem:[%s3163_s0 + $0x194] sm:$0xf0] }
 0x17c   :  { %v2260_v36 = vor.u32 %v2492_v32, %v2259_v31 }
 0x17d   :  { %2001 = vst [vmem:[#allocation3 + $0xd0] sm:$0xff] %v1937_v34  ;;  %v2261_v34 = vld [vmem:[%s3163_s0 + $0x198] sm:$0xf0] }
 0x17f   :  { %v1262_v39 = vpop.f32.mrf.mxu2 }
 0x180   :  { %v1431_v41 = vpop.f32.mrf.mxu3  ;;  %v927_v42 = vpop.f32.mrf.mxu0 }
 0x181   :  { %v1432_v45 = vadd.f32 %v1431_v41, %v1262_v39  ;;  %v1096_v46 = vpop.f32.mrf.mxu1  ;;  %v2264_v39 = vor.u32 %v2491_v33, %v2261_v34 }
 0x182   :  { %v1097_v48 = vadd.f32 %v1096_v46, %v927_v42 }
 0x183   :  { %v1938_v47 = vpack.c.bf16 %v1432_v45, %v1094_v44  ;;  %966 = vmatmul.bf16.gmra.mxu0 %v2236_v40 }
 0x184   :  { %1135 = vmatmul.bf16.gmra.mxu1 %v2240_v43  ;;  %1304 = vmatmul.bf16.gmra.mxu2 %v2236_v40 }
 0x185   :  { %2002 = vst [vmem:[#allocation3 + $0xd8] sm:$0xff] %v1938_v47  ;;  %1473 = vmatmul.bf16.gmra.mxu3 %v2240_v43 }
 0x187   :  { %v1265_v49 = vpop.f32.mrf.mxu2 }
 0x188   :  { %v1434_v50 = vpop.f32.mrf.mxu3  ;;  %v929_v51 = vpop.f32.mrf.mxu0 }
 0x189   :  { %v1435_v52 = vadd.f32 %v1434_v50, %v1265_v49  ;;  %v1098_v53 = vpop.f32.mrf.mxu1 }
 0x18a   :  { %v1099_v0 = vadd.f32 %v1098_v53, %v929_v51  ;;  %v2267_v51 = vld [vmem:[%s3163_s0 + $0x1a0] sm:$0xf]  ;;  %v2493_v53 = vld [vmem:[%s3163_s0 + $0x1a4] sm:$0xf] }
 0x18b   :  { %v1939_v54 = vpack.c.bf16 %v1435_v52, %v1097_v48  ;;  %v2494_v52 = vld [vmem:[%s3163_s0 + $0x1a4] sm:$0xf0] }
 0x18c   :  { %v2268_v56 = vor.u32 %v2494_v52, %v2267_v51 }
 0x18d   :  { %2003 = vst [vmem:[#allocation3 + $0xe0] sm:$0xff] %v1939_v54  ;;  %v2269_v54 = vld [vmem:[%s3163_s0 + $0x1a8] sm:$0xf0] }
 0x18f   :  { %v1267_v59 = vpop.f32.mrf.mxu2 }
 0x190   :  { %v1436_v61 = vpop.f32.mrf.mxu3  ;;  %v932_v62 = vpop.f32.mrf.mxu0 }
 0x191   :  { %v1437_v1 = vadd.f32 %v1436_v61, %v1267_v59  ;;  %v1101_v2 = vpop.f32.mrf.mxu1  ;;  %v2272_v59 = vor.u32 %v2493_v53, %v2269_v54 }
 0x192   :  { %v1102_v4 = vadd.f32 %v1101_v2, %v932_v62 }
 0x193   :  { %v1940_v3 = vpack.c.bf16 %v1437_v1, %v1099_v0  ;;  %971 = vmatmul.bf16.gmra.mxu0 %v2244_v60 }
 0x194   :  { %1140 = vmatmul.bf16.gmra.mxu1 %v2248_v63  ;;  %1309 = vmatmul.bf16.gmra.mxu2 %v2244_v60 }
 0x195   :  { %2004 = vst [vmem:[#allocation3 + $0xe8] sm:$0xff] %v1940_v3  ;;  %1478 = vmatmul.bf16.gmra.mxu3 %v2248_v63 }
 0x197   :  { %v1270_v5 = vpop.f32.mrf.mxu2 }
 0x198   :  { %v1439_v6 = vpop.f32.mrf.mxu3  ;;  %v934_v7 = vpop.f32.mrf.mxu0 }
 0x199   :  { %v1440_v8 = vadd.f32 %v1439_v6, %v1270_v5  ;;  %v1103_v9 = vpop.f32.mrf.mxu1 }
 0x19a   :  { %v1104_v20 = vadd.f32 %v1103_v9, %v934_v7  ;;  %v2275_v7 = vld [vmem:[%s3163_s0 + $0x1b0] sm:$0xf]  ;;  %v2495_v9 = vld [vmem:[%s3163_s0 + $0x1b4] sm:$0xf] }
 0x19b   :  { %v1941_v10 = vpack.c.bf16 %v1440_v8, %v1102_v4  ;;  %v2496_v8 = vld [vmem:[%s3163_s0 + $0x1b4] sm:$0xf0] }
 0x19c   :  { %v2276_v12 = vor.u32 %v2496_v8, %v2275_v7 }
 0x19d   :  { %2005 = vst [vmem:[#allocation3 + $0xf0] sm:$0xff] %v1941_v10  ;;  %v2277_v10 = vld [vmem:[%s3163_s0 + $0x1b8] sm:$0xf0] }
 0x19f   :  { %v1272_v15 = vpop.f32.mrf.mxu2 }
 0x1a0   :  { %v1441_v17 = vpop.f32.mrf.mxu3  ;;  %v937_v18 = vpop.f32.mrf.mxu0 }
 0x1a1   :  { %v1442_v21 = vadd.f32 %v1441_v17, %v1272_v15  ;;  %v1106_v22 = vpop.f32.mrf.mxu1  ;;  %v2280_v15 = vor.u32 %v2495_v9, %v2277_v10 }
 0x1a2   :  { %v1107_v24 = vadd.f32 %v1106_v22, %v937_v18 }
 0x1a3   :  { %v1942_v23 = vpack.c.bf16 %v1442_v21, %v1104_v20  ;;  %976 = vmatmul.bf16.gmra.mxu0 %v2252_v16 }
 0x1a4   :  { %1145 = vmatmul.bf16.gmra.mxu1 %v2256_v19  ;;  %1314 = vmatmul.bf16.gmra.mxu2 %v2252_v16 }
 0x1a5   :  { %2006 = vst [vmem:[#allocation3 + $0xf8] sm:$0xff] %v1942_v23  ;;  %1483 = vmatmul.bf16.gmra.mxu3 %v2256_v19 }
 0x1a7   :  { %v1275_v25 = vpop.f32.mrf.mxu2 }
 0x1a8   :  { %v1444_v26 = vpop.f32.mrf.mxu3  ;;  %v939_v27 = vpop.f32.mrf.mxu0 }
 0x1a9   :  { %v1445_v28 = vadd.f32 %v1444_v26, %v1275_v25  ;;  %v1108_v29 = vpop.f32.mrf.mxu1 }
 0x1aa   :  { %v1109_v40 = vadd.f32 %v1108_v29, %v939_v27  ;;  %v2283_v27 = vld [vmem:[%s3163_s0 + $0x1c0] sm:$0xf]  ;;  %v2497_v29 = vld [vmem:[%s3163_s0 + $0x1c4] sm:$0xf] }
 0x1ab   :  { %v1943_v30 = vpack.c.bf16 %v1445_v28, %v1107_v24  ;;  %v2498_v28 = vld [vmem:[%s3163_s0 + $0x1c4] sm:$0xf0] }
 0x1ac   :  { %v2284_v32 = vor.u32 %v2498_v28, %v2283_v27 }
 0x1ad   :  { %2007 = vst [vmem:[#allocation3 + $0x100] sm:$0xff] %v1943_v30  ;;  %v2285_v30 = vld [vmem:[%s3163_s0 + $0x1c8] sm:$0xf0] }
 0x1af   :  { %v1277_v35 = vpop.f32.mrf.mxu2 }
 0x1b0   :  { %v1446_v37 = vpop.f32.mrf.mxu3  ;;  %v942_v38 = vpop.f32.mrf.mxu0 }
 0x1b1   :  { %v1447_v41 = vadd.f32 %v1446_v37, %v1277_v35  ;;  %v1111_v42 = vpop.f32.mrf.mxu1  ;;  %v2288_v35 = vor.u32 %v2497_v29, %v2285_v30 }
 0x1b2   :  { %v1112_v44 = vadd.f32 %v1111_v42, %v942_v38 }
 0x1b3   :  { %v1944_v43 = vpack.c.bf16 %v1447_v41, %v1109_v40  ;;  %981 = vmatmul.bf16.gmra.mxu0 %v2260_v36 }
 0x1b4   :  { %1150 = vmatmul.bf16.gmra.mxu1 %v2264_v39  ;;  %1319 = vmatmul.bf16.gmra.mxu2 %v2260_v36 }
 0x1b5   :  { %2008 = vst [vmem:[#allocation3 + $0x108] sm:$0xff] %v1944_v43  ;;  %1488 = vmatmul.bf16.gmra.mxu3 %v2264_v39 }
 0x1b7   :  { %v1280_v45 = vpop.f32.mrf.mxu2 }
 0x1b8   :  { %v1449_v46 = vpop.f32.mrf.mxu3  ;;  %v944_v47 = vpop.f32.mrf.mxu0 }
 0x1b9   :  { %v1450_v48 = vadd.f32 %v1449_v46, %v1280_v45  ;;  %v1113_v49 = vpop.f32.mrf.mxu1 }
 0x1ba   :  { %v1114_v60 = vadd.f32 %v1113_v49, %v944_v47  ;;  %v2291_v47 = vld [vmem:[%s3163_s0 + $0x1d0] sm:$0xf]  ;;  %v2499_v49 = vld [vmem:[%s3163_s0 + $0x1d4] sm:$0xf] }
 0x1bb   :  { %v1945_v50 = vpack.c.bf16 %v1450_v48, %v1112_v44  ;;  %v2500_v48 = vld [vmem:[%s3163_s0 + $0x1d4] sm:$0xf0] }
 0x1bc   :  { %v2292_v52 = vor.u32 %v2500_v48, %v2291_v47 }
 0x1bd   :  { %2009 = vst [vmem:[#allocation3 + $0x110] sm:$0xff] %v1945_v50  ;;  %v2293_v50 = vld [vmem:[%s3163_s0 + $0x1d8] sm:$0xf0] }
 0x1bf   :  { %v1282_v55 = vpop.f32.mrf.mxu2 }
 0x1c0   :  { %v1451_v57 = vpop.f32.mrf.mxu3  ;;  %v947_v58 = vpop.f32.mrf.mxu0 }
 0x1c1   :  { %v1452_v61 = vadd.f32 %v1451_v57, %v1282_v55  ;;  %v1116_v62 = vpop.f32.mrf.mxu1  ;;  %v2296_v55 = vor.u32 %v2499_v49, %v2293_v50 }
 0x1c2   :  { %v1117_v0 = vadd.f32 %v1116_v62, %v947_v58 }
 0x1c3   :  { %v1946_v63 = vpack.c.bf16 %v1452_v61, %v1114_v60  ;;  %986 = vmatmul.bf16.gmra.mxu0 %v2268_v56 }
 0x1c4   :  { %1155 = vmatmul.bf16.gmra.mxu1 %v2272_v59  ;;  %1324 = vmatmul.bf16.gmra.mxu2 %v2268_v56 }
 0x1c5   :  { %2010 = vst [vmem:[#allocation3 + $0x118] sm:$0xff] %v1946_v63  ;;  %1493 = vmatmul.bf16.gmra.mxu3 %v2272_v59 }
 0x1c7   :  { %v1285_v1 = vpop.f32.mrf.mxu2 }
 0x1c8   :  { %v1454_v2 = vpop.f32.mrf.mxu3  ;;  %v949_v3 = vpop.f32.mrf.mxu0 }
 0x1c9   :  { %v1455_v4 = vadd.f32 %v1454_v2, %v1285_v1  ;;  %v1118_v5 = vpop.f32.mrf.mxu1 }
 0x1ca   :  { %v1119_v16 = vadd.f32 %v1118_v5, %v949_v3  ;;  %v2299_v3 = vld [vmem:[%s3163_s0 + $0x1e0] sm:$0xf]  ;;  %v2501_v5 = vld [vmem:[%s3163_s0 + $0x1e4] sm:$0xf] }
 0x1cb   :  { %v1947_v6 = vpack.c.bf16 %v1455_v4, %v1117_v0  ;;  %v2502_v4 = vld [vmem:[%s3163_s0 + $0x1e4] sm:$0xf0] }
 0x1cc   :  { %v2300_v8 = vor.u32 %v2502_v4, %v2299_v3 }
 0x1cd   :  { %2011 = vst [vmem:[#allocation3 + $0x120] sm:$0xff] %v1947_v6  ;;  %v2301_v6 = vld [vmem:[%s3163_s0 + $0x1e8] sm:$0xf0] }
 0x1cf   :  { %v1287_v11 = vpop.f32.mrf.mxu2 }
 0x1d0   :  { %v1456_v13 = vpop.f32.mrf.mxu3  ;;  %v952_v14 = vpop.f32.mrf.mxu0 }
 0x1d1   :  { %v1457_v17 = vadd.f32 %v1456_v13, %v1287_v11  ;;  %v1121_v18 = vpop.f32.mrf.mxu1  ;;  %v2304_v11 = vor.u32 %v2501_v5, %v2301_v6 }
 0x1d2   :  { %v1122_v20 = vadd.f32 %v1121_v18, %v952_v14 }
 0x1d3   :  { %v1948_v19 = vpack.c.bf16 %v1457_v17, %v1119_v16  ;;  %991 = vmatmul.bf16.gmra.mxu0 %v2276_v12 }
 0x1d4   :  { %1160 = vmatmul.bf16.gmra.mxu1 %v2280_v15  ;;  %1329 = vmatmul.bf16.gmra.mxu2 %v2276_v12 }
 0x1d5   :  { %2012 = vst [vmem:[#allocation3 + $0x128] sm:$0xff] %v1948_v19  ;;  %1498 = vmatmul.bf16.gmra.mxu3 %v2280_v15 }
 0x1d7   :  { %v1290_v21 = vpop.f32.mrf.mxu2 }
 0x1d8   :  { %v1459_v22 = vpop.f32.mrf.mxu3  ;;  %v954_v23 = vpop.f32.mrf.mxu0 }
 0x1d9   :  { %v1460_v24 = vadd.f32 %v1459_v22, %v1290_v21  ;;  %v1123_v25 = vpop.f32.mrf.mxu1 }
 0x1da   :  { %v1124_v36 = vadd.f32 %v1123_v25, %v954_v23  ;;  %v2307_v23 = vld [vmem:[%s3163_s0 + $0x1f0] sm:$0xf]  ;;  %v2503_v25 = vld [vmem:[%s3163_s0 + $0x1f4] sm:$0xf] }
 0x1db   :  { %v1949_v26 = vpack.c.bf16 %v1460_v24, %v1122_v20  ;;  %v2504_v24 = vld [vmem:[%s3163_s0 + $0x1f4] sm:$0xf0] }
 0x1dc   :  { %v2308_v28 = vor.u32 %v2504_v24, %v2307_v23 }
 0x1dd   :  { %2013 = vst [vmem:[#allocation3 + $0x130] sm:$0xff] %v1949_v26  ;;  %v2309_v26 = vld [vmem:[%s3163_s0 + $0x1f8] sm:$0xf0]  ;;  %s2566_s0 = smov [#allocation3]  }
 0x1de   :  { %s2043_s20 = sshll.u32 %s2566_s0, 4  ;;  %s2044_s20 = int_to_ptr.vmem [resolvable:$true] %s2043_s20 }
 0x1df   :  { %v1292_v31 = vpop.f32.mrf.mxu2 }
 0x1e0   :  { %v1461_v33 = vpop.f32.mrf.mxu3  ;;  %v957_v34 = vpop.f32.mrf.mxu0 }
 0x1e1   :  { %v1462_v37 = vadd.f32 %v1461_v33, %v1292_v31  ;;  %v1126_v38 = vpop.f32.mrf.mxu1  ;;  %v2312_v31 = vor.u32 %v2503_v25, %v2309_v26 }
 0x1e2   :  { %v1127_v40 = vadd.f32 %v1126_v38, %v957_v34 }
 0x1e3   :  { %v1950_v39 = vpack.c.bf16 %v1462_v37, %v1124_v36  ;;  %996 = vmatmul.bf16.gmra.mxu0 %v2284_v32 }
 0x1e4   :  { %1165 = vmatmul.bf16.gmra.mxu1 %v2288_v35  ;;  %1334 = vmatmul.bf16.gmra.mxu2 %v2284_v32 }
 0x1e5   :  { %2014 = vst [vmem:[#allocation3 + $0x138] sm:$0xff] %v1950_v39  ;;  %1503 = vmatmul.bf16.gmra.mxu3 %v2288_v35 }
 0x1e7   :  { %v1295_v41 = vpop.f32.mrf.mxu2 }
 0x1e8   :  { %v1464_v42 = vpop.f32.mrf.mxu3  ;;  %v959_v43 = vpop.f32.mrf.mxu0 }
 0x1e9   :  { %v1465_v44 = vadd.f32 %v1464_v42, %v1295_v41  ;;  %v1128_v45 = vpop.f32.mrf.mxu1 }
 0x1ea   :  { %v1129_v56 = vadd.f32 %v1128_v45, %v959_v43 }
 0x1eb   :  { %v1951_v46 = vpack.c.bf16 %v1465_v44, %v1127_v40 }
 0x1ed   :  { %2015 = vst [vmem:[#allocation3 + $0x140] sm:$0xff] %v1951_v46 }
 0x1ef   :  { %v1297_v51 = vpop.f32.mrf.mxu2 }
 0x1f0   :  { %v1466_v53 = vpop.f32.mrf.mxu3  ;;  %v962_v54 = vpop.f32.mrf.mxu0 }
 0x1f1   :  { %v1467_v57 = vadd.f32 %v1466_v53, %v1297_v51  ;;  %v1131_v58 = vpop.f32.mrf.mxu1 }
 0x1f2   :  { %v1132_v60 = vadd.f32 %v1131_v58, %v962_v54 }
 0x1f3   :  { %v1952_v59 = vpack.c.bf16 %v1467_v57, %v1129_v56  ;;  %1001 = vmatmul.bf16.gmra.mxu0 %v2292_v52 }
 0x1f4   :  { %1170 = vmatmul.bf16.gmra.mxu1 %v2296_v55  ;;  %1339 = vmatmul.bf16.gmra.mxu2 %v2292_v52 }
 0x1f5   :  { %2016 = vst [vmem:[#allocation3 + $0x148] sm:$0xff] %v1952_v59  ;;  %1508 = vmatmul.bf16.gmra.mxu3 %v2296_v55 }
 0x1f7   :  { %v1300_v61 = vpop.f32.mrf.mxu2 }
 0x1f8   :  { %v1469_v62 = vpop.f32.mrf.mxu3  ;;  %v964_v63 = vpop.f32.mrf.mxu0 }
 0x1f9   :  { %v1470_v0 = vadd.f32 %v1469_v62, %v1300_v61  ;;  %v1133_v1 = vpop.f32.mrf.mxu1 }
 0x1fa   :  { %v1134_v12 = vadd.f32 %v1133_v1, %v964_v63 }
 0x1fb   :  { %v1953_v2 = vpack.c.bf16 %v1470_v0, %v1132_v60 }
 0x1fd   :  { %2017 = vst [vmem:[#allocation3 + $0x150] sm:$0xff] %v1953_v2 }
 0x1ff   :  { %v1302_v7 = vpop.f32.mrf.mxu2 }
 0x200   :  { %v1471_v9 = vpop.f32.mrf.mxu3  ;;  %v967_v10 = vpop.f32.mrf.mxu0 }
 0x201   :  { %v1472_v13 = vadd.f32 %v1471_v9, %v1302_v7  ;;  %v1136_v14 = vpop.f32.mrf.mxu1 }
 0x202   :  { %v1137_v16 = vadd.f32 %v1136_v14, %v967_v10 }
 0x203   :  { %v1954_v15 = vpack.c.bf16 %v1472_v13, %v1134_v12  ;;  %1006 = vmatmul.bf16.gmra.mxu0 %v2300_v8 }
 0x204   :  { %1175 = vmatmul.bf16.gmra.mxu1 %v2304_v11  ;;  %1344 = vmatmul.bf16.gmra.mxu2 %v2300_v8 }
 0x205   :  { %2018 = vst [vmem:[#allocation3 + $0x158] sm:$0xff] %v1954_v15  ;;  %1513 = vmatmul.bf16.gmra.mxu3 %v2304_v11 }
 0x207   :  { %v1305_v17 = vpop.f32.mrf.mxu2 }
 0x208   :  { %v1474_v18 = vpop.f32.mrf.mxu3  ;;  %v969_v19 = vpop.f32.mrf.mxu0 }
 0x209   :  { %v1475_v20 = vadd.f32 %v1474_v18, %v1305_v17  ;;  %v1138_v21 = vpop.f32.mrf.mxu1 }
 0x20a   :  { %v1139_v32 = vadd.f32 %v1138_v21, %v969_v19 }
 0x20b   :  { %v1955_v22 = vpack.c.bf16 %v1475_v20, %v1137_v16 }
 0x20d   :  { %2019 = vst [vmem:[#allocation3 + $0x160] sm:$0xff] %v1955_v22 }
 0x20f   :  { %v1307_v27 = vpop.f32.mrf.mxu2 }
 0x210   :  { %v1476_v29 = vpop.f32.mrf.mxu3  ;;  %v972_v30 = vpop.f32.mrf.mxu0 }
 0x211   :  { %v1477_v33 = vadd.f32 %v1476_v29, %v1307_v27  ;;  %v1141_v34 = vpop.f32.mrf.mxu1 }
 0x212   :  { %v1142_v36 = vadd.f32 %v1141_v34, %v972_v30 }
 0x213   :  { %v1956_v35 = vpack.c.bf16 %v1477_v33, %v1139_v32  ;;  %1011 = vmatmul.bf16.gmra.mxu0 %v2308_v28 }
 0x214   :  { %1180 = vmatmul.bf16.gmra.mxu1 %v2312_v31  ;;  %1349 = vmatmul.bf16.gmra.mxu2 %v2308_v28 }
 0x215   :  { %2020 = vst [vmem:[#allocation3 + $0x168] sm:$0xff] %v1956_v35  ;;  %1518 = vmatmul.bf16.gmra.mxu3 %v2312_v31 }
 0x217   :  { %v1310_v37 = vpop.f32.mrf.mxu2 }
 0x218   :  { %v1479_v38 = vpop.f32.mrf.mxu3  ;;  %v974_v39 = vpop.f32.mrf.mxu0 }
 0x219   :  { %v1480_v40 = vadd.f32 %v1479_v38, %v1310_v37  ;;  %v1143_v41 = vpop.f32.mrf.mxu1 }
 0x21a   :  { %v1144_v46 = vadd.f32 %v1143_v41, %v974_v39 }
 0x21b   :  { %v1957_v42 = vpack.c.bf16 %v1480_v40, %v1142_v36 }
 0x21d   :  { %2021 = vst [vmem:[#allocation3 + $0x170] sm:$0xff] %v1957_v42 }
 0x21f   :  { %v1312_v43 = vpop.f32.mrf.mxu2 }
 0x220   :  { %v1481_v44 = vpop.f32.mrf.mxu3  ;;  %v977_v45 = vpop.f32.mrf.mxu0 }
 0x221   :  { %v1482_v47 = vadd.f32 %v1481_v44, %v1312_v43  ;;  %v1146_v48 = vpop.f32.mrf.mxu1 }
 0x222   :  { %v1147_v50 = vadd.f32 %v1146_v48, %v977_v45 }
 0x223   :  { %v1958_v49 = vpack.c.bf16 %v1482_v47, %v1144_v46 }
 0x225   :  { %2022 = vst [vmem:[#allocation3 + $0x178] sm:$0xff] %v1958_v49 }
 0x227   :  { %v1315_v51 = vpop.f32.mrf.mxu2 }
 0x228   :  { %v1484_v52 = vpop.f32.mrf.mxu3  ;;  %v979_v53 = vpop.f32.mrf.mxu0 }
 0x229   :  { %v1485_v54 = vadd.f32 %v1484_v52, %v1315_v51  ;;  %v1148_v55 = vpop.f32.mrf.mxu1 }
 0x22a   :  { %v1149_v60 = vadd.f32 %v1148_v55, %v979_v53 }
 0x22b   :  { %v1959_v56 = vpack.c.bf16 %v1485_v54, %v1147_v50 }
 0x22d   :  { %2023 = vst [vmem:[#allocation3 + $0x180] sm:$0xff] %v1959_v56 }
 0x22f   :  { %v1317_v57 = vpop.f32.mrf.mxu2 }
 0x230   :  { %v1486_v58 = vpop.f32.mrf.mxu3  ;;  %v982_v59 = vpop.f32.mrf.mxu0 }
 0x231   :  { %v1487_v61 = vadd.f32 %v1486_v58, %v1317_v57  ;;  %v1151_v62 = vpop.f32.mrf.mxu1 }
 0x232   :  { %v1152_v0 = vadd.f32 %v1151_v62, %v982_v59 }
 0x233   :  { %v1960_v63 = vpack.c.bf16 %v1487_v61, %v1149_v60 }
 0x235   :  { %2024 = vst [vmem:[#allocation3 + $0x188] sm:$0xff] %v1960_v63 }
 0x237   :  { %v1320_v1 = vpop.f32.mrf.mxu2 }
 0x238   :  { %v1489_v2 = vpop.f32.mrf.mxu3  ;;  %v984_v3 = vpop.f32.mrf.mxu0 }
 0x239   :  { %v1490_v4 = vadd.f32 %v1489_v2, %v1320_v1  ;;  %v1153_v5 = vpop.f32.mrf.mxu1 }
 0x23a   :  { %v1154_v10 = vadd.f32 %v1153_v5, %v984_v3 }
 0x23b   :  { %v1961_v6 = vpack.c.bf16 %v1490_v4, %v1152_v0 }
 0x23d   :  { %2025 = vst [vmem:[#allocation3 + $0x190] sm:$0xff] %v1961_v6 }
 0x23f   :  { %v1322_v7 = vpop.f32.mrf.mxu2 }
 0x240   :  { %v1491_v8 = vpop.f32.mrf.mxu3  ;;  %v987_v9 = vpop.f32.mrf.mxu0 }
 0x241   :  { %v1492_v11 = vadd.f32 %v1491_v8, %v1322_v7  ;;  %v1156_v12 = vpop.f32.mrf.mxu1 }
 0x242   :  { %v1157_v14 = vadd.f32 %v1156_v12, %v987_v9 }
 0x243   :  { %v1962_v13 = vpack.c.bf16 %v1492_v11, %v1154_v10 }
 0x245   :  { %2026 = vst [vmem:[#allocation3 + $0x198] sm:$0xff] %v1962_v13 }
 0x247   :  { %v1325_v15 = vpop.f32.mrf.mxu2 }
 0x248   :  { %v1494_v16 = vpop.f32.mrf.mxu3  ;;  %v989_v17 = vpop.f32.mrf.mxu0 }
 0x249   :  { %v1495_v18 = vadd.f32 %v1494_v16, %v1325_v15  ;;  %v1158_v19 = vpop.f32.mrf.mxu1 }
 0x24a   :  { %v1159_v24 = vadd.f32 %v1158_v19, %v989_v17 }
 0x24b   :  { %v1963_v20 = vpack.c.bf16 %v1495_v18, %v1157_v14 }
 0x24d   :  { %2027 = vst [vmem:[#allocation3 + $0x1a0] sm:$0xff] %v1963_v20 }
 0x24f   :  { %v1327_v21 = vpop.f32.mrf.mxu2 }
 0x250   :  { %v1496_v22 = vpop.f32.mrf.mxu3  ;;  %v992_v23 = vpop.f32.mrf.mxu0 }
 0x251   :  { %v1497_v25 = vadd.f32 %v1496_v22, %v1327_v21  ;;  %v1161_v26 = vpop.f32.mrf.mxu1 }
 0x252   :  { %v1162_v28 = vadd.f32 %v1161_v26, %v992_v23 }
 0x253   :  { %v1964_v27 = vpack.c.bf16 %v1497_v25, %v1159_v24 }
 0x255   :  { %2028 = vst [vmem:[#allocation3 + $0x1a8] sm:$0xff] %v1964_v27 }
 0x257   :  { %v1330_v29 = vpop.f32.mrf.mxu2 }
 0x258   :  { %v1499_v30 = vpop.f32.mrf.mxu3  ;;  %v994_v31 = vpop.f32.mrf.mxu0 }
 0x259   :  { %v1500_v32 = vadd.f32 %v1499_v30, %v1330_v29  ;;  %v1163_v33 = vpop.f32.mrf.mxu1 }
 0x25a   :  { %v1164_v38 = vadd.f32 %v1163_v33, %v994_v31 }
 0x25b   :  { %v1965_v34 = vpack.c.bf16 %v1500_v32, %v1162_v28 }
 0x25d   :  { %2029 = vst [vmem:[#allocation3 + $0x1b0] sm:$0xff] %v1965_v34 }
 0x25f   :  { %v1332_v35 = vpop.f32.mrf.mxu2 }
 0x260   :  { %v1501_v36 = vpop.f32.mrf.mxu3  ;;  %v997_v37 = vpop.f32.mrf.mxu0 }
 0x261   :  { %v1502_v39 = vadd.f32 %v1501_v36, %v1332_v35  ;;  %v1166_v40 = vpop.f32.mrf.mxu1 }
 0x262   :  { %v1167_v42 = vadd.f32 %v1166_v40, %v997_v37 }
 0x263   :  { %v1966_v41 = vpack.c.bf16 %v1502_v39, %v1164_v38 }
 0x265   :  { %2030 = vst [vmem:[#allocation3 + $0x1b8] sm:$0xff] %v1966_v41 }
 0x267   :  { %v1335_v43 = vpop.f32.mrf.mxu2 }
 0x268   :  { %v1504_v44 = vpop.f32.mrf.mxu3  ;;  %v999_v45 = vpop.f32.mrf.mxu0 }
 0x269   :  { %v1505_v46 = vadd.f32 %v1504_v44, %v1335_v43  ;;  %v1168_v47 = vpop.f32.mrf.mxu1 }
 0x26a   :  { %v1169_v52 = vadd.f32 %v1168_v47, %v999_v45 }
 0x26b   :  { %v1967_v48 = vpack.c.bf16 %v1505_v46, %v1167_v42 }
 0x26d   :  { %2031 = vst [vmem:[#allocation3 + $0x1c0] sm:$0xff] %v1967_v48 }
 0x26f   :  { %v1337_v49 = vpop.f32.mrf.mxu2 }
 0x270   :  { %v1506_v50 = vpop.f32.mrf.mxu3  ;;  %v1002_v51 = vpop.f32.mrf.mxu0 }
 0x271   :  { %v1507_v53 = vadd.f32 %v1506_v50, %v1337_v49  ;;  %v1171_v54 = vpop.f32.mrf.mxu1 }
 0x272   :  { %v1172_v56 = vadd.f32 %v1171_v54, %v1002_v51 }
 0x273   :  { %v1968_v55 = vpack.c.bf16 %v1507_v53, %v1169_v52 }
 0x275   :  { %2032 = vst [vmem:[#allocation3 + $0x1c8] sm:$0xff] %v1968_v55 }
 0x277   :  { %v1340_v57 = vpop.f32.mrf.mxu2 }
 0x278   :  { %v1509_v58 = vpop.f32.mrf.mxu3  ;;  %v1004_v59 = vpop.f32.mrf.mxu0 }
 0x279   :  { %v1510_v60 = vadd.f32 %v1509_v58, %v1340_v57  ;;  %v1173_v61 = vpop.f32.mrf.mxu1 }
 0x27a   :  { %v1174_v2 = vadd.f32 %v1173_v61, %v1004_v59 }
 0x27b   :  { %v1969_v62 = vpack.c.bf16 %v1510_v60, %v1172_v56 }
 0x27d   :  { %2033 = vst [vmem:[#allocation3 + $0x1d0] sm:$0xff] %v1969_v62 }
 0x27f   :  { %v1342_v63 = vpop.f32.mrf.mxu2 }
 0x280   :  { %v1511_v0 = vpop.f32.mrf.mxu3  ;;  %v1007_v1 = vpop.f32.mrf.mxu0 }
 0x281   :  { %v1512_v3 = vadd.f32 %v1511_v0, %v1342_v63  ;;  %v1176_v4 = vpop.f32.mrf.mxu1 }
 0x282   :  { %v1177_v6 = vadd.f32 %v1176_v4, %v1007_v1 }
 0x283   :  { %v1970_v5 = vpack.c.bf16 %v1512_v3, %v1174_v2 }
 0x285   :  { %2034 = vst [vmem:[#allocation3 + $0x1d8] sm:$0xff] %v1970_v5 }
 0x287   :  { %v1345_v7 = vpop.f32.mrf.mxu2 }
 0x288   :  { %v1514_v8 = vpop.f32.mrf.mxu3  ;;  %v1009_v10 = vpop.f32.mrf.mxu0 }
 0x289   :  { %v1515_v9 = vadd.f32 %v1514_v8, %v1345_v7  ;;  %v1178_v11 = vpop.f32.mrf.mxu1 }
 0x28a   :  { %v1179_v15 = vadd.f32 %v1178_v11, %v1009_v10 }
 0x28b   :  { %v1971_v12 = vpack.c.bf16 %v1515_v9, %v1177_v6 }
 0x28d   :  { %2035 = vst [vmem:[#allocation3 + $0x1e0] sm:$0xff] %v1971_v12 }
 0x28f   :  { %v1347_v13 = vpop.f32.mrf.mxu2 }
 0x290   :  { %v1516_v14 = vpop.f32.mrf.mxu3  ;;  %v1012_v18 = vpop.f32.mrf.mxu0 }
 0x291   :  { %v1517_v16 = vadd.f32 %v1516_v14, %v1347_v13  ;;  %v1181_v19 = vpop.f32.mrf.mxu1 }
 0x292   :  { %v1182_v20 = vadd.f32 %v1181_v19, %v1012_v18 }
 0x293   :  { %v1972_v17 = vpack.c.bf16 %v1517_v16, %v1179_v15 }
 0x295   :  { %2036 = vst [vmem:[#allocation3 + $0x1e8] sm:$0xff] %v1972_v17 }
 0x297   :  { %v1350_v21 = vpop.f32.mrf.mxu2 }
 0x298   :  { %v1519_v22 = vpop.f32.mrf.mxu3  ;;  %v1014_v25 = vpop.f32.mrf.mxu0 }
 0x299   :  { %v1520_v23 = vadd.f32 %v1519_v22, %v1350_v21  ;;  %v1183_v26 = vpop.f32.mrf.mxu1 }
 0x29a   :  { %v1184_v29 = vadd.f32 %v1183_v26, %v1014_v25 }
 0x29b   :  { %v1973_v24 = vpack.c.bf16 %v1520_v23, %v1182_v20 }
 0x29d   :  { %2037 = vst [vmem:[#allocation3 + $0x1f0] sm:$0xff] %v1973_v24 }
 0x29f   :  { %v1352_v27 = vpop.f32.mrf.mxu2 }
 0x2a0   :  { %v1521_v28 = vpop.f32.mrf.mxu3 }
 0x2a1   :  { %v1522_v30 = vadd.f32 %v1521_v28, %v1352_v27 }
 0x2a3   :  { %v1974_v31 = vpack.c.bf16 %v1522_v30, %v1184_v29 }
 0x2a5   :  { %2038 = vst [vmem:[#allocation3 + $0x1f8] sm:$0xff] %v1974_v31 }
 0x2a6   :  { %2051 = dma.vmem_to_hbm [thread:$0]  %s2044_s20, 8192, %s2046_s23, [#allocation4], %s2567_s24, %s2567_s24, %s2568_s25  }
 0x2a7   :  { %2564 = dma.done.wait [#allocation4], 8192  }
 0x2a8   :  { %2565 = vsyncadd [#allocation4], 4294959104 }
 0x2a9   :  { %2056 = vsyncpa [#allocation4], 1 }

// kernel: _lambda_.3
= control target key start
LH: loop header
LB: loop body
LE: loop exit
PB: predicated region body
PF: predicated region fallthrough
CT: control target
= control target key end

     0   :  { %s4581_s9 = smov 0   ;;  %s4583_s10 = smov 0   ;;  %s6171_s0 = inlined_call_operand.vmem [shape: bf16[512,256], index: 0, kind: input, shape index: {}]   ;;  %s6172_s1 = inlined_call_operand.vmem [shape: bf16[256,768], index: 1, kind: input, shape index: {}]   ;;  %s6173_s2 = inlined_call_operand.vmem [shape: bf16[512,768], index: 2, kind: output, shape index: {}]  }
   0x1   :  { %s4585_s11 = smov 0   ;;  %s4587_s12 = smov 0  }
   0x2   :  { %s4589_s13 = smov 0  }
   0x3 LB: > { %s27_s14 = sadd.s32 1, %s4560_s12  ;;  %s3703_s15 = sadd.s32 4294967295, %s4564_s13   ;;  %s4564_s13 = sphi %s4589_s13, %s12_s13   ;;  %s4560_s12 = sphi %s4587_s12, %s6360_s12   ;;  %s4556_s11 = sphi %s4585_s11, %s6359_s11   ;;  %s4552_s10 = sphi %s4583_s10, %s6358_s10   ;;  %s4548_s9 = sphi %s4581_s9, %s6357_s9  }
   0x4   : > { %p29_p0 = scmp.ge.s32.totalorder %s27_s14, 2  ;;  %p75_p1 = scmp.ne.s32.totalorder %s4552_s10, %s4548_s9 }
   0x5   : > { %p76_p2 = scmp.eq.s32.totalorder %s4564_s13, 0  ;;  %p107_p4 = scmp.eq.s32.totalorder %s3703_s15, 1 }
   0x6   : > { %s6362_s14 = smov (%p29_p0, %s27_s14), 0  ;;  %s68_s17 = sadd.s32 1, %s4552_s10 }
   0x7   : > { %p77_p3 = por %p76_p2, %p75_p1  ;;  %s64_s16 = ssub.s32 %s4560_s12, %s6362_s14 }
   0x8   : > { %p66_p5 = scmp.eq.s32.totalorder %s64_s16, 0  ;;  %p4616_p6 = por %p107_p4, %p75_p1 }
   0x9   : > { %p3707_p7 = scmp.ge.s32.totalorder %s4564_s13, 2 }
   0xa   : > { %s4621_s19 = scalar_select %p66_p5, %s4552_s10, %s68_s17  }
   0xb   : > { %144 = sbr.rel (%p3707_p7) target bundleno = 85 (0x55), region = 20 }
  0x10   : > { %147 = sbr.rel (!%p77_p3) target bundleno = 85 (0x55), region = 24  ;;  %s149_s20 = sand.u32 (%p77_p3), 1, %s4552_s10  }
  0x11   : > { %s4353_s21 = smul.u32 (%p77_p3), 12, %s4560_s12 }
  0x12   : > { %s4483_s22 = smul.u32 (%p77_p3), 384, %s149_s20 }
  0x13   : > { %s4629_s25 = scalar_lea.vmem (%p77_p3), %s6172_s1, %s4353_s21 }
  0x14   : > { %v172_v0 = vld [vmem:[%s4629_s25] sm:$0xff] (%p77_p3)  ;;  %v174_v1 = vld [vmem:[%s4629_s25 + $0x18] sm:$0xff] (%p77_p3)  ;;  %v176_v2 = vld [vmem:[%s4629_s25 + $0x30] sm:$0xff] (%p77_p3)  ;;  %s4634_s26 = scalar_lea.vmem (%p77_p3), [#allocation3], %s4483_s22 }
  0x15   : > { %173 = vst [vmem:[%s4634_s26] sm:$0xff] %v172_v0  ;;  %v178_v3 = vld [vmem:[%s4629_s25 + $0x48] sm:$0xff]  ;;  %v180_v4 = vld [vmem:[%s4629_s25 + $0x60] sm:$0xff]  ;;  %v182_v5 = vld [vmem:[%s4629_s25 + $0x78] sm:$0xff] }
  0x16   : > { %175 = vst [vmem:[%s4634_s26 + $0xc] sm:$0xff] %v174_v1  ;;  %v184_v6 = vld [vmem:[%s4629_s25 + $0x90] sm:$0xff]  ;;  %v186_v7 = vld [vmem:[%s4629_s25 + $0xa8] sm:$0xff]  ;;  %v188_v8 = vld [vmem:[%s4629_s25 + $0xc0] sm:$0xff] }
  0x17   : > { %177 = vst [vmem:[%s4634_s26 + $0x18] sm:$0xff] %v176_v2  ;;  %v190_v9 = vld [vmem:[%s4629_s25 + $0xd8] sm:$0xff]  ;;  %v192_v10 = vld [vmem:[%s4629_s25 + $0xf0] sm:$0xff]  ;;  %v194_v11 = vld [vmem:[%s4629_s25 + $0x108] sm:$0xff] }
  0x18   : > { %179 = vst [vmem:[%s4634_s26 + $0x24] sm:$0xff] %v178_v3  ;;  %v196_v12 = vld [vmem:[%s4629_s25 + $0x120] sm:$0xff]  ;;  %v198_v13 = vld [vmem:[%s4629_s25 + $0x138] sm:$0xff]  ;;  %v200_v14 = vld [vmem:[%s4629_s25 + $0x150] sm:$0xff] }
  0x19   : > { %181 = vst [vmem:[%s4634_s26 + $0x30] sm:$0xff] %v180_v4  ;;  %v202_v15 = vld [vmem:[%s4629_s25 + $0x168] sm:$0xff]  ;;  %v204_v16 = vld [vmem:[%s4629_s25 + $0x180] sm:$0xff]  ;;  %v206_v17 = vld [vmem:[%s4629_s25 + $0x198] sm:$0xff] }
  0x1a   : > { %183 = vst [vmem:[%s4634_s26 + $0x3c] sm:$0xff] %v182_v5  ;;  %v208_v18 = vld [vmem:[%s4629_s25 + $0x1b0] sm:$0xff]  ;;  %v210_v19 = vld [vmem:[%s4629_s25 + $0x1c8] sm:$0xff]  ;;  %v212_v20 = vld [vmem:[%s4629_s25 + $0x1e0] sm:$0xff] }
  0x1b   : > { %185 = vst [vmem:[%s4634_s26 + $0x48] sm:$0xff] %v184_v6  ;;  %v214_v21 = vld [vmem:[%s4629_s25 + $0x1f8] sm:$0xff]  ;;  %v216_v22 = vld [vmem:[%s4629_s25 + $0x210] sm:$0xff]  ;;  %v218_v23 = vld [vmem:[%s4629_s25 + $0x228] sm:$0xff] }
  0x1c   : > { %187 = vst [vmem:[%s4634_s26 + $0x54] sm:$0xff] %v186_v7  ;;  %v220_v24 = vld [vmem:[%s4629_s25 + $0x240] sm:$0xff]  ;;  %v222_v25 = vld [vmem:[%s4629_s25 + $0x258] sm:$0xff]  ;;  %v224_v26 = vld [vmem:[%s4629_s25 + $0x270] sm:$0xff] }
  0x1d   : > { %189 = vst [vmem:[%s4634_s26 + $0x60] sm:$0xff] %v188_v8  ;;  %v226_v27 = vld [vmem:[%s4629_s25 + $0x288] sm:$0xff]  ;;  %v228_v28 = vld [vmem:[%s4629_s25 + $0x2a0] sm:$0xff]  ;;  %v230_v29 = vld [vmem:[%s4629_s25 + $0x2b8] sm:$0xff] }
  0x1e   : > { %191 = vst [vmem:[%s4634_s26 + $0x6c] sm:$0xff] %v190_v9  ;;  %v232_v30 = vld [vmem:[%s4629_s25 + $0x2d0] sm:$0xff]  ;;  %v234_v31 = vld [vmem:[%s4629_s25 + $0x2e8] sm:$0xff]  ;;  %v3711_v33 = vld [vmem:[%s4629_s25 + $0x20] sm:$0xf] }
  0x1f   : > { %193 = vst [vmem:[%s4634_s26 + $0x78] sm:$0xff] %v192_v10  ;;  %v3709_v32 = vld [vmem:[%s4629_s25 + $0x8] sm:$0xf]  ;;  %v3713_v34 = vld [vmem:[%s4629_s25 + $0x38] sm:$0xf] }
  0x20   : > { %195 = vst [vmem:[%s4634_s26 + $0x84] sm:$0xff] %v194_v11  ;;  %v3715_v35 = vld [vmem:[%s4629_s25 + $0x50] sm:$0xf]  ;;  %v3717_v36 = vld [vmem:[%s4629_s25 + $0x68] sm:$0xf] }
  0x21   : > { %197 = vst [vmem:[%s4634_s26 + $0x90] sm:$0xff] %v196_v12  ;;  %v3719_v37 = vld [vmem:[%s4629_s25 + $0x80] sm:$0xf]  ;;  %v3721_v38 = vld [vmem:[%s4629_s25 + $0x98] sm:$0xf] }
  0x22   : > { %199 = vst [vmem:[%s4634_s26 + $0x9c] sm:$0xff] %v198_v13  ;;  %v3723_v39 = vld [vmem:[%s4629_s25 + $0xb0] sm:$0xf]  ;;  %v3725_v40 = vld [vmem:[%s4629_s25 + $0xc8] sm:$0xf] }
  0x23   : > { %201 = vst [vmem:[%s4634_s26 + $0xa8] sm:$0xff] %v200_v14  ;;  %v3727_v41 = vld [vmem:[%s4629_s25 + $0xe0] sm:$0xf]  ;;  %v3729_v42 = vld [vmem:[%s4629_s25 + $0xf8] sm:$0xf] }
  0x24   : > { %203 = vst [vmem:[%s4634_s26 + $0xb4] sm:$0xff] %v202_v15  ;;  %v3731_v43 = vld [vmem:[%s4629_s25 + $0x110] sm:$0xf]  ;;  %v3733_v44 = vld [vmem:[%s4629_s25 + $0x128] sm:$0xf] }
  0x25   : > { %205 = vst [vmem:[%s4634_s26 + $0xc0] sm:$0xff] %v204_v16  ;;  %v3735_v45 = vld [vmem:[%s4629_s25 + $0x140] sm:$0xf]  ;;  %v3737_v46 = vld [vmem:[%s4629_s25 + $0x158] sm:$0xf] }
  0x26   : > { %207 = vst [vmem:[%s4634_s26 + $0xcc] sm:$0xff] %v206_v17  ;;  %v3739_v47 = vld [vmem:[%s4629_s25 + $0x170] sm:$0xf]  ;;  %v3741_v48 = vld [vmem:[%s4629_s25 + $0x188] sm:$0xf] }
  0x27   : > { %209 = vst [vmem:[%s4634_s26 + $0xd8] sm:$0xff] %v208_v18  ;;  %v3743_v49 = vld [vmem:[%s4629_s25 + $0x1a0] sm:$0xf]  ;;  %v3745_v50 = vld [vmem:[%s4629_s25 + $0x1b8] sm:$0xf] }
  0x28   : > { %211 = vst [vmem:[%s4634_s26 + $0xe4] sm:$0xff] %v210_v19  ;;  %v3747_v51 = vld [vmem:[%s4629_s25 + $0x1d0] sm:$0xf]  ;;  %v3749_v52 = vld [vmem:[%s4629_s25 + $0x1e8] sm:$0xf] }
  0x29   : > { %213 = vst [vmem:[%s4634_s26 + $0xf0] sm:$0xff] %v212_v20  ;;  %v3751_v53 = vld [vmem:[%s4629_s25 + $0x200] sm:$0xf]  ;;  %v3753_v54 = vld [vmem:[%s4629_s25 + $0x218] sm:$0xf] }
  0x2a   : > { %215 = vst [vmem:[%s4634_s26 + $0xfc] sm:$0xff] %v214_v21  ;;  %v3755_v55 = vld [vmem:[%s4629_s25 + $0x230] sm:$0xf]  ;;  %v3757_v56 = vld [vmem:[%s4629_s25 + $0x248] sm:$0xf] }
  0x2b   : > { %217 = vst [vmem:[%s4634_s26 + $0x108] sm:$0xff] %v216_v22  ;;  %v3759_v57 = vld [vmem:[%s4629_s25 + $0x260] sm:$0xf]  ;;  %v3761_v58 = vld [vmem:[%s4629_s25 + $0x278] sm:$0xf] }
  0x2c   : > { %219 = vst [vmem:[%s4634_s26 + $0x114] sm:$0xff] %v218_v23  ;;  %v3763_v59 = vld [vmem:[%s4629_s25 + $0x290] sm:$0xf]  ;;  %v3765_v60 = vld [vmem:[%s4629_s25 + $0x2a8] sm:$0xf] }
  0x2d   : > { %221 = vst [vmem:[%s4634_s26 + $0x120] sm:$0xff] %v220_v24  ;;  %v3767_v61 = vld [vmem:[%s4629_s25 + $0x2c0] sm:$0xf]  ;;  %v3769_v62 = vld [vmem:[%s4629_s25 + $0x2d8] sm:$0xf] }
  0x2e   : > { %223 = vst [vmem:[%s4634_s26 + $0x12c] sm:$0xff] %v222_v25  ;;  %v3771_v63 = vld [vmem:[%s4629_s25 + $0x2f0] sm:$0xf] }
  0x2f   : > { %225 = vst [vmem:[%s4634_s26 + $0x138] sm:$0xff] %v224_v26 }
  0x30   : > { %227 = vst [vmem:[%s4634_s26 + $0x144] sm:$0xff] %v226_v27 }
  0x31   : > { %229 = vst [vmem:[%s4634_s26 + $0x150] sm:$0xff] %v228_v28 }
  0x32   : > { %231 = vst [vmem:[%s4634_s26 + $0x15c] sm:$0xff] %v230_v29 }
  0x33   : > { %233 = vst [vmem:[%s4634_s26 + $0x168] sm:$0xff] %v232_v30 }
  0x34   : > { %235 = vst [vmem:[%s4634_s26 + $0x174] sm:$0xff] %v234_v31 }
  0x35   : > { %3710 = vst [vmem:[%s4634_s26 + $0x8] sm:$0xf] %v3709_v32 }
  0x36   : > { %3712 = vst [vmem:[%s4634_s26 + $0x14] sm:$0xf] %v3711_v33 }
  0x37   : > { %3714 = vst [vmem:[%s4634_s26 + $0x20] sm:$0xf] %v3713_v34 }
  0x38   : > { %3716 = vst [vmem:[%s4634_s26 + $0x2c] sm:$0xf] %v3715_v35 }
  0x39   : > { %3718 = vst [vmem:[%s4634_s26 + $0x38] sm:$0xf] %v3717_v36 }
  0x3a   : > { %3720 = vst [vmem:[%s4634_s26 + $0x44] sm:$0xf] %v3719_v37 }
  0x3b   : > { %3722 = vst [vmem:[%s4634_s26 + $0x50] sm:$0xf] %v3721_v38 }
  0x3c   : > { %3724 = vst [vmem:[%s4634_s26 + $0x5c] sm:$0xf] %v3723_v39 }
  0x3d   : > { %3726 = vst [vmem:[%s4634_s26 + $0x68] sm:$0xf] %v3725_v40 }
  0x3e   : > { %3728 = vst [vmem:[%s4634_s26 + $0x74] sm:$0xf] %v3727_v41 }
  0x3f   : > { %3730 = vst [vmem:[%s4634_s26 + $0x80] sm:$0xf] %v3729_v42 }
  0x40   : > { %3732 = vst [vmem:[%s4634_s26 + $0x8c] sm:$0xf] %v3731_v43 }
  0x41   : > { %3734 = vst [vmem:[%s4634_s26 + $0x98] sm:$0xf] %v3733_v44 }
  0x42   : > { %3736 = vst [vmem:[%s4634_s26 + $0xa4] sm:$0xf] %v3735_v45 }
  0x43   : > { %3738 = vst [vmem:[%s4634_s26 + $0xb0] sm:$0xf] %v3737_v46 }
  0x44   : > { %3740 = vst [vmem:[%s4634_s26 + $0xbc] sm:$0xf] %v3739_v47 }
  0x45   : > { %3742 = vst [vmem:[%s4634_s26 + $0xc8] sm:$0xf] %v3741_v48 }
  0x46   : > { %3744 = vst [vmem:[%s4634_s26 + $0xd4] sm:$0xf] %v3743_v49 }
  0x47   : > { %3746 = vst [vmem:[%s4634_s26 + $0xe0] sm:$0xf] %v3745_v50 }
  0x48   : > { %3748 = vst [vmem:[%s4634_s26 + $0xec] sm:$0xf] %v3747_v51 }
  0x49   : > { %3750 = vst [vmem:[%s4634_s26 + $0xf8] sm:$0xf] %v3749_v52 }
  0x4a   : > { %3752 = vst [vmem:[%s4634_s26 + $0x104] sm:$0xf] %v3751_v53 }
  0x4b   : > { %3754 = vst [vmem:[%s4634_s26 + $0x110] sm:$0xf] %v3753_v54 }
  0x4c   : > { %3756 = vst [vmem:[%s4634_s26 + $0x11c] sm:$0xf] %v3755_v55 }
  0x4d   : > { %3758 = vst [vmem:[%s4634_s26 + $0x128] sm:$0xf] %v3757_v56 }
  0x4e   : > { %3760 = vst [vmem:[%s4634_s26 + $0x134] sm:$0xf] %v3759_v57 }
  0x4f   : > { %3762 = vst [vmem:[%s4634_s26 + $0x140] sm:$0xf] %v3761_v58 }
  0x50   : > { %3764 = vst [vmem:[%s4634_s26 + $0x14c] sm:$0xf] %v3763_v59 }
  0x51   : > { %3766 = vst [vmem:[%s4634_s26 + $0x158] sm:$0xf] %v3765_v60 }
  0x52   : > { %3768 = vst [vmem:[%s4634_s26 + $0x164] sm:$0xf] %v3767_v61 }
  0x53   : > { %3770 = vst [vmem:[%s4634_s26 + $0x170] sm:$0xf] %v3769_v62 }
  0x54   : > { %3772 = vst [vmem:[%s4634_s26 + $0x17c] sm:$0xf] %v3771_v63 }
  0x55 PF: > { %p3773_p8 = scmp.ge.s32.totalorder %s4564_s13, 1  ;;  %p312_p9 = scmp.lt.s32.totalorder %s4564_s13, 3 }
  0x57   : > { %p313_p10 = pnand %p3773_p8, %p312_p9 }
  0x59   : > { %316 = sbr.rel (%p313_p10) target bundleno = 1115 (0x45b), region = 50 }
  0x5e   : > { %s319_s27 = sand.u32 1, %s4548_s9   ;;  %v3776_v46 = vld [vmem:[%s6171_s0] sm:$0xf]  ;;  %v4355_v47 = vld [vmem:[%s6171_s0 + $0x4] sm:$0xf0]  ;;  %s4466_s9 = smul.u32 (%p4616_p6), 12, %s4556_s11 }
  0x5f   : > { %s4484_s28 = smul.u32 384, %s319_s27  ;;  %v3904_v48 = vld [vmem:[%s6171_s0 + $0x100] sm:$0xf]  ;;  %v4387_v54 = vld [vmem:[%s6171_s0 + $0x104] sm:$0xf0] }
  0x60   : > { %v4354_v55 = vld [vmem:[%s6171_s0 + $0x4] sm:$0xf]  ;;  %v3778_v56 = vld [vmem:[%s6171_s0 + $0x8] sm:$0xf0]  ;;  %s4485_s4 = smul.u32 768, %s319_s27  ;;  %s5900_s7 = scalar_lea.vmem (%p4616_p6), %s6173_s2, %s4466_s9 }
  0x61   : > { %s4766_s29 = scalar_lea.vmem [#allocation3], %s4484_s28  ;;  %v4386_v58 = vld [vmem:[%s6171_s0 + $0x104] sm:$0xf]  ;;  %v3906_v59 = vld [vmem:[%s6171_s0 + $0x108] sm:$0xf0] }
  0x62   : > { %v4116_v0 = vld [vmem:[%s4766_s29 + $0xa8] sm:$0xf]  ;;  %v4440_v1 = vld [vmem:[%s4766_s29 + $0xb0] sm:$0xf0]  ;;  %v4104_v5 = vld [vmem:[%s4766_s29 + $0x90] sm:$0xf] }
  0x63   : > { %v4212_v2 = vld [vmem:[%s4766_s29 + $0x168] sm:$0xf]  ;;  %v4117_v3 = vor.u32 %v4440_v1, %v4116_v0  ;;  %v4464_v4 = vld [vmem:[%s4766_s29 + $0x170] sm:$0xf0]  ;;  %v4437_v6 = vld [vmem:[%s4766_s29 + $0x98] sm:$0xf0] }
  0x64   : > { %v4213_v7 = vor.u32 %v4464_v4, %v4212_v2  ;;  %v4200_v8 = vld [vmem:[%s4766_s29 + $0x150] sm:$0xf]  ;;  %v4461_v9 = vld [vmem:[%s4766_s29 + $0x158] sm:$0xf0]  ;;  %v4105_v10 = vor.u32 %v4437_v6, %v4104_v5  ;;  %v4092_v12 = vld [vmem:[%s4766_s29 + $0x78] sm:$0xf]  ;;  %v4832_v2 = vor.u32 %v4355_v47, %v3776_v46  ;;  %v4836_v4 = vor.u32 %v4354_v55, %v3778_v56 }
  0x65   : > { %1457 = vmatpush.bf16.msra.mxu0 %v4117_v3  ;;  %4467 = vmatpush.bf16.msra.mxu2 %v4117_v3  ;;  %v4201_v11 = vor.u32 %v4461_v9, %v4200_v8  ;;  %v4434_v13 = vld [vmem:[%s4766_s29 + $0x80] sm:$0xf0]  ;;  %v4188_v14 = vld [vmem:[%s4766_s29 + $0x138] sm:$0xf]  ;;  %v4080_v18 = vld [vmem:[%s4766_s29 + $0x60] sm:$0xf]  ;;  %v4834_v3 = vor.u32 %v4387_v54, %v3904_v48  ;;  %v4838_v5 = vor.u32 %v4386_v58, %v3906_v59 }
  0x66   : > { %1626 = vmatpush.bf16.msra.mxu1 %v4213_v7  ;;  %4475 = vmatpush.bf16.msra.mxu3 %v4213_v7  ;;  %v4458_v15 = vld [vmem:[%s4766_s29 + $0x140] sm:$0xf0]  ;;  %v4093_v16 = vor.u32 %v4434_v13, %v4092_v12  ;;  %v4431_v19 = vld [vmem:[%s4766_s29 + $0x68] sm:$0xf0]  ;;  %v4176_v20 = vld [vmem:[%s4766_s29 + $0x120] sm:$0xf] }
  0x67   : > { %v4189_v17 = vor.u32 %v4458_v15, %v4188_v14  ;;  %v4455_v21 = vld [vmem:[%s4766_s29 + $0x128] sm:$0xf0]  ;;  %v4081_v22 = vor.u32 %v4431_v19, %v4080_v18  ;;  %v4068_v24 = vld [vmem:[%s4766_s29 + $0x48] sm:$0xf]  ;;  %v4428_v25 = vld [vmem:[%s4766_s29 + $0x50] sm:$0xf0] }
  0x68   : > { %v4177_v23 = vor.u32 %v4455_v21, %v4176_v20  ;;  %v4164_v26 = vld [vmem:[%s4766_s29 + $0x108] sm:$0xf]  ;;  %v4452_v27 = vld [vmem:[%s4766_s29 + $0x110] sm:$0xf0]  ;;  %v4069_v28 = vor.u32 %v4428_v25, %v4068_v24  ;;  %v4056_v30 = vld [vmem:[%s4766_s29 + $0x30] sm:$0xf] }
  0x69   : > { %1458 = vmatpush.bf16.msra.mxu0 %v4105_v10  ;;  %4468 = vmatpush.bf16.msra.mxu2 %v4105_v10  ;;  %v4165_v29 = vor.u32 %v4452_v27, %v4164_v26  ;;  %v4425_v31 = vld [vmem:[%s4766_s29 + $0x38] sm:$0xf0]  ;;  %v4152_v32 = vld [vmem:[%s4766_s29 + $0xf0] sm:$0xf]  ;;  %v4044_v36 = vld [vmem:[%s4766_s29 + $0x18] sm:$0xf] }
  0x6a   : > { %1627 = vmatpush.bf16.msra.mxu1 %v4201_v11  ;;  %4476 = vmatpush.bf16.msra.mxu3 %v4201_v11  ;;  %v4449_v33 = vld [vmem:[%s4766_s29 + $0xf8] sm:$0xf0]  ;;  %v4057_v34 = vor.u32 %v4425_v31, %v4056_v30  ;;  %v4422_v37 = vld [vmem:[%s4766_s29 + $0x20] sm:$0xf0]  ;;  %v4140_v38 = vld [vmem:[%s4766_s29 + $0xd8] sm:$0xf] }
  0x6b   : > { %v4153_v35 = vor.u32 %v4449_v33, %v4152_v32  ;;  %v4446_v39 = vld [vmem:[%s4766_s29 + $0xe0] sm:$0xf0]  ;;  %v4045_v40 = vor.u32 %v4422_v37, %v4044_v36  ;;  %v4032_v41 = vld [vmem:[%s4766_s29] sm:$0xf]  ;;  %v4419_v43 = vld [vmem:[%s4766_s29 + $0x8] sm:$0xf0] }
  0x6c   : > { %v4141_v42 = vor.u32 %v4446_v39, %v4140_v38  ;;  %v4128_v44 = vld [vmem:[%s4766_s29 + $0xc0] sm:$0xf]  ;;  %v4443_v45 = vld [vmem:[%s4766_s29 + $0xc8] sm:$0xf0]  ;;  %v4118_v50 = vld [vmem:[%s4766_s29 + $0xb4] sm:$0xf0]  ;;  %v4033_v53 = vor.u32 %v4419_v43, %v4032_v41 }
  0x6d   : > { %1459 = vmatpush.bf16.msra.mxu0 %v4093_v16  ;;  %4469 = vmatpush.bf16.msra.mxu2 %v4093_v16  ;;  %v4439_v49 = vld [vmem:[%s4766_s29 + $0xac] sm:$0xf]  ;;  %v4214_v52 = vld [vmem:[%s4766_s29 + $0x174] sm:$0xf0]  ;;  %v4129_v57 = vor.u32 %v4443_v45, %v4128_v44  ;;  %v4124_v60 = vld [vmem:[%s4766_s29 + $0xb0] sm:$0xf] }
  0x6e   : > { %1628 = vmatpush.bf16.msra.mxu1 %v4189_v17  ;;  %4477 = vmatpush.bf16.msra.mxu3 %v4189_v17  ;;  %v4463_v51 = vld [vmem:[%s4766_s29 + $0x16c] sm:$0xf]  ;;  %v4121_v61 = vor.u32 %v4439_v49, %v4118_v50  ;;  %v4441_v63 = vld [vmem:[%s4766_s29 + $0xb8] sm:$0xf0]  ;;  %v4220_v0 = vld [vmem:[%s4766_s29 + $0x170] sm:$0xf] }
  0x6f   : > { %v4217_v62 = vor.u32 %v4463_v51, %v4214_v52  ;;  %v4465_v1 = vld [vmem:[%s4766_s29 + $0x178] sm:$0xf0]  ;;  %v4125_v6 = vor.u32 %v4441_v63, %v4124_v60  ;;  %v4436_v8 = vld [vmem:[%s4766_s29 + $0x94] sm:$0xf]  ;;  %v4106_v9 = vld [vmem:[%s4766_s29 + $0x9c] sm:$0xf0] }
  0x70   : > { %v4221_v7 = vor.u32 %v4465_v1, %v4220_v0  ;;  %v4460_v10 = vld [vmem:[%s4766_s29 + $0x154] sm:$0xf]  ;;  %v4109_v11 = vor.u32 %v4436_v8, %v4106_v9  ;;  %v4202_v12 = vld [vmem:[%s4766_s29 + $0x15c] sm:$0xf0]  ;;  %v4112_v13 = vld [vmem:[%s4766_s29 + $0x98] sm:$0xf] }
  0x71   : > { %1460 = vmatpush.bf16.msra.mxu0 %v4081_v22  ;;  %4470 = vmatpush.bf16.msra.mxu2 %v4081_v22  ;;  %v4438_v14 = vld [vmem:[%s4766_s29 + $0xa0] sm:$0xf0]  ;;  %v4205_v15 = vor.u32 %v4460_v10, %v4202_v12  ;;  %v4208_v17 = vld [vmem:[%s4766_s29 + $0x158] sm:$0xf]  ;;  %v3784_v20 = vld [vmem:[%s6171_s0 + $0x10] sm:$0xf] }
  0x72   : > { %1629 = vmatpush.bf16.msra.mxu1 %v4177_v23  ;;  %4478 = vmatpush.bf16.msra.mxu3 %v4177_v23  ;;  %v4113_v16 = vor.u32 %v4438_v14, %v4112_v13  ;;  %v4462_v18 = vld [vmem:[%s4766_s29 + $0x160] sm:$0xf0]  ;;  %v4357_v21 = vld [vmem:[%s6171_s0 + $0x14] sm:$0xf0]  ;;  %v3912_v22 = vld [vmem:[%s6171_s0 + $0x110] sm:$0xf] }
  0x73   : > { %v4209_v19 = vor.u32 %v4462_v18, %v4208_v17  ;;  %v4389_v23 = vld [vmem:[%s6171_s0 + $0x114] sm:$0xf0]  ;;  %v4356_v24 = vld [vmem:[%s6171_s0 + $0x14] sm:$0xf]  ;;  %v3786_v25 = vld [vmem:[%s6171_s0 + $0x18] sm:$0xf0] }
  0x74   : > { %v4388_v26 = vld [vmem:[%s6171_s0 + $0x114] sm:$0xf]  ;;  %v3914_v27 = vld [vmem:[%s6171_s0 + $0x118] sm:$0xf0]  ;;  %v4880_v30 = vor.u32 %v4356_v24, %v3786_v25  ;;  %v3792_v32 = vld [vmem:[%s6171_s0 + $0x20] sm:$0xf] }
  0x75   : > { %1461 = vmatpush.bf16.msra.mxu0 %v4069_v28  ;;  %4471 = vmatpush.bf16.msra.mxu2 %v4069_v28  ;;  %v4876_v28 = vor.u32 %v4357_v21, %v3784_v20  ;;  %v4882_v31 = vor.u32 %v4388_v26, %v3914_v27  ;;  %v4359_v33 = vld [vmem:[%s6171_s0 + $0x24] sm:$0xf0]  ;;  %v4358_v36 = vld [vmem:[%s6171_s0 + $0x24] sm:$0xf]  ;;  %v3794_v37 = vld [vmem:[%s6171_s0 + $0x28] sm:$0xf0] }
  0x76   : > { %1630 = vmatpush.bf16.msra.mxu1 %v4165_v29  ;;  %4479 = vmatpush.bf16.msra.mxu3 %v4165_v29  ;;  %v4878_v29 = vor.u32 %v4389_v23, %v3912_v22  ;;  %v4390_v38 = vld [vmem:[%s6171_s0 + $0x124] sm:$0xf]  ;;  %v3922_v39 = vld [vmem:[%s6171_s0 + $0x128] sm:$0xf0]  ;;  %v4433_v44 = vld [vmem:[%s4766_s29 + $0x7c] sm:$0xf] }
  0x77   : > { %6236 = vst [vmem:[#allocation6_spill] sm:$0xff] %v4882_v31  ;;  %v4918_v43 = vor.u32 %v4390_v38, %v3922_v39  ;;  %v4094_v45 = vld [vmem:[%s4766_s29 + $0x84] sm:$0xf0]  ;;  %v4457_v46 = vld [vmem:[%s4766_s29 + $0x13c] sm:$0xf]  ;;  %s5606_s5 = scalar_lea.vmem [#allocation4], %s4485_s4 }
  0x78   : > { %6235 = vst [vmem:[#allocation5_spill] sm:$0xff] %v4878_v29  ;;  %v4097_v47 = vor.u32 %v4433_v44, %v4094_v45  ;;  %v4190_v48 = vld [vmem:[%s4766_s29 + $0x144] sm:$0xf0]  ;;  %v4100_v49 = vld [vmem:[%s4766_s29 + $0x80] sm:$0xf] }
  0x79   : > { %1462 = vmatpush.bf16.msra.mxu0 %v4057_v34  ;;  %4472 = vmatpush.bf16.msra.mxu2 %v4057_v34  ;;  %v3920_v34 = vld [vmem:[%s6171_s0 + $0x120] sm:$0xf]  ;;  %6238 = vst [vmem:[#allocation8_spill] sm:$0xff] %v4918_v43  ;;  %v4435_v50 = vld [vmem:[%s4766_s29 + $0x88] sm:$0xf0]  ;;  %v4193_v51 = vor.u32 %v4457_v46, %v4190_v48 }
  0x7a   : > { %1631 = vmatpush.bf16.msra.mxu1 %v4153_v35  ;;  %4480 = vmatpush.bf16.msra.mxu3 %v4153_v35  ;;  %v4391_v35 = vld [vmem:[%s6171_s0 + $0x124] sm:$0xf0]  ;;  %v4101_v52 = vor.u32 %v4435_v50, %v4100_v49  ;;  %v4459_v54 = vld [vmem:[%s4766_s29 + $0x148] sm:$0xf0]  ;;  %v3800_v56 = vld [vmem:[%s6171_s0 + $0x30] sm:$0xf] }
  0x7b   : > { %v4914_v41 = vor.u32 %v4391_v35, %v3920_v34  ;;  %v3928_v58 = vld [vmem:[%s6171_s0 + $0x130] sm:$0xf]  ;;  %v4393_v59 = vld [vmem:[%s6171_s0 + $0x134] sm:$0xf0]  ;;  %v4360_v60 = vld [vmem:[%s6171_s0 + $0x34] sm:$0xf] }
  0x7c   : > { %v3930_v63 = vld [vmem:[%s6171_s0 + $0x138] sm:$0xf0]  ;;  %v4958_v1 = vor.u32 %v4393_v59, %v3928_v58  ;;  %v3808_v8 = vld [vmem:[%s6171_s0 + $0x40] sm:$0xf]  ;;  %v4363_v9 = vld [vmem:[%s6171_s0 + $0x44] sm:$0xf0] }
  0x7d   : > { %1463 = vmatpush.bf16.msra.mxu0 %v4045_v40  ;;  %4473 = vmatpush.bf16.msra.mxu2 %v4045_v40  ;;  %v4912_v40 = vor.u32 %v4359_v33, %v3792_v32  ;;  %6237 = vst [vmem:[#allocation7_spill] sm:$0xff] %v4914_v41  ;;  %v3936_v10 = vld [vmem:[%s6171_s0 + $0x140] sm:$0xf]  ;;  %v4362_v12 = vld [vmem:[%s6171_s0 + $0x44] sm:$0xf] }
  0x7e   : > { %1632 = vmatpush.bf16.msra.mxu1 %v4141_v42  ;;  %4481 = vmatpush.bf16.msra.mxu3 %v4141_v42  ;;  %v4916_v42 = vor.u32 %v4358_v36, %v3794_v37  ;;  %6239 = vst [vmem:[#allocation9_spill] sm:$0xff] %v4958_v1  ;;  %v3810_v13 = vld [vmem:[%s6171_s0 + $0x48] sm:$0xf0]  ;;  %v4394_v14 = vld [vmem:[%s6171_s0 + $0x144] sm:$0xf] }
  0x7f   : > { %v4996_v18 = vor.u32 %v4362_v12, %v3810_v13  ;;  %v4430_v20 = vld [vmem:[%s4766_s29 + $0x64] sm:$0xf]  ;;  %v4082_v21 = vld [vmem:[%s4766_s29 + $0x6c] sm:$0xf0]  ;;  %v4088_v25 = vld [vmem:[%s4766_s29 + $0x68] sm:$0xf] }
  0x80   : > { %v4454_v22 = vld [vmem:[%s4766_s29 + $0x124] sm:$0xf]  ;;  %v4085_v23 = vor.u32 %v4430_v20, %v4082_v21  ;;  %v4178_v24 = vld [vmem:[%s4766_s29 + $0x12c] sm:$0xf0]  ;;  %v4432_v26 = vld [vmem:[%s4766_s29 + $0x70] sm:$0xf0] }
  0x81   : > { %1464 = vmatpush.bf16.msra.mxu0 %v4033_v53  ;;  %4474 = vmatpush.bf16.msra.mxu2 %v4033_v53  ;;  %v4196_v53 = vld [vmem:[%s4766_s29 + $0x140] sm:$0xf]  ;;  %v4181_v27 = vor.u32 %v4454_v22, %v4178_v24  ;;  %v4089_v32 = vor.u32 %v4432_v26, %v4088_v25  ;;  %v4184_v33 = vld [vmem:[%s4766_s29 + $0x128] sm:$0xf]  ;;  %v4456_v34 = vld [vmem:[%s4766_s29 + $0x130] sm:$0xf0] }
  0x82   : > { %1633 = vmatpush.bf16.msra.mxu1 %v4129_v57  ;;  %4482 = vmatpush.bf16.msra.mxu3 %v4129_v57  ;;  %v4197_v55 = vor.u32 %v4459_v54, %v4196_v53  ;;  %v4361_v57 = vld [vmem:[%s6171_s0 + $0x34] sm:$0xf0]  ;;  %v4185_v35 = vor.u32 %v4456_v34, %v4184_v33  ;;  %v3816_v36 = vld [vmem:[%s6171_s0 + $0x50] sm:$0xf]  ;;  %v4364_v44 = vld [vmem:[%s6171_s0 + $0x54] sm:$0xf] }
  0x83   : > { %v4956_v0 = vor.u32 %v4361_v57, %v3800_v56  ;;  %v4365_v37 = vld [vmem:[%s6171_s0 + $0x54] sm:$0xf0]  ;;  %v3944_v38 = vld [vmem:[%s6171_s0 + $0x150] sm:$0xf]  ;;  %v3818_v45 = vld [vmem:[%s6171_s0 + $0x58] sm:$0xf0] }
  0x84   : > { %1465 = vmatmul.bf16.vlgmr.msra.gmra.mxu0 %v4832_v2  ;;  %1545 = vmatmul.bf16.vlgmr.msra.gmra.mxu2 %v4834_v3  ;;  %v4397_v39 = vld [vmem:[%s6171_s0 + $0x154] sm:$0xf0]  ;;  %v4396_v46 = vld [vmem:[%s6171_s0 + $0x154] sm:$0xf]  ;;  %v5036_v48 = vor.u32 %v4365_v37, %v3816_v36  ;;  %v5040_v50 = vor.u32 %v4364_v44, %v3818_v45  ;;  %v4367_v53 = vld [vmem:[%s6171_s0 + $0x64] sm:$0xf0] }
  0x85   : > { %1795 = vmatpush.bf16.msrb.mxu2 %v4121_v61  ;;  %1634 = vmatmul.bf16.vlgmr.msra.gmra.mxu1 %v4836_v4  ;;  %v3802_v61 = vld [vmem:[%s6171_s0 + $0x38] sm:$0xf0]  ;;  %v5038_v49 = vor.u32 %v4397_v39, %v3944_v38  ;;  %v3952_v54 = vld [vmem:[%s6171_s0 + $0x160] sm:$0xf]  ;;  %v4366_v56 = vld [vmem:[%s6171_s0 + $0x64] sm:$0xf] }
  0x86   : > { %1964 = vmatpush.bf16.msrb.mxu3 %v4217_v62  ;;  %2133 = vmatpush.bf16.msrb.mxu0 %v4125_v6  ;;  %v4392_v62 = vld [vmem:[%s6171_s0 + $0x134] sm:$0xf]  ;;  %v4960_v6 = vor.u32 %v4360_v60, %v3802_v61  ;;  %v3826_v57 = vld [vmem:[%s6171_s0 + $0x68] sm:$0xf0]  ;;  %v4398_v58 = vld [vmem:[%s6171_s0 + $0x164] sm:$0xf] }
  0x87   : > { %1714 = vmatmul.bf16.vlgmr.msra.gmra.mxu3 %v4838_v5  ;;  %2302 = vmatpush.bf16.msrb.mxu1 %v4221_v7  ;;  %v4962_v7 = vor.u32 %v4392_v62, %v3930_v63  ;;  %6243 = vst [vmem:[#allocation13_spill] sm:$0xff] %v5038_v49  ;;  %v3954_v59 = vld [vmem:[%s6171_s0 + $0x168] sm:$0xf0]  ;;  %v5076_v62 = vor.u32 %v4366_v56, %v3826_v57  ;;  %v4166_v12 = vld [vmem:[%s4766_s29 + $0x114] sm:$0xf0] }
  0x88   : > { %v5078_v63 = vor.u32 %v4398_v58, %v3954_v59  ;;  %v4172_v20 = vld [vmem:[%s4766_s29 + $0x110] sm:$0xf]  ;;  %v4369_v22 = vld [vmem:[%s6171_s0 + $0x74] sm:$0xf0]  ;;  %v4453_v24 = vld [vmem:[%s4766_s29 + $0x118] sm:$0xf0] }
  0x89   : > { %1796 = vmatpush.bf16.msrb.mxu2 %v4109_v11  ;;  %6240 = vst [vmem:[#allocation10_spill] sm:$0xff] %v4962_v7  ;;  %v4395_v11 = vld [vmem:[%s6171_s0 + $0x144] sm:$0xf0]  ;;  %v3832_v21 = vld [vmem:[%s6171_s0 + $0x70] sm:$0xf] }
  0x8a   : > { %1965 = vmatpush.bf16.msrb.mxu3 %v4205_v15  ;;  %2134 = vmatpush.bf16.msrb.mxu0 %v4113_v16  ;;  %v3938_v15 = vld [vmem:[%s6171_s0 + $0x148] sm:$0xf0]  ;;  %v4992_v16 = vor.u32 %v4363_v9, %v3808_v8  ;;  %v4994_v17 = vor.u32 %v4395_v11, %v3936_v10  ;;  %6246 = vst [vmem:[#allocation16_spill] sm:$0xff] %v5078_v63  ;;  %v4070_v9 = vld [vmem:[%s4766_s29 + $0x54] sm:$0xf0] }
  0x8b   : > { %2303 = vmatpush.bf16.msrb.mxu1 %v4209_v19  ;;  %v4998_v19 = vor.u32 %v4394_v14, %v3938_v15  ;;  %v4427_v8 = vld [vmem:[%s4766_s29 + $0x4c] sm:$0xf]  ;;  %v4076_v14 = vld [vmem:[%s4766_s29 + $0x50] sm:$0xf]  ;;  %v4429_v15 = vld [vmem:[%s4766_s29 + $0x58] sm:$0xf0]  ;;  %v5116_v36 = vor.u32 %v4369_v22, %v3832_v21 }
  0x8c   : > { %6241 = vst [vmem:[#allocation11_spill] sm:$0xff] %v4994_v17  ;;  %v4451_v10 = vld [vmem:[%s4766_s29 + $0x10c] sm:$0xf]  ;;  %v4073_v11 = vor.u32 %v4427_v8, %v4070_v9  ;;  %v3960_v25 = vld [vmem:[%s6171_s0 + $0x170] sm:$0xf] }
  0x8d   : > { %1797 = vmatpush.bf16.msrb.mxu2 %v4097_v47  ;;  %6242 = vst [vmem:[#allocation12_spill] sm:$0xff] %v4998_v19  ;;  %v3946_v47 = vld [vmem:[%s6171_s0 + $0x158] sm:$0xf0]  ;;  %v4169_v13 = vor.u32 %v4451_v10, %v4166_v12  ;;  %v4401_v26 = vld [vmem:[%s6171_s0 + $0x174] sm:$0xf0] }
  0x8e   : > { %1966 = vmatpush.bf16.msrb.mxu3 %v4193_v51  ;;  %2135 = vmatpush.bf16.msrb.mxu0 %v4101_v52  ;;  %v5042_v51 = vor.u32 %v4396_v46, %v3946_v47  ;;  %v3824_v52 = vld [vmem:[%s6171_s0 + $0x60] sm:$0xf]  ;;  %v3834_v33 = vld [vmem:[%s6171_s0 + $0x78] sm:$0xf0]  ;;  %v4400_v34 = vld [vmem:[%s6171_s0 + $0x174] sm:$0xf]  ;;  %v5118_v37 = vor.u32 %v4401_v26, %v3960_v25 }
  0x8f   : > { %2304 = vmatpush.bf16.msrb.mxu1 %v4197_v55  ;;  %v4399_v55 = vld [vmem:[%s6171_s0 + $0x164] sm:$0xf0]  ;;  %v5072_v60 = vor.u32 %v4367_v53, %v3824_v52  ;;  %v3840_v44 = vld [vmem:[%s6171_s0 + $0x80] sm:$0xf]  ;;  %v4370_v52 = vld [vmem:[%s6171_s0 + $0x84] sm:$0xf] }
  0x90   : > { %6244 = vst [vmem:[#allocation14_spill] sm:$0xff] %v5042_v51  ;;  %v5074_v61 = vor.u32 %v4399_v55, %v3952_v54  ;;  %v4371_v45 = vld [vmem:[%s6171_s0 + $0x84] sm:$0xf0]  ;;  %v3968_v46 = vld [vmem:[%s6171_s0 + $0x180] sm:$0xf] }
  0x91   : > { %1798 = vmatpush.bf16.msrb.mxu2 %v4085_v23  ;;  %v4077_v23 = vor.u32 %v4429_v15, %v4076_v14  ;;  %6247 = vst [vmem:[#allocation17_spill] sm:$0xff] %v5118_v37  ;;  %v4403_v47 = vld [vmem:[%s6171_s0 + $0x184] sm:$0xf0]  ;;  %v3842_v53 = vld [vmem:[%s6171_s0 + $0x88] sm:$0xf0]  ;;  %v5152_v56 = vor.u32 %v4371_v45, %v3840_v44 }
  0x92   : > { %1967 = vmatpush.bf16.msrb.mxu3 %v4181_v27  ;;  %2136 = vmatpush.bf16.msrb.mxu0 %v4089_v32  ;;  %6245 = vst [vmem:[#allocation15_spill] sm:$0xff] %v5074_v61  ;;  %v4368_v27 = vld [vmem:[%s6171_s0 + $0x74] sm:$0xf]  ;;  %v4173_v32 = vor.u32 %v4453_v24, %v4172_v20  ;;  %v4402_v54 = vld [vmem:[%s6171_s0 + $0x184] sm:$0xf]  ;;  %v5154_v57 = vor.u32 %v4403_v47, %v3968_v46 }
  0x93   : > { %2305 = vmatpush.bf16.msrb.mxu1 %v4185_v35  ;;  %v3962_v35 = vld [vmem:[%s6171_s0 + $0x178] sm:$0xf0]  ;;  %v5120_v38 = vor.u32 %v4368_v27, %v3834_v33  ;;  %v3970_v55 = vld [vmem:[%s6171_s0 + $0x188] sm:$0xf0]  ;;  %v5156_v59 = vor.u32 %v4370_v52, %v3842_v53  ;;  %v4058_v12 = vld [vmem:[%s4766_s29 + $0x3c] sm:$0xf0] }
  0x94   : > { %1470 = vmatmul.bf16.gmra.mxu0 %v4876_v28  ;;  %1550 = vmatmul.bf16.gmra.mxu2 %v4878_v29  ;;  %v5122_v39 = vor.u32 %v4400_v34, %v3962_v35  ;;  %6249 = vst [vmem:[#allocation19_spill] sm:$0xff] %v5154_v57  ;;  %v5158_v8 = vor.u32 %v4402_v54, %v3970_v55  ;;  %v4154_v15 = vld [vmem:[%s4766_s29 + $0xfc] sm:$0xf0]  ;;  %v4064_v27 = vld [vmem:[%s4766_s29 + $0x38] sm:$0xf] }
  0x95   : > { %1639 = vmatmul.bf16.gmra.mxu1 %v4880_v30  ;;  %1799 = vmatpush.bf16.msrb.mxu2 %v4073_v11  ;;  %v4424_v11 = vld [vmem:[%s4766_s29 + $0x34] sm:$0xf]  ;;  %v4160_v33 = vld [vmem:[%s4766_s29 + $0xf8] sm:$0xf]  ;;  %v3848_v34 = vld [vmem:[%s6171_s0 + $0x90] sm:$0xf] }
  0x96   : > { %1968 = vmatpush.bf16.msrb.mxu3 %v4169_v13  ;;  %2137 = vmatpush.bf16.msrb.mxu0 %v4077_v23  ;;  %6248 = vst [vmem:[#allocation18_spill] sm:$0xff] %v5122_v39  ;;  %v4448_v13 = vld [vmem:[%s4766_s29 + $0xf4] sm:$0xf]  ;;  %v4061_v14 = vor.u32 %v4424_v11, %v4058_v12  ;;  %v4373_v35 = vld [vmem:[%s6171_s0 + $0x94] sm:$0xf0] }
  0x97   : > { %1719 = vmatmul.bf16.gmra.mxu3 %v4882_v31  ;;  %2306 = vmatpush.bf16.msrb.mxu1 %v4173_v32  ;;  %6250 = vst [vmem:[#allocation20_spill] sm:$0xff] %v5158_v8  ;;  %v4157_v21 = vor.u32 %v4448_v13, %v4154_v15  ;;  %v4426_v32 = vld [vmem:[%s4766_s29 + $0x40] sm:$0xf0]  ;;  %v3976_v46 = vld [vmem:[%s6171_s0 + $0x190] sm:$0xf]  ;;  %v5202_v12 = vor.u32 %v4373_v35, %v3848_v34 }
  0x98   : > { %v4065_v44 = vor.u32 %v4426_v32, %v4064_v27  ;;  %v4450_v45 = vld [vmem:[%s4766_s29 + $0x100] sm:$0xf0]  ;;  %v4405_v47 = vld [vmem:[%s6171_s0 + $0x194] sm:$0xf0]  ;;  %v4372_v52 = vld [vmem:[%s6171_s0 + $0x94] sm:$0xf] }
  0x99   : > { %1800 = vmatpush.bf16.msrb.mxu2 %v4061_v14  ;;  %v4161_v53 = vor.u32 %v4450_v45, %v4160_v33  ;;  %v3850_v54 = vld [vmem:[%s6171_s0 + $0x98] sm:$0xf0]  ;;  %v4404_v55 = vld [vmem:[%s6171_s0 + $0x194] sm:$0xf]  ;;  %v5204_v13 = vor.u32 %v4405_v47, %v3976_v46  ;;  %v4375_v45 = vld [vmem:[%s6171_s0 + $0xa4] sm:$0xf0] }
  0x9a   : > { %1969 = vmatpush.bf16.msrb.mxu3 %v4157_v21  ;;  %2138 = vmatpush.bf16.msrb.mxu0 %v4065_v44  ;;  %v3856_v44 = vld [vmem:[%s6171_s0 + $0xa0] sm:$0xf]  ;;  %v4407_v47 = vld [vmem:[%s6171_s0 + $0x1a4] sm:$0xf0] }
  0x9b   : > { %2307 = vmatpush.bf16.msrb.mxu1 %v4161_v53  ;;  %6252 = vst [vmem:[#allocation22_spill] sm:$0xff] %v5204_v13  ;;  %v3984_v46 = vld [vmem:[%s6171_s0 + $0x1a0] sm:$0xf]  ;;  %v3858_v53 = vld [vmem:[%s6171_s0 + $0xa8] sm:$0xf0] }
  0xa4   : > { %1475 = vmatmul.bf16.gmra.mxu0 %v4912_v40  ;;  %1555 = vmatmul.bf16.gmra.mxu2 %v4914_v41 }
  0xa5   : > { %1644 = vmatmul.bf16.gmra.mxu1 %v4916_v42 }
  0xa7   : > { %1724 = vmatmul.bf16.gmra.mxu3 %v4918_v43 }
  0xb4   : > { %1480 = vmatmul.bf16.gmra.mxu0 %v4956_v0  ;;  %1560 = vmatmul.bf16.gmra.mxu2 %v4958_v1 }
  0xb5   : > { %1649 = vmatmul.bf16.gmra.mxu1 %v4960_v6 }
  0xb7   : > { %1729 = vmatmul.bf16.gmra.mxu3 %v4962_v7 }
  0xc4   : > { %1485 = vmatmul.bf16.gmra.mxu0 %v4992_v16  ;;  %1565 = vmatmul.bf16.gmra.mxu2 %v4994_v17 }
  0xc5   : > { %1654 = vmatmul.bf16.gmra.mxu1 %v4996_v18 }
  0xc7   : > { %1734 = vmatmul.bf16.gmra.mxu3 %v4998_v19 }
  0xd4   : > { %1490 = vmatmul.bf16.gmra.mxu0 %v5036_v48  ;;  %1570 = vmatmul.bf16.gmra.mxu2 %v5038_v49 }
  0xd5   : > { %1659 = vmatmul.bf16.gmra.mxu1 %v5040_v50 }
  0xd7   : > { %1739 = vmatmul.bf16.gmra.mxu3 %v5042_v51 }
  0xe4   : > { %1495 = vmatmul.bf16.gmra.mxu0 %v5072_v60  ;;  %1575 = vmatmul.bf16.gmra.mxu2 %v5074_v61 }
  0xe5   : > { %1664 = vmatmul.bf16.gmra.mxu1 %v5076_v62 }
  0xe7   : > { %1744 = vmatmul.bf16.gmra.mxu3 %v5078_v63 }
  0xf4   : > { %1500 = vmatmul.bf16.gmra.mxu0 %v5116_v36  ;;  %1580 = vmatmul.bf16.gmra.mxu2 %v5118_v37 }
  0xf5   : > { %1669 = vmatmul.bf16.gmra.mxu1 %v5120_v38 }
  0xf7   : > { %1749 = vmatmul.bf16.gmra.mxu3 %v5122_v39 }
 0x101   : > { %v1466_v58 = vpop.f32.mrf.mxu0 }
 0x102   : > { %v1635_v9 = vpop.f32.mrf.mxu1 }
 0x103   : > { %v5160_v10 = vadd.f32 %v1635_v9, %v1466_v58  ;;  %v3978_v58 = vld [vmem:[%s6171_s0 + $0x198] sm:$0xf0] }
 0x104   : > { %1505 = vmatmul.bf16.gmra.mxu0 %v5152_v56  ;;  %1585 = vmatmul.bf16.gmra.mxu2 %v5154_v57  ;;  %v5210_v21 = vor.u32 %v4404_v55, %v3978_v58  ;;  %v3986_v55 = vld [vmem:[%s6171_s0 + $0x1a8] sm:$0xf0] }
 0x105   : > { %1674 = vmatmul.bf16.gmra.mxu1 %v5156_v59 }
 0x106   : > { %6254 = vst [vmem:[#allocation24_spill] sm:$0xff] %v5210_v21 }
 0x107   : > { %1754 = vmatmul.bf16.gmra.mxu3 %v5158_v8  ;;  %v1546_v20 = vpop.f32.mrf.mxu2 }
 0x109   : > { %v1468_v24 = vpop.f32.mrf.mxu0 }
 0x10a   : > { %v1715_v22 = vpop.f32.mrf.mxu3  ;;  %v1637_v25 = vpop.f32.mrf.mxu1 }
 0x10b   : > { %v5170_v23 = vadd.f32 %v1715_v22, %v1546_v20  ;;  %v5172_v26 = vadd.f32 %v1637_v25, %v1468_v24  ;;  %v5208_v20 = vor.u32 %v4372_v52, %v3850_v54  ;;  %v4374_v52 = vld [vmem:[%s6171_s0 + $0xa4] sm:$0xf] }
 0x10c   : > { %v4406_v54 = vld [vmem:[%s6171_s0 + $0x1a4] sm:$0xf] }
 0x10d   : > { %6251 = vst [vmem:[#allocation21_spill] sm:$0xff] %v5170_v23 }
 0x10f   : > { %v1548_v9 = vpop.f32.mrf.mxu2 }
 0x111   : > { %v1471_v15 = vpop.f32.mrf.mxu0 }
 0x112   : > { %v1717_v11 = vpop.f32.mrf.mxu3  ;;  %v1640_v22 = vpop.f32.mrf.mxu1 }
 0x113   : > { %v5206_v14 = vadd.f32 %v1717_v11, %v1548_v9  ;;  %v5212_v24 = vadd.f32 %v1640_v22, %v1471_v15  ;;  %v5246_v11 = vor.u32 %v4375_v45, %v3856_v44  ;;  %v5248_v15 = vor.u32 %v4407_v47, %v3984_v46  ;;  %v4421_v44 = vld [vmem:[%s4766_s29 + $0x1c] sm:$0xf]  ;;  %v4046_v45 = vld [vmem:[%s4766_s29 + $0x24] sm:$0xf0] }
 0x114   : > { %1510 = vmatmul.bf16.gmra.mxu0 %v5202_v12  ;;  %1590 = vmatmul.bf16.gmra.mxu2 %v5204_v13  ;;  %v4445_v46 = vld [vmem:[%s4766_s29 + $0xdc] sm:$0xf]  ;;  %v4049_v47 = vor.u32 %v4421_v44, %v4046_v45  ;;  %v3864_v44 = vld [vmem:[%s6171_s0 + $0xb0] sm:$0xf]  ;;  %v4377_v45 = vld [vmem:[%s6171_s0 + $0xb4] sm:$0xf0] }
 0x115   : > { %6253 = vst [vmem:[#allocation23_spill] sm:$0xff] %v5206_v14  ;;  %1679 = vmatmul.bf16.gmra.mxu1 %v5208_v20 }
 0x116   : > { %6256 = vst [vmem:[#allocation26_spill] sm:$0xff] %v5248_v15  ;;  %1801 = vmatpush.bf16.msrb.mxu2 %v4049_v47  ;;  %v4447_v47 = vld [vmem:[%s4766_s29 + $0xe8] sm:$0xf0] }
 0x117   : > { %1759 = vmatmul.bf16.gmra.mxu3 %v5210_v21  ;;  %v1551_v25 = vpop.f32.mrf.mxu2  ;;  %v5298_v21 = vor.u32 %v4377_v45, %v3864_v44 }
 0x119   : > { %v1473_v33 = vpop.f32.mrf.mxu0 }
 0x11a   : > { %v1720_v27 = vpop.f32.mrf.mxu3  ;;  %v1642_v34 = vpop.f32.mrf.mxu1 }
 0x11b   : > { %v5218_v32 = vadd.f32 %v1720_v27, %v1551_v25  ;;  %v5220_v35 = vadd.f32 %v1642_v34, %v1473_v33  ;;  %v5252_v27 = vor.u32 %v4374_v52, %v3858_v53  ;;  %v5254_v33 = vor.u32 %v4406_v54, %v3986_v55  ;;  %v4142_v52 = vld [vmem:[%s4766_s29 + $0xe4] sm:$0xf0] }
 0x11c   : > { %v4145_v54 = vor.u32 %v4445_v46, %v4142_v52  ;;  %v3992_v52 = vld [vmem:[%s6171_s0 + $0x1b0] sm:$0xf] }
 0x11d   : > { %6255 = vst [vmem:[#allocation25_spill] sm:$0xff] %v5218_v32 }
 0x11e   : > { %6258 = vst [vmem:[#allocation28_spill] sm:$0xff] %v5254_v33  ;;  %1970 = vmatpush.bf16.msrb.mxu3 %v4145_v54  ;;  %v4376_v54 = vld [vmem:[%s6171_s0 + $0xb4] sm:$0xf] }
 0x11f   : > { %v1553_v58 = vpop.f32.mrf.mxu2 }
 0x121   : > { %v1476_v25 = vpop.f32.mrf.mxu0 }
 0x122   : > { %v1722_v9 = vpop.f32.mrf.mxu3  ;;  %v1645_v34 = vpop.f32.mrf.mxu1 }
 0x123   : > { %v5250_v22 = vadd.f32 %v1722_v9, %v1553_v58  ;;  %v5256_v32 = vadd.f32 %v1645_v34, %v1476_v25 }
 0x124   : > { %1515 = vmatmul.bf16.gmra.mxu0 %v5246_v11  ;;  %1595 = vmatmul.bf16.gmra.mxu2 %v5248_v15  ;;  %v4423_v15 = vld [vmem:[%s4766_s29 + $0x28] sm:$0xf0] }
 0x125   : > { %6257 = vst [vmem:[#allocation27_spill] sm:$0xff] %v5250_v22  ;;  %1684 = vmatmul.bf16.gmra.mxu1 %v5252_v27  ;;  %v4148_v22 = vld [vmem:[%s4766_s29 + $0xe0] sm:$0xf] }
 0x127   : > { %1764 = vmatmul.bf16.gmra.mxu3 %v5254_v33  ;;  %v1556_v53 = vpop.f32.mrf.mxu2  ;;  %v4052_v33 = vld [vmem:[%s4766_s29 + $0x20] sm:$0xf] }
 0x128   : > { %v4053_v46 = vor.u32 %v4423_v15, %v4052_v33  ;;  %v4408_v15 = vld [vmem:[%s6171_s0 + $0x1b4] sm:$0xf]  ;;  %v3994_v33 = vld [vmem:[%s6171_s0 + $0x1b8] sm:$0xf0] }
 0x129   : > { %v1478_v9 = vpop.f32.mrf.mxu0  ;;  %v5306_v23 = vor.u32 %v4408_v15, %v3994_v33  ;;  %v4378_v15 = vld [vmem:[%s6171_s0 + $0xc4] sm:$0xf]  ;;  %v3874_v33 = vld [vmem:[%s6171_s0 + $0xc8] sm:$0xf0] }
 0x12a   : > { %v1725_v55 = vpop.f32.mrf.mxu3  ;;  %v1647_v25 = vpop.f32.mrf.mxu1  ;;  %2139 = vmatpush.bf16.msrb.mxu0 %v4053_v46 }
 0x12b   : > { %v5266_v58 = vadd.f32 %v1725_v55, %v1556_v53  ;;  %v5268_v34 = vadd.f32 %v1647_v25, %v1478_v9  ;;  %v4409_v53 = vld [vmem:[%s6171_s0 + $0x1b4] sm:$0xf0]  ;;  %v4149_v55 = vor.u32 %v4447_v47, %v4148_v22  ;;  %v3866_v9 = vld [vmem:[%s6171_s0 + $0xb8] sm:$0xf0]  ;;  %6262 = vst [vmem:[#allocation32_spill] sm:$0xff] %v5306_v23 }
 0x12c   : > { %v5300_v13 = vor.u32 %v4409_v53, %v3992_v52  ;;  %v5304_v14 = vor.u32 %v4376_v54, %v3866_v9  ;;  %v4379_v54 = vld [vmem:[%s6171_s0 + $0xc4] sm:$0xf0] }
 0x12d   : > { %6259 = vst [vmem:[#allocation29_spill] sm:$0xff] %v5266_v58  ;;  %2308 = vmatpush.bf16.msrb.mxu1 %v4149_v55  ;;  %v4000_v55 = vld [vmem:[%s6171_s0 + $0x1c0] sm:$0xf]  ;;  %v4411_v9 = vld [vmem:[%s6171_s0 + $0x1c4] sm:$0xf0] }
 0x12e   : > { %6260 = vst [vmem:[#allocation30_spill] sm:$0xff] %v5300_v13 }
 0x12f   : > { %v1558_v25 = vpop.f32.mrf.mxu2 }
 0x131   : > { %v1481_v47 = vpop.f32.mrf.mxu0 }
 0x132   : > { %v1727_v58 = vpop.f32.mrf.mxu3  ;;  %v1650_v8 = vpop.f32.mrf.mxu1 }
 0x133   : > { %v5302_v22 = vadd.f32 %v1727_v58, %v1558_v25  ;;  %v5308_v57 = vadd.f32 %v1650_v8, %v1481_v47  ;;  %v3872_v8 = vld [vmem:[%s6171_s0 + $0xc0] sm:$0xf]  ;;  %v4410_v25 = vld [vmem:[%s6171_s0 + $0x1c4] sm:$0xf]  ;;  %v4002_v47 = vld [vmem:[%s6171_s0 + $0x1c8] sm:$0xf0] }
 0x134   : > { %1520 = vmatmul.bf16.gmra.mxu0 %v5298_v21  ;;  %1600 = vmatmul.bf16.gmra.mxu2 %v5300_v13  ;;  %v5348_v13 = vor.u32 %v4378_v15, %v3874_v33  ;;  %v4130_v15 = vld [vmem:[%s4766_s29 + $0xcc] sm:$0xf0] }
 0x135   : > { %6261 = vst [vmem:[#allocation31_spill] sm:$0xff] %v5302_v22  ;;  %1689 = vmatmul.bf16.gmra.mxu1 %v5304_v14  ;;  %v5350_v22 = vor.u32 %v4410_v25, %v4002_v47 }
 0x137   : > { %1769 = vmatmul.bf16.gmra.mxu3 %v5306_v23  ;;  %v1561_v44 = vpop.f32.mrf.mxu2  ;;  %6266 = vst [vmem:[#allocation36_spill] sm:$0xff] %v5350_v22 }
 0x139   : > { %v1483_v46 = vpop.f32.mrf.mxu0 }
 0x13a   : > { %v1730_v45 = vpop.f32.mrf.mxu3  ;;  %v1652_v52 = vpop.f32.mrf.mxu1 }
 0x13b   : > { %v5314_v58 = vadd.f32 %v1730_v45, %v1561_v44  ;;  %v5316_v53 = vadd.f32 %v1652_v52, %v1483_v46  ;;  %v5342_v46 = vor.u32 %v4379_v54, %v3872_v8  ;;  %v5344_v52 = vor.u32 %v4411_v9, %v4000_v55  ;;  %v4418_v8 = vld [vmem:[%s4766_s29 + $0x4] sm:$0xf]  ;;  %v4034_v54 = vld [vmem:[%s4766_s29 + $0xc] sm:$0xf0] }
 0x13c   : > { %v4442_v55 = vld [vmem:[%s4766_s29 + $0xc4] sm:$0xf]  ;;  %v4037_v9 = vor.u32 %v4418_v8, %v4034_v54  ;;  %v3880_v8 = vld [vmem:[%s6171_s0 + $0xd0] sm:$0xf]  ;;  %v4381_v54 = vld [vmem:[%s6171_s0 + $0xd4] sm:$0xf0] }
 0x13d   : > { %6263 = vst [vmem:[#allocation33_spill] sm:$0xff] %v5314_v58  ;;  %v5394_v63 = vor.u32 %v4381_v54, %v3880_v8 }
 0x13e   : > { %6264 = vst [vmem:[#allocation34_spill] sm:$0xff] %v5344_v52  ;;  %1802 = vmatpush.bf16.msrb.mxu2 %v4037_v9  ;;  %v4444_v9 = vld [vmem:[%s4766_s29 + $0xd0] sm:$0xf0] }
 0x13f   : > { %v1563_v44 = vpop.f32.mrf.mxu2 }
 0x141   : > { %v1486_v23 = vpop.f32.mrf.mxu0 }
 0x142   : > { %v1732_v45 = vpop.f32.mrf.mxu3  ;;  %v1655_v39 = vpop.f32.mrf.mxu1 }
 0x143   : > { %v5346_v58 = vadd.f32 %v1732_v45, %v1563_v44  ;;  %v5352_v37 = vadd.f32 %v1655_v39, %v1486_v23  ;;  %v4133_v39 = vor.u32 %v4442_v55, %v4130_v15  ;;  %v4008_v15 = vld [vmem:[%s6171_s0 + $0x1d0] sm:$0xf] }
 0x144   : > { %1525 = vmatmul.bf16.gmra.mxu0 %v5342_v46  ;;  %1605 = vmatmul.bf16.gmra.mxu2 %v5344_v52  ;;  %v4420_v52 = vld [vmem:[%s4766_s29 + $0x10] sm:$0xf0] }
 0x145   : > { %6265 = vst [vmem:[#allocation35_spill] sm:$0xff] %v5346_v58  ;;  %1694 = vmatmul.bf16.gmra.mxu1 %v5348_v13  ;;  %1971 = vmatpush.bf16.msrb.mxu3 %v4133_v39  ;;  %v4136_v58 = vld [vmem:[%s4766_s29 + $0xc8] sm:$0xf]  ;;  %v4380_v39 = vld [vmem:[%s6171_s0 + $0xd4] sm:$0xf] }
 0x147   : > { %1774 = vmatmul.bf16.gmra.mxu3 %v5350_v22  ;;  %v1566_v33 = vpop.f32.mrf.mxu2  ;;  %v4040_v22 = vld [vmem:[%s4766_s29 + $0x8] sm:$0xf] }
 0x148   : > { %v4041_v55 = vor.u32 %v4420_v52, %v4040_v22  ;;  %v4412_v22 = vld [vmem:[%s6171_s0 + $0x1d4] sm:$0xf]  ;;  %v4010_v52 = vld [vmem:[%s6171_s0 + $0x1d8] sm:$0xf0] }
 0x149   : > { %v1488_v47 = vpop.f32.mrf.mxu0  ;;  %v5402_v49 = vor.u32 %v4412_v22, %v4010_v52  ;;  %v4382_v22 = vld [vmem:[%s6171_s0 + $0xe4] sm:$0xf]  ;;  %v3890_v52 = vld [vmem:[%s6171_s0 + $0xe8] sm:$0xf0] }
 0x14a   : > { %v1735_v23 = vpop.f32.mrf.mxu3  ;;  %v1657_v44 = vpop.f32.mrf.mxu1  ;;  %2140 = vmatpush.bf16.msrb.mxu0 %v4041_v55 }
 0x14b   : > { %v5362_v25 = vadd.f32 %v1735_v23, %v1566_v33  ;;  %v5364_v45 = vadd.f32 %v1657_v44, %v1488_v47  ;;  %v4413_v33 = vld [vmem:[%s6171_s0 + $0x1d4] sm:$0xf0]  ;;  %v4137_v23 = vor.u32 %v4444_v9, %v4136_v58  ;;  %v3882_v47 = vld [vmem:[%s6171_s0 + $0xd8] sm:$0xf0]  ;;  %6270 = vst [vmem:[#allocation40_spill] sm:$0xff] %v5402_v49 }
 0x14c   : > { %v5396_v61 = vor.u32 %v4413_v33, %v4008_v15  ;;  %v5400_v51 = vor.u32 %v4380_v39, %v3882_v47  ;;  %v4383_v39 = vld [vmem:[%s6171_s0 + $0xe4] sm:$0xf0] }
 0x14d   : > { %6267 = vst [vmem:[#allocation37_spill] sm:$0xff] %v5362_v25  ;;  %2309 = vmatpush.bf16.msrb.mxu1 %v4137_v23  ;;  %v4016_v23 = vld [vmem:[%s6171_s0 + $0x1e0] sm:$0xf]  ;;  %v4415_v47 = vld [vmem:[%s6171_s0 + $0x1e4] sm:$0xf0] }
 0x14e   : > { %6268 = vst [vmem:[#allocation38_spill] sm:$0xff] %v5396_v61 }
 0x14f   : > { %v1568_v44 = vpop.f32.mrf.mxu2 }
 0x151   : > { %v1491_v9 = vpop.f32.mrf.mxu0 }
 0x152   : > { %v1737_v25 = vpop.f32.mrf.mxu3  ;;  %v1660_v19 = vpop.f32.mrf.mxu1 }
 0x153   : > { %v5398_v58 = vadd.f32 %v1737_v25, %v1568_v44  ;;  %v5404_v17 = vadd.f32 %v1660_v19, %v1491_v9  ;;  %v3888_v19 = vld [vmem:[%s6171_s0 + $0xe0] sm:$0xf]  ;;  %v4414_v44 = vld [vmem:[%s6171_s0 + $0x1e4] sm:$0xf]  ;;  %v4018_v9 = vld [vmem:[%s6171_s0 + $0x1e8] sm:$0xf0] }
 0x154   : > { %1530 = vmatmul.bf16.gmra.mxu0 %v5394_v63  ;;  %1610 = vmatmul.bf16.gmra.mxu2 %v5396_v61  ;;  %v5444_v61 = vor.u32 %v4382_v22, %v3890_v52 }
 0x155   : > { %6269 = vst [vmem:[#allocation39_spill] sm:$0xff] %v5398_v58  ;;  %1699 = vmatmul.bf16.gmra.mxu1 %v5400_v51  ;;  %v5446_v58 = vor.u32 %v4414_v44, %v4018_v9  ;;  %v4024_v44 = vld [vmem:[%s6171_s0 + $0x1f0] sm:$0xf]  ;;  %v4417_v9 = vld [vmem:[%s6171_s0 + $0x1f4] sm:$0xf0] }
 0x157   : > { %1779 = vmatmul.bf16.gmra.mxu3 %v5402_v49  ;;  %v1571_v8 = vpop.f32.mrf.mxu2  ;;  %6274 = vst [vmem:[#allocation44_spill] sm:$0xff] %v5446_v58 }
 0x159   : > { %v1493_v55 = vpop.f32.mrf.mxu0 }
 0x15a   : > { %v1740_v54 = vpop.f32.mrf.mxu3  ;;  %v1662_v15 = vpop.f32.mrf.mxu1 }
 0x15b   : > { %v5410_v25 = vadd.f32 %v1740_v54, %v1571_v8  ;;  %v5412_v33 = vadd.f32 %v1662_v15, %v1493_v55  ;;  %v5438_v55 = vor.u32 %v4383_v39, %v3888_v19  ;;  %v5440_v15 = vor.u32 %v4415_v47, %v4016_v23 }
 0x15d   : > { %6271 = vst [vmem:[#allocation41_spill] sm:$0xff] %v5410_v25 }
 0x15e   : > { %6272 = vst [vmem:[#allocation42_spill] sm:$0xff] %v5440_v15 }
 0x15f   : > { %v1573_v8 = vpop.f32.mrf.mxu2 }
 0x161   : > { %v1496_v49 = vpop.f32.mrf.mxu0 }
 0x162   : > { %v1742_v54 = vpop.f32.mrf.mxu3  ;;  %v1665_v7 = vpop.f32.mrf.mxu1 }
 0x163   : > { %v5442_v25 = vadd.f32 %v1742_v54, %v1573_v8  ;;  %v5448_v1 = vadd.f32 %v1665_v7, %v1496_v49  ;;  %v3896_v7 = vld [vmem:[%s6171_s0 + $0xf0] sm:$0xf]  ;;  %v4385_v49 = vld [vmem:[%s6171_s0 + $0xf4] sm:$0xf0]  ;;  %v4384_v8 = vld [vmem:[%s6171_s0 + $0xf4] sm:$0xf] }
 0x164   : > { %1535 = vmatmul.bf16.gmra.mxu0 %v5438_v55  ;;  %1615 = vmatmul.bf16.gmra.mxu2 %v5440_v15  ;;  %v3898_v54 = vld [vmem:[%s6171_s0 + $0xf8] sm:$0xf0] }
 0x165   : > { %6273 = vst [vmem:[#allocation43_spill] sm:$0xff] %v5442_v25  ;;  %1704 = vmatmul.bf16.gmra.mxu1 %v5444_v61  ;;  %v5488_v43 = vor.u32 %v4384_v8, %v3898_v54 }
 0x167   : > { %1784 = vmatmul.bf16.gmra.mxu3 %v5446_v58  ;;  %v1576_v19 = vpop.f32.mrf.mxu2  ;;  %v5484_v58 = vor.u32 %v4417_v9, %v4024_v44 }
 0x169   : > { %v1498_v47 = vpop.f32.mrf.mxu0  ;;  %6276 = vst [vmem:[#allocation46_spill] sm:$0xff] %v5484_v58 }
 0x16a   : > { %v1745_v39 = vpop.f32.mrf.mxu3  ;;  %v1667_v22 = vpop.f32.mrf.mxu1 }
 0x16b   : > { %v5454_v23 = vadd.f32 %v1745_v39, %v1576_v19  ;;  %v5456_v52 = vadd.f32 %v1667_v22, %v1498_v47  ;;  %v4416_v19 = vld [vmem:[%s6171_s0 + $0x1f4] sm:$0xf]  ;;  %v4026_v39 = vld [vmem:[%s6171_s0 + $0x1f8] sm:$0xf0] }
 0x16c   : > { %v5490_v41 = vor.u32 %v4416_v19, %v4026_v39 }
 0x16d   : > { %6275 = vst [vmem:[#allocation45_spill] sm:$0xff] %v5454_v23  ;;  %v5482_v23 = vor.u32 %v4385_v49, %v3896_v7 }
 0x16e   : > { %6277 = vst [vmem:[#allocation47_spill] sm:$0xff] %v5490_v41 }
 0x16f   : > { %v1578_v47 = vpop.f32.mrf.mxu2 }
 0x171   : > { %v1501_v25 = vpop.f32.mrf.mxu0 }
 0x172   : > { %v1747_v22 = vpop.f32.mrf.mxu3  ;;  %v1670_v31 = vpop.f32.mrf.mxu1 }
 0x173   : > { %v5486_v15 = vadd.f32 %v1747_v22, %v1578_v47  ;;  %v5492_v29 = vadd.f32 %v1670_v31, %v1501_v25 }
 0x174   : > { %1540 = vmatmul.bf16.gmra.mxu0 %v5482_v23  ;;  %1620 = vmatmul.bf16.gmra.mxu2 %v5484_v58 }
 0x175   : > { %1709 = vmatmul.bf16.gmra.mxu1 %v5488_v43 }
 0x177   : > { %1789 = vmatmul.bf16.gmra.mxu3 %v5490_v41  ;;  %v1581_v7 = vpop.f32.mrf.mxu2 }
 0x179   : > { %v1503_v9 = vpop.f32.mrf.mxu0 }
 0x17a   : > { %v1750_v49 = vpop.f32.mrf.mxu3  ;;  %v1672_v8 = vpop.f32.mrf.mxu1 }
 0x17b   : > { %v5498_v44 = vadd.f32 %v1750_v49, %v1581_v7  ;;  %v5500_v54 = vadd.f32 %v1672_v8, %v1503_v9 }
 0x17d   : > { %6278 = vst [vmem:[#allocation48_spill] sm:$0xff] %v5498_v44 }
 0x17f   : > { %v1583_v19 = vpop.f32.mrf.mxu2 }
 0x181   : > { %v1506_v25 = vpop.f32.mrf.mxu0 }
 0x182   : > { %v1752_v39 = vpop.f32.mrf.mxu3  ;;  %v1675_v47 = vpop.f32.mrf.mxu1 }
 0x183   : > { %v5502_v31 = vadd.f32 %v1752_v39, %v1583_v19  ;;  %v5504_v22 = vadd.f32 %v1675_v47, %v1506_v25 }
 0x184   : > { %1803 = vmatmul.bf16.vlgmr.msrb.gmra.mxu2 %v4832_v2  ;;  %2141 = vmatmul.bf16.vlgmr.msrb.gmra.mxu0 %v4832_v2 }
 0x185   : > { %6279 = vst [vmem:[#allocation49_spill] sm:$0xff] %v5502_v31  ;;  %2310 = vmatmul.bf16.vlgmr.msrb.gmra.mxu1 %v4836_v4 }
 0x187   : > { %1972 = vmatmul.bf16.vlgmr.msrb.gmra.mxu3 %v4836_v4  ;;  %v1586_v7 = vpop.f32.mrf.mxu2 }
 0x189   : > { %v1508_v8 = vpop.f32.mrf.mxu0 }
 0x18a   : > { %v1755_v49 = vpop.f32.mrf.mxu3  ;;  %v1677_v44 = vpop.f32.mrf.mxu1 }
 0x18b   : > { %v5510_v9 = vadd.f32 %v1755_v49, %v1586_v7  ;;  %v5512_v19 = vadd.f32 %v1677_v44, %v1508_v8 }
 0x18d   : > { %6280 = vst [vmem:[#allocation50_spill] sm:$0xff] %v5510_v9 }
 0x18f   : > { %v1588_v39 = vpop.f32.mrf.mxu2 }
 0x191   : > { %v1511_v47 = vpop.f32.mrf.mxu0 }
 0x192   : > { %v1757_v31 = vpop.f32.mrf.mxu3  ;;  %v1680_v41 = vpop.f32.mrf.mxu1 }
 0x193   : > { %v5514_v25 = vadd.f32 %v1757_v31, %v1588_v39  ;;  %v5516_v58 = vadd.f32 %v1680_v41, %v1511_v47 }
 0x194   : > { %1808 = vmatmul.bf16.gmra.mxu2 %v4876_v28  ;;  %2146 = vmatmul.bf16.gmra.mxu0 %v4876_v28 }
 0x195   : > { %6281 = vst [vmem:[#allocation51_spill] sm:$0xff] %v5514_v25  ;;  %2315 = vmatmul.bf16.gmra.mxu1 %v4880_v30 }
 0x197   : > { %1977 = vmatmul.bf16.gmra.mxu3 %v4880_v30  ;;  %v1591_v2 = vpop.f32.mrf.mxu2 }
 0x199   : > { %v1513_v7 = vpop.f32.mrf.mxu0 }
 0x19a   : > { %v1760_v4 = vpop.f32.mrf.mxu3  ;;  %v1682_v49 = vpop.f32.mrf.mxu1 }
 0x19b   : > { %v5522_v44 = vadd.f32 %v1760_v4, %v1591_v2  ;;  %v5524_v31 = vadd.f32 %v1682_v49, %v1513_v7 }
 0x19d   : > { %6282 = vst [vmem:[#allocation52_spill] sm:$0xff] %v5522_v44 }
 0x19f   : > { %v1593_v8 = vpop.f32.mrf.mxu2 }
 0x1a1   : > { %v1516_v47 = vpop.f32.mrf.mxu0 }
 0x1a2   : > { %v1762_v39 = vpop.f32.mrf.mxu3  ;;  %v1685_v25 = vpop.f32.mrf.mxu1 }
 0x1a3   : > { %v5526_v41 = vadd.f32 %v1762_v39, %v1593_v8  ;;  %v5528_v9 = vadd.f32 %v1685_v25, %v1516_v47 }
 0x1a4   : > { %1813 = vmatmul.bf16.gmra.mxu2 %v4912_v40  ;;  %2151 = vmatmul.bf16.gmra.mxu0 %v4912_v40 }
 0x1a5   : > { %6283 = vst [vmem:[#allocation53_spill] sm:$0xff] %v5526_v41  ;;  %2320 = vmatmul.bf16.gmra.mxu1 %v4916_v42 }
 0x1a7   : > { %1982 = vmatmul.bf16.gmra.mxu3 %v4916_v42  ;;  %v1596_v28 = vpop.f32.mrf.mxu2 }
 0x1a9   : > { %v1518_v4 = vpop.f32.mrf.mxu0 }
 0x1aa   : > { %v1765_v30 = vpop.f32.mrf.mxu3  ;;  %v1687_v7 = vpop.f32.mrf.mxu1 }
 0x1ab   : > { %v5534_v2 = vadd.f32 %v1765_v30, %v1596_v28  ;;  %v5536_v49 = vadd.f32 %v1687_v7, %v1518_v4 }
 0x1ad   : > { %6284 = vst [vmem:[#allocation54_spill] sm:$0xff] %v5534_v2 }
 0x1af   : > { %v1598_v8 = vpop.f32.mrf.mxu2 }
 0x1b1   : > { %v1521_v47 = vpop.f32.mrf.mxu0 }
 0x1b2   : > { %v1767_v39 = vpop.f32.mrf.mxu3  ;;  %v1690_v41 = vpop.f32.mrf.mxu1 }
 0x1b3   : > { %v5538_v25 = vadd.f32 %v1767_v39, %v1598_v8  ;;  %v5540_v44 = vadd.f32 %v1690_v41, %v1521_v47 }
 0x1b4   : > { %1818 = vmatmul.bf16.gmra.mxu2 %v4956_v0  ;;  %2156 = vmatmul.bf16.gmra.mxu0 %v4956_v0 }
 0x1b5   : > { %6285 = vst [vmem:[#allocation55_spill] sm:$0xff] %v5538_v25  ;;  %2325 = vmatmul.bf16.gmra.mxu1 %v4960_v6 }
 0x1b7   : > { %1987 = vmatmul.bf16.gmra.mxu3 %v4960_v6  ;;  %v1601_v40 = vpop.f32.mrf.mxu2 }
 0x1b9   : > { %v1523_v30 = vpop.f32.mrf.mxu0 }
 0x1ba   : > { %v1770_v42 = vpop.f32.mrf.mxu3  ;;  %v1692_v4 = vpop.f32.mrf.mxu1 }
 0x1bb   : > { %v5546_v28 = vadd.f32 %v1770_v42, %v1601_v40  ;;  %v5548_v7 = vadd.f32 %v1692_v4, %v1523_v30 }
 0x1bd   : > { %6286 = vst [vmem:[#allocation56_spill] sm:$0xff] %v5546_v28 }
 0x1bf   : > { %v1603_v8 = vpop.f32.mrf.mxu2 }
 0x1c1   : > { %v1526_v47 = vpop.f32.mrf.mxu0 }
 0x1c2   : > { %v1772_v39 = vpop.f32.mrf.mxu3  ;;  %v1695_v25 = vpop.f32.mrf.mxu1 }
 0x1c3   : > { %v5550_v41 = vadd.f32 %v1772_v39, %v1603_v8  ;;  %v5552_v2 = vadd.f32 %v1695_v25, %v1526_v47 }
 0x1c4   : > { %1823 = vmatmul.bf16.gmra.mxu2 %v4992_v16  ;;  %2161 = vmatmul.bf16.gmra.mxu0 %v4992_v16 }
 0x1c5   : > { %6287 = vst [vmem:[#allocation57_spill] sm:$0xff] %v5550_v41  ;;  %2330 = vmatmul.bf16.gmra.mxu1 %v4996_v18 }
 0x1c7   : > { %1992 = vmatmul.bf16.gmra.mxu3 %v4996_v18  ;;  %v1606_v0 = vpop.f32.mrf.mxu2 }
 0x1c9   : > { %v1528_v42 = vpop.f32.mrf.mxu0 }
 0x1ca   : > { %v1775_v6 = vpop.f32.mrf.mxu3  ;;  %v1697_v30 = vpop.f32.mrf.mxu1 }
 0x1cb   : > { %v5558_v40 = vadd.f32 %v1775_v6, %v1606_v0  ;;  %v5560_v4 = vadd.f32 %v1697_v30, %v1528_v42 }
 0x1cd   : > { %6288 = vst [vmem:[#allocation58_spill] sm:$0xff] %v5558_v40 }
 0x1cf   : > { %v1608_v8 = vpop.f32.mrf.mxu2 }
 0x1d1   : > { %v1531_v47 = vpop.f32.mrf.mxu0 }
 0x1d2   : > { %v1777_v39 = vpop.f32.mrf.mxu3  ;;  %v1700_v41 = vpop.f32.mrf.mxu1 }
 0x1d3   : > { %v5562_v25 = vadd.f32 %v1777_v39, %v1608_v8  ;;  %v5564_v28 = vadd.f32 %v1700_v41, %v1531_v47 }
 0x1d4   : > { %1828 = vmatmul.bf16.gmra.mxu2 %v5036_v48  ;;  %2166 = vmatmul.bf16.gmra.mxu0 %v5036_v48 }
 0x1d5   : > { %6289 = vst [vmem:[#allocation59_spill] sm:$0xff] %v5562_v25  ;;  %2335 = vmatmul.bf16.gmra.mxu1 %v5040_v50 }
 0x1d7   : > { %1997 = vmatmul.bf16.gmra.mxu3 %v5040_v50  ;;  %v1611_v16 = vpop.f32.mrf.mxu2 }
 0x1d9   : > { %v1533_v6 = vpop.f32.mrf.mxu0 }
 0x1da   : > { %v1780_v18 = vpop.f32.mrf.mxu3  ;;  %v1702_v42 = vpop.f32.mrf.mxu1 }
 0x1db   : > { %v5570_v0 = vadd.f32 %v1780_v18, %v1611_v16  ;;  %v5572_v30 = vadd.f32 %v1702_v42, %v1533_v6 }
 0x1dd   : > { %6290 = vst [vmem:[#allocation60_spill] sm:$0xff] %v5570_v0 }
 0x1df   : > { %v1613_v8 = vpop.f32.mrf.mxu2 }
 0x1e1   : > { %v1536_v47 = vpop.f32.mrf.mxu0 }
 0x1e2   : > { %v1782_v39 = vpop.f32.mrf.mxu3  ;;  %v1705_v25 = vpop.f32.mrf.mxu1 }
 0x1e3   : > { %v5574_v41 = vadd.f32 %v1782_v39, %v1613_v8  ;;  %v5576_v40 = vadd.f32 %v1705_v25, %v1536_v47 }
 0x1e4   : > { %1833 = vmatmul.bf16.gmra.mxu2 %v5072_v60  ;;  %2171 = vmatmul.bf16.gmra.mxu0 %v5072_v60 }
 0x1e5   : > { %6291 = vst [vmem:[#allocation61_spill] sm:$0xff] %v5574_v41  ;;  %2340 = vmatmul.bf16.gmra.mxu1 %v5076_v62 }
 0x1e7   : > { %2002 = vmatmul.bf16.gmra.mxu3 %v5076_v62  ;;  %v1616_v48 = vpop.f32.mrf.mxu2 }
 0x1e9   : > { %v1538_v18 = vpop.f32.mrf.mxu0 }
 0x1ea   : > { %v1785_v50 = vpop.f32.mrf.mxu3  ;;  %v1707_v6 = vpop.f32.mrf.mxu1 }
 0x1eb   : > { %v5582_v16 = vadd.f32 %v1785_v50, %v1616_v48  ;;  %v5584_v42 = vadd.f32 %v1707_v6, %v1538_v18 }
 0x1ed   : > { %6292 = vst [vmem:[#allocation62_spill] sm:$0xff] %v5582_v16 }
 0x1ef   : > { %v1618_v8 = vpop.f32.mrf.mxu2 }
 0x1f1   : > { %v1541_v47 = vpop.f32.mrf.mxu0 }
 0x1f2   : > { %v1787_v39 = vpop.f32.mrf.mxu3  ;;  %v1710_v41 = vpop.f32.mrf.mxu1 }
 0x1f3   : > { %v5586_v25 = vadd.f32 %v1787_v39, %v1618_v8  ;;  %v5588_v60 = vadd.f32 %v1710_v41, %v1541_v47 }
 0x1f4   : > { %1838 = vmatmul.bf16.gmra.mxu2 %v5116_v36  ;;  %2176 = vmatmul.bf16.gmra.mxu0 %v5116_v36 }
 0x1f5   : > { %6293 = vst [vmem:[#allocation63_spill] sm:$0xff] %v5586_v25  ;;  %2345 = vmatmul.bf16.gmra.mxu1 %v5120_v38 }
 0x1f7   : > { %2007 = vmatmul.bf16.gmra.mxu3 %v5120_v38  ;;  %v1621_v62 = vpop.f32.mrf.mxu2 }
 0x1f9   : > { %v1543_v18 = vpop.f32.mrf.mxu0 }
 0x1fa   : > { %v1790_v48 = vpop.f32.mrf.mxu3  ;;  %v1712_v6 = vpop.f32.mrf.mxu1 }
 0x1fb   : > { %v5594_v50 = vadd.f32 %v1790_v48, %v1621_v62  ;;  %v5596_v8 = vadd.f32 %v1712_v6, %v1543_v18 }
 0x1fd   : > { %6294 = vst [vmem:[#allocation64_spill] sm:$0xff] %v5594_v50 }
 0x1ff   : > { %v1623_v39 = vpop.f32.mrf.mxu2 }
 0x201   : > { %v2142_v47 = vpop.f32.mrf.mxu0 }
 0x202   : > { %v1792_v25 = vpop.f32.mrf.mxu3  ;;  %v2311_v36 = vpop.f32.mrf.mxu1 }
 0x203   : > { %v5600_v41 = vadd.f32 %v1792_v25, %v1623_v39  ;;  %v2312_v16 = vadd.f32 %v2311_v36, %v2142_v47 }
 0x204   : > { %1843 = vmatmul.bf16.gmra.mxu2 %v5152_v56  ;;  %2181 = vmatmul.bf16.gmra.mxu0 %v5152_v56 }
 0x205   : > { %6295 = vst [vmem:[#allocation65_spill] sm:$0xff] %v5600_v41  ;;  %v3051_v38 = vpack.c.bf16 %v2312_v16, %v2312_v16  ;;  %2350 = vmatmul.bf16.gmra.mxu1 %v5156_v59 }
 0x207   : > { %2012 = vmatmul.bf16.gmra.mxu3 %v5156_v59  ;;  %3179 = vst [vmem:[%s5606_s5 + $0x8] sm:$0xf] %v3051_v38  ;;  %v1804_v25 = vpop.f32.mrf.mxu2 }
 0x209   : > { %v2144_v18 = vpop.f32.mrf.mxu0 }
 0x20a   : > { %v1973_v62 = vpop.f32.mrf.mxu3  ;;  %v2313_v6 = vpop.f32.mrf.mxu1 }
 0x20b   : > { %v1974_v48 = vadd.f32 %v1973_v62, %v1804_v25  ;;  %v2314_v56 = vadd.f32 %v2313_v6, %v2144_v18 }
 0x20d   : > { %v3050_v39 = vpack.c.bf16 %v1974_v48, %v5160_v10  ;;  %v3053_v16 = vpack.c.bf16 %v2314_v56, %v2314_v56 }
 0x20f   : > { %3178 = vst [vmem:[%s5606_s5] sm:$0xff] %v3050_v39  ;;  %v1806_v59 = vpop.f32.mrf.mxu2 }
 0x210   : > { %3181 = vst [vmem:[%s5606_s5 + $0x14] sm:$0xf] %v3053_v16 }
 0x211   : > { %v2147_v41 = vpop.f32.mrf.mxu0 }
 0x212   : > { %v1975_v47 = vpop.f32.mrf.mxu3  ;;  %v2316_v50 = vpop.f32.mrf.mxu1 }
 0x213   : > { %v1976_v36 = vadd.f32 %v1975_v47, %v1806_v59  ;;  %v2317_v0 = vadd.f32 %v2316_v50, %v2147_v41 }
 0x214   : > { %1848 = vmatmul.bf16.gmra.mxu2 %v5202_v12  ;;  %2186 = vmatmul.bf16.gmra.mxu0 %v5202_v12 }
 0x215   : > { %v3052_v38 = vpack.c.bf16 %v1976_v36, %v5172_v26  ;;  %v3055_v10 = vpack.c.bf16 %v2317_v0, %v2317_v0  ;;  %2355 = vmatmul.bf16.gmra.mxu1 %v5208_v20 }
 0x217   : > { %3180 = vst [vmem:[%s5606_s5 + $0xc] sm:$0xff] %v3052_v38  ;;  %2017 = vmatmul.bf16.gmra.mxu3 %v5208_v20  ;;  %v1809_v25 = vpop.f32.mrf.mxu2 }
 0x218   : > { %3183 = vst [vmem:[%s5606_s5 + $0x20] sm:$0xf] %v3055_v10 }
 0x219   : > { %v2149_v18 = vpop.f32.mrf.mxu0 }
 0x21a   : > { %v1978_v62 = vpop.f32.mrf.mxu3  ;;  %v2318_v26 = vpop.f32.mrf.mxu1 }
 0x21b   : > { %v1979_v48 = vadd.f32 %v1978_v62, %v1809_v25  ;;  %v2319_v41 = vadd.f32 %v2318_v26, %v2149_v18 }
 0x21d   : > { %v3054_v50 = vpack.c.bf16 %v1979_v48, %v5212_v24  ;;  %v3057_v6 = vpack.c.bf16 %v2319_v41, %v2319_v41 }
 0x21f   : > { %3182 = vst [vmem:[%s5606_s5 + $0x18] sm:$0xff] %v3054_v50  ;;  %v1811_v12 = vpop.f32.mrf.mxu2 }
 0x220   : > { %3185 = vst [vmem:[%s5606_s5 + $0x2c] sm:$0xf] %v3057_v6 }
 0x221   : > { %v2152_v56 = vpop.f32.mrf.mxu0 }
 0x222   : > { %v1980_v0 = vpop.f32.mrf.mxu3  ;;  %v2321_v16 = vpop.f32.mrf.mxu1 }
 0x223   : > { %v1981_v39 = vadd.f32 %v1980_v0, %v1811_v12  ;;  %v2322_v59 = vadd.f32 %v2321_v16, %v2152_v56 }
 0x224   : > { %1853 = vmatmul.bf16.gmra.mxu2 %v5246_v11  ;;  %2191 = vmatmul.bf16.gmra.mxu0 %v5246_v11 }
 0x225   : > { %v3056_v20 = vpack.c.bf16 %v1981_v39, %v5220_v35  ;;  %v3059_v24 = vpack.c.bf16 %v2322_v59, %v2322_v59  ;;  %2360 = vmatmul.bf16.gmra.mxu1 %v5252_v27 }
 0x227   : > { %3184 = vst [vmem:[%s5606_s5 + $0x24] sm:$0xff] %v3056_v20  ;;  %2022 = vmatmul.bf16.gmra.mxu3 %v5252_v27  ;;  %v1814_v47 = vpop.f32.mrf.mxu2 }
 0x228   : > { %3187 = vst [vmem:[%s5606_s5 + $0x38] sm:$0xf] %v3059_v24 }
 0x229   : > { %v2154_v10 = vpop.f32.mrf.mxu0 }
 0x22a   : > { %v1983_v36 = vpop.f32.mrf.mxu3  ;;  %v2323_v35 = vpop.f32.mrf.mxu1 }
 0x22b   : > { %v1984_v38 = vadd.f32 %v1983_v36, %v1814_v47  ;;  %v2324_v62 = vadd.f32 %v2323_v35, %v2154_v10 }
 0x22d   : > { %v3058_v25 = vpack.c.bf16 %v1984_v38, %v5256_v32  ;;  %v3061_v48 = vpack.c.bf16 %v2324_v62, %v2324_v62 }
 0x22f   : > { %3186 = vst [vmem:[%s5606_s5 + $0x30] sm:$0xff] %v3058_v25  ;;  %v1816_v11 = vpop.f32.mrf.mxu2 }
 0x230   : > { %3189 = vst [vmem:[%s5606_s5 + $0x44] sm:$0xf] %v3061_v48 }
 0x231   : > { %v2157_v50 = vpop.f32.mrf.mxu0 }
 0x232   : > { %v1985_v18 = vpop.f32.mrf.mxu3  ;;  %v2326_v41 = vpop.f32.mrf.mxu1 }
 0x233   : > { %v1986_v26 = vadd.f32 %v1985_v18, %v1816_v11  ;;  %v2327_v6 = vadd.f32 %v2326_v41, %v2157_v50 }
 0x234   : > { %1858 = vmatmul.bf16.gmra.mxu2 %v5298_v21  ;;  %2196 = vmatmul.bf16.gmra.mxu0 %v5298_v21 }
 0x235   : > { %v3060_v27 = vpack.c.bf16 %v1986_v26, %v5268_v34  ;;  %v3063_v32 = vpack.c.bf16 %v2327_v6, %v2327_v6  ;;  %2365 = vmatmul.bf16.gmra.mxu1 %v5304_v14 }
 0x237   : > { %3188 = vst [vmem:[%s5606_s5 + $0x3c] sm:$0xff] %v3060_v27  ;;  %2027 = vmatmul.bf16.gmra.mxu3 %v5304_v14  ;;  %v1819_v12 = vpop.f32.mrf.mxu2 }
 0x238   : > { %3191 = vst [vmem:[%s5606_s5 + $0x50] sm:$0xf] %v3063_v32 }
 0x239   : > { %v2159_v56 = vpop.f32.mrf.mxu0 }
 0x23a   : > { %v1988_v0 = vpop.f32.mrf.mxu3  ;;  %v2328_v34 = vpop.f32.mrf.mxu1 }
 0x23b   : > { %v1989_v39 = vadd.f32 %v1988_v0, %v1819_v12  ;;  %v2329_v20 = vadd.f32 %v2328_v34, %v2159_v56 }
 0x23d   : > { %v3062_v16 = vpack.c.bf16 %v1989_v39, %v5308_v57  ;;  %v3065_v59 = vpack.c.bf16 %v2329_v20, %v2329_v20 }
 0x23f   : > { %3190 = vst [vmem:[%s5606_s5 + $0x48] sm:$0xff] %v3062_v16  ;;  %v1821_v21 = vpop.f32.mrf.mxu2 }
 0x240   : > { %3193 = vst [vmem:[%s5606_s5 + $0x5c] sm:$0xf] %v3065_v59 }
 0x241   : > { %v2162_v36 = vpop.f32.mrf.mxu0 }
 0x242   : > { %v1990_v24 = vpop.f32.mrf.mxu3  ;;  %v2331_v38 = vpop.f32.mrf.mxu1 }
 0x243   : > { %v1991_v47 = vadd.f32 %v1990_v24, %v1821_v21  ;;  %v2332_v10 = vadd.f32 %v2331_v38, %v2162_v36 }
 0x244   : > { %1863 = vmatmul.bf16.gmra.mxu2 %v5342_v46  ;;  %2201 = vmatmul.bf16.gmra.mxu0 %v5342_v46 }
 0x245   : > { %v3064_v14 = vpack.c.bf16 %v1991_v47, %v5316_v53  ;;  %v3067_v57 = vpack.c.bf16 %v2332_v10, %v2332_v10  ;;  %2370 = vmatmul.bf16.gmra.mxu1 %v5348_v13 }
 0x247   : > { %3192 = vst [vmem:[%s5606_s5 + $0x54] sm:$0xff] %v3064_v14  ;;  %2032 = vmatmul.bf16.gmra.mxu3 %v5348_v13  ;;  %v1824_v35 = vpop.f32.mrf.mxu2 }
 0x248   : > { %3195 = vst [vmem:[%s5606_s5 + $0x68] sm:$0xf] %v3067_v57 }
 0x249   : > { %v2164_v48 = vpop.f32.mrf.mxu0 }
 0x24a   : > { %v1993_v25 = vpop.f32.mrf.mxu3  ;;  %v2333_v53 = vpop.f32.mrf.mxu1 }
 0x24b   : > { %v1994_v62 = vadd.f32 %v1993_v25, %v1824_v35  ;;  %v2334_v18 = vadd.f32 %v2333_v53, %v2164_v48 }
 0x24d   : > { %v3066_v11 = vpack.c.bf16 %v1994_v62, %v5352_v37  ;;  %v3069_v26 = vpack.c.bf16 %v2334_v18, %v2334_v18 }
 0x24f   : > { %3194 = vst [vmem:[%s5606_s5 + $0x60] sm:$0xff] %v3066_v11  ;;  %v1826_v46 = vpop.f32.mrf.mxu2 }
 0x250   : > { %3197 = vst [vmem:[%s5606_s5 + $0x74] sm:$0xf] %v3069_v26 }
 0x251   : > { %v2167_v27 = vpop.f32.mrf.mxu0 }
 0x252   : > { %v1995_v50 = vpop.f32.mrf.mxu3  ;;  %v2336_v6 = vpop.f32.mrf.mxu1 }
 0x253   : > { %v1996_v41 = vadd.f32 %v1995_v50, %v1826_v46  ;;  %v2337_v32 = vadd.f32 %v2336_v6, %v2167_v27 }
 0x254   : > { %1868 = vmatmul.bf16.gmra.mxu2 %v5394_v63  ;;  %2206 = vmatmul.bf16.gmra.mxu0 %v5394_v63 }
 0x255   : > { %v3068_v13 = vpack.c.bf16 %v1996_v41, %v5364_v45  ;;  %v3071_v37 = vpack.c.bf16 %v2337_v32, %v2337_v32  ;;  %2375 = vmatmul.bf16.gmra.mxu1 %v5400_v51 }
 0x257   : > { %3196 = vst [vmem:[%s5606_s5 + $0x6c] sm:$0xff] %v3068_v13  ;;  %2037 = vmatmul.bf16.gmra.mxu3 %v5400_v51  ;;  %v1829_v12 = vpop.f32.mrf.mxu2 }
 0x258   : > { %3199 = vst [vmem:[%s5606_s5 + $0x80] sm:$0xf] %v3071_v37 }
 0x259   : > { %v2169_v56 = vpop.f32.mrf.mxu0 }
 0x25a   : > { %v1998_v0 = vpop.f32.mrf.mxu3  ;;  %v2338_v45 = vpop.f32.mrf.mxu1 }
 0x25b   : > { %v1999_v39 = vadd.f32 %v1998_v0, %v1829_v12  ;;  %v2339_v16 = vadd.f32 %v2338_v45, %v2169_v56 }
 0x25d   : > { %v3070_v34 = vpack.c.bf16 %v1999_v39, %v5404_v17  ;;  %v3073_v20 = vpack.c.bf16 %v2339_v16, %v2339_v16 }
 0x25f   : > { %3198 = vst [vmem:[%s5606_s5 + $0x78] sm:$0xff] %v3070_v34  ;;  %v1831_v63 = vpop.f32.mrf.mxu2 }
 0x260   : > { %3201 = vst [vmem:[%s5606_s5 + $0x8c] sm:$0xf] %v3073_v20 }
 0x261   : > { %v2172_v24 = vpop.f32.mrf.mxu0 }
 0x262   : > { %v2000_v59 = vpop.f32.mrf.mxu3  ;;  %v2341_v47 = vpop.f32.mrf.mxu1 }
 0x263   : > { %v2001_v21 = vadd.f32 %v2000_v59, %v1831_v63  ;;  %v2342_v36 = vadd.f32 %v2341_v47, %v2172_v24 }
 0x264   : > { %1873 = vmatmul.bf16.gmra.mxu2 %v5438_v55  ;;  %2211 = vmatmul.bf16.gmra.mxu0 %v5438_v55 }
 0x265   : > { %v3072_v51 = vpack.c.bf16 %v2001_v21, %v5412_v33  ;;  %v3075_v17 = vpack.c.bf16 %v2342_v36, %v2342_v36  ;;  %2380 = vmatmul.bf16.gmra.mxu1 %v5444_v61 }
 0x267   : > { %3200 = vst [vmem:[%s5606_s5 + $0x84] sm:$0xff] %v3072_v51  ;;  %2042 = vmatmul.bf16.gmra.mxu3 %v5444_v61  ;;  %v1834_v38 = vpop.f32.mrf.mxu2 }
 0x268   : > { %3203 = vst [vmem:[%s5606_s5 + $0x98] sm:$0xf] %v3075_v17 }
 0x269   : > { %v2174_v57 = vpop.f32.mrf.mxu0 }
 0x26a   : > { %v2003_v14 = vpop.f32.mrf.mxu3  ;;  %v2343_v33 = vpop.f32.mrf.mxu1 }
 0x26b   : > { %v2004_v10 = vadd.f32 %v2003_v14, %v1834_v38  ;;  %v2344_v25 = vadd.f32 %v2343_v33, %v2174_v57  ;;  %v6296_v38 = vld [vmem:[#allocation5_spill] sm:$0xff]  ;;  %v6297_v14 = vld [vmem:[#allocation6_spill] sm:$0xff] }
 0x26d   : > { %v3074_v35 = vpack.c.bf16 %v2004_v10, %v5448_v1  ;;  %v3077_v62 = vpack.c.bf16 %v2344_v25, %v2344_v25 }
 0x26f   : > { %3202 = vst [vmem:[%s5606_s5 + $0x90] sm:$0xff] %v3074_v35  ;;  %v1836_v55 = vpop.f32.mrf.mxu2 }
 0x270   : > { %3205 = vst [vmem:[%s5606_s5 + $0xa4] sm:$0xf] %v3077_v62 }
 0x271   : > { %v2177_v11 = vpop.f32.mrf.mxu0 }
 0x272   : > { %v2005_v48 = vpop.f32.mrf.mxu3  ;;  %v2346_v18 = vpop.f32.mrf.mxu1 }
 0x273   : > { %v2006_v53 = vadd.f32 %v2005_v48, %v1836_v55  ;;  %v2347_v26 = vadd.f32 %v2346_v18, %v2177_v11 }
 0x274   : > { %1878 = vmatmul.bf16.gmra.mxu2 %v5482_v23  ;;  %2216 = vmatmul.bf16.gmra.mxu0 %v5482_v23 }
 0x275   : > { %v3076_v61 = vpack.c.bf16 %v2006_v53, %v5456_v52  ;;  %v3079_v1 = vpack.c.bf16 %v2347_v26, %v2347_v26  ;;  %2385 = vmatmul.bf16.gmra.mxu1 %v5488_v43 }
 0x277   : > { %3204 = vst [vmem:[%s5606_s5 + $0x9c] sm:$0xff] %v3076_v61  ;;  %2047 = vmatmul.bf16.gmra.mxu3 %v5488_v43  ;;  %v1839_v46 = vpop.f32.mrf.mxu2 }
 0x278   : > { %3207 = vst [vmem:[%s5606_s5 + $0xb0] sm:$0xf] %v3079_v1 }
 0x279   : > { %v2179_v27 = vpop.f32.mrf.mxu0 }
 0x27a   : > { %v2008_v50 = vpop.f32.mrf.mxu3  ;;  %v2348_v52 = vpop.f32.mrf.mxu1 }
 0x27b   : > { %v2009_v41 = vadd.f32 %v2008_v50, %v1839_v46  ;;  %v2349_v13 = vadd.f32 %v2348_v52, %v2179_v27  ;;  %v6298_v46 = vld [vmem:[#allocation7_spill] sm:$0xff]  ;;  %v6299_v50 = vld [vmem:[#allocation8_spill] sm:$0xff] }
 0x27d   : > { %v3078_v6 = vpack.c.bf16 %v2009_v41, %v5492_v29  ;;  %v3081_v32 = vpack.c.bf16 %v2349_v13, %v2349_v13 }
 0x27f   : > { %3206 = vst [vmem:[%s5606_s5 + $0xa8] sm:$0xff] %v3078_v6  ;;  %v1841_v23 = vpop.f32.mrf.mxu2 }
 0x280   : > { %3209 = vst [vmem:[%s5606_s5 + $0xbc] sm:$0xf] %v3081_v32 }
 0x281   : > { %v2182_v0 = vpop.f32.mrf.mxu0 }
 0x282   : > { %v2010_v37 = vpop.f32.mrf.mxu3  ;;  %v2351_v39 = vpop.f32.mrf.mxu1 }
 0x283   : > { %v2011_v12 = vadd.f32 %v2010_v37, %v1841_v23  ;;  %v2352_v56 = vadd.f32 %v2351_v39, %v2182_v0 }
 0x284   : > { %1883 = vmatmul.bf16.gmra.mxu2 %v4834_v3  ;;  %2221 = vmatmul.bf16.gmra.mxu0 %v4834_v3 }
 0x285   : > { %v3080_v43 = vpack.c.bf16 %v2011_v12, %v5500_v54  ;;  %v3083_v29 = vpack.c.bf16 %v2352_v56, %v2352_v56  ;;  %2390 = vmatmul.bf16.gmra.mxu1 %v4838_v5 }
 0x287   : > { %3208 = vst [vmem:[%s5606_s5 + $0xb4] sm:$0xff] %v3080_v43  ;;  %2052 = vmatmul.bf16.gmra.mxu3 %v4838_v5  ;;  %v1844_v45 = vpop.f32.mrf.mxu2 }
 0x288   : > { %3211 = vst [vmem:[%s5606_s5 + $0xc8] sm:$0xf] %v3083_v29 }
 0x289   : > { %v2184_v20 = vpop.f32.mrf.mxu0 }
 0x28a   : > { %v2013_v34 = vpop.f32.mrf.mxu3  ;;  %v2353_v54 = vpop.f32.mrf.mxu1 }
 0x28b   : > { %v2014_v16 = vadd.f32 %v2013_v34, %v1844_v45  ;;  %v2354_v59 = vadd.f32 %v2353_v54, %v2184_v20  ;;  %v6300_v45 = vld [vmem:[#allocation9_spill] sm:$0xff]  ;;  %v6301_v34 = vld [vmem:[#allocation10_spill] sm:$0xff] }
 0x28d   : > { %v3082_v63 = vpack.c.bf16 %v2014_v16, %v5504_v22  ;;  %v3085_v21 = vpack.c.bf16 %v2354_v59, %v2354_v59 }
 0x28f   : > { %3210 = vst [vmem:[%s5606_s5 + $0xc0] sm:$0xff] %v3082_v63  ;;  %v1846_v3 = vpop.f32.mrf.mxu2 }
 0x290   : > { %3213 = vst [vmem:[%s5606_s5 + $0xd4] sm:$0xf] %v3085_v21 }
 0x291   : > { %v2187_v51 = vpop.f32.mrf.mxu0 }
 0x292   : > { %v2015_v24 = vpop.f32.mrf.mxu3  ;;  %v2356_v36 = vpop.f32.mrf.mxu1 }
 0x293   : > { %v2016_v47 = vadd.f32 %v2015_v24, %v1846_v3  ;;  %v2357_v17 = vadd.f32 %v2356_v36, %v2187_v51 }
 0x294   : > { %1888 = vmatmul.bf16.gmra.mxu2 %v6296_v38  ;;  %2226 = vmatmul.bf16.gmra.mxu0 %v6296_v38 }
 0x295   : > { %v3084_v5 = vpack.c.bf16 %v2016_v47, %v5512_v19  ;;  %v3087_v22 = vpack.c.bf16 %v2357_v17, %v2357_v17  ;;  %2395 = vmatmul.bf16.gmra.mxu1 %v6297_v14 }
 0x297   : > { %3212 = vst [vmem:[%s5606_s5 + $0xcc] sm:$0xff] %v3084_v5  ;;  %2057 = vmatmul.bf16.gmra.mxu3 %v6297_v14  ;;  %v1849_v10 = vpop.f32.mrf.mxu2  ;;  %v6303_v14 = vld [vmem:[#allocation12_spill] sm:$0xff] }
 0x298   : > { %3215 = vst [vmem:[%s5606_s5 + $0xe0] sm:$0xf] %v3087_v22  ;;  %v6302_v22 = vld [vmem:[#allocation11_spill] sm:$0xff] }
 0x299   : > { %v2189_v35 = vpop.f32.mrf.mxu0 }
 0x29a   : > { %v2018_v57 = vpop.f32.mrf.mxu3  ;;  %v2358_v19 = vpop.f32.mrf.mxu1 }
 0x29b   : > { %v2019_v33 = vadd.f32 %v2018_v57, %v1849_v10  ;;  %v2359_v62 = vadd.f32 %v2358_v19, %v2189_v35 }
 0x29d   : > { %v3086_v25 = vpack.c.bf16 %v2019_v33, %v5516_v58  ;;  %v3089_v55 = vpack.c.bf16 %v2359_v62, %v2359_v62 }
 0x29f   : > { %3214 = vst [vmem:[%s5606_s5 + $0xd8] sm:$0xff] %v3086_v25  ;;  %v1851_v48 = vpop.f32.mrf.mxu2 }
 0x2a0   : > { %3217 = vst [vmem:[%s5606_s5 + $0xec] sm:$0xf] %v3089_v55 }
 0x2a1   : > { %v2192_v18 = vpop.f32.mrf.mxu0 }
 0x2a2   : > { %v2020_v53 = vpop.f32.mrf.mxu3  ;;  %v2361_v61 = vpop.f32.mrf.mxu1 }
 0x2a3   : > { %v2021_v11 = vadd.f32 %v2020_v53, %v1851_v48  ;;  %v2362_v1 = vadd.f32 %v2361_v61, %v2192_v18 }
 0x2a4   : > { %1893 = vmatmul.bf16.gmra.mxu2 %v6298_v46  ;;  %2231 = vmatmul.bf16.gmra.mxu0 %v6298_v46  ;;  %v6305_v46 = vld [vmem:[#allocation14_spill] sm:$0xff] }
 0x2a5   : > { %v3088_v26 = vpack.c.bf16 %v2021_v11, %v5524_v31  ;;  %v3091_v58 = vpack.c.bf16 %v2362_v1, %v2362_v1  ;;  %2400 = vmatmul.bf16.gmra.mxu1 %v6299_v50  ;;  %v6304_v1 = vld [vmem:[#allocation13_spill] sm:$0xff] }
 0x2a7   : > { %3216 = vst [vmem:[%s5606_s5 + $0xe4] sm:$0xff] %v3088_v26  ;;  %2062 = vmatmul.bf16.gmra.mxu3 %v6299_v50  ;;  %v1854_v41 = vpop.f32.mrf.mxu2 }
 0x2a8   : > { %3219 = vst [vmem:[%s5606_s5 + $0xf8] sm:$0xf] %v3091_v58 }
 0x2a9   : > { %v2194_v6 = vpop.f32.mrf.mxu0 }
 0x2aa   : > { %v2023_v27 = vpop.f32.mrf.mxu3  ;;  %v2363_v31 = vpop.f32.mrf.mxu1 }
 0x2ab   : > { %v2024_v52 = vadd.f32 %v2023_v27, %v1854_v41  ;;  %v2364_v32 = vadd.f32 %v2363_v31, %v2194_v6 }
 0x2ad   : > { %v3090_v13 = vpack.c.bf16 %v2024_v52, %v5528_v9  ;;  %v3093_v23 = vpack.c.bf16 %v2364_v32, %v2364_v32 }
 0x2af   : > { %3218 = vst [vmem:[%s5606_s5 + $0xf0] sm:$0xff] %v3090_v13  ;;  %v1856_v37 = vpop.f32.mrf.mxu2 }
 0x2b0   : > { %3221 = vst [vmem:[%s5606_s5 + $0x104] sm:$0xf] %v3093_v23 }
 0x2b1   : > { %v2197_v39 = vpop.f32.mrf.mxu0 }
 0x2b2   : > { %v2025_v12 = vpop.f32.mrf.mxu3  ;;  %v2366_v43 = vpop.f32.mrf.mxu1 }
 0x2b3   : > { %v2026_v0 = vadd.f32 %v2025_v12, %v1856_v37  ;;  %v2367_v29 = vadd.f32 %v2366_v43, %v2197_v39  ;;  %v6306_v43 = vld [vmem:[#allocation15_spill] sm:$0xff] }
 0x2b4   : > { %1898 = vmatmul.bf16.gmra.mxu2 %v6300_v45  ;;  %2236 = vmatmul.bf16.gmra.mxu0 %v6300_v45 }
 0x2b5   : > { %v3092_v56 = vpack.c.bf16 %v2026_v0, %v5536_v49  ;;  %v3095_v9 = vpack.c.bf16 %v2367_v29, %v2367_v29  ;;  %2405 = vmatmul.bf16.gmra.mxu1 %v6301_v34 }
 0x2b7   : > { %3220 = vst [vmem:[%s5606_s5 + $0xfc] sm:$0xff] %v3092_v56  ;;  %2067 = vmatmul.bf16.gmra.mxu3 %v6301_v34  ;;  %v1859_v16 = vpop.f32.mrf.mxu2  ;;  %v6307_v56 = vld [vmem:[#allocation16_spill] sm:$0xff] }
 0x2b8   : > { %3223 = vst [vmem:[%s5606_s5 + $0x110] sm:$0xf] %v3095_v9 }
 0x2b9   : > { %v2199_v63 = vpop.f32.mrf.mxu0 }
 0x2ba   : > { %v2028_v20 = vpop.f32.mrf.mxu3  ;;  %v2368_v49 = vpop.f32.mrf.mxu1 }
 0x2bb   : > { %v2029_v54 = vadd.f32 %v2028_v20, %v1859_v16  ;;  %v2369_v21 = vadd.f32 %v2368_v49, %v2199_v63 }
 0x2bd   : > { %v3094_v59 = vpack.c.bf16 %v2029_v54, %v5540_v44  ;;  %v3097_v3 = vpack.c.bf16 %v2369_v21, %v2369_v21 }
 0x2bf   : > { %3222 = vst [vmem:[%s5606_s5 + $0x108] sm:$0xff] %v3094_v59  ;;  %v1861_v24 = vpop.f32.mrf.mxu2 }
 0x2c0   : > { %3225 = vst [vmem:[%s5606_s5 + $0x11c] sm:$0xf] %v3097_v3 }
 0x2c1   : > { %v2202_v36 = vpop.f32.mrf.mxu0 }
 0x2c2   : > { %v2030_v47 = vpop.f32.mrf.mxu3  ;;  %v2371_v5 = vpop.f32.mrf.mxu1 }
 0x2c3   : > { %v2031_v51 = vadd.f32 %v2030_v47, %v1861_v24  ;;  %v2372_v38 = vadd.f32 %v2371_v5, %v2202_v36  ;;  %v6309_v36 = vld [vmem:[#allocation18_spill] sm:$0xff] }
 0x2c4   : > { %1903 = vmatmul.bf16.gmra.mxu2 %v6302_v22  ;;  %2241 = vmatmul.bf16.gmra.mxu0 %v6302_v22 }
 0x2c5   : > { %v3096_v17 = vpack.c.bf16 %v2031_v51, %v5548_v7  ;;  %v3099_v44 = vpack.c.bf16 %v2372_v38, %v2372_v38  ;;  %2410 = vmatmul.bf16.gmra.mxu1 %v6303_v14  ;;  %v6308_v51 = vld [vmem:[#allocation17_spill] sm:$0xff] }
 0x2c7   : > { %3224 = vst [vmem:[%s5606_s5 + $0x114] sm:$0xff] %v3096_v17  ;;  %2072 = vmatmul.bf16.gmra.mxu3 %v6303_v14  ;;  %v1864_v10 = vpop.f32.mrf.mxu2 }
 0x2c8   : > { %3227 = vst [vmem:[%s5606_s5 + $0x128] sm:$0xf] %v3099_v44 }
 0x2c9   : > { %v2204_v35 = vpop.f32.mrf.mxu0 }
 0x2ca   : > { %v2033_v57 = vpop.f32.mrf.mxu3  ;;  %v2373_v7 = vpop.f32.mrf.mxu1 }
 0x2cb   : > { %v2034_v33 = vadd.f32 %v2033_v57, %v1864_v10  ;;  %v2374_v25 = vadd.f32 %v2373_v7, %v2204_v35 }
 0x2cd   : > { %v3098_v19 = vpack.c.bf16 %v2034_v33, %v5552_v2  ;;  %v3101_v62 = vpack.c.bf16 %v2374_v25, %v2374_v25 }
 0x2cf   : > { %3226 = vst [vmem:[%s5606_s5 + $0x120] sm:$0xff] %v3098_v19  ;;  %v1866_v55 = vpop.f32.mrf.mxu2 }
 0x2d0   : > { %3229 = vst [vmem:[%s5606_s5 + $0x134] sm:$0xf] %v3101_v62 }
 0x2d1   : > { %v2207_v11 = vpop.f32.mrf.mxu0 }
 0x2d2   : > { %v2035_v48 = vpop.f32.mrf.mxu3  ;;  %v2376_v18 = vpop.f32.mrf.mxu1 }
 0x2d3   : > { %v2036_v53 = vadd.f32 %v2035_v48, %v1866_v55  ;;  %v2377_v26 = vadd.f32 %v2376_v18, %v2207_v11  ;;  %v6310_v55 = vld [vmem:[#allocation19_spill] sm:$0xff]  ;;  %v6311_v48 = vld [vmem:[#allocation20_spill] sm:$0xff] }
 0x2d4   : > { %1908 = vmatmul.bf16.gmra.mxu2 %v6304_v1  ;;  %2246 = vmatmul.bf16.gmra.mxu0 %v6304_v1 }
 0x2d5   : > { %v3100_v61 = vpack.c.bf16 %v2036_v53, %v5560_v4  ;;  %v3103_v2 = vpack.c.bf16 %v2377_v26, %v2377_v26  ;;  %2415 = vmatmul.bf16.gmra.mxu1 %v6305_v46  ;;  %v6312_v26 = vld [vmem:[#allocation21_spill] sm:$0xff] }
 0x2d7   : > { %3228 = vst [vmem:[%s5606_s5 + $0x12c] sm:$0xff] %v3100_v61  ;;  %2077 = vmatmul.bf16.gmra.mxu3 %v6305_v46  ;;  %v1869_v58 = vpop.f32.mrf.mxu2 }
 0x2d8   : > { %3231 = vst [vmem:[%s5606_s5 + $0x140] sm:$0xf] %v3103_v2 }
 0x2d9   : > { %v2209_v27 = vpop.f32.mrf.mxu0 }
 0x2da   : > { %v2038_v50 = vpop.f32.mrf.mxu3  ;;  %v2378_v4 = vpop.f32.mrf.mxu1 }
 0x2db   : > { %v2039_v41 = vadd.f32 %v2038_v50, %v1869_v58  ;;  %v2379_v6 = vadd.f32 %v2378_v4, %v2209_v27 }
 0x2dd   : > { %v3102_v52 = vpack.c.bf16 %v2039_v41, %v5564_v28  ;;  %v3105_v31 = vpack.c.bf16 %v2379_v6, %v2379_v6 }
 0x2df   : > { %3230 = vst [vmem:[%s5606_s5 + $0x138] sm:$0xff] %v3102_v52  ;;  %v1871_v13 = vpop.f32.mrf.mxu2  ;;  %v6313_v52 = vld [vmem:[#allocation23_spill] sm:$0xff] }
 0x2e0   : > { %3233 = vst [vmem:[%s5606_s5 + $0x14c] sm:$0xf] %v3105_v31 }
 0x2e1   : > { %v2212_v37 = vpop.f32.mrf.mxu0 }
 0x2e2   : > { %v2040_v32 = vpop.f32.mrf.mxu3  ;;  %v2381_v12 = vpop.f32.mrf.mxu1 }
 0x2e3   : > { %v2041_v23 = vadd.f32 %v2040_v32, %v1871_v13  ;;  %v2382_v39 = vadd.f32 %v2381_v12, %v2212_v37  ;;  %v6314_v13 = vld [vmem:[#allocation22_spill] sm:$0xff] }
 0x2e4   : > { %1913 = vmatmul.bf16.gmra.mxu2 %v6306_v43  ;;  %2251 = vmatmul.bf16.gmra.mxu0 %v6306_v43 }
 0x2e5   : > { %v3104_v0 = vpack.c.bf16 %v2041_v23, %v5572_v30  ;;  %v3107_v28 = vpack.c.bf16 %v2382_v39, %v2382_v39  ;;  %2420 = vmatmul.bf16.gmra.mxu1 %v6307_v56  ;;  %v6315_v23 = vld [vmem:[#allocation24_spill] sm:$0xff] }
 0x2e7   : > { %3232 = vst [vmem:[%s5606_s5 + $0x144] sm:$0xff] %v3104_v0  ;;  %2082 = vmatmul.bf16.gmra.mxu3 %v6307_v56  ;;  %v1874_v29 = vpop.f32.mrf.mxu2 }
 0x2e8   : > { %3235 = vst [vmem:[%s5606_s5 + $0x158] sm:$0xf] %v3107_v28  ;;  %v6316_v28 = vld [vmem:[#allocation25_spill] sm:$0xff] }
 0x2e9   : > { %v2214_v34 = vpop.f32.mrf.mxu0 }
 0x2ea   : > { %v2043_v45 = vpop.f32.mrf.mxu3  ;;  %v2383_v30 = vpop.f32.mrf.mxu1 }
 0x2eb   : > { %v2044_v9 = vadd.f32 %v2043_v45, %v1874_v29  ;;  %v2384_v20 = vadd.f32 %v2383_v30, %v2214_v34 }
 0x2ed   : > { %v3106_v16 = vpack.c.bf16 %v2044_v9, %v5576_v40  ;;  %v3109_v54 = vpack.c.bf16 %v2384_v20, %v2384_v20 }
 0x2ef   : > { %3234 = vst [vmem:[%s5606_s5 + $0x150] sm:$0xff] %v3106_v16  ;;  %v1876_v63 = vpop.f32.mrf.mxu2 }
 0x2f0   : > { %3237 = vst [vmem:[%s5606_s5 + $0x164] sm:$0xf] %v3109_v54  ;;  %v6317_v54 = vld [vmem:[#allocation27_spill] sm:$0xff] }
 0x2f1   : > { %v2217_v21 = vpop.f32.mrf.mxu0 }
 0x2f2   : > { %v2045_v49 = vpop.f32.mrf.mxu3  ;;  %v2386_v3 = vpop.f32.mrf.mxu1 }
 0x2f3   : > { %v2046_v59 = vadd.f32 %v2045_v49, %v1876_v63  ;;  %v2387_v47 = vadd.f32 %v2386_v3, %v2217_v21  ;;  %v6319_v3 = vld [vmem:[#allocation28_spill] sm:$0xff] }
 0x2f4   : > { %1918 = vmatmul.bf16.gmra.mxu2 %v6308_v51  ;;  %2256 = vmatmul.bf16.gmra.mxu0 %v6308_v51 }
 0x2f5   : > { %v3108_v24 = vpack.c.bf16 %v2046_v59, %v5584_v42  ;;  %v3111_v40 = vpack.c.bf16 %v2387_v47, %v2387_v47  ;;  %2425 = vmatmul.bf16.gmra.mxu1 %v6309_v36  ;;  %v6318_v59 = vld [vmem:[#allocation26_spill] sm:$0xff] }
 0x2f7   : > { %3236 = vst [vmem:[%s5606_s5 + $0x15c] sm:$0xff] %v3108_v24  ;;  %2087 = vmatmul.bf16.gmra.mxu3 %v6309_v36  ;;  %v1879_v5 = vpop.f32.mrf.mxu2 }
 0x2f8   : > { %3239 = vst [vmem:[%s5606_s5 + $0x170] sm:$0xf] %v3111_v40 }
 0x2f9   : > { %v2219_v22 = vpop.f32.mrf.mxu0 }
 0x2fa   : > { %v2048_v17 = vpop.f32.mrf.mxu3  ;;  %v2388_v42 = vpop.f32.mrf.mxu1 }
 0x2fb   : > { %v2049_v38 = vadd.f32 %v2048_v17, %v1879_v5  ;;  %v2389_v14 = vadd.f32 %v2388_v42, %v2219_v22  ;;  %v6320_v5 = vld [vmem:[#allocation29_spill] sm:$0xff] }
 0x2fd   : > { %v3110_v44 = vpack.c.bf16 %v2049_v38, %v5588_v60  ;;  %v3113_v10 = vpack.c.bf16 %v2389_v14, %v2389_v14 }
 0x2ff   : > { %3238 = vst [vmem:[%s5606_s5 + $0x168] sm:$0xff] %v3110_v44  ;;  %v1881_v57 = vpop.f32.mrf.mxu2 }
 0x300   : > { %3241 = vst [vmem:[%s5606_s5 + $0x17c] sm:$0xf] %v3113_v10 }
 0x301   : > { %v2222_v7 = vpop.f32.mrf.mxu0 }
 0x302   : > { %v2050_v33 = vpop.f32.mrf.mxu3  ;;  %v2391_v19 = vpop.f32.mrf.mxu1 }
 0x303   : > { %v2051_v35 = vadd.f32 %v2050_v33, %v1881_v57  ;;  %v2392_v62 = vadd.f32 %v2391_v19, %v2222_v7  ;;  %v6321_v33 = vld [vmem:[#allocation31_spill] sm:$0xff]  ;;  %v6322_v19 = vld [vmem:[#allocation30_spill] sm:$0xff] }
 0x304   : > { %1923 = vmatmul.bf16.gmra.mxu2 %v6310_v55  ;;  %2261 = vmatmul.bf16.gmra.mxu0 %v6310_v55 }
 0x305   : > { %v3112_v25 = vpack.c.bf16 %v2051_v35, %v5596_v8  ;;  %v3115_v60 = vpack.c.bf16 %v2392_v62, %v2392_v62  ;;  %2430 = vmatmul.bf16.gmra.mxu1 %v6311_v48  ;;  %v6323_v62 = vld [vmem:[#allocation32_spill] sm:$0xff] }
 0x307   : > { %3240 = vst [vmem:[%s5606_s5 + $0x174] sm:$0xff] %v3112_v25  ;;  %2092 = vmatmul.bf16.gmra.mxu3 %v6311_v48  ;;  %v1884_v53 = vpop.f32.mrf.mxu2 }
 0x308   : > { %3243 = vst [vmem:[%s5606_s5 + $0x188] sm:$0xf] %v3115_v60 }
 0x309   : > { %v2224_v61 = vpop.f32.mrf.mxu0 }
 0x30a   : > { %v2053_v11 = vpop.f32.mrf.mxu3  ;;  %v2393_v8 = vpop.f32.mrf.mxu1 }
 0x30b   : > { %v2054_v18 = vadd.f32 %v2053_v11, %v1884_v53  ;;  %v2394_v2 = vadd.f32 %v2393_v8, %v2224_v61 }
 0x30d   : > { %v3114_v1 = vpack.c.bf16 %v2054_v18, %v6312_v26  ;;  %v3117_v46 = vpack.c.bf16 %v2394_v2, %v2394_v2  ;;  %v6324_v18 = vld [vmem:[#allocation33_spill] sm:$0xff] }
 0x30f   : > { %3242 = vst [vmem:[%s5606_s5 + $0x180] sm:$0xff] %v3114_v1  ;;  %v1886_v58 = vpop.f32.mrf.mxu2 }
 0x310   : > { %3245 = vst [vmem:[%s5606_s5 + $0x194] sm:$0xf] %v3117_v46 }
 0x311   : > { %v2227_v27 = vpop.f32.mrf.mxu0 }
 0x312   : > { %v2055_v50 = vpop.f32.mrf.mxu3  ;;  %v2396_v4 = vpop.f32.mrf.mxu1 }
 0x313   : > { %v2056_v41 = vadd.f32 %v2055_v50, %v1886_v58  ;;  %v2397_v31 = vadd.f32 %v2396_v4, %v2227_v27 }
 0x314   : > { %1928 = vmatmul.bf16.gmra.mxu2 %v6314_v13  ;;  %2266 = vmatmul.bf16.gmra.mxu0 %v6314_v13 }
 0x315   : > { %v3116_v6 = vpack.c.bf16 %v2056_v41, %v6313_v52  ;;  %v3119_v32 = vpack.c.bf16 %v2397_v31, %v2397_v31  ;;  %2435 = vmatmul.bf16.gmra.mxu1 %v6315_v23  ;;  %v6325_v41 = vld [vmem:[#allocation35_spill] sm:$0xff]  ;;  %v6326_v52 = vld [vmem:[#allocation34_spill] sm:$0xff]  ;;  %v6327_v31 = vld [vmem:[#allocation36_spill] sm:$0xff] }
 0x317   : > { %3244 = vst [vmem:[%s5606_s5 + $0x18c] sm:$0xff] %v3116_v6  ;;  %2097 = vmatmul.bf16.gmra.mxu3 %v6315_v23  ;;  %v1889_v37 = vpop.f32.mrf.mxu2 }
 0x318   : > { %3247 = vst [vmem:[%s5606_s5 + $0x1a0] sm:$0xf] %v3119_v32 }
 0x319   : > { %v2229_v39 = vpop.f32.mrf.mxu0 }
 0x31a   : > { %v2058_v12 = vpop.f32.mrf.mxu3  ;;  %v2398_v43 = vpop.f32.mrf.mxu1 }
 0x31b   : > { %v2059_v0 = vadd.f32 %v2058_v12, %v1889_v37  ;;  %v2399_v29 = vadd.f32 %v2398_v43, %v2229_v39 }
 0x31d   : > { %v3118_v56 = vpack.c.bf16 %v2059_v0, %v6316_v28  ;;  %v3121_v45 = vpack.c.bf16 %v2399_v29, %v2399_v29  ;;  %v6328_v0 = vld [vmem:[#allocation37_spill] sm:$0xff] }
 0x31f   : > { %3246 = vst [vmem:[%s5606_s5 + $0x198] sm:$0xff] %v3118_v56  ;;  %v1891_v9 = vpop.f32.mrf.mxu2 }
 0x320   : > { %3249 = vst [vmem:[%s5606_s5 + $0x1ac] sm:$0xf] %v3121_v45 }
 0x321   : > { %v2232_v16 = vpop.f32.mrf.mxu0 }
 0x322   : > { %v2060_v34 = vpop.f32.mrf.mxu3  ;;  %v2401_v20 = vpop.f32.mrf.mxu1 }
 0x323   : > { %v2061_v30 = vadd.f32 %v2060_v34, %v1891_v9  ;;  %v2402_v49 = vadd.f32 %v2401_v20, %v2232_v16 }
 0x324   : > { %1933 = vmatmul.bf16.gmra.mxu2 %v6318_v59  ;;  %2271 = vmatmul.bf16.gmra.mxu0 %v6318_v59 }
 0x325   : > { %v3120_v63 = vpack.c.bf16 %v2061_v30, %v6317_v54  ;;  %v3123_v21 = vpack.c.bf16 %v2402_v49, %v2402_v49  ;;  %2440 = vmatmul.bf16.gmra.mxu1 %v6319_v3  ;;  %v6329_v30 = vld [vmem:[#allocation39_spill] sm:$0xff]  ;;  %v6330_v54 = vld [vmem:[#allocation38_spill] sm:$0xff]  ;;  %v6331_v49 = vld [vmem:[#allocation40_spill] sm:$0xff] }
 0x327   : > { %3248 = vst [vmem:[%s5606_s5 + $0x1a4] sm:$0xff] %v3120_v63  ;;  %2102 = vmatmul.bf16.gmra.mxu3 %v6319_v3  ;;  %v1894_v24 = vpop.f32.mrf.mxu2 }
 0x328   : > { %3251 = vst [vmem:[%s5606_s5 + $0x1b8] sm:$0xf] %v3123_v21 }
 0x329   : > { %v2234_v40 = vpop.f32.mrf.mxu0 }
 0x32a   : > { %v2063_v47 = vpop.f32.mrf.mxu3  ;;  %v2403_v36 = vpop.f32.mrf.mxu1 }
 0x32b   : > { %v2064_v51 = vadd.f32 %v2063_v47, %v1894_v24  ;;  %v2404_v38 = vadd.f32 %v2403_v36, %v2234_v40 }
 0x32d   : > { %v3122_v17 = vpack.c.bf16 %v2064_v51, %v6320_v5  ;;  %v3125_v22 = vpack.c.bf16 %v2404_v38, %v2404_v38  ;;  %v6332_v51 = vld [vmem:[#allocation41_spill] sm:$0xff] }
 0x32f   : > { %3250 = vst [vmem:[%s5606_s5 + $0x1b0] sm:$0xff] %v3122_v17  ;;  %v1896_v42 = vpop.f32.mrf.mxu2 }
 0x330   : > { %3253 = vst [vmem:[%s5606_s5 + $0x1c4] sm:$0xf] %v3125_v22 }
 0x331   : > { %v2237_v10 = vpop.f32.mrf.mxu0 }
 0x332   : > { %v2065_v44 = vpop.f32.mrf.mxu3  ;;  %v2406_v57 = vpop.f32.mrf.mxu1 }
 0x333   : > { %v2066_v14 = vadd.f32 %v2065_v44, %v1896_v42  ;;  %v2407_v7 = vadd.f32 %v2406_v57, %v2237_v10 }
 0x334   : > { %1938 = vmatmul.bf16.gmra.mxu2 %v6322_v19  ;;  %2276 = vmatmul.bf16.gmra.mxu0 %v6322_v19 }
 0x335   : > { %v3124_v35 = vpack.c.bf16 %v2066_v14, %v6321_v33  ;;  %v3127_v25 = vpack.c.bf16 %v2407_v7, %v2407_v7  ;;  %2445 = vmatmul.bf16.gmra.mxu1 %v6323_v62  ;;  %v6333_v14 = vld [vmem:[#allocation43_spill] sm:$0xff]  ;;  %v6334_v33 = vld [vmem:[#allocation42_spill] sm:$0xff]  ;;  %v6335_v7 = vld [vmem:[#allocation44_spill] sm:$0xff] }
 0x337   : > { %3252 = vst [vmem:[%s5606_s5 + $0x1bc] sm:$0xff] %v3124_v35  ;;  %2107 = vmatmul.bf16.gmra.mxu3 %v6323_v62  ;;  %v1899_v55 = vpop.f32.mrf.mxu2 }
 0x338   : > { %3255 = vst [vmem:[%s5606_s5 + $0x1d0] sm:$0xf] %v3127_v25 }
 0x339   : > { %v2239_v53 = vpop.f32.mrf.mxu0 }
 0x33a   : > { %v2068_v60 = vpop.f32.mrf.mxu3  ;;  %v2408_v11 = vpop.f32.mrf.mxu1 }
 0x33b   : > { %v2069_v48 = vadd.f32 %v2068_v60, %v1899_v55  ;;  %v2409_v8 = vadd.f32 %v2408_v11, %v2239_v53 }
 0x33d   : > { %v3126_v61 = vpack.c.bf16 %v2069_v48, %v6324_v18  ;;  %v3129_v26 = vpack.c.bf16 %v2409_v8, %v2409_v8  ;;  %v6336_v48 = vld [vmem:[#allocation45_spill] sm:$0xff] }
 0x33f   : > { %3254 = vst [vmem:[%s5606_s5 + $0x1c8] sm:$0xff] %v3126_v61  ;;  %v1901_v1 = vpop.f32.mrf.mxu2 }
 0x340   : > { %3257 = vst [vmem:[%s5606_s5 + $0x1dc] sm:$0xf] %v3129_v26 }
 0x341   : > { %v2242_v58 = vpop.f32.mrf.mxu0 }
 0x342   : > { %v2070_v2 = vpop.f32.mrf.mxu3  ;;  %v2411_v50 = vpop.f32.mrf.mxu1 }
 0x343   : > { %v2071_v46 = vadd.f32 %v2070_v2, %v1901_v1  ;;  %v2412_v4 = vadd.f32 %v2411_v50, %v2242_v58  ;;  %v6337_v50 = vld [vmem:[#allocation46_spill] sm:$0xff] }
 0x344   : > { %1943 = vmatmul.bf16.gmra.mxu2 %v6326_v52  ;;  %2281 = vmatmul.bf16.gmra.mxu0 %v6326_v52 }
 0x345   : > { %v3128_v27 = vpack.c.bf16 %v2071_v46, %v6325_v41  ;;  %v3131_v6 = vpack.c.bf16 %v2412_v4, %v2412_v4  ;;  %2450 = vmatmul.bf16.gmra.mxu1 %v6327_v31 }
 0x347   : > { %3256 = vst [vmem:[%s5606_s5 + $0x1d4] sm:$0xff] %v3128_v27  ;;  %2112 = vmatmul.bf16.gmra.mxu3 %v6327_v31  ;;  %v1904_v13 = vpop.f32.mrf.mxu2  ;;  %v6338_v27 = vld [vmem:[#allocation47_spill] sm:$0xff] }
 0x348   : > { %3259 = vst [vmem:[%s5606_s5 + $0x1e8] sm:$0xf] %v3131_v6 }
 0x349   : > { %v2244_v37 = vpop.f32.mrf.mxu0 }
 0x34a   : > { %v2073_v32 = vpop.f32.mrf.mxu3  ;;  %v2413_v12 = vpop.f32.mrf.mxu1 }
 0x34b   : > { %v2074_v23 = vadd.f32 %v2073_v32, %v1904_v13  ;;  %v2414_v43 = vadd.f32 %v2413_v12, %v2244_v37  ;;  %v6339_v13 = vld [vmem:[#allocation48_spill] sm:$0xff] }
 0x34d   : > { %v3130_v39 = vpack.c.bf16 %v2074_v23, %v6328_v0  ;;  %v3133_v28 = vpack.c.bf16 %v2414_v43, %v2414_v43 }
 0x34f   : > { %3258 = vst [vmem:[%s5606_s5 + $0x1e0] sm:$0xff] %v3130_v39  ;;  %v1906_v56 = vpop.f32.mrf.mxu2 }
 0x350   : > { %3261 = vst [vmem:[%s5606_s5 + $0x1f4] sm:$0xf] %v3133_v28 }
 0x351   : > { %v2247_v9 = vpop.f32.mrf.mxu0 }
 0x352   : > { %v2075_v29 = vpop.f32.mrf.mxu3  ;;  %v2416_v34 = vpop.f32.mrf.mxu1 }
 0x353   : > { %v2076_v45 = vadd.f32 %v2075_v29, %v1906_v56  ;;  %v2417_v20 = vadd.f32 %v2416_v34, %v2247_v9  ;;  %v6340_v56 = vld [vmem:[#allocation49_spill] sm:$0xff] }
 0x354   : > { %1948 = vmatmul.bf16.gmra.mxu2 %v6330_v54  ;;  %2286 = vmatmul.bf16.gmra.mxu0 %v6330_v54 }
 0x355   : > { %v3132_v16 = vpack.c.bf16 %v2076_v45, %v6329_v30  ;;  %v3135_v63 = vpack.c.bf16 %v2417_v20, %v2417_v20  ;;  %2455 = vmatmul.bf16.gmra.mxu1 %v6331_v49 }
 0x357   : > { %3260 = vst [vmem:[%s5606_s5 + $0x1ec] sm:$0xff] %v3132_v16  ;;  %2117 = vmatmul.bf16.gmra.mxu3 %v6331_v49  ;;  %v1909_v59 = vpop.f32.mrf.mxu2 }
 0x358   : > { %3263 = vst [vmem:[%s5606_s5 + $0x200] sm:$0xf] %v3135_v63  ;;  %v6341_v63 = vld [vmem:[#allocation50_spill] sm:$0xff] }
 0x359   : > { %v2249_v24 = vpop.f32.mrf.mxu0 }
 0x35a   : > { %v2078_v21 = vpop.f32.mrf.mxu3  ;;  %v2418_v47 = vpop.f32.mrf.mxu1 }
 0x35b   : > { %v2079_v3 = vadd.f32 %v2078_v21, %v1909_v59  ;;  %v2419_v36 = vadd.f32 %v2418_v47, %v2249_v24 }
 0x35d   : > { %v3134_v40 = vpack.c.bf16 %v2079_v3, %v6332_v51  ;;  %v3137_v5 = vpack.c.bf16 %v2419_v36, %v2419_v36  ;;  %v6342_v36 = vld [vmem:[#allocation51_spill] sm:$0xff] }
 0x35f   : > { %3262 = vst [vmem:[%s5606_s5 + $0x1f8] sm:$0xff] %v3134_v40  ;;  %v1911_v17 = vpop.f32.mrf.mxu2 }
 0x360   : > { %3265 = vst [vmem:[%s5606_s5 + $0x20c] sm:$0xf] %v3137_v5 }
 0x361   : > { %v2252_v42 = vpop.f32.mrf.mxu0 }
 0x362   : > { %v2080_v38 = vpop.f32.mrf.mxu3  ;;  %v2421_v44 = vpop.f32.mrf.mxu1 }
 0x363   : > { %v2081_v22 = vadd.f32 %v2080_v38, %v1911_v17  ;;  %v2422_v57 = vadd.f32 %v2421_v44, %v2252_v42 }
 0x364   : > { %1953 = vmatmul.bf16.gmra.mxu2 %v6334_v33  ;;  %2291 = vmatmul.bf16.gmra.mxu0 %v6334_v33 }
 0x365   : > { %v3136_v10 = vpack.c.bf16 %v2081_v22, %v6333_v14  ;;  %v3139_v35 = vpack.c.bf16 %v2422_v57, %v2422_v57  ;;  %2460 = vmatmul.bf16.gmra.mxu1 %v6335_v7  ;;  %v6343_v57 = vld [vmem:[#allocation52_spill] sm:$0xff] }
 0x367   : > { %3264 = vst [vmem:[%s5606_s5 + $0x204] sm:$0xff] %v3136_v10  ;;  %2122 = vmatmul.bf16.gmra.mxu3 %v6335_v7  ;;  %v1914_v19 = vpop.f32.mrf.mxu2 }
 0x368   : > { %3267 = vst [vmem:[%s5606_s5 + $0x218] sm:$0xf] %v3139_v35 }
 0x369   : > { %v2254_v55 = vpop.f32.mrf.mxu0 }
 0x36a   : > { %v2083_v25 = vpop.f32.mrf.mxu3  ;;  %v2423_v60 = vpop.f32.mrf.mxu1 }
 0x36b   : > { %v2084_v62 = vadd.f32 %v2083_v25, %v1914_v19  ;;  %v2424_v11 = vadd.f32 %v2423_v60, %v2254_v55 }
 0x36d   : > { %v3138_v53 = vpack.c.bf16 %v2084_v62, %v6336_v48  ;;  %v3141_v18 = vpack.c.bf16 %v2424_v11, %v2424_v11  ;;  %v6344_v48 = vld [vmem:[#allocation53_spill] sm:$0xff] }
 0x36f   : > { %3266 = vst [vmem:[%s5606_s5 + $0x210] sm:$0xff] %v3138_v53  ;;  %v1916_v61 = vpop.f32.mrf.mxu2 }
 0x370   : > { %3269 = vst [vmem:[%s5606_s5 + $0x224] sm:$0xf] %v3141_v18 }
 0x371   : > { %v2257_v1 = vpop.f32.mrf.mxu0 }
 0x372   : > { %v2085_v8 = vpop.f32.mrf.mxu3  ;;  %v2426_v2 = vpop.f32.mrf.mxu1 }
 0x373   : > { %v2086_v26 = vadd.f32 %v2085_v8, %v1916_v61  ;;  %v2427_v58 = vadd.f32 %v2426_v2, %v2257_v1 }
 0x374   : > { %1958 = vmatmul.bf16.gmra.mxu2 %v6337_v50  ;;  %2296 = vmatmul.bf16.gmra.mxu0 %v6337_v50 }
 0x375   : > { %v3140_v46 = vpack.c.bf16 %v2086_v26, %v5486_v15  ;;  %v3143_v41 = vpack.c.bf16 %v2427_v58, %v2427_v58  ;;  %2465 = vmatmul.bf16.gmra.mxu1 %v6338_v27 }
 0x377   : > { %3268 = vst [vmem:[%s5606_s5 + $0x21c] sm:$0xff] %v3140_v46  ;;  %2127 = vmatmul.bf16.gmra.mxu3 %v6338_v27  ;;  %v1919_v4 = vpop.f32.mrf.mxu2  ;;  %v6345_v46 = vld [vmem:[#allocation54_spill] sm:$0xff] }
 0x378   : > { %3271 = vst [vmem:[%s5606_s5 + $0x230] sm:$0xf] %v3143_v41 }
 0x379   : > { %v2259_v31 = vpop.f32.mrf.mxu0 }
 0x37a   : > { %v2088_v52 = vpop.f32.mrf.mxu3  ;;  %v2428_v15 = vpop.f32.mrf.mxu1 }
 0x37b   : > { %v2089_v6 = vadd.f32 %v2088_v52, %v1919_v4  ;;  %v2429_v23 = vadd.f32 %v2428_v15, %v2259_v31  ;;  %v6346_v15 = vld [vmem:[#allocation55_spill] sm:$0xff] }
 0x37d   : > { %v3142_v32 = vpack.c.bf16 %v2089_v6, %v6339_v13  ;;  %v3145_v37 = vpack.c.bf16 %v2429_v23, %v2429_v23 }
 0x37f   : > { %3270 = vst [vmem:[%s5606_s5 + $0x228] sm:$0xff] %v3142_v32  ;;  %v1921_v12 = vpop.f32.mrf.mxu2 }
 0x380   : > { %3273 = vst [vmem:[%s5606_s5 + $0x23c] sm:$0xf] %v3145_v37 }
 0x381   : > { %v2262_v43 = vpop.f32.mrf.mxu0 }
 0x382   : > { %v2090_v0 = vpop.f32.mrf.mxu3  ;;  %v2431_v28 = vpop.f32.mrf.mxu1 }
 0x383   : > { %v2091_v39 = vadd.f32 %v2090_v0, %v1921_v12  ;;  %v2432_v45 = vadd.f32 %v2431_v28, %v2262_v43  ;;  %v6347_v28 = vld [vmem:[#allocation56_spill] sm:$0xff] }
 0x385   : > { %v3144_v29 = vpack.c.bf16 %v2091_v39, %v6340_v56  ;;  %v3147_v9 = vpack.c.bf16 %v2432_v45, %v2432_v45 }
 0x387   : > { %3272 = vst [vmem:[%s5606_s5 + $0x234] sm:$0xff] %v3144_v29  ;;  %v1924_v34 = vpop.f32.mrf.mxu2 }
 0x388   : > { %3275 = vst [vmem:[%s5606_s5 + $0x248] sm:$0xf] %v3147_v9 }
 0x389   : > { %v2264_v20 = vpop.f32.mrf.mxu0 }
 0x38a   : > { %v2093_v30 = vpop.f32.mrf.mxu3  ;;  %v2433_v54 = vpop.f32.mrf.mxu1 }
 0x38b   : > { %v2094_v16 = vadd.f32 %v2093_v30, %v1924_v34  ;;  %v2434_v59 = vadd.f32 %v2433_v54, %v2264_v20  ;;  %v6348_v54 = vld [vmem:[#allocation57_spill] sm:$0xff] }
 0x38d   : > { %v3146_v49 = vpack.c.bf16 %v2094_v16, %v6341_v63  ;;  %v3149_v21 = vpack.c.bf16 %v2434_v59, %v2434_v59 }
 0x38f   : > { %3274 = vst [vmem:[%s5606_s5 + $0x240] sm:$0xff] %v3146_v49  ;;  %v1926_v3 = vpop.f32.mrf.mxu2 }
 0x390   : > { %3277 = vst [vmem:[%s5606_s5 + $0x254] sm:$0xf] %v3149_v21 }
 0x391   : > { %v2267_v51 = vpop.f32.mrf.mxu0 }
 0x392   : > { %v2095_v24 = vpop.f32.mrf.mxu3  ;;  %v2436_v40 = vpop.f32.mrf.mxu1 }
 0x393   : > { %v2096_v47 = vadd.f32 %v2095_v24, %v1926_v3  ;;  %v2437_v17 = vadd.f32 %v2436_v40, %v2267_v51  ;;  %v6349_v40 = vld [vmem:[#allocation58_spill] sm:$0xff] }
 0x395   : > { %v3148_v5 = vpack.c.bf16 %v2096_v47, %v6342_v36  ;;  %v3151_v38 = vpack.c.bf16 %v2437_v17, %v2437_v17 }
 0x397   : > { %3276 = vst [vmem:[%s5606_s5 + $0x24c] sm:$0xff] %v3148_v5  ;;  %v1929_v22 = vpop.f32.mrf.mxu2 }
 0x398   : > { %3279 = vst [vmem:[%s5606_s5 + $0x260] sm:$0xf] %v3151_v38 }
 0x399   : > { %v2269_v14 = vpop.f32.mrf.mxu0 }
 0x39a   : > { %v2098_v42 = vpop.f32.mrf.mxu3  ;;  %v2438_v10 = vpop.f32.mrf.mxu1 }
 0x39b   : > { %v2099_v44 = vadd.f32 %v2098_v42, %v1929_v22  ;;  %v2439_v35 = vadd.f32 %v2438_v10, %v2269_v14  ;;  %v6350_v10 = vld [vmem:[#allocation59_spill] sm:$0xff] }
 0x39d   : > { %v3150_v33 = vpack.c.bf16 %v2099_v44, %v6343_v57  ;;  %v3153_v7 = vpack.c.bf16 %v2439_v35, %v2439_v35 }
 0x39f   : > { %3278 = vst [vmem:[%s5606_s5 + $0x258] sm:$0xff] %v3150_v33  ;;  %v1931_v19 = vpop.f32.mrf.mxu2 }
 0x3a0   : > { %3281 = vst [vmem:[%s5606_s5 + $0x26c] sm:$0xf] %v3153_v7 }
 0x3a1   : > { %v2272_v55 = vpop.f32.mrf.mxu0 }
 0x3a2   : > { %v2100_v25 = vpop.f32.mrf.mxu3  ;;  %v2441_v60 = vpop.f32.mrf.mxu1 }
 0x3a3   : > { %v2101_v62 = vadd.f32 %v2100_v25, %v1931_v19  ;;  %v2442_v11 = vadd.f32 %v2441_v60, %v2272_v55  ;;  %v6351_v60 = vld [vmem:[#allocation60_spill] sm:$0xff] }
 0x3a5   : > { %v3152_v53 = vpack.c.bf16 %v2101_v62, %v6344_v48  ;;  %v3155_v18 = vpack.c.bf16 %v2442_v11, %v2442_v11 }
 0x3a7   : > { %3280 = vst [vmem:[%s5606_s5 + $0x264] sm:$0xff] %v3152_v53  ;;  %v1934_v61 = vpop.f32.mrf.mxu2 }
 0x3a8   : > { %3283 = vst [vmem:[%s5606_s5 + $0x278] sm:$0xf] %v3155_v18 }
 0x3a9   : > { %v2274_v1 = vpop.f32.mrf.mxu0 }
 0x3aa   : > { %v2103_v8 = vpop.f32.mrf.mxu3  ;;  %v2443_v2 = vpop.f32.mrf.mxu1 }
 0x3ab   : > { %v2104_v26 = vadd.f32 %v2103_v8, %v1934_v61  ;;  %v2444_v50 = vadd.f32 %v2443_v2, %v2274_v1  ;;  %v6352_v2 = vld [vmem:[#allocation61_spill] sm:$0xff] }
 0x3ad   : > { %v3154_v58 = vpack.c.bf16 %v2104_v26, %v6345_v46  ;;  %v3157_v41 = vpack.c.bf16 %v2444_v50, %v2444_v50 }
 0x3af   : > { %3282 = vst [vmem:[%s5606_s5 + $0x270] sm:$0xff] %v3154_v58  ;;  %v1936_v27 = vpop.f32.mrf.mxu2 }
 0x3b0   : > { %3285 = vst [vmem:[%s5606_s5 + $0x284] sm:$0xf] %v3157_v41 }
 0x3b1   : > { %v2277_v6 = vpop.f32.mrf.mxu0 }
 0x3b2   : > { %v2105_v4 = vpop.f32.mrf.mxu3  ;;  %v2446_v31 = vpop.f32.mrf.mxu1 }
 0x3b3   : > { %v2106_v52 = vadd.f32 %v2105_v4, %v1936_v27  ;;  %v2447_v32 = vadd.f32 %v2446_v31, %v2277_v6  ;;  %v6353_v31 = vld [vmem:[#allocation62_spill] sm:$0xff] }
 0x3b5   : > { %v3156_v13 = vpack.c.bf16 %v2106_v52, %v6346_v15  ;;  %v3159_v23 = vpack.c.bf16 %v2447_v32, %v2447_v32 }
 0x3b7   : > { %3284 = vst [vmem:[%s5606_s5 + $0x27c] sm:$0xff] %v3156_v13  ;;  %v1939_v37 = vpop.f32.mrf.mxu2 }
 0x3b8   : > { %3287 = vst [vmem:[%s5606_s5 + $0x290] sm:$0xf] %v3159_v23 }
 0x3b9   : > { %v2279_v39 = vpop.f32.mrf.mxu0 }
 0x3ba   : > { %v2108_v12 = vpop.f32.mrf.mxu3  ;;  %v2448_v43 = vpop.f32.mrf.mxu1 }
 0x3bb   : > { %v2109_v0 = vadd.f32 %v2108_v12, %v1939_v37  ;;  %v2449_v29 = vadd.f32 %v2448_v43, %v2279_v39  ;;  %v6354_v43 = vld [vmem:[#allocation63_spill] sm:$0xff] }
 0x3bd   : > { %v3158_v56 = vpack.c.bf16 %v2109_v0, %v6347_v28  ;;  %v3161_v45 = vpack.c.bf16 %v2449_v29, %v2449_v29 }
 0x3bf   : > { %3286 = vst [vmem:[%s5606_s5 + $0x288] sm:$0xff] %v3158_v56  ;;  %v1941_v9 = vpop.f32.mrf.mxu2 }
 0x3c0   : > { %3289 = vst [vmem:[%s5606_s5 + $0x29c] sm:$0xf] %v3161_v45 }
 0x3c1   : > { %v2282_v16 = vpop.f32.mrf.mxu0 }
 0x3c2   : > { %v2110_v34 = vpop.f32.mrf.mxu3  ;;  %v2451_v20 = vpop.f32.mrf.mxu1 }
 0x3c3   : > { %v2111_v30 = vadd.f32 %v2110_v34, %v1941_v9  ;;  %v2452_v49 = vadd.f32 %v2451_v20, %v2282_v16  ;;  %v6355_v20 = vld [vmem:[#allocation64_spill] sm:$0xff] }
 0x3c5   : > { %v3160_v63 = vpack.c.bf16 %v2111_v30, %v6348_v54  ;;  %v3163_v59 = vpack.c.bf16 %v2452_v49, %v2452_v49 }
 0x3c7   : > { %3288 = vst [vmem:[%s5606_s5 + $0x294] sm:$0xff] %v3160_v63  ;;  %v1944_v21 = vpop.f32.mrf.mxu2 }
 0x3c8   : > { %3291 = vst [vmem:[%s5606_s5 + $0x2a8] sm:$0xf] %v3163_v59 }
 0x3c9   : > { %v2284_v47 = vpop.f32.mrf.mxu0 }
 0x3ca   : > { %v2113_v3 = vpop.f32.mrf.mxu3  ;;  %v2453_v51 = vpop.f32.mrf.mxu1 }
 0x3cb   : > { %v2114_v24 = vadd.f32 %v2113_v3, %v1944_v21  ;;  %v2454_v5 = vadd.f32 %v2453_v51, %v2284_v47  ;;  %v3333_v51 = vld [vmem:[%s5606_s5] sm:$0xff] (%p4616_p6) }
 0x3cc   : > { %3334 = vst [vmem:[%s5900_s7] sm:$0xff] (%p4616_p6), %v3333_v51  ;;  %v4223_v51 = vld [vmem:[%s5606_s5 + $0x8] sm:$0xf] (%p4616_p6) }
 0x3cd   : > { %v3162_v36 = vpack.c.bf16 %v2114_v24, %v6349_v40  ;;  %v3165_v17 = vpack.c.bf16 %v2454_v5, %v2454_v5  ;;  %v6356_v24 = vld [vmem:[#allocation65_spill] sm:$0xff]  ;;  %v3335_v40 = vld [vmem:[%s5606_s5 + $0xc] sm:$0xff] (%p4616_p6)  ;;  %4224 = vst [vmem:[%s5900_s7 + $0x8] sm:$0xf] (%p4616_p6), %v4223_v51 }
 0x3ce   : > { %v3339_v5 = vld [vmem:[%s5606_s5 + $0x24] sm:$0xff] (%p4616_p6)  ;;  %3336 = vst [vmem:[%s5900_s7 + $0x18] sm:$0xff] (%p4616_p6), %v3335_v40  ;;  %v4225_v40 = vld [vmem:[%s5606_s5 + $0x14] sm:$0xf] (%p4616_p6) }
 0x3cf   : > { %3290 = vst [vmem:[%s5606_s5 + $0x2a0] sm:$0xff] %v3162_v36  ;;  %v1946_v38 = vpop.f32.mrf.mxu2  ;;  %v3337_v36 = vld [vmem:[%s5606_s5 + $0x18] sm:$0xff] (%p4616_p6) }
 0x3d0   : > { %3293 = vst [vmem:[%s5606_s5 + $0x2b4] sm:$0xf] %v3165_v17  ;;  %v3341_v17 = vld [vmem:[%s5606_s5 + $0x30] sm:$0xff] (%p4616_p6) }
 0x3d1   : > { %v2287_v44 = vpop.f32.mrf.mxu0  ;;  %3338 = vst [vmem:[%s5900_s7 + $0x30] sm:$0xff] (%p4616_p6), %v3337_v36  ;;  %v4227_v36 = vld [vmem:[%s5606_s5 + $0x20] sm:$0xf] (%p4616_p6) }
 0x3d2   : > { %v2115_v22 = vpop.f32.mrf.mxu3  ;;  %v2456_v14 = vpop.f32.mrf.mxu1  ;;  %3340 = vst [vmem:[%s5900_s7 + $0x48] sm:$0xff] (%p4616_p6), %v3339_v5  ;;  %v4229_v5 = vld [vmem:[%s5606_s5 + $0x2c] sm:$0xf] (%p4616_p6) }
 0x3d3   : > { %v2116_v42 = vadd.f32 %v2115_v22, %v1946_v38  ;;  %v2457_v33 = vadd.f32 %v2456_v14, %v2287_v44  ;;  %v3343_v38 = vld [vmem:[%s5606_s5 + $0x3c] sm:$0xff] (%p4616_p6)  ;;  %v3345_v22 = vld [vmem:[%s5606_s5 + $0x48] sm:$0xff] (%p4616_p6)  ;;  %3342 = vst [vmem:[%s5900_s7 + $0x60] sm:$0xff] (%p4616_p6), %v3341_v17  ;;  %v4231_v17 = vld [vmem:[%s5606_s5 + $0x38] sm:$0xf] (%p4616_p6) }
 0x3d4   : > { %3344 = vst [vmem:[%s5900_s7 + $0x78] sm:$0xff] (%p4616_p6), %v3343_v38  ;;  %v3349_v44 = vld [vmem:[%s5606_s5 + $0x60] sm:$0xff] (%p4616_p6)  ;;  %v3351_v14 = vld [vmem:[%s5606_s5 + $0x6c] sm:$0xff] (%p4616_p6) }
 0x3d5   : > { %v3164_v57 = vpack.c.bf16 %v2116_v42, %v6350_v10  ;;  %v3167_v35 = vpack.c.bf16 %v2457_v33, %v2457_v33  ;;  %v3347_v42 = vld [vmem:[%s5606_s5 + $0x54] sm:$0xff] (%p4616_p6)  ;;  %3346 = vst [vmem:[%s5900_s7 + $0x90] sm:$0xff] (%p4616_p6), %v3345_v22  ;;  %v4233_v38 = vld [vmem:[%s5606_s5 + $0x44] sm:$0xf] (%p4616_p6)  ;;  %v4235_v22 = vld [vmem:[%s5606_s5 + $0x50] sm:$0xf] (%p4616_p6) }
 0x3d6   : > { %3348 = vst [vmem:[%s5900_s7 + $0xa8] sm:$0xff] (%p4616_p6), %v3347_v42  ;;  %v3353_v10 = vld [vmem:[%s5606_s5 + $0x78] sm:$0xff] (%p4616_p6)  ;;  %v3357_v33 = vld [vmem:[%s5606_s5 + $0x90] sm:$0xff] (%p4616_p6) }
 0x3d7   : > { %3292 = vst [vmem:[%s5606_s5 + $0x2ac] sm:$0xff] %v3164_v57  ;;  %v1949_v7 = vpop.f32.mrf.mxu2  ;;  %v3355_v57 = vld [vmem:[%s5606_s5 + $0x84] sm:$0xff] (%p4616_p6)  ;;  %v4237_v42 = vld [vmem:[%s5606_s5 + $0x5c] sm:$0xf] (%p4616_p6) }
 0x3d8   : > { %3295 = vst [vmem:[%s5606_s5 + $0x2c0] sm:$0xf] %v3167_v35  ;;  %v3359_v35 = vld [vmem:[%s5606_s5 + $0x9c] sm:$0xff] (%p4616_p6) }
 0x3d9   : > { %v2289_v62 = vpop.f32.mrf.mxu0  ;;  %3350 = vst [vmem:[%s5900_s7 + $0xc0] sm:$0xff] (%p4616_p6), %v3349_v44  ;;  %v4239_v44 = vld [vmem:[%s5606_s5 + $0x68] sm:$0xf] (%p4616_p6) }
 0x3da   : > { %v2118_v19 = vpop.f32.mrf.mxu3  ;;  %v2458_v55 = vpop.f32.mrf.mxu1  ;;  %3352 = vst [vmem:[%s5900_s7 + $0xd8] sm:$0xff] (%p4616_p6), %v3351_v14  ;;  %v4241_v14 = vld [vmem:[%s5606_s5 + $0x74] sm:$0xf] (%p4616_p6) }
 0x3db   : > { %v2119_v25 = vadd.f32 %v2118_v19, %v1949_v7  ;;  %v2459_v53 = vadd.f32 %v2458_v55, %v2289_v62  ;;  %3354 = vst [vmem:[%s5900_s7 + $0xf0] sm:$0xff] (%p4616_p6), %v3353_v10  ;;  %v3361_v7 = vld [vmem:[%s5606_s5 + $0xa8] sm:$0xff] (%p4616_p6)  ;;  %v3363_v19 = vld [vmem:[%s5606_s5 + $0xb4] sm:$0xff] (%p4616_p6)  ;;  %v4243_v10 = vld [vmem:[%s5606_s5 + $0x80] sm:$0xf] (%p4616_p6) }
 0x3dc   : > { %3356 = vst [vmem:[%s5900_s7 + $0x108] sm:$0xff] (%p4616_p6), %v3355_v57  ;;  %v3367_v62 = vld [vmem:[%s5606_s5 + $0xcc] sm:$0xff] (%p4616_p6)  ;;  %v3369_v55 = vld [vmem:[%s5606_s5 + $0xd8] sm:$0xff] (%p4616_p6) }
 0x3dd   : > { %v3166_v48 = vpack.c.bf16 %v2119_v25, %v6351_v60  ;;  %v3169_v11 = vpack.c.bf16 %v2459_v53, %v2459_v53  ;;  %3358 = vst [vmem:[%s5900_s7 + $0x120] sm:$0xff] (%p4616_p6), %v3357_v33  ;;  %v3365_v25 = vld [vmem:[%s5606_s5 + $0xc0] sm:$0xff] (%p4616_p6)  ;;  %v4245_v57 = vld [vmem:[%s5606_s5 + $0x8c] sm:$0xf] (%p4616_p6)  ;;  %v4247_v33 = vld [vmem:[%s5606_s5 + $0x98] sm:$0xf] (%p4616_p6) }
 0x3de   : > { %3360 = vst [vmem:[%s5900_s7 + $0x138] sm:$0xff] (%p4616_p6), %v3359_v35  ;;  %v3371_v60 = vld [vmem:[%s5606_s5 + $0xe4] sm:$0xff] (%p4616_p6)  ;;  %v3375_v53 = vld [vmem:[%s5606_s5 + $0xfc] sm:$0xff] (%p4616_p6) }
 0x3df   : > { %3294 = vst [vmem:[%s5606_s5 + $0x2b8] sm:$0xff] %v3166_v48  ;;  %v1951_v18 = vpop.f32.mrf.mxu2  ;;  %v3373_v48 = vld [vmem:[%s5606_s5 + $0xf0] sm:$0xff] (%p4616_p6)  ;;  %v4249_v35 = vld [vmem:[%s5606_s5 + $0xa4] sm:$0xf] (%p4616_p6) }
 0x3e0   : > { %3297 = vst [vmem:[%s5606_s5 + $0x2cc] sm:$0xf] %v3169_v11  ;;  %v3377_v11 = vld [vmem:[%s5606_s5 + $0x108] sm:$0xff] (%p4616_p6) }
 0x3e1   : > { %v2292_v26 = vpop.f32.mrf.mxu0  ;;  %3362 = vst [vmem:[%s5900_s7 + $0x150] sm:$0xff] (%p4616_p6), %v3361_v7  ;;  %v4251_v7 = vld [vmem:[%s5606_s5 + $0xb0] sm:$0xf] (%p4616_p6) }
 0x3e2   : > { %v2120_v61 = vpop.f32.mrf.mxu3  ;;  %v2461_v1 = vpop.f32.mrf.mxu1  ;;  %3364 = vst [vmem:[%s5900_s7 + $0x168] sm:$0xff] (%p4616_p6), %v3363_v19  ;;  %v4253_v19 = vld [vmem:[%s5606_s5 + $0xbc] sm:$0xf] (%p4616_p6) }
 0x3e3   : > { %v2121_v8 = vadd.f32 %v2120_v61, %v1951_v18  ;;  %v2462_v58 = vadd.f32 %v2461_v1, %v2292_v26  ;;  %3366 = vst [vmem:[%s5900_s7 + $0x180] sm:$0xff] (%p4616_p6), %v3365_v25  ;;  %v3379_v18 = vld [vmem:[%s5606_s5 + $0x114] sm:$0xff] (%p4616_p6)  ;;  %v3381_v61 = vld [vmem:[%s5606_s5 + $0x120] sm:$0xff] (%p4616_p6)  ;;  %v4255_v25 = vld [vmem:[%s5606_s5 + $0xc8] sm:$0xf] (%p4616_p6) }
 0x3e4   : > { %3368 = vst [vmem:[%s5900_s7 + $0x198] sm:$0xff] (%p4616_p6), %v3367_v62  ;;  %v3385_v26 = vld [vmem:[%s5606_s5 + $0x138] sm:$0xff] (%p4616_p6)  ;;  %v3387_v1 = vld [vmem:[%s5606_s5 + $0x144] sm:$0xff] (%p4616_p6)  ;;  %v4257_v62 = vld [vmem:[%s5606_s5 + $0xd4] sm:$0xf] (%p4616_p6) }
 0x3e5   : > { %v3168_v46 = vpack.c.bf16 %v2121_v8, %v6352_v2  ;;  %v3171_v50 = vpack.c.bf16 %v2462_v58, %v2462_v58  ;;  %3370 = vst [vmem:[%s5900_s7 + $0x1b0] sm:$0xff] (%p4616_p6), %v3369_v55  ;;  %v3383_v8 = vld [vmem:[%s5606_s5 + $0x12c] sm:$0xff] (%p4616_p6)  ;;  %v4259_v55 = vld [vmem:[%s5606_s5 + $0xe0] sm:$0xf] (%p4616_p6) }
 0x3e6   : > { %3372 = vst [vmem:[%s5900_s7 + $0x1c8] sm:$0xff] (%p4616_p6), %v3371_v60  ;;  %v3389_v2 = vld [vmem:[%s5606_s5 + $0x150] sm:$0xff] (%p4616_p6)  ;;  %v3393_v58 = vld [vmem:[%s5606_s5 + $0x168] sm:$0xff] (%p4616_p6) }
 0x3e7   : > { %3296 = vst [vmem:[%s5606_s5 + $0x2c4] sm:$0xff] %v3168_v46  ;;  %v1954_v41 = vpop.f32.mrf.mxu2  ;;  %v3391_v46 = vld [vmem:[%s5606_s5 + $0x15c] sm:$0xff] (%p4616_p6)  ;;  %v4261_v60 = vld [vmem:[%s5606_s5 + $0xec] sm:$0xf] (%p4616_p6) }
 0x3e8   : > { %3299 = vst [vmem:[%s5606_s5 + $0x2d8] sm:$0xf] %v3171_v50  ;;  %v3395_v50 = vld [vmem:[%s5606_s5 + $0x174] sm:$0xff] (%p4616_p6) }
 0x3e9   : > { %v2294_v52 = vpop.f32.mrf.mxu0  ;;  %3374 = vst [vmem:[%s5900_s7 + $0x1e0] sm:$0xff] (%p4616_p6), %v3373_v48  ;;  %v4263_v48 = vld [vmem:[%s5606_s5 + $0xf8] sm:$0xf] (%p4616_p6) }
 0x3ea   : > { %v2123_v27 = vpop.f32.mrf.mxu3  ;;  %v2463_v6 = vpop.f32.mrf.mxu1  ;;  %3376 = vst [vmem:[%s5900_s7 + $0x1f8] sm:$0xff] (%p4616_p6), %v3375_v53  ;;  %v4265_v53 = vld [vmem:[%s5606_s5 + $0x104] sm:$0xf] (%p4616_p6) }
 0x3eb   : > { %v2124_v4 = vadd.f32 %v2123_v27, %v1954_v41  ;;  %v2464_v13 = vadd.f32 %v2463_v6, %v2294_v52  ;;  %3378 = vst [vmem:[%s5900_s7 + $0x210] sm:$0xff] (%p4616_p6), %v3377_v11  ;;  %v3397_v41 = vld [vmem:[%s5606_s5 + $0x180] sm:$0xff] (%p4616_p6)  ;;  %v3399_v27 = vld [vmem:[%s5606_s5 + $0x18c] sm:$0xff] (%p4616_p6) }
 0x3ec   : > { %3380 = vst [vmem:[%s5900_s7 + $0x228] sm:$0xff] (%p4616_p6), %v3379_v18  ;;  %v3403_v52 = vld [vmem:[%s5606_s5 + $0x1a4] sm:$0xff] (%p4616_p6)  ;;  %v3405_v6 = vld [vmem:[%s5606_s5 + $0x1b0] sm:$0xff] (%p4616_p6)  ;;  %v4269_v18 = vld [vmem:[%s5606_s5 + $0x11c] sm:$0xf] (%p4616_p6) }
 0x3ed   : > { %v3170_v15 = vpack.c.bf16 %v2124_v4, %v6353_v31  ;;  %v3173_v32 = vpack.c.bf16 %v2464_v13, %v2464_v13  ;;  %3382 = vst [vmem:[%s5900_s7 + $0x240] sm:$0xff] (%p4616_p6), %v3381_v61  ;;  %v3401_v4 = vld [vmem:[%s5606_s5 + $0x198] sm:$0xff] (%p4616_p6)  ;;  %v4267_v11 = vld [vmem:[%s5606_s5 + $0x110] sm:$0xf] (%p4616_p6)  ;;  %v4271_v61 = vld [vmem:[%s5606_s5 + $0x128] sm:$0xf] (%p4616_p6) }
 0x3ee   : > { %3384 = vst [vmem:[%s5900_s7 + $0x258] sm:$0xff] (%p4616_p6), %v3383_v8  ;;  %v3407_v31 = vld [vmem:[%s5606_s5 + $0x1bc] sm:$0xff] (%p4616_p6)  ;;  %v3411_v13 = vld [vmem:[%s5606_s5 + $0x1d4] sm:$0xff] (%p4616_p6) }
 0x3ef   : > { %3298 = vst [vmem:[%s5606_s5 + $0x2d0] sm:$0xff] %v3170_v15  ;;  %v1956_v23 = vpop.f32.mrf.mxu2  ;;  %v3409_v15 = vld [vmem:[%s5606_s5 + $0x1c8] sm:$0xff] (%p4616_p6)  ;;  %v4273_v8 = vld [vmem:[%s5606_s5 + $0x134] sm:$0xf] (%p4616_p6) }
 0x3f0   : > { %3301 = vst [vmem:[%s5606_s5 + $0x2e4] sm:$0xf] %v3173_v32  ;;  %v3413_v32 = vld [vmem:[%s5606_s5 + $0x1e0] sm:$0xff] (%p4616_p6) }
 0x3f1   : > { %v2297_v0 = vpop.f32.mrf.mxu0  ;;  %3386 = vst [vmem:[%s5900_s7 + $0x270] sm:$0xff] (%p4616_p6), %v3385_v26  ;;  %v4275_v26 = vld [vmem:[%s5606_s5 + $0x140] sm:$0xf] (%p4616_p6) }
 0x3f2   : > { %v2125_v37 = vpop.f32.mrf.mxu3  ;;  %v2466_v39 = vpop.f32.mrf.mxu1  ;;  %3388 = vst [vmem:[%s5900_s7 + $0x288] sm:$0xff] (%p4616_p6), %v3387_v1  ;;  %v4277_v1 = vld [vmem:[%s5606_s5 + $0x14c] sm:$0xf] (%p4616_p6) }
 0x3f3   : > { %v2126_v12 = vadd.f32 %v2125_v37, %v1956_v23  ;;  %v2467_v56 = vadd.f32 %v2466_v39, %v2297_v0  ;;  %3390 = vst [vmem:[%s5900_s7 + $0x2a0] sm:$0xff] (%p4616_p6), %v3389_v2  ;;  %v3415_v23 = vld [vmem:[%s5606_s5 + $0x1ec] sm:$0xff] (%p4616_p6)  ;;  %v3417_v37 = vld [vmem:[%s5606_s5 + $0x1f8] sm:$0xff] (%p4616_p6) }
 0x3f4   : > { %3392 = vst [vmem:[%s5900_s7 + $0x2b8] sm:$0xff] (%p4616_p6), %v3391_v46  ;;  %v3421_v0 = vld [vmem:[%s5606_s5 + $0x210] sm:$0xff] (%p4616_p6)  ;;  %v3423_v39 = vld [vmem:[%s5606_s5 + $0x21c] sm:$0xff] (%p4616_p6)  ;;  %v4279_v2 = vld [vmem:[%s5606_s5 + $0x158] sm:$0xf] (%p4616_p6) }
 0x3f5   : > { %v3172_v28 = vpack.c.bf16 %v2126_v12, %v6354_v43  ;;  %v3175_v29 = vpack.c.bf16 %v2467_v56, %v2467_v56  ;;  %3394 = vst [vmem:[%s5900_s7 + $0x2d0] sm:$0xff] (%p4616_p6), %v3393_v58  ;;  %v3419_v12 = vld [vmem:[%s5606_s5 + $0x204] sm:$0xff] (%p4616_p6)  ;;  %v4283_v58 = vld [vmem:[%s5606_s5 + $0x170] sm:$0xf] (%p4616_p6) }
 0x3f6   : > { %3396 = vst [vmem:[%s5900_s7 + $0x2e8] sm:$0xff] (%p4616_p6), %v3395_v50  ;;  %v3425_v43 = vld [vmem:[%s5606_s5 + $0x228] sm:$0xff] (%p4616_p6)  ;;  %v3429_v56 = vld [vmem:[%s5606_s5 + $0x240] sm:$0xff] (%p4616_p6)  ;;  %v4285_v50 = vld [vmem:[%s5606_s5 + $0x17c] sm:$0xf] (%p4616_p6) }
 0x3f7   : > { %3300 = vst [vmem:[%s5606_s5 + $0x2dc] sm:$0xff] %v3172_v28  ;;  %v1959_v45 = vpop.f32.mrf.mxu2  ;;  %v3427_v28 = vld [vmem:[%s5606_s5 + $0x234] sm:$0xff] (%p4616_p6)  ;;  %v4281_v46 = vld [vmem:[%s5606_s5 + $0x164] sm:$0xf] (%p4616_p6) }
 0x3f8   : > { %3303 = vst [vmem:[%s5606_s5 + $0x2f0] sm:$0xf] %v3175_v29  ;;  %v3431_v29 = vld [vmem:[%s5606_s5 + $0x24c] sm:$0xff] (%p4616_p6) }
 0x3f9   : > { %v2299_v30 = vpop.f32.mrf.mxu0  ;;  %3398 = vst [vmem:[%s5900_s7 + $0x300] sm:$0xff] (%p4616_p6), %v3397_v41  ;;  %v4287_v41 = vld [vmem:[%s5606_s5 + $0x188] sm:$0xf] (%p4616_p6) }
 0x3fa   : > { %v2128_v9 = vpop.f32.mrf.mxu3  ;;  %v2468_v16 = vpop.f32.mrf.mxu1  ;;  %3400 = vst [vmem:[%s5900_s7 + $0x318] sm:$0xff] (%p4616_p6), %v3399_v27  ;;  %v4289_v27 = vld [vmem:[%s5606_s5 + $0x194] sm:$0xf] (%p4616_p6) }
 0x3fb   : > { %v2129_v34 = vadd.f32 %v2128_v9, %v1959_v45  ;;  %v2469_v63 = vadd.f32 %v2468_v16, %v2299_v30  ;;  %3402 = vst [vmem:[%s5900_s7 + $0x330] sm:$0xff] (%p4616_p6), %v3401_v4  ;;  %v3433_v45 = vld [vmem:[%s5606_s5 + $0x258] sm:$0xff] (%p4616_p6)  ;;  %v3435_v9 = vld [vmem:[%s5606_s5 + $0x264] sm:$0xff] (%p4616_p6)  ;;  %v4291_v4 = vld [vmem:[%s5606_s5 + $0x1a0] sm:$0xf] (%p4616_p6) }
 0x3fc   : > { %3404 = vst [vmem:[%s5900_s7 + $0x348] sm:$0xff] (%p4616_p6), %v3403_v52  ;;  %v3439_v30 = vld [vmem:[%s5606_s5 + $0x27c] sm:$0xff] (%p4616_p6)  ;;  %v3441_v16 = vld [vmem:[%s5606_s5 + $0x288] sm:$0xff] (%p4616_p6) }
 0x3fd   : > { %v3174_v54 = vpack.c.bf16 %v2129_v34, %v6355_v20  ;;  %v3177_v49 = vpack.c.bf16 %v2469_v63, %v2469_v63  ;;  %3406 = vst [vmem:[%s5900_s7 + $0x360] sm:$0xff] (%p4616_p6), %v3405_v6  ;;  %v3437_v34 = vld [vmem:[%s5606_s5 + $0x270] sm:$0xff] (%p4616_p6)  ;;  %v4293_v52 = vld [vmem:[%s5606_s5 + $0x1ac] sm:$0xf] (%p4616_p6)  ;;  %v4295_v6 = vld [vmem:[%s5606_s5 + $0x1b8] sm:$0xf] (%p4616_p6) }
 0x3fe   : > { %3408 = vst [vmem:[%s5900_s7 + $0x378] sm:$0xff] (%p4616_p6), %v3407_v31  ;;  %v3443_v20 = vld [vmem:[%s5606_s5 + $0x294] sm:$0xff] (%p4616_p6)  ;;  %v3447_v63 = vld [vmem:[%s5606_s5 + $0x2ac] sm:$0xff] (%p4616_p6)  ;;  %v4297_v31 = vld [vmem:[%s5606_s5 + $0x1c4] sm:$0xf] (%p4616_p6) }
 0x3ff   : > { %3302 = vst [vmem:[%s5606_s5 + $0x2e8] sm:$0xff] %v3174_v54  ;;  %v1961_v59 = vpop.f32.mrf.mxu2  ;;  %v3445_v54 = vld [vmem:[%s5606_s5 + $0x2a0] sm:$0xff] (%p4616_p6) }
 0x400   : > { %3305 = vst [vmem:[%s5606_s5 + $0x2fc] sm:$0xf] %v3177_v49  ;;  %v3449_v49 = vld [vmem:[%s5606_s5 + $0x2b8] sm:$0xff] (%p4616_p6) }
 0x401   : > { %3410 = vst [vmem:[%s5900_s7 + $0x390] sm:$0xff] (%p4616_p6), %v3409_v15  ;;  %v4299_v15 = vld [vmem:[%s5606_s5 + $0x1d0] sm:$0xf] (%p4616_p6) }
 0x402   : > { %v2130_v21 = vpop.f32.mrf.mxu3  ;;  %3412 = vst [vmem:[%s5900_s7 + $0x3a8] sm:$0xff] (%p4616_p6), %v3411_v13  ;;  %v4301_v13 = vld [vmem:[%s5606_s5 + $0x1dc] sm:$0xf] (%p4616_p6) }
 0x403   : > { %v2131_v3 = vadd.f32 %v2130_v21, %v1961_v59  ;;  %3312 = sbr.rel (!%p4616_p6) target bundleno = 1115 (0x45b), region = 66  ;;  %3414 = vst [vmem:[%s5900_s7 + $0x3c0] sm:$0xff] (%p4616_p6), %v3413_v32  ;;  %v3451_v59 = vld [vmem:[%s5606_s5 + $0x2c4] sm:$0xff] (%p4616_p6)  ;;  %v3453_v21 = vld [vmem:[%s5606_s5 + $0x2d0] sm:$0xff] (%p4616_p6) }
 0x404   : > { %3416 = vst [vmem:[%s5900_s7 + $0x3d8] sm:$0xff] (%p4616_p6), %v3415_v23  ;;  %v4303_v32 = vld [vmem:[%s5606_s5 + $0x1e8] sm:$0xf] (%p4616_p6)  ;;  %v4305_v23 = vld [vmem:[%s5606_s5 + $0x1f4] sm:$0xf] (%p4616_p6) }
 0x405   : > { %v3176_v47 = vpack.c.bf16 %v2131_v3, %v6356_v24  ;;  %3418 = vst [vmem:[%s5900_s7 + $0x3f0] sm:$0xff] (%p4616_p6), %v3417_v37  ;;  %v3455_v3 = vld [vmem:[%s5606_s5 + $0x2dc] sm:$0xff] (%p4616_p6) }
 0x406   : > { %3420 = vst [vmem:[%s5900_s7 + $0x408] sm:$0xff] (%p4616_p6), %v3419_v12  ;;  %v3457_v24 = vld [vmem:[%s5606_s5 + $0x2e8] sm:$0xff] (%p4616_p6)  ;;  %v4307_v37 = vld [vmem:[%s5606_s5 + $0x200] sm:$0xf] (%p4616_p6) }
 0x407   : > { %3304 = vst [vmem:[%s5606_s5 + $0x2f4] sm:$0xff] %v3176_v47  ;;  %v4309_v12 = vld [vmem:[%s5606_s5 + $0x20c] sm:$0xf] (%p4616_p6) }
 0x408   : > { %3422 = vst [vmem:[%s5900_s7 + $0x420] sm:$0xff] %v3421_v0  ;;  %v4311_v0 = vld [vmem:[%s5606_s5 + $0x218] sm:$0xf] }
 0x409   : > { %3424 = vst [vmem:[%s5900_s7 + $0x438] sm:$0xff] %v3423_v39  ;;  %v4313_v39 = vld [vmem:[%s5606_s5 + $0x224] sm:$0xf] }
 0x40a   : > { %3426 = vst [vmem:[%s5900_s7 + $0x450] sm:$0xff] %v3425_v43  ;;  %v4315_v43 = vld [vmem:[%s5606_s5 + $0x230] sm:$0xf] }
 0x40b   : > { %3428 = vst [vmem:[%s5900_s7 + $0x468] sm:$0xff] %v3427_v28  ;;  %v4317_v28 = vld [vmem:[%s5606_s5 + $0x23c] sm:$0xf] }
 0x40c   : > { %3430 = vst [vmem:[%s5900_s7 + $0x480] sm:$0xff] %v3429_v56  ;;  %v4319_v56 = vld [vmem:[%s5606_s5 + $0x248] sm:$0xf] }
 0x40d   : > { %3432 = vst [vmem:[%s5900_s7 + $0x498] sm:$0xff] %v3431_v29  ;;  %v4321_v29 = vld [vmem:[%s5606_s5 + $0x254] sm:$0xf] }
 0x40e   : > { %3434 = vst [vmem:[%s5900_s7 + $0x4b0] sm:$0xff] %v3433_v45  ;;  %v3459_v47 = vld [vmem:[%s5606_s5 + $0x2f4] sm:$0xff]  ;;  %v4323_v45 = vld [vmem:[%s5606_s5 + $0x260] sm:$0xf] }
 0x40f   : > { %3436 = vst [vmem:[%s5900_s7 + $0x4c8] sm:$0xff] %v3435_v9  ;;  %v4325_v9 = vld [vmem:[%s5606_s5 + $0x26c] sm:$0xf] }
 0x410   : > { %3438 = vst [vmem:[%s5900_s7 + $0x4e0] sm:$0xff] %v3437_v34  ;;  %v4327_v34 = vld [vmem:[%s5606_s5 + $0x278] sm:$0xf] }
 0x411   : > { %3440 = vst [vmem:[%s5900_s7 + $0x4f8] sm:$0xff] %v3439_v30  ;;  %v4329_v30 = vld [vmem:[%s5606_s5 + $0x284] sm:$0xf] }
 0x412   : > { %3442 = vst [vmem:[%s5900_s7 + $0x510] sm:$0xff] %v3441_v16  ;;  %v4331_v16 = vld [vmem:[%s5606_s5 + $0x290] sm:$0xf] }
 0x413   : > { %3444 = vst [vmem:[%s5900_s7 + $0x528] sm:$0xff] %v3443_v20  ;;  %v4333_v20 = vld [vmem:[%s5606_s5 + $0x29c] sm:$0xf] }
 0x414   : > { %3446 = vst [vmem:[%s5900_s7 + $0x540] sm:$0xff] %v3445_v54  ;;  %v4335_v54 = vld [vmem:[%s5606_s5 + $0x2a8] sm:$0xf] }
 0x415   : > { %3448 = vst [vmem:[%s5900_s7 + $0x558] sm:$0xff] %v3447_v63  ;;  %v4337_v63 = vld [vmem:[%s5606_s5 + $0x2b4] sm:$0xf] }
 0x416   : > { %3450 = vst [vmem:[%s5900_s7 + $0x570] sm:$0xff] %v3449_v49  ;;  %v4339_v49 = vld [vmem:[%s5606_s5 + $0x2c0] sm:$0xf] }
 0x417   : > { %3452 = vst [vmem:[%s5900_s7 + $0x588] sm:$0xff] %v3451_v59  ;;  %v4341_v59 = vld [vmem:[%s5606_s5 + $0x2cc] sm:$0xf] }
 0x418   : > { %3454 = vst [vmem:[%s5900_s7 + $0x5a0] sm:$0xff] %v3453_v21  ;;  %v4343_v21 = vld [vmem:[%s5606_s5 + $0x2d8] sm:$0xf] }
 0x419   : > { %3456 = vst [vmem:[%s5900_s7 + $0x5b8] sm:$0xff] %v3455_v3  ;;  %v4345_v3 = vld [vmem:[%s5606_s5 + $0x2e4] sm:$0xf] }
 0x41a   : > { %3458 = vst [vmem:[%s5900_s7 + $0x5d0] sm:$0xff] %v3457_v24  ;;  %v4347_v24 = vld [vmem:[%s5606_s5 + $0x2f0] sm:$0xf] }
 0x41b   : > { %3460 = vst [vmem:[%s5900_s7 + $0x5e8] sm:$0xff] %v3459_v47  ;;  %v4349_v47 = vld [vmem:[%s5606_s5 + $0x2fc] sm:$0xf] }
 0x41c   : > { %4226 = vst [vmem:[%s5900_s7 + $0x20] sm:$0xf] %v4225_v40 }
 0x41d   : > { %4228 = vst [vmem:[%s5900_s7 + $0x38] sm:$0xf] %v4227_v36 }
 0x41e   : > { %4230 = vst [vmem:[%s5900_s7 + $0x50] sm:$0xf] %v4229_v5 }
 0x41f   : > { %4232 = vst [vmem:[%s5900_s7 + $0x68] sm:$0xf] %v4231_v17 }
 0x420   : > { %4234 = vst [vmem:[%s5900_s7 + $0x80] sm:$0xf] %v4233_v38 }
 0x421   : > { %4236 = vst [vmem:[%s5900_s7 + $0x98] sm:$0xf] %v4235_v22 }
 0x422   : > { %4238 = vst [vmem:[%s5900_s7 + $0xb0] sm:$0xf] %v4237_v42 }
 0x423   : > { %4240 = vst [vmem:[%s5900_s7 + $0xc8] sm:$0xf] %v4239_v44 }
 0x424   : > { %4242 = vst [vmem:[%s5900_s7 + $0xe0] sm:$0xf] %v4241_v14 }
 0x425   : > { %4244 = vst [vmem:[%s5900_s7 + $0xf8] sm:$0xf] %v4243_v10 }
 0x426   : > { %4246 = vst [vmem:[%s5900_s7 + $0x110] sm:$0xf] %v4245_v57 }
 0x427   : > { %4248 = vst [vmem:[%s5900_s7 + $0x128] sm:$0xf] %v4247_v33 }
 0x428   : > { %4250 = vst [vmem:[%s5900_s7 + $0x140] sm:$0xf] %v4249_v35 }
 0x429   : > { %4252 = vst [vmem:[%s5900_s7 + $0x158] sm:$0xf] %v4251_v7 }
 0x42a   : > { %4254 = vst [vmem:[%s5900_s7 + $0x170] sm:$0xf] %v4253_v19 }
 0x42b   : > { %4256 = vst [vmem:[%s5900_s7 + $0x188] sm:$0xf] %v4255_v25 }
 0x42c   : > { %4258 = vst [vmem:[%s5900_s7 + $0x1a0] sm:$0xf] %v4257_v62 }
 0x42d   : > { %4260 = vst [vmem:[%s5900_s7 + $0x1b8] sm:$0xf] %v4259_v55 }
 0x42e   : > { %4262 = vst [vmem:[%s5900_s7 + $0x1d0] sm:$0xf] %v4261_v60 }
 0x42f   : > { %4264 = vst [vmem:[%s5900_s7 + $0x1e8] sm:$0xf] %v4263_v48 }
 0x430   : > { %4266 = vst [vmem:[%s5900_s7 + $0x200] sm:$0xf] %v4265_v53 }
 0x431   : > { %4268 = vst [vmem:[%s5900_s7 + $0x218] sm:$0xf] %v4267_v11 }
 0x432   : > { %4270 = vst [vmem:[%s5900_s7 + $0x230] sm:$0xf] %v4269_v18 }
 0x433   : > { %4272 = vst [vmem:[%s5900_s7 + $0x248] sm:$0xf] %v4271_v61 }
 0x434   : > { %4274 = vst [vmem:[%s5900_s7 + $0x260] sm:$0xf] %v4273_v8 }
 0x435   : > { %4276 = vst [vmem:[%s5900_s7 + $0x278] sm:$0xf] %v4275_v26 }
 0x436   : > { %4278 = vst [vmem:[%s5900_s7 + $0x290] sm:$0xf] %v4277_v1 }
 0x437   : > { %4280 = vst [vmem:[%s5900_s7 + $0x2a8] sm:$0xf] %v4279_v2 }
 0x438   : > { %4282 = vst [vmem:[%s5900_s7 + $0x2c0] sm:$0xf] %v4281_v46 }
 0x439   : > { %4284 = vst [vmem:[%s5900_s7 + $0x2d8] sm:$0xf] %v4283_v58 }
 0x43a   : > { %4286 = vst [vmem:[%s5900_s7 + $0x2f0] sm:$0xf] %v4285_v50 }
 0x43b   : > { %4288 = vst [vmem:[%s5900_s7 + $0x308] sm:$0xf] %v4287_v41 }
 0x43c   : > { %4290 = vst [vmem:[%s5900_s7 + $0x320] sm:$0xf] %v4289_v27 }
 0x43d   : > { %4292 = vst [vmem:[%s5900_s7 + $0x338] sm:$0xf] %v4291_v4 }
 0x43e   : > { %4294 = vst [vmem:[%s5900_s7 + $0x350] sm:$0xf] %v4293_v52 }
 0x43f   : > { %4296 = vst [vmem:[%s5900_s7 + $0x368] sm:$0xf] %v4295_v6 }
 0x440   : > { %4298 = vst [vmem:[%s5900_s7 + $0x380] sm:$0xf] %v4297_v31 }
 0x441   : > { %4300 = vst [vmem:[%s5900_s7 + $0x398] sm:$0xf] %v4299_v15 }
 0x442   : > { %4302 = vst [vmem:[%s5900_s7 + $0x3b0] sm:$0xf] %v4301_v13 }
 0x443   : > { %4304 = vst [vmem:[%s5900_s7 + $0x3c8] sm:$0xf] %v4303_v32 }
 0x444   : > { %4306 = vst [vmem:[%s5900_s7 + $0x3e0] sm:$0xf] %v4305_v23 }
 0x445   : > { %4308 = vst [vmem:[%s5900_s7 + $0x3f8] sm:$0xf] %v4307_v37 }
 0x446   : > { %4310 = vst [vmem:[%s5900_s7 + $0x410] sm:$0xf] %v4309_v12 }
 0x447   : > { %4312 = vst [vmem:[%s5900_s7 + $0x428] sm:$0xf] %v4311_v0 }
 0x448   : > { %4314 = vst [vmem:[%s5900_s7 + $0x440] sm:$0xf] %v4313_v39 }
 0x449   : > { %4316 = vst [vmem:[%s5900_s7 + $0x458] sm:$0xf] %v4315_v43 }
 0x44a   : > { %4318 = vst [vmem:[%s5900_s7 + $0x470] sm:$0xf] %v4317_v28 }
 0x44b   : > { %4320 = vst [vmem:[%s5900_s7 + $0x488] sm:$0xf] %v4319_v56 }
 0x44c   : > { %4322 = vst [vmem:[%s5900_s7 + $0x4a0] sm:$0xf] %v4321_v29 }
 0x44d   : > { %4324 = vst [vmem:[%s5900_s7 + $0x4b8] sm:$0xf] %v4323_v45 }
 0x44e   : > { %4326 = vst [vmem:[%s5900_s7 + $0x4d0] sm:$0xf] %v4325_v9 }
 0x44f   : > { %4328 = vst [vmem:[%s5900_s7 + $0x4e8] sm:$0xf] %v4327_v34 }
 0x450   : > { %4330 = vst [vmem:[%s5900_s7 + $0x500] sm:$0xf] %v4329_v30 }
 0x451   : > { %4332 = vst [vmem:[%s5900_s7 + $0x518] sm:$0xf] %v4331_v16 }
 0x452   : > { %4334 = vst [vmem:[%s5900_s7 + $0x530] sm:$0xf] %v4333_v20 }
 0x453   : > { %4336 = vst [vmem:[%s5900_s7 + $0x548] sm:$0xf] %v4335_v54 }
 0x454   : > { %4338 = vst [vmem:[%s5900_s7 + $0x560] sm:$0xf] %v4337_v63 }
 0x455   : > { %4340 = vst [vmem:[%s5900_s7 + $0x578] sm:$0xf] %v4339_v49 }
 0x456   : > { %4342 = vst [vmem:[%s5900_s7 + $0x590] sm:$0xf] %v4341_v59 }
 0x457   : > { %4344 = vst [vmem:[%s5900_s7 + $0x5a8] sm:$0xf] %v4343_v21 }
 0x458   : > { %4346 = vst [vmem:[%s5900_s7 + $0x5c0] sm:$0xf] %v4345_v3 }
 0x459   : > { %4348 = vst [vmem:[%s5900_s7 + $0x5d8] sm:$0xf] %v4347_v24 }
 0x45a   : > { %4350 = vst [vmem:[%s5900_s7 + $0x5f0] sm:$0xf] %v4349_v47 }
 0x45b PF: > { %s12_s13 = sadd.s32 1, %s4564_s13   ;;  %s6357_s9 = smov %s4552_s10 }
 0x45c   : > { %p9_p11 = scmp.ge.s32.totalorder %s12_s13, 4   ;;  %s6358_s10 = smov %s4621_s19 }
 0x45d   : > { %s6359_s11 = smov %s4560_s12  ;;  %s6360_s12 = smov %s6362_s14 }
 0x45e   :  { %11 = sbr.rel (!%p9_p11) target bundleno = 3 (0x3), region = 138 }

</bundles_post_ra>
